<compile_context>
chip_gen: v6e
topology: v6e:2x2x1
jax: 0.10.0
libtpu: 0.0.40
codegen_flags: <defaults>
</compile_context>

<pallas_src>
import functools
import math

import jax
import jax.numpy as jnp
from jax import lax
from jax.experimental import pallas as pl
from jax.experimental.pallas import tpu as pltpu

LN_EPS = 1e-5
BN_EPS = 1e-5

_DN_T = (((1,), (1,)), ((), ()))  # contract last dims of both operands (A @ B^T)


# ----------------------------- in-kernel helpers -----------------------------

def _softmax_last(x):
    m = jnp.max(x, axis=-1, keepdims=True)
    e = jnp.exp(x - m)
    return e * pl.reciprocal(jnp.sum(e, axis=-1, keepdims=True), approx=True)


def _layer_norm(x, g, b):
    mu = jnp.mean(x, axis=-1, keepdims=True)
    xc = x - mu
    var = jnp.mean(xc * xc, axis=-1, keepdims=True)
    return xc * lax.rsqrt(var + LN_EPS) * g + b


def _bn_eval(u, g, b, rm, rv):
    # eval-mode BatchNorm2d (single channel, scalar stats from SMEM)
    return (u - rm) * (g / jnp.sqrt(rv + BN_EPS)) + b


def _transpose_last2(x):
    # [B, M, N] -> [B, N, M] via per-batch 2-D transposes (B is a tiny static size).
    return jnp.stack([jnp.transpose(x[i]) for i in range(x.shape[0])], axis=0)


def _mha(x, in_w, in_b, out_w, out_b, num_heads):
    """nn.MultiheadAttention forward (q=k=v=x), batched over the leading axis.

    x: [B, T, E]; in_w: [3E, E]; in_b: [1, 3E]; out_w: [E, E]; out_b: [1, E]
    """
    bsz, t_len, e = x.shape
    dh = e // num_heads
    scale = 1.0 / math.sqrt(dh)
    # One fused QKV projection over the whole batch: [B*T, E] x [3E, E]^T.
    x2 = x.reshape(bsz * t_len, e)
    qkv = lax.dot_general(x2, in_w, _DN_T, preferred_element_type=jnp.float32) + in_b
    qkv = qkv.reshape(bsz, t_len, 3 * e)
    # Heads: batched-over-B score / PV einsums; the head concat is folded into the
    # output projection by accumulating per-head partial out-projections.
    acc = jnp.zeros((bsz * t_len, e), jnp.float32)
    for h in range(num_heads):
        lo = h * dh
        qh = qkv[:, :, lo:lo + dh] * scale
        kh = qkv[:, :, e + lo:e + lo + dh]
        vh = qkv[:, :, 2 * e + lo:2 * e + lo + dh]
        s = jnp.einsum('bqd,bkd->bqk', qh, kh, preferred_element_type=jnp.float32)
        p = _softmax_last(s)
        oh = jnp.einsum('bqk,bkd->bqd', p, vh, preferred_element_type=jnp.float32)
        acc = acc + lax.dot_general(oh.reshape(bsz * t_len, dh), out_w[:, lo:lo + dh],
                                    _DN_T, preferred_element_type=jnp.float32)
    return (acc + out_b).reshape(bsz, t_len, e)


def _conv_toeplitz(c, t_ref, l, bias):
    """Zero-padded 'same' KxK single-channel conv as K row-shifts + K [D,D] Toeplitz matmuls."""
    bsz, s_len, d = c.shape
    ksz = t_ref.shape[1]
    r = ksz // 2
    zpad = jnp.zeros((bsz, r, d), jnp.float32)
    cp = jnp.concatenate([zpad, c, zpad], axis=1)           # zero pad along the seq axis
    acc = jnp.zeros((bsz * s_len, d), jnp.float32)
    for m in range(ksz):
        xm = cp[:, m:m + s_len, :].reshape(bsz * s_len, d)  # row shift by (m - r)
        acc = acc + jnp.dot(xm, t_ref[l, m], preferred_element_type=jnp.float32)
    return acc.reshape(bsz, s_len, d) + bias


# --------------------------------- kernel ------------------------------------

def transformer_kernel(x_ref, pe_ref,
                       in_w1_ref, in_b1_ref, out_w1_ref, out_b1_ref,
                       in_w2_ref, in_b2_ref, out_w2_ref, out_b2_ref,
                       ln_ref, t3_ref, t5_ref, sc_ref,
                       o_ref, *, heads, heads_t, num_layers):
    # positional encoding: pe table precomputed outside (input-independent)
    y = x_ref[...] + pe_ref[...]                             # [B, S, D]

    for l in range(num_layers):
        # self-attention over d_model (batched over B)
        a1 = _mha(y, in_w1_ref[l], in_b1_ref[l], out_w1_ref[l], out_b1_ref[l], heads)
        # self-attention over seq_len on transposed input, transposed back
        yt = _transpose_last2(y)                             # [B, D, S]
        a2 = _transpose_last2(
            _mha(yt, in_w2_ref[l], in_b2_ref[l], out_w2_ref[l], out_b2_ref[l], heads_t))

        ln = ln_ref[l]  # [4, D]: attn_norm g, attn_norm b, final_norm g, final_norm b
        z = _layer_norm(y + a1 + a2, ln[0:1, :], ln[1:2, :])

        # CNN block (single channel). sc_ref[l] layout:
        # [c1_w, c1_b, bn1_g, bn1_b, bn1_rm, bn1_rv,
        #  c2_b, bn2_g, bn2_b, bn2_rm, bn2_rv,
        #  c3_b, bn3_g, bn3_b, bn3_rm, bn3_rv]
        c = sc_ref[l, 0] * z + sc_ref[l, 1]                  # 1x1 conv
        c = jnp.maximum(_bn_eval(c, sc_ref[l, 2], sc_ref[l, 3], sc_ref[l, 4], sc_ref[l, 5]), 0.0)
        c = _conv_toeplitz(c, t3_ref, l, sc_ref[l, 6])       # 3x3 conv, pad 1 (as matmuls)
        c = jnp.maximum(_bn_eval(c, sc_ref[l, 7], sc_ref[l, 8], sc_ref[l, 9], sc_ref[l, 10]), 0.0)
        c = _conv_toeplitz(c, t5_ref, l, sc_ref[l, 11])      # 5x5 conv, pad 2 (as matmuls)
        c = jnp.maximum(_bn_eval(c, sc_ref[l, 12], sc_ref[l, 13], sc_ref[l, 14], sc_ref[l, 15]), 0.0)
        # TODO(synk): dropout layers are identity (inference-mode forward pass).

        y = _layer_norm(z + c, ln[2:3, :], ln[3:4, :])

    o_ref[...] = y


# --------------------------------- wrapper ------------------------------------

def transformer_forward(x, pe, packed, heads, heads_t, num_layers):
    b, s, d = x.shape
    kernel = functools.partial(transformer_kernel, heads=heads, heads_t=heads_t,
                               num_layers=num_layers)
    vmem = lambda: pl.BlockSpec(memory_space=pltpu.MemorySpace.VMEM)
    smem = lambda: pl.BlockSpec(memory_space=pltpu.MemorySpace.SMEM)
    return pl.pallas_call(
        kernel,
        out_shape=jax.ShapeDtypeStruct((b, s, d), jnp.float32),
        in_specs=[vmem() for _ in range(13)] + [smem()],
        out_specs=vmem(),
    )(x, pe,
      packed["in_w1"], packed["in_b1"], packed["out_w1"], packed["out_b1"],
      packed["in_w2"], packed["in_b2"], packed["out_w2"], packed["out_b2"],
      packed["ln"], packed["t3"], packed["t5"], packed["sc"])


# --------------------------- host-side preprocessing ---------------------------

def _toeplitz_from_conv(w, d):
    """[K,K] conv kernel -> [K, d, d] banded matrices: T[m,a,j] = w[m, a-j+r] (else 0)."""
    ksz = w.shape[0]
    r = ksz // 2
    a_idx = jnp.arange(d)[:, None]
    j_idx = jnp.arange(d)[None, :]
    n = a_idx - j_idx + r
    valid = (n >= 0) & (n < ksz)
    t = w[:, jnp.clip(n, 0, ksz - 1)]                       # [K, d, d]
    return jnp.where(valid[None], t, 0.0).astype(jnp.float32)


def compute_pos_table(pos_p):
    a = pos_p["positions"] - pos_p["mu"]
    log_p = -(a * a) / (2.0 * pos_p["sigma"] ** 2) - jnp.log(pos_p["sigma"])
    pdfs = jax.nn.softmax(log_p, axis=1)
    return pdfs @ pos_p["emb"]                              # [S, D]


def pack_params(layer_ps, d_model):
    stack = lambda key: jnp.stack([p[key] for p in layer_ps], axis=0)
    return {
        "in_w1": stack("in_w1"),
        "in_b1": jnp.stack([p["in_b1"].reshape(1, -1) for p in layer_ps], axis=0),
        "out_w1": stack("out_w1"),
        "out_b1": stack("out_b1"),
        "in_w2": stack("in_w2"),
        "in_b2": jnp.stack([p["in_b2"].reshape(1, -1) for p in layer_ps], axis=0),
        "out_w2": stack("out_w2"),
        "out_b2": stack("out_b2"),
        "ln": stack("ln"),
        "t3": jnp.stack([_toeplitz_from_conv(p["conv3"], d_model) for p in layer_ps], axis=0),
        "t5": jnp.stack([_toeplitz_from_conv(p["conv5"], d_model) for p in layer_ps], axis=0),
        "sc": stack("sc"),
    }


# ------------------------------ parameter init --------------------------------

def init_pos_params(key, k, d_model, seq_len):
    a = math.sqrt(6.0 / (k + d_model))  # xavier_uniform
    emb = jax.random.uniform(key, (k, d_model), jnp.float32, -a, a)
    positions = jnp.tile(jnp.arange(seq_len, dtype=jnp.float32)[:, None], (1, k))
    interval = seq_len / k
    mu = (jnp.arange(k, dtype=jnp.float32) * interval)[None, :]
    sigma = jnp.full((1, k), 50.0, jnp.float32)
    return dict(emb=emb, positions=positions, mu=mu, sigma=sigma)


def init_layer_params(key, d_model, seq_len):
    ks = jax.random.split(key, 10)
    sc = 0.1
    p = {
        "in_w1": jax.random.normal(ks[0], (3 * d_model, d_model), jnp.float32) * sc,
        "in_b1": jax.random.normal(ks[1], (3, d_model), jnp.float32) * sc,
        "out_w1": jax.random.normal(ks[2], (d_model, d_model), jnp.float32) * sc,
        "out_b1": jax.random.normal(ks[3], (1, d_model), jnp.float32) * sc,
        "in_w2": jax.random.normal(ks[4], (3 * seq_len, seq_len), jnp.float32) * sc,
        "in_b2": jax.random.normal(ks[5], (3, seq_len), jnp.float32) * sc,
        "out_w2": jax.random.normal(ks[6], (seq_len, seq_len), jnp.float32) * sc,
        "out_b2": jax.random.normal(ks[7], (1, seq_len), jnp.float32) * sc,
        "ln": jnp.concatenate([jnp.ones((1, d_model), jnp.float32),
                               jnp.zeros((1, d_model), jnp.float32),
                               jnp.ones((1, d_model), jnp.float32),
                               jnp.zeros((1, d_model), jnp.float32)], axis=0),
        "conv3": jax.random.normal(ks[8], (3, 3), jnp.float32) * sc,
        "conv5": jax.random.normal(ks[9], (5, 5), jnp.float32) * sc,
    }
    bn_default = [1.0, 0.0, 0.0, 1.0]  # gamma, beta, running_mean, running_var
    p["sc"] = jnp.array([0.5, 0.01] + bn_default + [0.01] + bn_default + [0.01] + bn_default,
                        dtype=jnp.float32)
    return p


# ------------------------------ pure-JAX reference -----------------------------

def _ref_ln(x, g, b):
    mu = jnp.mean(x, -1, keepdims=True)
    var = jnp.mean((x - mu) ** 2, -1, keepdims=True)
    return (x - mu) / jnp.sqrt(var + LN_EPS) * g + b


def _ref_mha(x, in_w, in_b, out_w, out_b, num_heads):
    s_len, e = x.shape
    dh = e // num_heads
    q = x @ in_w[:e].T + in_b[0]
    k = x @ in_w[e:2 * e].T + in_b[1]
    v = x @ in_w[2 * e:].T + in_b[2]
    q = q.reshape(s_len, num_heads, dh).transpose(1, 0, 2)
    k = k.reshape(s_len, num_heads, dh).transpose(1, 0, 2)
    v = v.reshape(s_len, num_heads, dh).transpose(1, 0, 2)
    s = jnp.einsum('hqd,hkd->hqk', q, k) / math.sqrt(dh)
    p = jax.nn.softmax(s, axis=-1)
    o = jnp.einsum('hqk,hkd->hqd', p, v).transpose(1, 0, 2).reshape(s_len, e)
    return o @ out_w.T + out_b[0]


def _ref_conv(x, w, b):
    r = w.shape[0] // 2
    xp = jnp.pad(x, ((r, r), (r, r)))
    out = jnp.zeros_like(x)
    for m in range(w.shape[0]):
        for n in range(w.shape[1]):
            out = out + w[m, n] * xp[m:m + x.shape[0], n:n + x.shape[1]]
    return out + b


def _ref_layer(x, p, heads, heads_t):
    def per_batch(xb):
        a1 = _ref_mha(xb, p["in_w1"], p["in_b1"], p["out_w1"], p["out_b1"], heads)
        a2 = _ref_mha(xb.T, p["in_w2"], p["in_b2"], p["out_w2"], p["out_b2"], heads_t).T
        ln = p["ln"]
        y = _ref_ln(xb + a1 + a2, ln[0], ln[1])
        sc = p["sc"]

        def bn(z, g, b, rm, rv):
            return (z - rm) / jnp.sqrt(rv + BN_EPS) * g + b

        c = jnp.maximum(bn(sc[0] * y + sc[1], sc[2], sc[3], sc[4], sc[5]), 0.0)
        c = jnp.maximum(bn(_ref_conv(c, p["conv3"], sc[6]), sc[7], sc[8], sc[9], sc[10]), 0.0)
        c = jnp.maximum(bn(_ref_conv(c, p["conv5"], sc[11]), sc[12], sc[13], sc[14], sc[15]), 0.0)
        return _ref_ln(y + c, ln[2], ln[3])

    return jax.vmap(per_batch)(x)


def _ref_transformer(x, pos_p, layer_ps, heads, heads_t):
    a = pos_p["positions"] - pos_p["mu"]
    log_p = -(a * a) / (2.0 * pos_p["sigma"] ** 2) - jnp.log(pos_p["sigma"])
    pdfs = jax.nn.softmax(log_p, axis=1)
    y = x + (pdfs @ pos_p["emb"])[None]
    for p in layer_ps:
        y = _ref_layer(y, p, heads, heads_t)
    return y


# ----------------------------------- main --------------------------------------

if __name__ == "__main__":
    B, SEQ_LEN, D_MODEL, K = 2, 16, 32, 8
    HEADS, HEADS_T, NUM_LAYER = 4, 4, 2

    key = jax.random.PRNGKey(0)
    k_in, k_pos, *k_layers = jax.random.split(key, 2 + NUM_LAYER)
    x = jax.random.normal(k_in, (B, SEQ_LEN, D_MODEL), jnp.float32)

    pos_params = init_pos_params(k_pos, K, D_MODEL, SEQ_LEN)
    layer_params = [init_layer_params(k_layers[i], D_MODEL, SEQ_LEN) for i in range(NUM_LAYER)]

    pe = compute_pos_table(pos_params)          # [S, D], input-independent, hoisted
    packed = pack_params(layer_params, D_MODEL)  # stacked-per-layer weights + Toeplitz convs

    fwd = jax.jit(functools.partial(transformer_forward,
                                    heads=HEADS, heads_t=HEADS_T, num_layers=NUM_LAYER))
    out = fwd(x, pe, packed)
    out = jax.block_until_ready(out)

    ref = _ref_transformer(x, pos_params, layer_params, HEADS, HEADS_T)
    assert out.shape == (B, SEQ_LEN, D_MODEL)
    assert bool(jnp.all(jnp.isfinite(out)))
    assert bool(jnp.allclose(out, ref, rtol=5e-2, atol=5e-2))
    print("KERNEL_OK")
</pallas_src>

<mosaic_0001>
module attributes {stable_mosaic.version = 11 : i64} {
  func.func @transformer_kernel(%arg0: memref<2x16x32xf32, #tpu.memory_space<vmem>>, %arg1: memref<16x32xf32, #tpu.memory_space<vmem>>, %arg2: memref<2x96x32xf32, #tpu.memory_space<vmem>>, %arg3: memref<2x1x96xf32, #tpu.memory_space<vmem>>, %arg4: memref<2x32x32xf32, #tpu.memory_space<vmem>>, %arg5: memref<2x1x32xf32, #tpu.memory_space<vmem>>, %arg6: memref<2x48x16xf32, #tpu.memory_space<vmem>>, %arg7: memref<2x1x48xf32, #tpu.memory_space<vmem>>, %arg8: memref<2x16x16xf32, #tpu.memory_space<vmem>>, %arg9: memref<2x1x16xf32, #tpu.memory_space<vmem>>, %arg10: memref<2x4x32xf32, #tpu.memory_space<vmem>>, %arg11: memref<2x3x32x32xf32, #tpu.memory_space<vmem>>, %arg12: memref<2x5x32x32xf32, #tpu.memory_space<vmem>>, %arg13: memref<2x16xf32, #tpu.memory_space<smem>>, %arg14: memref<2x16x32xf32, #tpu.memory_space<vmem>>) attributes {dimension_semantics = [], scalar_prefetch = 0 : i64, scratch_operands = 0 : i64, tpu.core_type = #tpu.core_type<tc>} {
    %c0 = arith.constant 0 : index
    %c0_0 = arith.constant 0 : index
    %c0_1 = arith.constant 0 : index
    %0 = vector.load %arg0[%c0, %c0_0, %c0_1] : memref<2x16x32xf32, #tpu.memory_space<vmem>>, vector<2x16x32xf32>
    %c0_2 = arith.constant 0 : index
    %c0_3 = arith.constant 0 : index
    %1 = vector.load %arg1[%c0_2, %c0_3] : memref<16x32xf32, #tpu.memory_space<vmem>>, vector<16x32xf32>
    %2 = vector.shape_cast %1 : vector<16x32xf32> to vector<1x16x32xf32>
    %3 = vector.broadcast %2 : vector<1x16x32xf32> to vector<2x16x32xf32>
    %4 = arith.addf %0, %3 : vector<2x16x32xf32>
    %c0_4 = arith.constant 0 : index
    %c0_5 = arith.constant 0 : index
    %c0_6 = arith.constant 0 : index
    %5 = vector.load %arg2[%c0_4, %c0_5, %c0_6] : memref<2x96x32xf32, #tpu.memory_space<vmem>>, vector<1x96x32xf32>
    %6 = vector.shape_cast %5 : vector<1x96x32xf32> to vector<96x32xf32>
    %c0_7 = arith.constant 0 : index
    %c0_8 = arith.constant 0 : index
    %c0_9 = arith.constant 0 : index
    %7 = vector.load %arg3[%c0_7, %c0_8, %c0_9] : memref<2x1x96xf32, #tpu.memory_space<vmem>>, vector<1x1x96xf32>
    %8 = vector.shape_cast %7 : vector<1x1x96xf32> to vector<1x96xf32>
    %c0_10 = arith.constant 0 : index
    %c0_11 = arith.constant 0 : index
    %c0_12 = arith.constant 0 : index
    %9 = vector.load %arg4[%c0_10, %c0_11, %c0_12] : memref<2x32x32xf32, #tpu.memory_space<vmem>>, vector<1x32x32xf32>
    %10 = vector.shape_cast %9 : vector<1x32x32xf32> to vector<32x32xf32>
    %c0_13 = arith.constant 0 : index
    %c0_14 = arith.constant 0 : index
    %c0_15 = arith.constant 0 : index
    %11 = vector.load %arg5[%c0_13, %c0_14, %c0_15] : memref<2x1x32xf32, #tpu.memory_space<vmem>>, vector<1x1x32xf32>
    %12 = vector.shape_cast %11 : vector<1x1x32xf32> to vector<1x32xf32>
    %13 = vector.shape_cast %4 : vector<2x16x32xf32> to vector<32x32xf32>
    %cst = arith.constant dense<0.000000e+00> : vector<32x96xf32>
    %14 = tpu.matmul %13, %6, %cst {dimension_numbers = #tpu.dot_dimension_numbers<[1], [1], [0], [0], [0, 0, 1, 0], [], []>} : vector<32x32xf32>, vector<96x32xf32>, vector<32x96xf32> -> vector<32x96xf32>
    %15 = vector.broadcast %8 : vector<1x96xf32> to vector<32x96xf32>
    %16 = arith.addf %14, %15 : vector<32x96xf32>
    %17 = vector.shape_cast %16 : vector<32x96xf32> to vector<2x16x96xf32>
    %cst_16 = arith.constant 0.000000e+00 : f32
    %18 = vector.broadcast %cst_16 : f32 to vector<32x32xf32>
    %19 = vector.extract_strided_slice %17 {offsets = [0, 0, 0], sizes = [2, 16, 8], strides = [1, 1, 1]} : vector<2x16x96xf32> to vector<2x16x8xf32>
    %cst_17 = arith.constant 0.353553385 : f32
    %20 = vector.broadcast %cst_17 : f32 to vector<2x16x8xf32>
    %21 = arith.mulf %19, %20 : vector<2x16x8xf32>
    %22 = vector.extract_strided_slice %17 {offsets = [0, 0, 32], sizes = [2, 16, 8], strides = [1, 1, 1]} : vector<2x16x96xf32> to vector<2x16x8xf32>
    %23 = vector.extract_strided_slice %17 {offsets = [0, 0, 64], sizes = [2, 16, 8], strides = [1, 1, 1]} : vector<2x16x96xf32> to vector<2x16x8xf32>
    "tpu.trace_start"() <{level = 10 : i32, message = "bqd,bkd->bqk"}> : () -> ()
    %cst_18 = arith.constant dense<0.000000e+00> : vector<2x16x16xf32>
    %24 = tpu.matmul %21, %22, %cst_18 {dimension_numbers = #tpu.dot_dimension_numbers<[2], [2], [1], [1], [0, 0, 0, 1, 1, 1], [0], [0]>} : vector<2x16x8xf32>, vector<2x16x8xf32>, vector<2x16x16xf32> -> vector<2x16x16xf32>
    "tpu.trace_stop"() : () -> ()
    %cst_19 = arith.constant dense<0xFF800000> : vector<2x16xf32>
    %25 = vector.multi_reduction <maximumf>, %24, %cst_19 [2] : vector<2x16x16xf32> to vector<2x16xf32>
    %26 = vector.shape_cast %25 : vector<2x16xf32> to vector<2x16x1xf32>
    %27 = vector.broadcast %26 : vector<2x16x1xf32> to vector<2x16x16xf32>
    %28 = arith.subf %24, %27 : vector<2x16x16xf32>
    %29 = math.exp %28 : vector<2x16x16xf32>
    %cst_20 = arith.constant dense<0.000000e+00> : vector<2x16xf32>
    %30 = vector.multi_reduction <add>, %29, %cst_20 [2] : vector<2x16x16xf32> to vector<2x16xf32>
    %31 = vector.shape_cast %30 : vector<2x16xf32> to vector<2x16x1xf32>
    %32 = tpu.reciprocal %31 {approx = true} : vector<2x16x1xf32> -> vector<2x16x1xf32>
    %33 = vector.broadcast %32 : vector<2x16x1xf32> to vector<2x16x16xf32>
    %34 = arith.mulf %29, %33 : vector<2x16x16xf32>
    "tpu.trace_start"() <{level = 10 : i32, message = "bqk,bkd->bqd"}> : () -> ()
    %cst_21 = arith.constant dense<0.000000e+00> : vector<2x16x8xf32>
    %35 = tpu.matmul %34, %23, %cst_21 {dimension_numbers = #tpu.dot_dimension_numbers<[2], [1], [1], [2], [0, 0, 0, 1, 1, 2], [0], [0]>} : vector<2x16x16xf32>, vector<2x16x8xf32>, vector<2x16x8xf32> -> vector<2x16x8xf32>
    "tpu.trace_stop"() : () -> ()
    %36 = vector.shape_cast %35 : vector<2x16x8xf32> to vector<32x8xf32>
    %37 = vector.extract_strided_slice %10 {offsets = [0, 0], sizes = [32, 8], strides = [1, 1]} : vector<32x32xf32> to vector<32x8xf32>
    %cst_22 = arith.constant dense<0.000000e+00> : vector<32x32xf32>
    %38 = tpu.matmul %36, %37, %cst_22 {dimension_numbers = #tpu.dot_dimension_numbers<[1], [1], [0], [0], [0, 0, 1, 0], [], []>} : vector<32x8xf32>, vector<32x8xf32>, vector<32x32xf32> -> vector<32x32xf32>
    %39 = arith.addf %18, %38 : vector<32x32xf32>
    %40 = vector.extract_strided_slice %17 {offsets = [0, 0, 8], sizes = [2, 16, 8], strides = [1, 1, 1]} : vector<2x16x96xf32> to vector<2x16x8xf32>
    %cst_23 = arith.constant 0.353553385 : f32
    %41 = vector.broadcast %cst_23 : f32 to vector<2x16x8xf32>
    %42 = arith.mulf %40, %41 : vector<2x16x8xf32>
    %43 = vector.extract_strided_slice %17 {offsets = [0, 0, 40], sizes = [2, 16, 8], strides = [1, 1, 1]} : vector<2x16x96xf32> to vector<2x16x8xf32>
    %44 = vector.extract_strided_slice %17 {offsets = [0, 0, 72], sizes = [2, 16, 8], strides = [1, 1, 1]} : vector<2x16x96xf32> to vector<2x16x8xf32>
    "tpu.trace_start"() <{level = 10 : i32, message = "bqd,bkd->bqk"}> : () -> ()
    %cst_24 = arith.constant dense<0.000000e+00> : vector<2x16x16xf32>
    %45 = tpu.matmul %42, %43, %cst_24 {dimension_numbers = #tpu.dot_dimension_numbers<[2], [2], [1], [1], [0, 0, 0, 1, 1, 1], [0], [0]>} : vector<2x16x8xf32>, vector<2x16x8xf32>, vector<2x16x16xf32> -> vector<2x16x16xf32>
    "tpu.trace_stop"() : () -> ()
    %cst_25 = arith.constant dense<0xFF800000> : vector<2x16xf32>
    %46 = vector.multi_reduction <maximumf>, %45, %cst_25 [2] : vector<2x16x16xf32> to vector<2x16xf32>
    %47 = vector.shape_cast %46 : vector<2x16xf32> to vector<2x16x1xf32>
    %48 = vector.broadcast %47 : vector<2x16x1xf32> to vector<2x16x16xf32>
    %49 = arith.subf %45, %48 : vector<2x16x16xf32>
    %50 = math.exp %49 : vector<2x16x16xf32>
    %cst_26 = arith.constant dense<0.000000e+00> : vector<2x16xf32>
    %51 = vector.multi_reduction <add>, %50, %cst_26 [2] : vector<2x16x16xf32> to vector<2x16xf32>
    %52 = vector.shape_cast %51 : vector<2x16xf32> to vector<2x16x1xf32>
    %53 = tpu.reciprocal %52 {approx = true} : vector<2x16x1xf32> -> vector<2x16x1xf32>
    %54 = vector.broadcast %53 : vector<2x16x1xf32> to vector<2x16x16xf32>
    %55 = arith.mulf %50, %54 : vector<2x16x16xf32>
    "tpu.trace_start"() <{level = 10 : i32, message = "bqk,bkd->bqd"}> : () -> ()
    %cst_27 = arith.constant dense<0.000000e+00> : vector<2x16x8xf32>
    %56 = tpu.matmul %55, %44, %cst_27 {dimension_numbers = #tpu.dot_dimension_numbers<[2], [1], [1], [2], [0, 0, 0, 1, 1, 2], [0], [0]>} : vector<2x16x16xf32>, vector<2x16x8xf32>, vector<2x16x8xf32> -> vector<2x16x8xf32>
    "tpu.trace_stop"() : () -> ()
    %57 = vector.shape_cast %56 : vector<2x16x8xf32> to vector<32x8xf32>
    %58 = vector.extract_strided_slice %10 {offsets = [0, 8], sizes = [32, 8], strides = [1, 1]} : vector<32x32xf32> to vector<32x8xf32>
    %cst_28 = arith.constant dense<0.000000e+00> : vector<32x32xf32>
    %59 = tpu.matmul %57, %58, %cst_28 {dimension_numbers = #tpu.dot_dimension_numbers<[1], [1], [0], [0], [0, 0, 1, 0], [], []>} : vector<32x8xf32>, vector<32x8xf32>, vector<32x32xf32> -> vector<32x32xf32>
    %60 = arith.addf %39, %59 : vector<32x32xf32>
    %61 = vector.extract_strided_slice %17 {offsets = [0, 0, 16], sizes = [2, 16, 8], strides = [1, 1, 1]} : vector<2x16x96xf32> to vector<2x16x8xf32>
    %cst_29 = arith.constant 0.353553385 : f32
    %62 = vector.broadcast %cst_29 : f32 to vector<2x16x8xf32>
    %63 = arith.mulf %61, %62 : vector<2x16x8xf32>
    %64 = vector.extract_strided_slice %17 {offsets = [0, 0, 48], sizes = [2, 16, 8], strides = [1, 1, 1]} : vector<2x16x96xf32> to vector<2x16x8xf32>
    %65 = vector.extract_strided_slice %17 {offsets = [0, 0, 80], sizes = [2, 16, 8], strides = [1, 1, 1]} : vector<2x16x96xf32> to vector<2x16x8xf32>
    "tpu.trace_start"() <{level = 10 : i32, message = "bqd,bkd->bqk"}> : () -> ()
    %cst_30 = arith.constant dense<0.000000e+00> : vector<2x16x16xf32>
    %66 = tpu.matmul %63, %64, %cst_30 {dimension_numbers = #tpu.dot_dimension_numbers<[2], [2], [1], [1], [0, 0, 0, 1, 1, 1], [0], [0]>} : vector<2x16x8xf32>, vector<2x16x8xf32>, vector<2x16x16xf32> -> vector<2x16x16xf32>
    "tpu.trace_stop"() : () -> ()
    %cst_31 = arith.constant dense<0xFF800000> : vector<2x16xf32>
    %67 = vector.multi_reduction <maximumf>, %66, %cst_31 [2] : vector<2x16x16xf32> to vector<2x16xf32>
    %68 = vector.shape_cast %67 : vector<2x16xf32> to vector<2x16x1xf32>
    %69 = vector.broadcast %68 : vector<2x16x1xf32> to vector<2x16x16xf32>
    %70 = arith.subf %66, %69 : vector<2x16x16xf32>
    %71 = math.exp %70 : vector<2x16x16xf32>
    %cst_32 = arith.constant dense<0.000000e+00> : vector<2x16xf32>
    %72 = vector.multi_reduction <add>, %71, %cst_32 [2] : vector<2x16x16xf32> to vector<2x16xf32>
    %73 = vector.shape_cast %72 : vector<2x16xf32> to vector<2x16x1xf32>
    %74 = tpu.reciprocal %73 {approx = true} : vector<2x16x1xf32> -> vector<2x16x1xf32>
    %75 = vector.broadcast %74 : vector<2x16x1xf32> to vector<2x16x16xf32>
    %76 = arith.mulf %71, %75 : vector<2x16x16xf32>
    "tpu.trace_start"() <{level = 10 : i32, message = "bqk,bkd->bqd"}> : () -> ()
    %cst_33 = arith.constant dense<0.000000e+00> : vector<2x16x8xf32>
    %77 = tpu.matmul %76, %65, %cst_33 {dimension_numbers = #tpu.dot_dimension_numbers<[2], [1], [1], [2], [0, 0, 0, 1, 1, 2], [0], [0]>} : vector<2x16x16xf32>, vector<2x16x8xf32>, vector<2x16x8xf32> -> vector<2x16x8xf32>
    "tpu.trace_stop"() : () -> ()
    %78 = vector.shape_cast %77 : vector<2x16x8xf32> to vector<32x8xf32>
    %79 = vector.extract_strided_slice %10 {offsets = [0, 16], sizes = [32, 8], strides = [1, 1]} : vector<32x32xf32> to vector<32x8xf32>
    %cst_34 = arith.constant dense<0.000000e+00> : vector<32x32xf32>
    %80 = tpu.matmul %78, %79, %cst_34 {dimension_numbers = #tpu.dot_dimension_numbers<[1], [1], [0], [0], [0, 0, 1, 0], [], []>} : vector<32x8xf32>, vector<32x8xf32>, vector<32x32xf32> -> vector<32x32xf32>
    %81 = arith.addf %60, %80 : vector<32x32xf32>
    %82 = vector.extract_strided_slice %17 {offsets = [0, 0, 24], sizes = [2, 16, 8], strides = [1, 1, 1]} : vector<2x16x96xf32> to vector<2x16x8xf32>
    %cst_35 = arith.constant 0.353553385 : f32
    %83 = vector.broadcast %cst_35 : f32 to vector<2x16x8xf32>
    %84 = arith.mulf %82, %83 : vector<2x16x8xf32>
    %85 = vector.extract_strided_slice %17 {offsets = [0, 0, 56], sizes = [2, 16, 8], strides = [1, 1, 1]} : vector<2x16x96xf32> to vector<2x16x8xf32>
    %86 = vector.extract_strided_slice %17 {offsets = [0, 0, 88], sizes = [2, 16, 8], strides = [1, 1, 1]} : vector<2x16x96xf32> to vector<2x16x8xf32>
    "tpu.trace_start"() <{level = 10 : i32, message = "bqd,bkd->bqk"}> : () -> ()
    %cst_36 = arith.constant dense<0.000000e+00> : vector<2x16x16xf32>
    %87 = tpu.matmul %84, %85, %cst_36 {dimension_numbers = #tpu.dot_dimension_numbers<[2], [2], [1], [1], [0, 0, 0, 1, 1, 1], [0], [0]>} : vector<2x16x8xf32>, vector<2x16x8xf32>, vector<2x16x16xf32> -> vector<2x16x16xf32>
    "tpu.trace_stop"() : () -> ()
    %cst_37 = arith.constant dense<0xFF800000> : vector<2x16xf32>
    %88 = vector.multi_reduction <maximumf>, %87, %cst_37 [2] : vector<2x16x16xf32> to vector<2x16xf32>
    %89 = vector.shape_cast %88 : vector<2x16xf32> to vector<2x16x1xf32>
    %90 = vector.broadcast %89 : vector<2x16x1xf32> to vector<2x16x16xf32>
    %91 = arith.subf %87, %90 : vector<2x16x16xf32>
    %92 = math.exp %91 : vector<2x16x16xf32>
    %cst_38 = arith.constant dense<0.000000e+00> : vector<2x16xf32>
    %93 = vector.multi_reduction <add>, %92, %cst_38 [2] : vector<2x16x16xf32> to vector<2x16xf32>
    %94 = vector.shape_cast %93 : vector<2x16xf32> to vector<2x16x1xf32>
    %95 = tpu.reciprocal %94 {approx = true} : vector<2x16x1xf32> -> vector<2x16x1xf32>
    %96 = vector.broadcast %95 : vector<2x16x1xf32> to vector<2x16x16xf32>
    %97 = arith.mulf %92, %96 : vector<2x16x16xf32>
    "tpu.trace_start"() <{level = 10 : i32, message = "bqk,bkd->bqd"}> : () -> ()
    %cst_39 = arith.constant dense<0.000000e+00> : vector<2x16x8xf32>
    %98 = tpu.matmul %97, %86, %cst_39 {dimension_numbers = #tpu.dot_dimension_numbers<[2], [1], [1], [2], [0, 0, 0, 1, 1, 2], [0], [0]>} : vector<2x16x16xf32>, vector<2x16x8xf32>, vector<2x16x8xf32> -> vector<2x16x8xf32>
    "tpu.trace_stop"() : () -> ()
    %99 = vector.shape_cast %98 : vector<2x16x8xf32> to vector<32x8xf32>
    %100 = vector.extract_strided_slice %10 {offsets = [0, 24], sizes = [32, 8], strides = [1, 1]} : vector<32x32xf32> to vector<32x8xf32>
    %cst_40 = arith.constant dense<0.000000e+00> : vector<32x32xf32>
    %101 = tpu.matmul %99, %100, %cst_40 {dimension_numbers = #tpu.dot_dimension_numbers<[1], [1], [0], [0], [0, 0, 1, 0], [], []>} : vector<32x8xf32>, vector<32x8xf32>, vector<32x32xf32> -> vector<32x32xf32>
    %102 = arith.addf %81, %101 : vector<32x32xf32>
    %103 = vector.broadcast %12 : vector<1x32xf32> to vector<32x32xf32>
    %104 = arith.addf %102, %103 : vector<32x32xf32>
    %105 = vector.shape_cast %104 : vector<32x32xf32> to vector<2x16x32xf32>
    %106 = vector.extract_strided_slice %4 {offsets = [0, 0, 0], sizes = [1, 16, 32], strides = [1, 1, 1]} : vector<2x16x32xf32> to vector<1x16x32xf32>
    %107 = vector.shape_cast %106 : vector<1x16x32xf32> to vector<16x32xf32>
    %108 = tpu.transpose %107, [1, 0] : vector<16x32xf32> -> vector<32x16xf32>
    %109 = vector.extract_strided_slice %4 {offsets = [1, 0, 0], sizes = [1, 16, 32], strides = [1, 1, 1]} : vector<2x16x32xf32> to vector<1x16x32xf32>
    %110 = vector.shape_cast %109 : vector<1x16x32xf32> to vector<16x32xf32>
    %111 = tpu.transpose %110, [1, 0] : vector<16x32xf32> -> vector<32x16xf32>
    %112 = vector.shape_cast %108 : vector<32x16xf32> to vector<1x32x16xf32>
    %113 = vector.shape_cast %111 : vector<32x16xf32> to vector<1x32x16xf32>
    %114 = tpu.concatenate %112, %113 in 0 : vector<1x32x16xf32>, vector<1x32x16xf32> -> vector<2x32x16xf32>
    %c0_41 = arith.constant 0 : index
    %c0_42 = arith.constant 0 : index
    %c0_43 = arith.constant 0 : index
    %115 = vector.load %arg6[%c0_41, %c0_42, %c0_43] : memref<2x48x16xf32, #tpu.memory_space<vmem>>, vector<1x48x16xf32>
    %116 = vector.shape_cast %115 : vector<1x48x16xf32> to vector<48x16xf32>
    %c0_44 = arith.constant 0 : index
    %c0_45 = arith.constant 0 : index
    %c0_46 = arith.constant 0 : index
    %117 = vector.load %arg7[%c0_44, %c0_45, %c0_46] : memref<2x1x48xf32, #tpu.memory_space<vmem>>, vector<1x1x48xf32>
    %118 = vector.shape_cast %117 : vector<1x1x48xf32> to vector<1x48xf32>
    %c0_47 = arith.constant 0 : index
    %c0_48 = arith.constant 0 : index
    %c0_49 = arith.constant 0 : index
    %119 = vector.load %arg8[%c0_47, %c0_48, %c0_49] : memref<2x16x16xf32, #tpu.memory_space<vmem>>, vector<1x16x16xf32>
    %120 = vector.shape_cast %119 : vector<1x16x16xf32> to vector<16x16xf32>
    %c0_50 = arith.constant 0 : index
    %c0_51 = arith.constant 0 : index
    %c0_52 = arith.constant 0 : index
    %121 = vector.load %arg9[%c0_50, %c0_51, %c0_52] : memref<2x1x16xf32, #tpu.memory_space<vmem>>, vector<1x1x16xf32>
    %122 = vector.shape_cast %121 : vector<1x1x16xf32> to vector<1x16xf32>
    %123 = vector.shape_cast %114 : vector<2x32x16xf32> to vector<64x16xf32>
    %cst_53 = arith.constant dense<0.000000e+00> : vector<64x48xf32>
    %124 = tpu.matmul %123, %116, %cst_53 {dimension_numbers = #tpu.dot_dimension_numbers<[1], [1], [0], [0], [0, 0, 1, 0], [], []>} : vector<64x16xf32>, vector<48x16xf32>, vector<64x48xf32> -> vector<64x48xf32>
    %125 = vector.broadcast %118 : vector<1x48xf32> to vector<64x48xf32>
    %126 = arith.addf %124, %125 : vector<64x48xf32>
    %127 = vector.shape_cast %126 : vector<64x48xf32> to vector<2x32x48xf32>
    %cst_54 = arith.constant 0.000000e+00 : f32
    %128 = vector.broadcast %cst_54 : f32 to vector<64x16xf32>
    %129 = vector.extract_strided_slice %127 {offsets = [0, 0, 0], sizes = [2, 32, 4], strides = [1, 1, 1]} : vector<2x32x48xf32> to vector<2x32x4xf32>
    %cst_55 = arith.constant 5.000000e-01 : f32
    %130 = vector.broadcast %cst_55 : f32 to vector<2x32x4xf32>
    %131 = arith.mulf %129, %130 : vector<2x32x4xf32>
    %132 = vector.extract_strided_slice %127 {offsets = [0, 0, 16], sizes = [2, 32, 4], strides = [1, 1, 1]} : vector<2x32x48xf32> to vector<2x32x4xf32>
    %133 = vector.extract_strided_slice %127 {offsets = [0, 0, 32], sizes = [2, 32, 4], strides = [1, 1, 1]} : vector<2x32x48xf32> to vector<2x32x4xf32>
    "tpu.trace_start"() <{level = 10 : i32, message = "bqd,bkd->bqk"}> : () -> ()
    %cst_56 = arith.constant dense<0.000000e+00> : vector<2x32x32xf32>
    %134 = tpu.matmul %131, %132, %cst_56 {dimension_numbers = #tpu.dot_dimension_numbers<[2], [2], [1], [1], [0, 0, 0, 1, 1, 1], [0], [0]>} : vector<2x32x4xf32>, vector<2x32x4xf32>, vector<2x32x32xf32> -> vector<2x32x32xf32>
    "tpu.trace_stop"() : () -> ()
    %cst_57 = arith.constant dense<0xFF800000> : vector<2x32xf32>
    %135 = vector.multi_reduction <maximumf>, %134, %cst_57 [2] : vector<2x32x32xf32> to vector<2x32xf32>
    %136 = vector.shape_cast %135 : vector<2x32xf32> to vector<2x32x1xf32>
    %137 = vector.broadcast %136 : vector<2x32x1xf32> to vector<2x32x32xf32>
    %138 = arith.subf %134, %137 : vector<2x32x32xf32>
    %139 = math.exp %138 : vector<2x32x32xf32>
    %cst_58 = arith.constant dense<0.000000e+00> : vector<2x32xf32>
    %140 = vector.multi_reduction <add>, %139, %cst_58 [2] : vector<2x32x32xf32> to vector<2x32xf32>
    %141 = vector.shape_cast %140 : vector<2x32xf32> to vector<2x32x1xf32>
    %142 = tpu.reciprocal %141 {approx = true} : vector<2x32x1xf32> -> vector<2x32x1xf32>
    %143 = vector.broadcast %142 : vector<2x32x1xf32> to vector<2x32x32xf32>
    %144 = arith.mulf %139, %143 : vector<2x32x32xf32>
    "tpu.trace_start"() <{level = 10 : i32, message = "bqk,bkd->bqd"}> : () -> ()
    %cst_59 = arith.constant dense<0.000000e+00> : vector<2x32x4xf32>
    %145 = tpu.matmul %144, %133, %cst_59 {dimension_numbers = #tpu.dot_dimension_numbers<[2], [1], [1], [2], [0, 0, 0, 1, 1, 2], [0], [0]>} : vector<2x32x32xf32>, vector<2x32x4xf32>, vector<2x32x4xf32> -> vector<2x32x4xf32>
    "tpu.trace_stop"() : () -> ()
    %146 = vector.shape_cast %145 : vector<2x32x4xf32> to vector<64x4xf32>
    %147 = vector.extract_strided_slice %120 {offsets = [0, 0], sizes = [16, 4], strides = [1, 1]} : vector<16x16xf32> to vector<16x4xf32>
    %cst_60 = arith.constant dense<0.000000e+00> : vector<64x16xf32>
    %148 = tpu.matmul %146, %147, %cst_60 {dimension_numbers = #tpu.dot_dimension_numbers<[1], [1], [0], [0], [0, 0, 1, 0], [], []>} : vector<64x4xf32>, vector<16x4xf32>, vector<64x16xf32> -> vector<64x16xf32>
    %149 = arith.addf %128, %148 : vector<64x16xf32>
    %150 = vector.extract_strided_slice %127 {offsets = [0, 0, 4], sizes = [2, 32, 4], strides = [1, 1, 1]} : vector<2x32x48xf32> to vector<2x32x4xf32>
    %cst_61 = arith.constant 5.000000e-01 : f32
    %151 = vector.broadcast %cst_61 : f32 to vector<2x32x4xf32>
    %152 = arith.mulf %150, %151 : vector<2x32x4xf32>
    %153 = vector.extract_strided_slice %127 {offsets = [0, 0, 20], sizes = [2, 32, 4], strides = [1, 1, 1]} : vector<2x32x48xf32> to vector<2x32x4xf32>
    %154 = vector.extract_strided_slice %127 {offsets = [0, 0, 36], sizes = [2, 32, 4], strides = [1, 1, 1]} : vector<2x32x48xf32> to vector<2x32x4xf32>
    "tpu.trace_start"() <{level = 10 : i32, message = "bqd,bkd->bqk"}> : () -> ()
    %cst_62 = arith.constant dense<0.000000e+00> : vector<2x32x32xf32>
    %155 = tpu.matmul %152, %153, %cst_62 {dimension_numbers = #tpu.dot_dimension_numbers<[2], [2], [1], [1], [0, 0, 0, 1, 1, 1], [0], [0]>} : vector<2x32x4xf32>, vector<2x32x4xf32>, vector<2x32x32xf32> -> vector<2x32x32xf32>
    "tpu.trace_stop"() : () -> ()
    %cst_63 = arith.constant dense<0xFF800000> : vector<2x32xf32>
    %156 = vector.multi_reduction <maximumf>, %155, %cst_63 [2] : vector<2x32x32xf32> to vector<2x32xf32>
    %157 = vector.shape_cast %156 : vector<2x32xf32> to vector<2x32x1xf32>
    %158 = vector.broadcast %157 : vector<2x32x1xf32> to vector<2x32x32xf32>
    %159 = arith.subf %155, %158 : vector<2x32x32xf32>
    %160 = math.exp %159 : vector<2x32x32xf32>
    %cst_64 = arith.constant dense<0.000000e+00> : vector<2x32xf32>
    %161 = vector.multi_reduction <add>, %160, %cst_64 [2] : vector<2x32x32xf32> to vector<2x32xf32>
    %162 = vector.shape_cast %161 : vector<2x32xf32> to vector<2x32x1xf32>
    %163 = tpu.reciprocal %162 {approx = true} : vector<2x32x1xf32> -> vector<2x32x1xf32>
    %164 = vector.broadcast %163 : vector<2x32x1xf32> to vector<2x32x32xf32>
    %165 = arith.mulf %160, %164 : vector<2x32x32xf32>
    "tpu.trace_start"() <{level = 10 : i32, message = "bqk,bkd->bqd"}> : () -> ()
    %cst_65 = arith.constant dense<0.000000e+00> : vector<2x32x4xf32>
    %166 = tpu.matmul %165, %154, %cst_65 {dimension_numbers = #tpu.dot_dimension_numbers<[2], [1], [1], [2], [0, 0, 0, 1, 1, 2], [0], [0]>} : vector<2x32x32xf32>, vector<2x32x4xf32>, vector<2x32x4xf32> -> vector<2x32x4xf32>
    "tpu.trace_stop"() : () -> ()
    %167 = vector.shape_cast %166 : vector<2x32x4xf32> to vector<64x4xf32>
    %168 = vector.extract_strided_slice %120 {offsets = [0, 4], sizes = [16, 4], strides = [1, 1]} : vector<16x16xf32> to vector<16x4xf32>
    %cst_66 = arith.constant dense<0.000000e+00> : vector<64x16xf32>
    %169 = tpu.matmul %167, %168, %cst_66 {dimension_numbers = #tpu.dot_dimension_numbers<[1], [1], [0], [0], [0, 0, 1, 0], [], []>} : vector<64x4xf32>, vector<16x4xf32>, vector<64x16xf32> -> vector<64x16xf32>
    %170 = arith.addf %149, %169 : vector<64x16xf32>
    %171 = vector.extract_strided_slice %127 {offsets = [0, 0, 8], sizes = [2, 32, 4], strides = [1, 1, 1]} : vector<2x32x48xf32> to vector<2x32x4xf32>
    %cst_67 = arith.constant 5.000000e-01 : f32
    %172 = vector.broadcast %cst_67 : f32 to vector<2x32x4xf32>
    %173 = arith.mulf %171, %172 : vector<2x32x4xf32>
    %174 = vector.extract_strided_slice %127 {offsets = [0, 0, 24], sizes = [2, 32, 4], strides = [1, 1, 1]} : vector<2x32x48xf32> to vector<2x32x4xf32>
    %175 = vector.extract_strided_slice %127 {offsets = [0, 0, 40], sizes = [2, 32, 4], strides = [1, 1, 1]} : vector<2x32x48xf32> to vector<2x32x4xf32>
    "tpu.trace_start"() <{level = 10 : i32, message = "bqd,bkd->bqk"}> : () -> ()
    %cst_68 = arith.constant dense<0.000000e+00> : vector<2x32x32xf32>
    %176 = tpu.matmul %173, %174, %cst_68 {dimension_numbers = #tpu.dot_dimension_numbers<[2], [2], [1], [1], [0, 0, 0, 1, 1, 1], [0], [0]>} : vector<2x32x4xf32>, vector<2x32x4xf32>, vector<2x32x32xf32> -> vector<2x32x32xf32>
    "tpu.trace_stop"() : () -> ()
    %cst_69 = arith.constant dense<0xFF800000> : vector<2x32xf32>
    %177 = vector.multi_reduction <maximumf>, %176, %cst_69 [2] : vector<2x32x32xf32> to vector<2x32xf32>
    %178 = vector.shape_cast %177 : vector<2x32xf32> to vector<2x32x1xf32>
    %179 = vector.broadcast %178 : vector<2x32x1xf32> to vector<2x32x32xf32>
    %180 = arith.subf %176, %179 : vector<2x32x32xf32>
    %181 = math.exp %180 : vector<2x32x32xf32>
    %cst_70 = arith.constant dense<0.000000e+00> : vector<2x32xf32>
    %182 = vector.multi_reduction <add>, %181, %cst_70 [2] : vector<2x32x32xf32> to vector<2x32xf32>
    %183 = vector.shape_cast %182 : vector<2x32xf32> to vector<2x32x1xf32>
    %184 = tpu.reciprocal %183 {approx = true} : vector<2x32x1xf32> -> vector<2x32x1xf32>
    %185 = vector.broadcast %184 : vector<2x32x1xf32> to vector<2x32x32xf32>
    %186 = arith.mulf %181, %185 : vector<2x32x32xf32>
    "tpu.trace_start"() <{level = 10 : i32, message = "bqk,bkd->bqd"}> : () -> ()
    %cst_71 = arith.constant dense<0.000000e+00> : vector<2x32x4xf32>
    %187 = tpu.matmul %186, %175, %cst_71 {dimension_numbers = #tpu.dot_dimension_numbers<[2], [1], [1], [2], [0, 0, 0, 1, 1, 2], [0], [0]>} : vector<2x32x32xf32>, vector<2x32x4xf32>, vector<2x32x4xf32> -> vector<2x32x4xf32>
    "tpu.trace_stop"() : () -> ()
    %188 = vector.shape_cast %187 : vector<2x32x4xf32> to vector<64x4xf32>
    %189 = vector.extract_strided_slice %120 {offsets = [0, 8], sizes = [16, 4], strides = [1, 1]} : vector<16x16xf32> to vector<16x4xf32>
    %cst_72 = arith.constant dense<0.000000e+00> : vector<64x16xf32>
    %190 = tpu.matmul %188, %189, %cst_72 {dimension_numbers = #tpu.dot_dimension_numbers<[1], [1], [0], [0], [0, 0, 1, 0], [], []>} : vector<64x4xf32>, vector<16x4xf32>, vector<64x16xf32> -> vector<64x16xf32>
    %191 = arith.addf %170, %190 : vector<64x16xf32>
    %192 = vector.extract_strided_slice %127 {offsets = [0, 0, 12], sizes = [2, 32, 4], strides = [1, 1, 1]} : vector<2x32x48xf32> to vector<2x32x4xf32>
    %cst_73 = arith.constant 5.000000e-01 : f32
    %193 = vector.broadcast %cst_73 : f32 to vector<2x32x4xf32>
    %194 = arith.mulf %192, %193 : vector<2x32x4xf32>
    %195 = vector.extract_strided_slice %127 {offsets = [0, 0, 28], sizes = [2, 32, 4], strides = [1, 1, 1]} : vector<2x32x48xf32> to vector<2x32x4xf32>
    %196 = vector.extract_strided_slice %127 {offsets = [0, 0, 44], sizes = [2, 32, 4], strides = [1, 1, 1]} : vector<2x32x48xf32> to vector<2x32x4xf32>
    "tpu.trace_start"() <{level = 10 : i32, message = "bqd,bkd->bqk"}> : () -> ()
    %cst_74 = arith.constant dense<0.000000e+00> : vector<2x32x32xf32>
    %197 = tpu.matmul %194, %195, %cst_74 {dimension_numbers = #tpu.dot_dimension_numbers<[2], [2], [1], [1], [0, 0, 0, 1, 1, 1], [0], [0]>} : vector<2x32x4xf32>, vector<2x32x4xf32>, vector<2x32x32xf32> -> vector<2x32x32xf32>
    "tpu.trace_stop"() : () -> ()
    %cst_75 = arith.constant dense<0xFF800000> : vector<2x32xf32>
    %198 = vector.multi_reduction <maximumf>, %197, %cst_75 [2] : vector<2x32x32xf32> to vector<2x32xf32>
    %199 = vector.shape_cast %198 : vector<2x32xf32> to vector<2x32x1xf32>
    %200 = vector.broadcast %199 : vector<2x32x1xf32> to vector<2x32x32xf32>
    %201 = arith.subf %197, %200 : vector<2x32x32xf32>
    %202 = math.exp %201 : vector<2x32x32xf32>
    %cst_76 = arith.constant dense<0.000000e+00> : vector<2x32xf32>
    %203 = vector.multi_reduction <add>, %202, %cst_76 [2] : vector<2x32x32xf32> to vector<2x32xf32>
    %204 = vector.shape_cast %203 : vector<2x32xf32> to vector<2x32x1xf32>
    %205 = tpu.reciprocal %204 {approx = true} : vector<2x32x1xf32> -> vector<2x32x1xf32>
    %206 = vector.broadcast %205 : vector<2x32x1xf32> to vector<2x32x32xf32>
    %207 = arith.mulf %202, %206 : vector<2x32x32xf32>
    "tpu.trace_start"() <{level = 10 : i32, message = "bqk,bkd->bqd"}> : () -> ()
    %cst_77 = arith.constant dense<0.000000e+00> : vector<2x32x4xf32>
    %208 = tpu.matmul %207, %196, %cst_77 {dimension_numbers = #tpu.dot_dimension_numbers<[2], [1], [1], [2], [0, 0, 0, 1, 1, 2], [0], [0]>} : vector<2x32x32xf32>, vector<2x32x4xf32>, vector<2x32x4xf32> -> vector<2x32x4xf32>
    "tpu.trace_stop"() : () -> ()
    %209 = vector.shape_cast %208 : vector<2x32x4xf32> to vector<64x4xf32>
    %210 = vector.extract_strided_slice %120 {offsets = [0, 12], sizes = [16, 4], strides = [1, 1]} : vector<16x16xf32> to vector<16x4xf32>
    %cst_78 = arith.constant dense<0.000000e+00> : vector<64x16xf32>
    %211 = tpu.matmul %209, %210, %cst_78 {dimension_numbers = #tpu.dot_dimension_numbers<[1], [1], [0], [0], [0, 0, 1, 0], [], []>} : vector<64x4xf32>, vector<16x4xf32>, vector<64x16xf32> -> vector<64x16xf32>
    %212 = arith.addf %191, %211 : vector<64x16xf32>
    %213 = vector.broadcast %122 : vector<1x16xf32> to vector<64x16xf32>
    %214 = arith.addf %212, %213 : vector<64x16xf32>
    %215 = vector.shape_cast %214 : vector<64x16xf32> to vector<2x32x16xf32>
    %216 = vector.extract_strided_slice %215 {offsets = [0, 0, 0], sizes = [1, 32, 16], strides = [1, 1, 1]} : vector<2x32x16xf32> to vector<1x32x16xf32>
    %217 = vector.shape_cast %216 : vector<1x32x16xf32> to vector<32x16xf32>
    %218 = tpu.transpose %217, [1, 0] : vector<32x16xf32> -> vector<16x32xf32>
    %219 = vector.extract_strided_slice %215 {offsets = [1, 0, 0], sizes = [1, 32, 16], strides = [1, 1, 1]} : vector<2x32x16xf32> to vector<1x32x16xf32>
    %220 = vector.shape_cast %219 : vector<1x32x16xf32> to vector<32x16xf32>
    %221 = tpu.transpose %220, [1, 0] : vector<32x16xf32> -> vector<16x32xf32>
    %222 = vector.shape_cast %218 : vector<16x32xf32> to vector<1x16x32xf32>
    %223 = vector.shape_cast %221 : vector<16x32xf32> to vector<1x16x32xf32>
    %224 = tpu.concatenate %222, %223 in 0 : vector<1x16x32xf32>, vector<1x16x32xf32> -> vector<2x16x32xf32>
    %c0_79 = arith.constant 0 : index
    %c0_80 = arith.constant 0 : index
    %c0_81 = arith.constant 0 : index
    %225 = vector.load %arg10[%c0_79, %c0_80, %c0_81] : memref<2x4x32xf32, #tpu.memory_space<vmem>>, vector<1x4x32xf32>
    %226 = vector.shape_cast %225 : vector<1x4x32xf32> to vector<4x32xf32>
    %227 = arith.addf %4, %105 : vector<2x16x32xf32>
    %228 = arith.addf %227, %224 : vector<2x16x32xf32>
    %229 = vector.extract_strided_slice %226 {offsets = [0, 0], sizes = [1, 32], strides = [1, 1]} : vector<4x32xf32> to vector<1x32xf32>
    %230 = vector.extract_strided_slice %226 {offsets = [1, 0], sizes = [1, 32], strides = [1, 1]} : vector<4x32xf32> to vector<1x32xf32>
    %cst_82 = arith.constant dense<0.000000e+00> : vector<2x16xf32>
    %231 = vector.multi_reduction <add>, %228, %cst_82 [2] : vector<2x16x32xf32> to vector<2x16xf32>
    %232 = vector.shape_cast %231 : vector<2x16xf32> to vector<2x16x1xf32>
    %cst_83 = arith.constant 3.200000e+01 : f32
    %233 = vector.broadcast %cst_83 : f32 to vector<2x16x1xf32>
    %234 = arith.divf %232, %233 : vector<2x16x1xf32>
    %235 = vector.broadcast %234 : vector<2x16x1xf32> to vector<2x16x32xf32>
    %236 = arith.subf %228, %235 : vector<2x16x32xf32>
    %237 = arith.mulf %236, %236 : vector<2x16x32xf32>
    %cst_84 = arith.constant dense<0.000000e+00> : vector<2x16xf32>
    %238 = vector.multi_reduction <add>, %237, %cst_84 [2] : vector<2x16x32xf32> to vector<2x16xf32>
    %239 = vector.shape_cast %238 : vector<2x16xf32> to vector<2x16x1xf32>
    %cst_85 = arith.constant 3.200000e+01 : f32
    %240 = vector.broadcast %cst_85 : f32 to vector<2x16x1xf32>
    %241 = arith.divf %239, %240 : vector<2x16x1xf32>
    %cst_86 = arith.constant 9.99999974E-6 : f32
    %242 = vector.broadcast %cst_86 : f32 to vector<2x16x1xf32>
    %243 = arith.addf %241, %242 : vector<2x16x1xf32>
    %244 = math.rsqrt %243 : vector<2x16x1xf32>
    %245 = vector.broadcast %244 : vector<2x16x1xf32> to vector<2x16x32xf32>
    %246 = arith.mulf %236, %245 : vector<2x16x32xf32>
    %247 = vector.shape_cast %229 : vector<1x32xf32> to vector<1x1x32xf32>
    %248 = vector.broadcast %247 : vector<1x1x32xf32> to vector<2x16x32xf32>
    %249 = arith.mulf %246, %248 : vector<2x16x32xf32>
    %250 = vector.shape_cast %230 : vector<1x32xf32> to vector<1x1x32xf32>
    %251 = vector.broadcast %250 : vector<1x1x32xf32> to vector<2x16x32xf32>
    %252 = arith.addf %249, %251 : vector<2x16x32xf32>
    %c0_87 = arith.constant 0 : index
    %c0_88 = arith.constant 0 : index
    %253 = memref.load %arg13[%c0_87, %c0_88] : memref<2x16xf32, #tpu.memory_space<smem>>
    %254 = vector.broadcast %253 : f32 to vector<2x16x32xf32>
    %255 = arith.mulf %254, %252 : vector<2x16x32xf32>
    %c0_89 = arith.constant 0 : index
    %c1 = arith.constant 1 : index
    %256 = memref.load %arg13[%c0_89, %c1] : memref<2x16xf32, #tpu.memory_space<smem>>
    %257 = vector.broadcast %256 : f32 to vector<2x16x32xf32>
    %258 = arith.addf %255, %257 : vector<2x16x32xf32>
    %c0_90 = arith.constant 0 : index
    %c2 = arith.constant 2 : index
    %259 = memref.load %arg13[%c0_90, %c2] : memref<2x16xf32, #tpu.memory_space<smem>>
    %c0_91 = arith.constant 0 : index
    %c3 = arith.constant 3 : index
    %260 = memref.load %arg13[%c0_91, %c3] : memref<2x16xf32, #tpu.memory_space<smem>>
    %c0_92 = arith.constant 0 : index
    %c4 = arith.constant 4 : index
    %261 = memref.load %arg13[%c0_92, %c4] : memref<2x16xf32, #tpu.memory_space<smem>>
    %c0_93 = arith.constant 0 : index
    %c5 = arith.constant 5 : index
    %262 = memref.load %arg13[%c0_93, %c5] : memref<2x16xf32, #tpu.memory_space<smem>>
    %263 = vector.broadcast %261 : f32 to vector<2x16x32xf32>
    %264 = arith.subf %258, %263 : vector<2x16x32xf32>
    %cst_94 = arith.constant 9.99999974E-6 : f32
    %265 = arith.addf %262, %cst_94 : f32
    %266 = math.sqrt %265 : f32
    %267 = arith.divf %259, %266 : f32
    %268 = vector.broadcast %267 : f32 to vector<2x16x32xf32>
    %269 = arith.mulf %264, %268 : vector<2x16x32xf32>
    %270 = vector.broadcast %260 : f32 to vector<2x16x32xf32>
    %271 = arith.addf %269, %270 : vector<2x16x32xf32>
    %cst_95 = arith.constant 0.000000e+00 : f32
    %272 = vector.broadcast %cst_95 : f32 to vector<2x16x32xf32>
    %273 = arith.maximumf %271, %272 : vector<2x16x32xf32>
    %c0_96 = arith.constant 0 : index
    %c6 = arith.constant 6 : index
    %274 = memref.load %arg13[%c0_96, %c6] : memref<2x16xf32, #tpu.memory_space<smem>>
    %cst_97 = arith.constant 0.000000e+00 : f32
    %275 = vector.broadcast %cst_97 : f32 to vector<2x1x32xf32>
    %276 = tpu.concatenate %275, %273, %275 in 1 : vector<2x1x32xf32>, vector<2x16x32xf32>, vector<2x1x32xf32> -> vector<2x18x32xf32>
    %cst_98 = arith.constant 0.000000e+00 : f32
    %277 = vector.broadcast %cst_98 : f32 to vector<32x32xf32>
    %278 = vector.extract_strided_slice %276 {offsets = [0, 0, 0], sizes = [2, 16, 32], strides = [1, 1, 1]} : vector<2x18x32xf32> to vector<2x16x32xf32>
    %279 = vector.shape_cast %278 : vector<2x16x32xf32> to vector<32x32xf32>
    %c0_99 = arith.constant 0 : index
    %c0_100 = arith.constant 0 : index
    %c0_101 = arith.constant 0 : index
    %c0_102 = arith.constant 0 : index
    %280 = vector.load %arg11[%c0_99, %c0_100, %c0_101, %c0_102] : memref<2x3x32x32xf32, #tpu.memory_space<vmem>>, vector<1x1x32x32xf32>
    %281 = vector.shape_cast %280 : vector<1x1x32x32xf32> to vector<32x32xf32>
    %cst_103 = arith.constant dense<0.000000e+00> : vector<32x32xf32>
    %282 = tpu.matmul %279, %281, %cst_103 {dimension_numbers = #tpu.dot_dimension_numbers<[1], [0], [0], [1], [0, 0, 1, 1], [], []>} : vector<32x32xf32>, vector<32x32xf32>, vector<32x32xf32> -> vector<32x32xf32>
    %283 = arith.addf %277, %282 : vector<32x32xf32>
    %284 = vector.extract_strided_slice %276 {offsets = [0, 1, 0], sizes = [2, 16, 32], strides = [1, 1, 1]} : vector<2x18x32xf32> to vector<2x16x32xf32>
    %285 = vector.shape_cast %284 : vector<2x16x32xf32> to vector<32x32xf32>
    %c0_104 = arith.constant 0 : index
    %c1_105 = arith.constant 1 : index
    %c0_106 = arith.constant 0 : index
    %c0_107 = arith.constant 0 : index
    %286 = vector.load %arg11[%c0_104, %c1_105, %c0_106, %c0_107] : memref<2x3x32x32xf32, #tpu.memory_space<vmem>>, vector<1x1x32x32xf32>
    %287 = vector.shape_cast %286 : vector<1x1x32x32xf32> to vector<32x32xf32>
    %cst_108 = arith.constant dense<0.000000e+00> : vector<32x32xf32>
    %288 = tpu.matmul %285, %287, %cst_108 {dimension_numbers = #tpu.dot_dimension_numbers<[1], [0], [0], [1], [0, 0, 1, 1], [], []>} : vector<32x32xf32>, vector<32x32xf32>, vector<32x32xf32> -> vector<32x32xf32>
    %289 = arith.addf %283, %288 : vector<32x32xf32>
    %290 = vector.extract_strided_slice %276 {offsets = [0, 2, 0], sizes = [2, 16, 32], strides = [1, 1, 1]} : vector<2x18x32xf32> to vector<2x16x32xf32>
    %291 = vector.shape_cast %290 : vector<2x16x32xf32> to vector<32x32xf32>
    %c0_109 = arith.constant 0 : index
    %c2_110 = arith.constant 2 : index
    %c0_111 = arith.constant 0 : index
    %c0_112 = arith.constant 0 : index
    %292 = vector.load %arg11[%c0_109, %c2_110, %c0_111, %c0_112] : memref<2x3x32x32xf32, #tpu.memory_space<vmem>>, vector<1x1x32x32xf32>
    %293 = vector.shape_cast %292 : vector<1x1x32x32xf32> to vector<32x32xf32>
    %cst_113 = arith.constant dense<0.000000e+00> : vector<32x32xf32>
    %294 = tpu.matmul %291, %293, %cst_113 {dimension_numbers = #tpu.dot_dimension_numbers<[1], [0], [0], [1], [0, 0, 1, 1], [], []>} : vector<32x32xf32>, vector<32x32xf32>, vector<32x32xf32> -> vector<32x32xf32>
    %295 = arith.addf %289, %294 : vector<32x32xf32>
    %296 = vector.shape_cast %295 : vector<32x32xf32> to vector<2x16x32xf32>
    %297 = vector.broadcast %274 : f32 to vector<2x16x32xf32>
    %298 = arith.addf %296, %297 : vector<2x16x32xf32>
    %c0_114 = arith.constant 0 : index
    %c7 = arith.constant 7 : index
    %299 = memref.load %arg13[%c0_114, %c7] : memref<2x16xf32, #tpu.memory_space<smem>>
    %c0_115 = arith.constant 0 : index
    %c8 = arith.constant 8 : index
    %300 = memref.load %arg13[%c0_115, %c8] : memref<2x16xf32, #tpu.memory_space<smem>>
    %c0_116 = arith.constant 0 : index
    %c9 = arith.constant 9 : index
    %301 = memref.load %arg13[%c0_116, %c9] : memref<2x16xf32, #tpu.memory_space<smem>>
    %c0_117 = arith.constant 0 : index
    %c10 = arith.constant 10 : index
    %302 = memref.load %arg13[%c0_117, %c10] : memref<2x16xf32, #tpu.memory_space<smem>>
    %303 = vector.broadcast %301 : f32 to vector<2x16x32xf32>
    %304 = arith.subf %298, %303 : vector<2x16x32xf32>
    %cst_118 = arith.constant 9.99999974E-6 : f32
    %305 = arith.addf %302, %cst_118 : f32
    %306 = math.sqrt %305 : f32
    %307 = arith.divf %299, %306 : f32
    %308 = vector.broadcast %307 : f32 to vector<2x16x32xf32>
    %309 = arith.mulf %304, %308 : vector<2x16x32xf32>
    %310 = vector.broadcast %300 : f32 to vector<2x16x32xf32>
    %311 = arith.addf %309, %310 : vector<2x16x32xf32>
    %cst_119 = arith.constant 0.000000e+00 : f32
    %312 = vector.broadcast %cst_119 : f32 to vector<2x16x32xf32>
    %313 = arith.maximumf %311, %312 : vector<2x16x32xf32>
    %c0_120 = arith.constant 0 : index
    %c11 = arith.constant 11 : index
    %314 = memref.load %arg13[%c0_120, %c11] : memref<2x16xf32, #tpu.memory_space<smem>>
    %cst_121 = arith.constant 0.000000e+00 : f32
    %315 = vector.broadcast %cst_121 : f32 to vector<2x2x32xf32>
    %316 = tpu.concatenate %315, %313, %315 in 1 : vector<2x2x32xf32>, vector<2x16x32xf32>, vector<2x2x32xf32> -> vector<2x20x32xf32>
    %cst_122 = arith.constant 0.000000e+00 : f32
    %317 = vector.broadcast %cst_122 : f32 to vector<32x32xf32>
    %318 = vector.extract_strided_slice %316 {offsets = [0, 0, 0], sizes = [2, 16, 32], strides = [1, 1, 1]} : vector<2x20x32xf32> to vector<2x16x32xf32>
    %319 = vector.shape_cast %318 : vector<2x16x32xf32> to vector<32x32xf32>
    %c0_123 = arith.constant 0 : index
    %c0_124 = arith.constant 0 : index
    %c0_125 = arith.constant 0 : index
    %c0_126 = arith.constant 0 : index
    %320 = vector.load %arg12[%c0_123, %c0_124, %c0_125, %c0_126] : memref<2x5x32x32xf32, #tpu.memory_space<vmem>>, vector<1x1x32x32xf32>
    %321 = vector.shape_cast %320 : vector<1x1x32x32xf32> to vector<32x32xf32>
    %cst_127 = arith.constant dense<0.000000e+00> : vector<32x32xf32>
    %322 = tpu.matmul %319, %321, %cst_127 {dimension_numbers = #tpu.dot_dimension_numbers<[1], [0], [0], [1], [0, 0, 1, 1], [], []>} : vector<32x32xf32>, vector<32x32xf32>, vector<32x32xf32> -> vector<32x32xf32>
    %323 = arith.addf %317, %322 : vector<32x32xf32>
    %324 = vector.extract_strided_slice %316 {offsets = [0, 1, 0], sizes = [2, 16, 32], strides = [1, 1, 1]} : vector<2x20x32xf32> to vector<2x16x32xf32>
    %325 = vector.shape_cast %324 : vector<2x16x32xf32> to vector<32x32xf32>
    %c0_128 = arith.constant 0 : index
    %c1_129 = arith.constant 1 : index
    %c0_130 = arith.constant 0 : index
    %c0_131 = arith.constant 0 : index
    %326 = vector.load %arg12[%c0_128, %c1_129, %c0_130, %c0_131] : memref<2x5x32x32xf32, #tpu.memory_space<vmem>>, vector<1x1x32x32xf32>
    %327 = vector.shape_cast %326 : vector<1x1x32x32xf32> to vector<32x32xf32>
    %cst_132 = arith.constant dense<0.000000e+00> : vector<32x32xf32>
    %328 = tpu.matmul %325, %327, %cst_132 {dimension_numbers = #tpu.dot_dimension_numbers<[1], [0], [0], [1], [0, 0, 1, 1], [], []>} : vector<32x32xf32>, vector<32x32xf32>, vector<32x32xf32> -> vector<32x32xf32>
    %329 = arith.addf %323, %328 : vector<32x32xf32>
    %330 = vector.extract_strided_slice %316 {offsets = [0, 2, 0], sizes = [2, 16, 32], strides = [1, 1, 1]} : vector<2x20x32xf32> to vector<2x16x32xf32>
    %331 = vector.shape_cast %330 : vector<2x16x32xf32> to vector<32x32xf32>
    %c0_133 = arith.constant 0 : index
    %c2_134 = arith.constant 2 : index
    %c0_135 = arith.constant 0 : index
    %c0_136 = arith.constant 0 : index
    %332 = vector.load %arg12[%c0_133, %c2_134, %c0_135, %c0_136] : memref<2x5x32x32xf32, #tpu.memory_space<vmem>>, vector<1x1x32x32xf32>
    %333 = vector.shape_cast %332 : vector<1x1x32x32xf32> to vector<32x32xf32>
    %cst_137 = arith.constant dense<0.000000e+00> : vector<32x32xf32>
    %334 = tpu.matmul %331, %333, %cst_137 {dimension_numbers = #tpu.dot_dimension_numbers<[1], [0], [0], [1], [0, 0, 1, 1], [], []>} : vector<32x32xf32>, vector<32x32xf32>, vector<32x32xf32> -> vector<32x32xf32>
    %335 = arith.addf %329, %334 : vector<32x32xf32>
    %336 = vector.extract_strided_slice %316 {offsets = [0, 3, 0], sizes = [2, 16, 32], strides = [1, 1, 1]} : vector<2x20x32xf32> to vector<2x16x32xf32>
    %337 = vector.shape_cast %336 : vector<2x16x32xf32> to vector<32x32xf32>
    %c0_138 = arith.constant 0 : index
    %c3_139 = arith.constant 3 : index
    %c0_140 = arith.constant 0 : index
    %c0_141 = arith.constant 0 : index
    %338 = vector.load %arg12[%c0_138, %c3_139, %c0_140, %c0_141] : memref<2x5x32x32xf32, #tpu.memory_space<vmem>>, vector<1x1x32x32xf32>
    %339 = vector.shape_cast %338 : vector<1x1x32x32xf32> to vector<32x32xf32>
    %cst_142 = arith.constant dense<0.000000e+00> : vector<32x32xf32>
    %340 = tpu.matmul %337, %339, %cst_142 {dimension_numbers = #tpu.dot_dimension_numbers<[1], [0], [0], [1], [0, 0, 1, 1], [], []>} : vector<32x32xf32>, vector<32x32xf32>, vector<32x32xf32> -> vector<32x32xf32>
    %341 = arith.addf %335, %340 : vector<32x32xf32>
    %342 = vector.extract_strided_slice %316 {offsets = [0, 4, 0], sizes = [2, 16, 32], strides = [1, 1, 1]} : vector<2x20x32xf32> to vector<2x16x32xf32>
    %343 = vector.shape_cast %342 : vector<2x16x32xf32> to vector<32x32xf32>
    %c0_143 = arith.constant 0 : index
    %c4_144 = arith.constant 4 : index
    %c0_145 = arith.constant 0 : index
    %c0_146 = arith.constant 0 : index
    %344 = vector.load %arg12[%c0_143, %c4_144, %c0_145, %c0_146] : memref<2x5x32x32xf32, #tpu.memory_space<vmem>>, vector<1x1x32x32xf32>
    %345 = vector.shape_cast %344 : vector<1x1x32x32xf32> to vector<32x32xf32>
    %cst_147 = arith.constant dense<0.000000e+00> : vector<32x32xf32>
    %346 = tpu.matmul %343, %345, %cst_147 {dimension_numbers = #tpu.dot_dimension_numbers<[1], [0], [0], [1], [0, 0, 1, 1], [], []>} : vector<32x32xf32>, vector<32x32xf32>, vector<32x32xf32> -> vector<32x32xf32>
    %347 = arith.addf %341, %346 : vector<32x32xf32>
    %348 = vector.shape_cast %347 : vector<32x32xf32> to vector<2x16x32xf32>
    %349 = vector.broadcast %314 : f32 to vector<2x16x32xf32>
    %350 = arith.addf %348, %349 : vector<2x16x32xf32>
    %c0_148 = arith.constant 0 : index
    %c12 = arith.constant 12 : index
    %351 = memref.load %arg13[%c0_148, %c12] : memref<2x16xf32, #tpu.memory_space<smem>>
    %c0_149 = arith.constant 0 : index
    %c13 = arith.constant 13 : index
    %352 = memref.load %arg13[%c0_149, %c13] : memref<2x16xf32, #tpu.memory_space<smem>>
    %c0_150 = arith.constant 0 : index
    %c14 = arith.constant 14 : index
    %353 = memref.load %arg13[%c0_150, %c14] : memref<2x16xf32, #tpu.memory_space<smem>>
    %c0_151 = arith.constant 0 : index
    %c15 = arith.constant 15 : index
    %354 = memref.load %arg13[%c0_151, %c15] : memref<2x16xf32, #tpu.memory_space<smem>>
    %355 = vector.broadcast %353 : f32 to vector<2x16x32xf32>
    %356 = arith.subf %350, %355 : vector<2x16x32xf32>
    %cst_152 = arith.constant 9.99999974E-6 : f32
    %357 = arith.addf %354, %cst_152 : f32
    %358 = math.sqrt %357 : f32
    %359 = arith.divf %351, %358 : f32
    %360 = vector.broadcast %359 : f32 to vector<2x16x32xf32>
    %361 = arith.mulf %356, %360 : vector<2x16x32xf32>
    %362 = vector.broadcast %352 : f32 to vector<2x16x32xf32>
    %363 = arith.addf %361, %362 : vector<2x16x32xf32>
    %cst_153 = arith.constant 0.000000e+00 : f32
    %364 = vector.broadcast %cst_153 : f32 to vector<2x16x32xf32>
    %365 = arith.maximumf %363, %364 : vector<2x16x32xf32>
    %366 = arith.addf %252, %365 : vector<2x16x32xf32>
    %367 = vector.extract_strided_slice %226 {offsets = [2, 0], sizes = [1, 32], strides = [1, 1]} : vector<4x32xf32> to vector<1x32xf32>
    %368 = vector.extract_strided_slice %226 {offsets = [3, 0], sizes = [1, 32], strides = [1, 1]} : vector<4x32xf32> to vector<1x32xf32>
    %cst_154 = arith.constant dense<0.000000e+00> : vector<2x16xf32>
    %369 = vector.multi_reduction <add>, %366, %cst_154 [2] : vector<2x16x32xf32> to vector<2x16xf32>
    %370 = vector.shape_cast %369 : vector<2x16xf32> to vector<2x16x1xf32>
    %cst_155 = arith.constant 3.200000e+01 : f32
    %371 = vector.broadcast %cst_155 : f32 to vector<2x16x1xf32>
    %372 = arith.divf %370, %371 : vector<2x16x1xf32>
    %373 = vector.broadcast %372 : vector<2x16x1xf32> to vector<2x16x32xf32>
    %374 = arith.subf %366, %373 : vector<2x16x32xf32>
    %375 = arith.mulf %374, %374 : vector<2x16x32xf32>
    %cst_156 = arith.constant dense<0.000000e+00> : vector<2x16xf32>
    %376 = vector.multi_reduction <add>, %375, %cst_156 [2] : vector<2x16x32xf32> to vector<2x16xf32>
    %377 = vector.shape_cast %376 : vector<2x16xf32> to vector<2x16x1xf32>
    %cst_157 = arith.constant 3.200000e+01 : f32
    %378 = vector.broadcast %cst_157 : f32 to vector<2x16x1xf32>
    %379 = arith.divf %377, %378 : vector<2x16x1xf32>
    %cst_158 = arith.constant 9.99999974E-6 : f32
    %380 = vector.broadcast %cst_158 : f32 to vector<2x16x1xf32>
    %381 = arith.addf %379, %380 : vector<2x16x1xf32>
    %382 = math.rsqrt %381 : vector<2x16x1xf32>
    %383 = vector.broadcast %382 : vector<2x16x1xf32> to vector<2x16x32xf32>
    %384 = arith.mulf %374, %383 : vector<2x16x32xf32>
    %385 = vector.shape_cast %367 : vector<1x32xf32> to vector<1x1x32xf32>
    %386 = vector.broadcast %385 : vector<1x1x32xf32> to vector<2x16x32xf32>
    %387 = arith.mulf %384, %386 : vector<2x16x32xf32>
    %388 = vector.shape_cast %368 : vector<1x32xf32> to vector<1x1x32xf32>
    %389 = vector.broadcast %388 : vector<1x1x32xf32> to vector<2x16x32xf32>
    %390 = arith.addf %387, %389 : vector<2x16x32xf32>
    %c1_159 = arith.constant 1 : index
    %c0_160 = arith.constant 0 : index
    %c0_161 = arith.constant 0 : index
    %391 = vector.load %arg2[%c1_159, %c0_160, %c0_161] : memref<2x96x32xf32, #tpu.memory_space<vmem>>, vector<1x96x32xf32>
    %392 = vector.shape_cast %391 : vector<1x96x32xf32> to vector<96x32xf32>
    %c1_162 = arith.constant 1 : index
    %c0_163 = arith.constant 0 : index
    %c0_164 = arith.constant 0 : index
    %393 = vector.load %arg3[%c1_162, %c0_163, %c0_164] : memref<2x1x96xf32, #tpu.memory_space<vmem>>, vector<1x1x96xf32>
    %394 = vector.shape_cast %393 : vector<1x1x96xf32> to vector<1x96xf32>
    %c1_165 = arith.constant 1 : index
    %c0_166 = arith.constant 0 : index
    %c0_167 = arith.constant 0 : index
    %395 = vector.load %arg4[%c1_165, %c0_166, %c0_167] : memref<2x32x32xf32, #tpu.memory_space<vmem>>, vector<1x32x32xf32>
    %396 = vector.shape_cast %395 : vector<1x32x32xf32> to vector<32x32xf32>
    %c1_168 = arith.constant 1 : index
    %c0_169 = arith.constant 0 : index
    %c0_170 = arith.constant 0 : index
    %397 = vector.load %arg5[%c1_168, %c0_169, %c0_170] : memref<2x1x32xf32, #tpu.memory_space<vmem>>, vector<1x1x32xf32>
    %398 = vector.shape_cast %397 : vector<1x1x32xf32> to vector<1x32xf32>
    %399 = vector.shape_cast %390 : vector<2x16x32xf32> to vector<32x32xf32>
    %cst_171 = arith.constant dense<0.000000e+00> : vector<32x96xf32>
    %400 = tpu.matmul %399, %392, %cst_171 {dimension_numbers = #tpu.dot_dimension_numbers<[1], [1], [0], [0], [0, 0, 1, 0], [], []>} : vector<32x32xf32>, vector<96x32xf32>, vector<32x96xf32> -> vector<32x96xf32>
    %401 = vector.broadcast %394 : vector<1x96xf32> to vector<32x96xf32>
    %402 = arith.addf %400, %401 : vector<32x96xf32>
    %403 = vector.shape_cast %402 : vector<32x96xf32> to vector<2x16x96xf32>
    %cst_172 = arith.constant 0.000000e+00 : f32
    %404 = vector.broadcast %cst_172 : f32 to vector<32x32xf32>
    %405 = vector.extract_strided_slice %403 {offsets = [0, 0, 0], sizes = [2, 16, 8], strides = [1, 1, 1]} : vector<2x16x96xf32> to vector<2x16x8xf32>
    %cst_173 = arith.constant 0.353553385 : f32
    %406 = vector.broadcast %cst_173 : f32 to vector<2x16x8xf32>
    %407 = arith.mulf %405, %406 : vector<2x16x8xf32>
    %408 = vector.extract_strided_slice %403 {offsets = [0, 0, 32], sizes = [2, 16, 8], strides = [1, 1, 1]} : vector<2x16x96xf32> to vector<2x16x8xf32>
    %409 = vector.extract_strided_slice %403 {offsets = [0, 0, 64], sizes = [2, 16, 8], strides = [1, 1, 1]} : vector<2x16x96xf32> to vector<2x16x8xf32>
    "tpu.trace_start"() <{level = 10 : i32, message = "bqd,bkd->bqk"}> : () -> ()
    %cst_174 = arith.constant dense<0.000000e+00> : vector<2x16x16xf32>
    %410 = tpu.matmul %407, %408, %cst_174 {dimension_numbers = #tpu.dot_dimension_numbers<[2], [2], [1], [1], [0, 0, 0, 1, 1, 1], [0], [0]>} : vector<2x16x8xf32>, vector<2x16x8xf32>, vector<2x16x16xf32> -> vector<2x16x16xf32>
    "tpu.trace_stop"() : () -> ()
    %cst_175 = arith.constant dense<0xFF800000> : vector<2x16xf32>
    %411 = vector.multi_reduction <maximumf>, %410, %cst_175 [2] : vector<2x16x16xf32> to vector<2x16xf32>
    %412 = vector.shape_cast %411 : vector<2x16xf32> to vector<2x16x1xf32>
    %413 = vector.broadcast %412 : vector<2x16x1xf32> to vector<2x16x16xf32>
    %414 = arith.subf %410, %413 : vector<2x16x16xf32>
    %415 = math.exp %414 : vector<2x16x16xf32>
    %cst_176 = arith.constant dense<0.000000e+00> : vector<2x16xf32>
    %416 = vector.multi_reduction <add>, %415, %cst_176 [2] : vector<2x16x16xf32> to vector<2x16xf32>
    %417 = vector.shape_cast %416 : vector<2x16xf32> to vector<2x16x1xf32>
    %418 = tpu.reciprocal %417 {approx = true} : vector<2x16x1xf32> -> vector<2x16x1xf32>
    %419 = vector.broadcast %418 : vector<2x16x1xf32> to vector<2x16x16xf32>
    %420 = arith.mulf %415, %419 : vector<2x16x16xf32>
    "tpu.trace_start"() <{level = 10 : i32, message = "bqk,bkd->bqd"}> : () -> ()
    %cst_177 = arith.constant dense<0.000000e+00> : vector<2x16x8xf32>
    %421 = tpu.matmul %420, %409, %cst_177 {dimension_numbers = #tpu.dot_dimension_numbers<[2], [1], [1], [2], [0, 0, 0, 1, 1, 2], [0], [0]>} : vector<2x16x16xf32>, vector<2x16x8xf32>, vector<2x16x8xf32> -> vector<2x16x8xf32>
    "tpu.trace_stop"() : () -> ()
    %422 = vector.shape_cast %421 : vector<2x16x8xf32> to vector<32x8xf32>
    %423 = vector.extract_strided_slice %396 {offsets = [0, 0], sizes = [32, 8], strides = [1, 1]} : vector<32x32xf32> to vector<32x8xf32>
    %cst_178 = arith.constant dense<0.000000e+00> : vector<32x32xf32>
    %424 = tpu.matmul %422, %423, %cst_178 {dimension_numbers = #tpu.dot_dimension_numbers<[1], [1], [0], [0], [0, 0, 1, 0], [], []>} : vector<32x8xf32>, vector<32x8xf32>, vector<32x32xf32> -> vector<32x32xf32>
    %425 = arith.addf %404, %424 : vector<32x32xf32>
    %426 = vector.extract_strided_slice %403 {offsets = [0, 0, 8], sizes = [2, 16, 8], strides = [1, 1, 1]} : vector<2x16x96xf32> to vector<2x16x8xf32>
    %cst_179 = arith.constant 0.353553385 : f32
    %427 = vector.broadcast %cst_179 : f32 to vector<2x16x8xf32>
    %428 = arith.mulf %426, %427 : vector<2x16x8xf32>
    %429 = vector.extract_strided_slice %403 {offsets = [0, 0, 40], sizes = [2, 16, 8], strides = [1, 1, 1]} : vector<2x16x96xf32> to vector<2x16x8xf32>
    %430 = vector.extract_strided_slice %403 {offsets = [0, 0, 72], sizes = [2, 16, 8], strides = [1, 1, 1]} : vector<2x16x96xf32> to vector<2x16x8xf32>
    "tpu.trace_start"() <{level = 10 : i32, message = "bqd,bkd->bqk"}> : () -> ()
    %cst_180 = arith.constant dense<0.000000e+00> : vector<2x16x16xf32>
    %431 = tpu.matmul %428, %429, %cst_180 {dimension_numbers = #tpu.dot_dimension_numbers<[2], [2], [1], [1], [0, 0, 0, 1, 1, 1], [0], [0]>} : vector<2x16x8xf32>, vector<2x16x8xf32>, vector<2x16x16xf32> -> vector<2x16x16xf32>
    "tpu.trace_stop"() : () -> ()
    %cst_181 = arith.constant dense<0xFF800000> : vector<2x16xf32>
    %432 = vector.multi_reduction <maximumf>, %431, %cst_181 [2] : vector<2x16x16xf32> to vector<2x16xf32>
    %433 = vector.shape_cast %432 : vector<2x16xf32> to vector<2x16x1xf32>
    %434 = vector.broadcast %433 : vector<2x16x1xf32> to vector<2x16x16xf32>
    %435 = arith.subf %431, %434 : vector<2x16x16xf32>
    %436 = math.exp %435 : vector<2x16x16xf32>
    %cst_182 = arith.constant dense<0.000000e+00> : vector<2x16xf32>
    %437 = vector.multi_reduction <add>, %436, %cst_182 [2] : vector<2x16x16xf32> to vector<2x16xf32>
    %438 = vector.shape_cast %437 : vector<2x16xf32> to vector<2x16x1xf32>
    %439 = tpu.reciprocal %438 {approx = true} : vector<2x16x1xf32> -> vector<2x16x1xf32>
    %440 = vector.broadcast %439 : vector<2x16x1xf32> to vector<2x16x16xf32>
    %441 = arith.mulf %436, %440 : vector<2x16x16xf32>
    "tpu.trace_start"() <{level = 10 : i32, message = "bqk,bkd->bqd"}> : () -> ()
    %cst_183 = arith.constant dense<0.000000e+00> : vector<2x16x8xf32>
    %442 = tpu.matmul %441, %430, %cst_183 {dimension_numbers = #tpu.dot_dimension_numbers<[2], [1], [1], [2], [0, 0, 0, 1, 1, 2], [0], [0]>} : vector<2x16x16xf32>, vector<2x16x8xf32>, vector<2x16x8xf32> -> vector<2x16x8xf32>
    "tpu.trace_stop"() : () -> ()
    %443 = vector.shape_cast %442 : vector<2x16x8xf32> to vector<32x8xf32>
    %444 = vector.extract_strided_slice %396 {offsets = [0, 8], sizes = [32, 8], strides = [1, 1]} : vector<32x32xf32> to vector<32x8xf32>
    %cst_184 = arith.constant dense<0.000000e+00> : vector<32x32xf32>
    %445 = tpu.matmul %443, %444, %cst_184 {dimension_numbers = #tpu.dot_dimension_numbers<[1], [1], [0], [0], [0, 0, 1, 0], [], []>} : vector<32x8xf32>, vector<32x8xf32>, vector<32x32xf32> -> vector<32x32xf32>
    %446 = arith.addf %425, %445 : vector<32x32xf32>
    %447 = vector.extract_strided_slice %403 {offsets = [0, 0, 16], sizes = [2, 16, 8], strides = [1, 1, 1]} : vector<2x16x96xf32> to vector<2x16x8xf32>
    %cst_185 = arith.constant 0.353553385 : f32
    %448 = vector.broadcast %cst_185 : f32 to vector<2x16x8xf32>
    %449 = arith.mulf %447, %448 : vector<2x16x8xf32>
    %450 = vector.extract_strided_slice %403 {offsets = [0, 0, 48], sizes = [2, 16, 8], strides = [1, 1, 1]} : vector<2x16x96xf32> to vector<2x16x8xf32>
    %451 = vector.extract_strided_slice %403 {offsets = [0, 0, 80], sizes = [2, 16, 8], strides = [1, 1, 1]} : vector<2x16x96xf32> to vector<2x16x8xf32>
    "tpu.trace_start"() <{level = 10 : i32, message = "bqd,bkd->bqk"}> : () -> ()
    %cst_186 = arith.constant dense<0.000000e+00> : vector<2x16x16xf32>
    %452 = tpu.matmul %449, %450, %cst_186 {dimension_numbers = #tpu.dot_dimension_numbers<[2], [2], [1], [1], [0, 0, 0, 1, 1, 1], [0], [0]>} : vector<2x16x8xf32>, vector<2x16x8xf32>, vector<2x16x16xf32> -> vector<2x16x16xf32>
    "tpu.trace_stop"() : () -> ()
    %cst_187 = arith.constant dense<0xFF800000> : vector<2x16xf32>
    %453 = vector.multi_reduction <maximumf>, %452, %cst_187 [2] : vector<2x16x16xf32> to vector<2x16xf32>
    %454 = vector.shape_cast %453 : vector<2x16xf32> to vector<2x16x1xf32>
    %455 = vector.broadcast %454 : vector<2x16x1xf32> to vector<2x16x16xf32>
    %456 = arith.subf %452, %455 : vector<2x16x16xf32>
    %457 = math.exp %456 : vector<2x16x16xf32>
    %cst_188 = arith.constant dense<0.000000e+00> : vector<2x16xf32>
    %458 = vector.multi_reduction <add>, %457, %cst_188 [2] : vector<2x16x16xf32> to vector<2x16xf32>
    %459 = vector.shape_cast %458 : vector<2x16xf32> to vector<2x16x1xf32>
    %460 = tpu.reciprocal %459 {approx = true} : vector<2x16x1xf32> -> vector<2x16x1xf32>
    %461 = vector.broadcast %460 : vector<2x16x1xf32> to vector<2x16x16xf32>
    %462 = arith.mulf %457, %461 : vector<2x16x16xf32>
    "tpu.trace_start"() <{level = 10 : i32, message = "bqk,bkd->bqd"}> : () -> ()
    %cst_189 = arith.constant dense<0.000000e+00> : vector<2x16x8xf32>
    %463 = tpu.matmul %462, %451, %cst_189 {dimension_numbers = #tpu.dot_dimension_numbers<[2], [1], [1], [2], [0, 0, 0, 1, 1, 2], [0], [0]>} : vector<2x16x16xf32>, vector<2x16x8xf32>, vector<2x16x8xf32> -> vector<2x16x8xf32>
    "tpu.trace_stop"() : () -> ()
    %464 = vector.shape_cast %463 : vector<2x16x8xf32> to vector<32x8xf32>
    %465 = vector.extract_strided_slice %396 {offsets = [0, 16], sizes = [32, 8], strides = [1, 1]} : vector<32x32xf32> to vector<32x8xf32>
    %cst_190 = arith.constant dense<0.000000e+00> : vector<32x32xf32>
    %466 = tpu.matmul %464, %465, %cst_190 {dimension_numbers = #tpu.dot_dimension_numbers<[1], [1], [0], [0], [0, 0, 1, 0], [], []>} : vector<32x8xf32>, vector<32x8xf32>, vector<32x32xf32> -> vector<32x32xf32>
    %467 = arith.addf %446, %466 : vector<32x32xf32>
    %468 = vector.extract_strided_slice %403 {offsets = [0, 0, 24], sizes = [2, 16, 8], strides = [1, 1, 1]} : vector<2x16x96xf32> to vector<2x16x8xf32>
    %cst_191 = arith.constant 0.353553385 : f32
    %469 = vector.broadcast %cst_191 : f32 to vector<2x16x8xf32>
    %470 = arith.mulf %468, %469 : vector<2x16x8xf32>
    %471 = vector.extract_strided_slice %403 {offsets = [0, 0, 56], sizes = [2, 16, 8], strides = [1, 1, 1]} : vector<2x16x96xf32> to vector<2x16x8xf32>
    %472 = vector.extract_strided_slice %403 {offsets = [0, 0, 88], sizes = [2, 16, 8], strides = [1, 1, 1]} : vector<2x16x96xf32> to vector<2x16x8xf32>
    "tpu.trace_start"() <{level = 10 : i32, message = "bqd,bkd->bqk"}> : () -> ()
    %cst_192 = arith.constant dense<0.000000e+00> : vector<2x16x16xf32>
    %473 = tpu.matmul %470, %471, %cst_192 {dimension_numbers = #tpu.dot_dimension_numbers<[2], [2], [1], [1], [0, 0, 0, 1, 1, 1], [0], [0]>} : vector<2x16x8xf32>, vector<2x16x8xf32>, vector<2x16x16xf32> -> vector<2x16x16xf32>
    "tpu.trace_stop"() : () -> ()
    %cst_193 = arith.constant dense<0xFF800000> : vector<2x16xf32>
    %474 = vector.multi_reduction <maximumf>, %473, %cst_193 [2] : vector<2x16x16xf32> to vector<2x16xf32>
    %475 = vector.shape_cast %474 : vector<2x16xf32> to vector<2x16x1xf32>
    %476 = vector.broadcast %475 : vector<2x16x1xf32> to vector<2x16x16xf32>
    %477 = arith.subf %473, %476 : vector<2x16x16xf32>
    %478 = math.exp %477 : vector<2x16x16xf32>
    %cst_194 = arith.constant dense<0.000000e+00> : vector<2x16xf32>
    %479 = vector.multi_reduction <add>, %478, %cst_194 [2] : vector<2x16x16xf32> to vector<2x16xf32>
    %480 = vector.shape_cast %479 : vector<2x16xf32> to vector<2x16x1xf32>
    %481 = tpu.reciprocal %480 {approx = true} : vector<2x16x1xf32> -> vector<2x16x1xf32>
    %482 = vector.broadcast %481 : vector<2x16x1xf32> to vector<2x16x16xf32>
    %483 = arith.mulf %478, %482 : vector<2x16x16xf32>
    "tpu.trace_start"() <{level = 10 : i32, message = "bqk,bkd->bqd"}> : () -> ()
    %cst_195 = arith.constant dense<0.000000e+00> : vector<2x16x8xf32>
    %484 = tpu.matmul %483, %472, %cst_195 {dimension_numbers = #tpu.dot_dimension_numbers<[2], [1], [1], [2], [0, 0, 0, 1, 1, 2], [0], [0]>} : vector<2x16x16xf32>, vector<2x16x8xf32>, vector<2x16x8xf32> -> vector<2x16x8xf32>
    "tpu.trace_stop"() : () -> ()
    %485 = vector.shape_cast %484 : vector<2x16x8xf32> to vector<32x8xf32>
    %486 = vector.extract_strided_slice %396 {offsets = [0, 24], sizes = [32, 8], strides = [1, 1]} : vector<32x32xf32> to vector<32x8xf32>
    %cst_196 = arith.constant dense<0.000000e+00> : vector<32x32xf32>
    %487 = tpu.matmul %485, %486, %cst_196 {dimension_numbers = #tpu.dot_dimension_numbers<[1], [1], [0], [0], [0, 0, 1, 0], [], []>} : vector<32x8xf32>, vector<32x8xf32>, vector<32x32xf32> -> vector<32x32xf32>
    %488 = arith.addf %467, %487 : vector<32x32xf32>
    %489 = vector.broadcast %398 : vector<1x32xf32> to vector<32x32xf32>
    %490 = arith.addf %488, %489 : vector<32x32xf32>
    %491 = vector.shape_cast %490 : vector<32x32xf32> to vector<2x16x32xf32>
    %492 = vector.extract_strided_slice %390 {offsets = [0, 0, 0], sizes = [1, 16, 32], strides = [1, 1, 1]} : vector<2x16x32xf32> to vector<1x16x32xf32>
    %493 = vector.shape_cast %492 : vector<1x16x32xf32> to vector<16x32xf32>
    %494 = tpu.transpose %493, [1, 0] : vector<16x32xf32> -> vector<32x16xf32>
    %495 = vector.extract_strided_slice %390 {offsets = [1, 0, 0], sizes = [1, 16, 32], strides = [1, 1, 1]} : vector<2x16x32xf32> to vector<1x16x32xf32>
    %496 = vector.shape_cast %495 : vector<1x16x32xf32> to vector<16x32xf32>
    %497 = tpu.transpose %496, [1, 0] : vector<16x32xf32> -> vector<32x16xf32>
    %498 = vector.shape_cast %494 : vector<32x16xf32> to vector<1x32x16xf32>
    %499 = vector.shape_cast %497 : vector<32x16xf32> to vector<1x32x16xf32>
    %500 = tpu.concatenate %498, %499 in 0 : vector<1x32x16xf32>, vector<1x32x16xf32> -> vector<2x32x16xf32>
    %c1_197 = arith.constant 1 : index
    %c0_198 = arith.constant 0 : index
    %c0_199 = arith.constant 0 : index
    %501 = vector.load %arg6[%c1_197, %c0_198, %c0_199] : memref<2x48x16xf32, #tpu.memory_space<vmem>>, vector<1x48x16xf32>
    %502 = vector.shape_cast %501 : vector<1x48x16xf32> to vector<48x16xf32>
    %c1_200 = arith.constant 1 : index
    %c0_201 = arith.constant 0 : index
    %c0_202 = arith.constant 0 : index
    %503 = vector.load %arg7[%c1_200, %c0_201, %c0_202] : memref<2x1x48xf32, #tpu.memory_space<vmem>>, vector<1x1x48xf32>
    %504 = vector.shape_cast %503 : vector<1x1x48xf32> to vector<1x48xf32>
    %c1_203 = arith.constant 1 : index
    %c0_204 = arith.constant 0 : index
    %c0_205 = arith.constant 0 : index
    %505 = vector.load %arg8[%c1_203, %c0_204, %c0_205] : memref<2x16x16xf32, #tpu.memory_space<vmem>>, vector<1x16x16xf32>
    %506 = vector.shape_cast %505 : vector<1x16x16xf32> to vector<16x16xf32>
    %c1_206 = arith.constant 1 : index
    %c0_207 = arith.constant 0 : index
    %c0_208 = arith.constant 0 : index
    %507 = vector.load %arg9[%c1_206, %c0_207, %c0_208] : memref<2x1x16xf32, #tpu.memory_space<vmem>>, vector<1x1x16xf32>
    %508 = vector.shape_cast %507 : vector<1x1x16xf32> to vector<1x16xf32>
    %509 = vector.shape_cast %500 : vector<2x32x16xf32> to vector<64x16xf32>
    %cst_209 = arith.constant dense<0.000000e+00> : vector<64x48xf32>
    %510 = tpu.matmul %509, %502, %cst_209 {dimension_numbers = #tpu.dot_dimension_numbers<[1], [1], [0], [0], [0, 0, 1, 0], [], []>} : vector<64x16xf32>, vector<48x16xf32>, vector<64x48xf32> -> vector<64x48xf32>
    %511 = vector.broadcast %504 : vector<1x48xf32> to vector<64x48xf32>
    %512 = arith.addf %510, %511 : vector<64x48xf32>
    %513 = vector.shape_cast %512 : vector<64x48xf32> to vector<2x32x48xf32>
    %cst_210 = arith.constant 0.000000e+00 : f32
    %514 = vector.broadcast %cst_210 : f32 to vector<64x16xf32>
    %515 = vector.extract_strided_slice %513 {offsets = [0, 0, 0], sizes = [2, 32, 4], strides = [1, 1, 1]} : vector<2x32x48xf32> to vector<2x32x4xf32>
    %cst_211 = arith.constant 5.000000e-01 : f32
    %516 = vector.broadcast %cst_211 : f32 to vector<2x32x4xf32>
    %517 = arith.mulf %515, %516 : vector<2x32x4xf32>
    %518 = vector.extract_strided_slice %513 {offsets = [0, 0, 16], sizes = [2, 32, 4], strides = [1, 1, 1]} : vector<2x32x48xf32> to vector<2x32x4xf32>
    %519 = vector.extract_strided_slice %513 {offsets = [0, 0, 32], sizes = [2, 32, 4], strides = [1, 1, 1]} : vector<2x32x48xf32> to vector<2x32x4xf32>
    "tpu.trace_start"() <{level = 10 : i32, message = "bqd,bkd->bqk"}> : () -> ()
    %cst_212 = arith.constant dense<0.000000e+00> : vector<2x32x32xf32>
    %520 = tpu.matmul %517, %518, %cst_212 {dimension_numbers = #tpu.dot_dimension_numbers<[2], [2], [1], [1], [0, 0, 0, 1, 1, 1], [0], [0]>} : vector<2x32x4xf32>, vector<2x32x4xf32>, vector<2x32x32xf32> -> vector<2x32x32xf32>
    "tpu.trace_stop"() : () -> ()
    %cst_213 = arith.constant dense<0xFF800000> : vector<2x32xf32>
    %521 = vector.multi_reduction <maximumf>, %520, %cst_213 [2] : vector<2x32x32xf32> to vector<2x32xf32>
    %522 = vector.shape_cast %521 : vector<2x32xf32> to vector<2x32x1xf32>
    %523 = vector.broadcast %522 : vector<2x32x1xf32> to vector<2x32x32xf32>
    %524 = arith.subf %520, %523 : vector<2x32x32xf32>
    %525 = math.exp %524 : vector<2x32x32xf32>
    %cst_214 = arith.constant dense<0.000000e+00> : vector<2x32xf32>
    %526 = vector.multi_reduction <add>, %525, %cst_214 [2] : vector<2x32x32xf32> to vector<2x32xf32>
    %527 = vector.shape_cast %526 : vector<2x32xf32> to vector<2x32x1xf32>
    %528 = tpu.reciprocal %527 {approx = true} : vector<2x32x1xf32> -> vector<2x32x1xf32>
    %529 = vector.broadcast %528 : vector<2x32x1xf32> to vector<2x32x32xf32>
    %530 = arith.mulf %525, %529 : vector<2x32x32xf32>
    "tpu.trace_start"() <{level = 10 : i32, message = "bqk,bkd->bqd"}> : () -> ()
    %cst_215 = arith.constant dense<0.000000e+00> : vector<2x32x4xf32>
    %531 = tpu.matmul %530, %519, %cst_215 {dimension_numbers = #tpu.dot_dimension_numbers<[2], [1], [1], [2], [0, 0, 0, 1, 1, 2], [0], [0]>} : vector<2x32x32xf32>, vector<2x32x4xf32>, vector<2x32x4xf32> -> vector<2x32x4xf32>
    "tpu.trace_stop"() : () -> ()
    %532 = vector.shape_cast %531 : vector<2x32x4xf32> to vector<64x4xf32>
    %533 = vector.extract_strided_slice %506 {offsets = [0, 0], sizes = [16, 4], strides = [1, 1]} : vector<16x16xf32> to vector<16x4xf32>
    %cst_216 = arith.constant dense<0.000000e+00> : vector<64x16xf32>
    %534 = tpu.matmul %532, %533, %cst_216 {dimension_numbers = #tpu.dot_dimension_numbers<[1], [1], [0], [0], [0, 0, 1, 0], [], []>} : vector<64x4xf32>, vector<16x4xf32>, vector<64x16xf32> -> vector<64x16xf32>
    %535 = arith.addf %514, %534 : vector<64x16xf32>
    %536 = vector.extract_strided_slice %513 {offsets = [0, 0, 4], sizes = [2, 32, 4], strides = [1, 1, 1]} : vector<2x32x48xf32> to vector<2x32x4xf32>
    %cst_217 = arith.constant 5.000000e-01 : f32
    %537 = vector.broadcast %cst_217 : f32 to vector<2x32x4xf32>
    %538 = arith.mulf %536, %537 : vector<2x32x4xf32>
    %539 = vector.extract_strided_slice %513 {offsets = [0, 0, 20], sizes = [2, 32, 4], strides = [1, 1, 1]} : vector<2x32x48xf32> to vector<2x32x4xf32>
    %540 = vector.extract_strided_slice %513 {offsets = [0, 0, 36], sizes = [2, 32, 4], strides = [1, 1, 1]} : vector<2x32x48xf32> to vector<2x32x4xf32>
    "tpu.trace_start"() <{level = 10 : i32, message = "bqd,bkd->bqk"}> : () -> ()
    %cst_218 = arith.constant dense<0.000000e+00> : vector<2x32x32xf32>
    %541 = tpu.matmul %538, %539, %cst_218 {dimension_numbers = #tpu.dot_dimension_numbers<[2], [2], [1], [1], [0, 0, 0, 1, 1, 1], [0], [0]>} : vector<2x32x4xf32>, vector<2x32x4xf32>, vector<2x32x32xf32> -> vector<2x32x32xf32>
    "tpu.trace_stop"() : () -> ()
    %cst_219 = arith.constant dense<0xFF800000> : vector<2x32xf32>
    %542 = vector.multi_reduction <maximumf>, %541, %cst_219 [2] : vector<2x32x32xf32> to vector<2x32xf32>
    %543 = vector.shape_cast %542 : vector<2x32xf32> to vector<2x32x1xf32>
    %544 = vector.broadcast %543 : vector<2x32x1xf32> to vector<2x32x32xf32>
    %545 = arith.subf %541, %544 : vector<2x32x32xf32>
    %546 = math.exp %545 : vector<2x32x32xf32>
    %cst_220 = arith.constant dense<0.000000e+00> : vector<2x32xf32>
    %547 = vector.multi_reduction <add>, %546, %cst_220 [2] : vector<2x32x32xf32> to vector<2x32xf32>
    %548 = vector.shape_cast %547 : vector<2x32xf32> to vector<2x32x1xf32>
    %549 = tpu.reciprocal %548 {approx = true} : vector<2x32x1xf32> -> vector<2x32x1xf32>
    %550 = vector.broadcast %549 : vector<2x32x1xf32> to vector<2x32x32xf32>
    %551 = arith.mulf %546, %550 : vector<2x32x32xf32>
    "tpu.trace_start"() <{level = 10 : i32, message = "bqk,bkd->bqd"}> : () -> ()
    %cst_221 = arith.constant dense<0.000000e+00> : vector<2x32x4xf32>
    %552 = tpu.matmul %551, %540, %cst_221 {dimension_numbers = #tpu.dot_dimension_numbers<[2], [1], [1], [2], [0, 0, 0, 1, 1, 2], [0], [0]>} : vector<2x32x32xf32>, vector<2x32x4xf32>, vector<2x32x4xf32> -> vector<2x32x4xf32>
    "tpu.trace_stop"() : () -> ()
    %553 = vector.shape_cast %552 : vector<2x32x4xf32> to vector<64x4xf32>
    %554 = vector.extract_strided_slice %506 {offsets = [0, 4], sizes = [16, 4], strides = [1, 1]} : vector<16x16xf32> to vector<16x4xf32>
    %cst_222 = arith.constant dense<0.000000e+00> : vector<64x16xf32>
    %555 = tpu.matmul %553, %554, %cst_222 {dimension_numbers = #tpu.dot_dimension_numbers<[1], [1], [0], [0], [0, 0, 1, 0], [], []>} : vector<64x4xf32>, vector<16x4xf32>, vector<64x16xf32> -> vector<64x16xf32>
    %556 = arith.addf %535, %555 : vector<64x16xf32>
    %557 = vector.extract_strided_slice %513 {offsets = [0, 0, 8], sizes = [2, 32, 4], strides = [1, 1, 1]} : vector<2x32x48xf32> to vector<2x32x4xf32>
    %cst_223 = arith.constant 5.000000e-01 : f32
    %558 = vector.broadcast %cst_223 : f32 to vector<2x32x4xf32>
    %559 = arith.mulf %557, %558 : vector<2x32x4xf32>
    %560 = vector.extract_strided_slice %513 {offsets = [0, 0, 24], sizes = [2, 32, 4], strides = [1, 1, 1]} : vector<2x32x48xf32> to vector<2x32x4xf32>
    %561 = vector.extract_strided_slice %513 {offsets = [0, 0, 40], sizes = [2, 32, 4], strides = [1, 1, 1]} : vector<2x32x48xf32> to vector<2x32x4xf32>
    "tpu.trace_start"() <{level = 10 : i32, message = "bqd,bkd->bqk"}> : () -> ()
    %cst_224 = arith.constant dense<0.000000e+00> : vector<2x32x32xf32>
    %562 = tpu.matmul %559, %560, %cst_224 {dimension_numbers = #tpu.dot_dimension_numbers<[2], [2], [1], [1], [0, 0, 0, 1, 1, 1], [0], [0]>} : vector<2x32x4xf32>, vector<2x32x4xf32>, vector<2x32x32xf32> -> vector<2x32x32xf32>
    "tpu.trace_stop"() : () -> ()
    %cst_225 = arith.constant dense<0xFF800000> : vector<2x32xf32>
    %563 = vector.multi_reduction <maximumf>, %562, %cst_225 [2] : vector<2x32x32xf32> to vector<2x32xf32>
    %564 = vector.shape_cast %563 : vector<2x32xf32> to vector<2x32x1xf32>
    %565 = vector.broadcast %564 : vector<2x32x1xf32> to vector<2x32x32xf32>
    %566 = arith.subf %562, %565 : vector<2x32x32xf32>
    %567 = math.exp %566 : vector<2x32x32xf32>
    %cst_226 = arith.constant dense<0.000000e+00> : vector<2x32xf32>
    %568 = vector.multi_reduction <add>, %567, %cst_226 [2] : vector<2x32x32xf32> to vector<2x32xf32>
    %569 = vector.shape_cast %568 : vector<2x32xf32> to vector<2x32x1xf32>
    %570 = tpu.reciprocal %569 {approx = true} : vector<2x32x1xf32> -> vector<2x32x1xf32>
    %571 = vector.broadcast %570 : vector<2x32x1xf32> to vector<2x32x32xf32>
    %572 = arith.mulf %567, %571 : vector<2x32x32xf32>
    "tpu.trace_start"() <{level = 10 : i32, message = "bqk,bkd->bqd"}> : () -> ()
    %cst_227 = arith.constant dense<0.000000e+00> : vector<2x32x4xf32>
    %573 = tpu.matmul %572, %561, %cst_227 {dimension_numbers = #tpu.dot_dimension_numbers<[2], [1], [1], [2], [0, 0, 0, 1, 1, 2], [0], [0]>} : vector<2x32x32xf32>, vector<2x32x4xf32>, vector<2x32x4xf32> -> vector<2x32x4xf32>
    "tpu.trace_stop"() : () -> ()
    %574 = vector.shape_cast %573 : vector<2x32x4xf32> to vector<64x4xf32>
    %575 = vector.extract_strided_slice %506 {offsets = [0, 8], sizes = [16, 4], strides = [1, 1]} : vector<16x16xf32> to vector<16x4xf32>
    %cst_228 = arith.constant dense<0.000000e+00> : vector<64x16xf32>
    %576 = tpu.matmul %574, %575, %cst_228 {dimension_numbers = #tpu.dot_dimension_numbers<[1], [1], [0], [0], [0, 0, 1, 0], [], []>} : vector<64x4xf32>, vector<16x4xf32>, vector<64x16xf32> -> vector<64x16xf32>
    %577 = arith.addf %556, %576 : vector<64x16xf32>
    %578 = vector.extract_strided_slice %513 {offsets = [0, 0, 12], sizes = [2, 32, 4], strides = [1, 1, 1]} : vector<2x32x48xf32> to vector<2x32x4xf32>
    %cst_229 = arith.constant 5.000000e-01 : f32
    %579 = vector.broadcast %cst_229 : f32 to vector<2x32x4xf32>
    %580 = arith.mulf %578, %579 : vector<2x32x4xf32>
    %581 = vector.extract_strided_slice %513 {offsets = [0, 0, 28], sizes = [2, 32, 4], strides = [1, 1, 1]} : vector<2x32x48xf32> to vector<2x32x4xf32>
    %582 = vector.extract_strided_slice %513 {offsets = [0, 0, 44], sizes = [2, 32, 4], strides = [1, 1, 1]} : vector<2x32x48xf32> to vector<2x32x4xf32>
    "tpu.trace_start"() <{level = 10 : i32, message = "bqd,bkd->bqk"}> : () -> ()
    %cst_230 = arith.constant dense<0.000000e+00> : vector<2x32x32xf32>
    %583 = tpu.matmul %580, %581, %cst_230 {dimension_numbers = #tpu.dot_dimension_numbers<[2], [2], [1], [1], [0, 0, 0, 1, 1, 1], [0], [0]>} : vector<2x32x4xf32>, vector<2x32x4xf32>, vector<2x32x32xf32> -> vector<2x32x32xf32>
    "tpu.trace_stop"() : () -> ()
    %cst_231 = arith.constant dense<0xFF800000> : vector<2x32xf32>
    %584 = vector.multi_reduction <maximumf>, %583, %cst_231 [2] : vector<2x32x32xf32> to vector<2x32xf32>
    %585 = vector.shape_cast %584 : vector<2x32xf32> to vector<2x32x1xf32>
    %586 = vector.broadcast %585 : vector<2x32x1xf32> to vector<2x32x32xf32>
    %587 = arith.subf %583, %586 : vector<2x32x32xf32>
    %588 = math.exp %587 : vector<2x32x32xf32>
    %cst_232 = arith.constant dense<0.000000e+00> : vector<2x32xf32>
    %589 = vector.multi_reduction <add>, %588, %cst_232 [2] : vector<2x32x32xf32> to vector<2x32xf32>
    %590 = vector.shape_cast %589 : vector<2x32xf32> to vector<2x32x1xf32>
    %591 = tpu.reciprocal %590 {approx = true} : vector<2x32x1xf32> -> vector<2x32x1xf32>
    %592 = vector.broadcast %591 : vector<2x32x1xf32> to vector<2x32x32xf32>
    %593 = arith.mulf %588, %592 : vector<2x32x32xf32>
    "tpu.trace_start"() <{level = 10 : i32, message = "bqk,bkd->bqd"}> : () -> ()
    %cst_233 = arith.constant dense<0.000000e+00> : vector<2x32x4xf32>
    %594 = tpu.matmul %593, %582, %cst_233 {dimension_numbers = #tpu.dot_dimension_numbers<[2], [1], [1], [2], [0, 0, 0, 1, 1, 2], [0], [0]>} : vector<2x32x32xf32>, vector<2x32x4xf32>, vector<2x32x4xf32> -> vector<2x32x4xf32>
    "tpu.trace_stop"() : () -> ()
    %595 = vector.shape_cast %594 : vector<2x32x4xf32> to vector<64x4xf32>
    %596 = vector.extract_strided_slice %506 {offsets = [0, 12], sizes = [16, 4], strides = [1, 1]} : vector<16x16xf32> to vector<16x4xf32>
    %cst_234 = arith.constant dense<0.000000e+00> : vector<64x16xf32>
    %597 = tpu.matmul %595, %596, %cst_234 {dimension_numbers = #tpu.dot_dimension_numbers<[1], [1], [0], [0], [0, 0, 1, 0], [], []>} : vector<64x4xf32>, vector<16x4xf32>, vector<64x16xf32> -> vector<64x16xf32>
    %598 = arith.addf %577, %597 : vector<64x16xf32>
    %599 = vector.broadcast %508 : vector<1x16xf32> to vector<64x16xf32>
    %600 = arith.addf %598, %599 : vector<64x16xf32>
    %601 = vector.shape_cast %600 : vector<64x16xf32> to vector<2x32x16xf32>
    %602 = vector.extract_strided_slice %601 {offsets = [0, 0, 0], sizes = [1, 32, 16], strides = [1, 1, 1]} : vector<2x32x16xf32> to vector<1x32x16xf32>
    %603 = vector.shape_cast %602 : vector<1x32x16xf32> to vector<32x16xf32>
    %604 = tpu.transpose %603, [1, 0] : vector<32x16xf32> -> vector<16x32xf32>
    %605 = vector.extract_strided_slice %601 {offsets = [1, 0, 0], sizes = [1, 32, 16], strides = [1, 1, 1]} : vector<2x32x16xf32> to vector<1x32x16xf32>
    %606 = vector.shape_cast %605 : vector<1x32x16xf32> to vector<32x16xf32>
    %607 = tpu.transpose %606, [1, 0] : vector<32x16xf32> -> vector<16x32xf32>
    %608 = vector.shape_cast %604 : vector<16x32xf32> to vector<1x16x32xf32>
    %609 = vector.shape_cast %607 : vector<16x32xf32> to vector<1x16x32xf32>
    %610 = tpu.concatenate %608, %609 in 0 : vector<1x16x32xf32>, vector<1x16x32xf32> -> vector<2x16x32xf32>
    %c1_235 = arith.constant 1 : index
    %c0_236 = arith.constant 0 : index
    %c0_237 = arith.constant 0 : index
    %611 = vector.load %arg10[%c1_235, %c0_236, %c0_237] : memref<2x4x32xf32, #tpu.memory_space<vmem>>, vector<1x4x32xf32>
    %612 = vector.shape_cast %611 : vector<1x4x32xf32> to vector<4x32xf32>
    %613 = arith.addf %390, %491 : vector<2x16x32xf32>
    %614 = arith.addf %613, %610 : vector<2x16x32xf32>
    %615 = vector.extract_strided_slice %612 {offsets = [0, 0], sizes = [1, 32], strides = [1, 1]} : vector<4x32xf32> to vector<1x32xf32>
    %616 = vector.extract_strided_slice %612 {offsets = [1, 0], sizes = [1, 32], strides = [1, 1]} : vector<4x32xf32> to vector<1x32xf32>
    %cst_238 = arith.constant dense<0.000000e+00> : vector<2x16xf32>
    %617 = vector.multi_reduction <add>, %614, %cst_238 [2] : vector<2x16x32xf32> to vector<2x16xf32>
    %618 = vector.shape_cast %617 : vector<2x16xf32> to vector<2x16x1xf32>
    %cst_239 = arith.constant 3.200000e+01 : f32
    %619 = vector.broadcast %cst_239 : f32 to vector<2x16x1xf32>
    %620 = arith.divf %618, %619 : vector<2x16x1xf32>
    %621 = vector.broadcast %620 : vector<2x16x1xf32> to vector<2x16x32xf32>
    %622 = arith.subf %614, %621 : vector<2x16x32xf32>
    %623 = arith.mulf %622, %622 : vector<2x16x32xf32>
    %cst_240 = arith.constant dense<0.000000e+00> : vector<2x16xf32>
    %624 = vector.multi_reduction <add>, %623, %cst_240 [2] : vector<2x16x32xf32> to vector<2x16xf32>
    %625 = vector.shape_cast %624 : vector<2x16xf32> to vector<2x16x1xf32>
    %cst_241 = arith.constant 3.200000e+01 : f32
    %626 = vector.broadcast %cst_241 : f32 to vector<2x16x1xf32>
    %627 = arith.divf %625, %626 : vector<2x16x1xf32>
    %cst_242 = arith.constant 9.99999974E-6 : f32
    %628 = vector.broadcast %cst_242 : f32 to vector<2x16x1xf32>
    %629 = arith.addf %627, %628 : vector<2x16x1xf32>
    %630 = math.rsqrt %629 : vector<2x16x1xf32>
    %631 = vector.broadcast %630 : vector<2x16x1xf32> to vector<2x16x32xf32>
    %632 = arith.mulf %622, %631 : vector<2x16x32xf32>
    %633 = vector.shape_cast %615 : vector<1x32xf32> to vector<1x1x32xf32>
    %634 = vector.broadcast %633 : vector<1x1x32xf32> to vector<2x16x32xf32>
    %635 = arith.mulf %632, %634 : vector<2x16x32xf32>
    %636 = vector.shape_cast %616 : vector<1x32xf32> to vector<1x1x32xf32>
    %637 = vector.broadcast %636 : vector<1x1x32xf32> to vector<2x16x32xf32>
    %638 = arith.addf %635, %637 : vector<2x16x32xf32>
    %c1_243 = arith.constant 1 : index
    %c0_244 = arith.constant 0 : index
    %639 = memref.load %arg13[%c1_243, %c0_244] : memref<2x16xf32, #tpu.memory_space<smem>>
    %640 = vector.broadcast %639 : f32 to vector<2x16x32xf32>
    %641 = arith.mulf %640, %638 : vector<2x16x32xf32>
    %c1_245 = arith.constant 1 : index
    %c1_246 = arith.constant 1 : index
    %642 = memref.load %arg13[%c1_245, %c1_246] : memref<2x16xf32, #tpu.memory_space<smem>>
    %643 = vector.broadcast %642 : f32 to vector<2x16x32xf32>
    %644 = arith.addf %641, %643 : vector<2x16x32xf32>
    %c1_247 = arith.constant 1 : index
    %c2_248 = arith.constant 2 : index
    %645 = memref.load %arg13[%c1_247, %c2_248] : memref<2x16xf32, #tpu.memory_space<smem>>
    %c1_249 = arith.constant 1 : index
    %c3_250 = arith.constant 3 : index
    %646 = memref.load %arg13[%c1_249, %c3_250] : memref<2x16xf32, #tpu.memory_space<smem>>
    %c1_251 = arith.constant 1 : index
    %c4_252 = arith.constant 4 : index
    %647 = memref.load %arg13[%c1_251, %c4_252] : memref<2x16xf32, #tpu.memory_space<smem>>
    %c1_253 = arith.constant 1 : index
    %c5_254 = arith.constant 5 : index
    %648 = memref.load %arg13[%c1_253, %c5_254] : memref<2x16xf32, #tpu.memory_space<smem>>
    %649 = vector.broadcast %647 : f32 to vector<2x16x32xf32>
    %650 = arith.subf %644, %649 : vector<2x16x32xf32>
    %cst_255 = arith.constant 9.99999974E-6 : f32
    %651 = arith.addf %648, %cst_255 : f32
    %652 = math.sqrt %651 : f32
    %653 = arith.divf %645, %652 : f32
    %654 = vector.broadcast %653 : f32 to vector<2x16x32xf32>
    %655 = arith.mulf %650, %654 : vector<2x16x32xf32>
    %656 = vector.broadcast %646 : f32 to vector<2x16x32xf32>
    %657 = arith.addf %655, %656 : vector<2x16x32xf32>
    %cst_256 = arith.constant 0.000000e+00 : f32
    %658 = vector.broadcast %cst_256 : f32 to vector<2x16x32xf32>
    %659 = arith.maximumf %657, %658 : vector<2x16x32xf32>
    %c1_257 = arith.constant 1 : index
    %c6_258 = arith.constant 6 : index
    %660 = memref.load %arg13[%c1_257, %c6_258] : memref<2x16xf32, #tpu.memory_space<smem>>
    %cst_259 = arith.constant 0.000000e+00 : f32
    %661 = vector.broadcast %cst_259 : f32 to vector<2x1x32xf32>
    %662 = tpu.concatenate %661, %659, %661 in 1 : vector<2x1x32xf32>, vector<2x16x32xf32>, vector<2x1x32xf32> -> vector<2x18x32xf32>
    %cst_260 = arith.constant 0.000000e+00 : f32
    %663 = vector.broadcast %cst_260 : f32 to vector<32x32xf32>
    %664 = vector.extract_strided_slice %662 {offsets = [0, 0, 0], sizes = [2, 16, 32], strides = [1, 1, 1]} : vector<2x18x32xf32> to vector<2x16x32xf32>
    %665 = vector.shape_cast %664 : vector<2x16x32xf32> to vector<32x32xf32>
    %c1_261 = arith.constant 1 : index
    %c0_262 = arith.constant 0 : index
    %c0_263 = arith.constant 0 : index
    %c0_264 = arith.constant 0 : index
    %666 = vector.load %arg11[%c1_261, %c0_262, %c0_263, %c0_264] : memref<2x3x32x32xf32, #tpu.memory_space<vmem>>, vector<1x1x32x32xf32>
    %667 = vector.shape_cast %666 : vector<1x1x32x32xf32> to vector<32x32xf32>
    %cst_265 = arith.constant dense<0.000000e+00> : vector<32x32xf32>
    %668 = tpu.matmul %665, %667, %cst_265 {dimension_numbers = #tpu.dot_dimension_numbers<[1], [0], [0], [1], [0, 0, 1, 1], [], []>} : vector<32x32xf32>, vector<32x32xf32>, vector<32x32xf32> -> vector<32x32xf32>
    %669 = arith.addf %663, %668 : vector<32x32xf32>
    %670 = vector.extract_strided_slice %662 {offsets = [0, 1, 0], sizes = [2, 16, 32], strides = [1, 1, 1]} : vector<2x18x32xf32> to vector<2x16x32xf32>
    %671 = vector.shape_cast %670 : vector<2x16x32xf32> to vector<32x32xf32>
    %c1_266 = arith.constant 1 : index
    %c1_267 = arith.constant 1 : index
    %c0_268 = arith.constant 0 : index
    %c0_269 = arith.constant 0 : index
    %672 = vector.load %arg11[%c1_266, %c1_267, %c0_268, %c0_269] : memref<2x3x32x32xf32, #tpu.memory_space<vmem>>, vector<1x1x32x32xf32>
    %673 = vector.shape_cast %672 : vector<1x1x32x32xf32> to vector<32x32xf32>
    %cst_270 = arith.constant dense<0.000000e+00> : vector<32x32xf32>
    %674 = tpu.matmul %671, %673, %cst_270 {dimension_numbers = #tpu.dot_dimension_numbers<[1], [0], [0], [1], [0, 0, 1, 1], [], []>} : vector<32x32xf32>, vector<32x32xf32>, vector<32x32xf32> -> vector<32x32xf32>
    %675 = arith.addf %669, %674 : vector<32x32xf32>
    %676 = vector.extract_strided_slice %662 {offsets = [0, 2, 0], sizes = [2, 16, 32], strides = [1, 1, 1]} : vector<2x18x32xf32> to vector<2x16x32xf32>
    %677 = vector.shape_cast %676 : vector<2x16x32xf32> to vector<32x32xf32>
    %c1_271 = arith.constant 1 : index
    %c2_272 = arith.constant 2 : index
    %c0_273 = arith.constant 0 : index
    %c0_274 = arith.constant 0 : index
    %678 = vector.load %arg11[%c1_271, %c2_272, %c0_273, %c0_274] : memref<2x3x32x32xf32, #tpu.memory_space<vmem>>, vector<1x1x32x32xf32>
    %679 = vector.shape_cast %678 : vector<1x1x32x32xf32> to vector<32x32xf32>
    %cst_275 = arith.constant dense<0.000000e+00> : vector<32x32xf32>
    %680 = tpu.matmul %677, %679, %cst_275 {dimension_numbers = #tpu.dot_dimension_numbers<[1], [0], [0], [1], [0, 0, 1, 1], [], []>} : vector<32x32xf32>, vector<32x32xf32>, vector<32x32xf32> -> vector<32x32xf32>
    %681 = arith.addf %675, %680 : vector<32x32xf32>
    %682 = vector.shape_cast %681 : vector<32x32xf32> to vector<2x16x32xf32>
    %683 = vector.broadcast %660 : f32 to vector<2x16x32xf32>
    %684 = arith.addf %682, %683 : vector<2x16x32xf32>
    %c1_276 = arith.constant 1 : index
    %c7_277 = arith.constant 7 : index
    %685 = memref.load %arg13[%c1_276, %c7_277] : memref<2x16xf32, #tpu.memory_space<smem>>
    %c1_278 = arith.constant 1 : index
    %c8_279 = arith.constant 8 : index
    %686 = memref.load %arg13[%c1_278, %c8_279] : memref<2x16xf32, #tpu.memory_space<smem>>
    %c1_280 = arith.constant 1 : index
    %c9_281 = arith.constant 9 : index
    %687 = memref.load %arg13[%c1_280, %c9_281] : memref<2x16xf32, #tpu.memory_space<smem>>
    %c1_282 = arith.constant 1 : index
    %c10_283 = arith.constant 10 : index
    %688 = memref.load %arg13[%c1_282, %c10_283] : memref<2x16xf32, #tpu.memory_space<smem>>
    %689 = vector.broadcast %687 : f32 to vector<2x16x32xf32>
    %690 = arith.subf %684, %689 : vector<2x16x32xf32>
    %cst_284 = arith.constant 9.99999974E-6 : f32
    %691 = arith.addf %688, %cst_284 : f32
    %692 = math.sqrt %691 : f32
    %693 = arith.divf %685, %692 : f32
    %694 = vector.broadcast %693 : f32 to vector<2x16x32xf32>
    %695 = arith.mulf %690, %694 : vector<2x16x32xf32>
    %696 = vector.broadcast %686 : f32 to vector<2x16x32xf32>
    %697 = arith.addf %695, %696 : vector<2x16x32xf32>
    %cst_285 = arith.constant 0.000000e+00 : f32
    %698 = vector.broadcast %cst_285 : f32 to vector<2x16x32xf32>
    %699 = arith.maximumf %697, %698 : vector<2x16x32xf32>
    %c1_286 = arith.constant 1 : index
    %c11_287 = arith.constant 11 : index
    %700 = memref.load %arg13[%c1_286, %c11_287] : memref<2x16xf32, #tpu.memory_space<smem>>
    %cst_288 = arith.constant 0.000000e+00 : f32
    %701 = vector.broadcast %cst_288 : f32 to vector<2x2x32xf32>
    %702 = tpu.concatenate %701, %699, %701 in 1 : vector<2x2x32xf32>, vector<2x16x32xf32>, vector<2x2x32xf32> -> vector<2x20x32xf32>
    %cst_289 = arith.constant 0.000000e+00 : f32
    %703 = vector.broadcast %cst_289 : f32 to vector<32x32xf32>
    %704 = vector.extract_strided_slice %702 {offsets = [0, 0, 0], sizes = [2, 16, 32], strides = [1, 1, 1]} : vector<2x20x32xf32> to vector<2x16x32xf32>
    %705 = vector.shape_cast %704 : vector<2x16x32xf32> to vector<32x32xf32>
    %c1_290 = arith.constant 1 : index
    %c0_291 = arith.constant 0 : index
    %c0_292 = arith.constant 0 : index
    %c0_293 = arith.constant 0 : index
    %706 = vector.load %arg12[%c1_290, %c0_291, %c0_292, %c0_293] : memref<2x5x32x32xf32, #tpu.memory_space<vmem>>, vector<1x1x32x32xf32>
    %707 = vector.shape_cast %706 : vector<1x1x32x32xf32> to vector<32x32xf32>
    %cst_294 = arith.constant dense<0.000000e+00> : vector<32x32xf32>
    %708 = tpu.matmul %705, %707, %cst_294 {dimension_numbers = #tpu.dot_dimension_numbers<[1], [0], [0], [1], [0, 0, 1, 1], [], []>} : vector<32x32xf32>, vector<32x32xf32>, vector<32x32xf32> -> vector<32x32xf32>
    %709 = arith.addf %703, %708 : vector<32x32xf32>
    %710 = vector.extract_strided_slice %702 {offsets = [0, 1, 0], sizes = [2, 16, 32], strides = [1, 1, 1]} : vector<2x20x32xf32> to vector<2x16x32xf32>
    %711 = vector.shape_cast %710 : vector<2x16x32xf32> to vector<32x32xf32>
    %c1_295 = arith.constant 1 : index
    %c1_296 = arith.constant 1 : index
    %c0_297 = arith.constant 0 : index
    %c0_298 = arith.constant 0 : index
    %712 = vector.load %arg12[%c1_295, %c1_296, %c0_297, %c0_298] : memref<2x5x32x32xf32, #tpu.memory_space<vmem>>, vector<1x1x32x32xf32>
    %713 = vector.shape_cast %712 : vector<1x1x32x32xf32> to vector<32x32xf32>
    %cst_299 = arith.constant dense<0.000000e+00> : vector<32x32xf32>
    %714 = tpu.matmul %711, %713, %cst_299 {dimension_numbers = #tpu.dot_dimension_numbers<[1], [0], [0], [1], [0, 0, 1, 1], [], []>} : vector<32x32xf32>, vector<32x32xf32>, vector<32x32xf32> -> vector<32x32xf32>
    %715 = arith.addf %709, %714 : vector<32x32xf32>
    %716 = vector.extract_strided_slice %702 {offsets = [0, 2, 0], sizes = [2, 16, 32], strides = [1, 1, 1]} : vector<2x20x32xf32> to vector<2x16x32xf32>
    %717 = vector.shape_cast %716 : vector<2x16x32xf32> to vector<32x32xf32>
    %c1_300 = arith.constant 1 : index
    %c2_301 = arith.constant 2 : index
    %c0_302 = arith.constant 0 : index
    %c0_303 = arith.constant 0 : index
    %718 = vector.load %arg12[%c1_300, %c2_301, %c0_302, %c0_303] : memref<2x5x32x32xf32, #tpu.memory_space<vmem>>, vector<1x1x32x32xf32>
    %719 = vector.shape_cast %718 : vector<1x1x32x32xf32> to vector<32x32xf32>
    %cst_304 = arith.constant dense<0.000000e+00> : vector<32x32xf32>
    %720 = tpu.matmul %717, %719, %cst_304 {dimension_numbers = #tpu.dot_dimension_numbers<[1], [0], [0], [1], [0, 0, 1, 1], [], []>} : vector<32x32xf32>, vector<32x32xf32>, vector<32x32xf32> -> vector<32x32xf32>
    %721 = arith.addf %715, %720 : vector<32x32xf32>
    %722 = vector.extract_strided_slice %702 {offsets = [0, 3, 0], sizes = [2, 16, 32], strides = [1, 1, 1]} : vector<2x20x32xf32> to vector<2x16x32xf32>
    %723 = vector.shape_cast %722 : vector<2x16x32xf32> to vector<32x32xf32>
    %c1_305 = arith.constant 1 : index
    %c3_306 = arith.constant 3 : index
    %c0_307 = arith.constant 0 : index
    %c0_308 = arith.constant 0 : index
    %724 = vector.load %arg12[%c1_305, %c3_306, %c0_307, %c0_308] : memref<2x5x32x32xf32, #tpu.memory_space<vmem>>, vector<1x1x32x32xf32>
    %725 = vector.shape_cast %724 : vector<1x1x32x32xf32> to vector<32x32xf32>
    %cst_309 = arith.constant dense<0.000000e+00> : vector<32x32xf32>
    %726 = tpu.matmul %723, %725, %cst_309 {dimension_numbers = #tpu.dot_dimension_numbers<[1], [0], [0], [1], [0, 0, 1, 1], [], []>} : vector<32x32xf32>, vector<32x32xf32>, vector<32x32xf32> -> vector<32x32xf32>
    %727 = arith.addf %721, %726 : vector<32x32xf32>
    %728 = vector.extract_strided_slice %702 {offsets = [0, 4, 0], sizes = [2, 16, 32], strides = [1, 1, 1]} : vector<2x20x32xf32> to vector<2x16x32xf32>
    %729 = vector.shape_cast %728 : vector<2x16x32xf32> to vector<32x32xf32>
    %c1_310 = arith.constant 1 : index
    %c4_311 = arith.constant 4 : index
    %c0_312 = arith.constant 0 : index
    %c0_313 = arith.constant 0 : index
    %730 = vector.load %arg12[%c1_310, %c4_311, %c0_312, %c0_313] : memref<2x5x32x32xf32, #tpu.memory_space<vmem>>, vector<1x1x32x32xf32>
    %731 = vector.shape_cast %730 : vector<1x1x32x32xf32> to vector<32x32xf32>
    %cst_314 = arith.constant dense<0.000000e+00> : vector<32x32xf32>
    %732 = tpu.matmul %729, %731, %cst_314 {dimension_numbers = #tpu.dot_dimension_numbers<[1], [0], [0], [1], [0, 0, 1, 1], [], []>} : vector<32x32xf32>, vector<32x32xf32>, vector<32x32xf32> -> vector<32x32xf32>
    %733 = arith.addf %727, %732 : vector<32x32xf32>
    %734 = vector.shape_cast %733 : vector<32x32xf32> to vector<2x16x32xf32>
    %735 = vector.broadcast %700 : f32 to vector<2x16x32xf32>
    %736 = arith.addf %734, %735 : vector<2x16x32xf32>
    %c1_315 = arith.constant 1 : index
    %c12_316 = arith.constant 12 : index
    %737 = memref.load %arg13[%c1_315, %c12_316] : memref<2x16xf32, #tpu.memory_space<smem>>
    %c1_317 = arith.constant 1 : index
    %c13_318 = arith.constant 13 : index
    %738 = memref.load %arg13[%c1_317, %c13_318] : memref<2x16xf32, #tpu.memory_space<smem>>
    %c1_319 = arith.constant 1 : index
    %c14_320 = arith.constant 14 : index
    %739 = memref.load %arg13[%c1_319, %c14_320] : memref<2x16xf32, #tpu.memory_space<smem>>
    %c1_321 = arith.constant 1 : index
    %c15_322 = arith.constant 15 : index
    %740 = memref.load %arg13[%c1_321, %c15_322] : memref<2x16xf32, #tpu.memory_space<smem>>
    %741 = vector.broadcast %739 : f32 to vector<2x16x32xf32>
    %742 = arith.subf %736, %741 : vector<2x16x32xf32>
    %cst_323 = arith.constant 9.99999974E-6 : f32
    %743 = arith.addf %740, %cst_323 : f32
    %744 = math.sqrt %743 : f32
    %745 = arith.divf %737, %744 : f32
    %746 = vector.broadcast %745 : f32 to vector<2x16x32xf32>
    %747 = arith.mulf %742, %746 : vector<2x16x32xf32>
    %748 = vector.broadcast %738 : f32 to vector<2x16x32xf32>
    %749 = arith.addf %747, %748 : vector<2x16x32xf32>
    %cst_324 = arith.constant 0.000000e+00 : f32
    %750 = vector.broadcast %cst_324 : f32 to vector<2x16x32xf32>
    %751 = arith.maximumf %749, %750 : vector<2x16x32xf32>
    %752 = arith.addf %638, %751 : vector<2x16x32xf32>
    %753 = vector.extract_strided_slice %612 {offsets = [2, 0], sizes = [1, 32], strides = [1, 1]} : vector<4x32xf32> to vector<1x32xf32>
    %754 = vector.extract_strided_slice %612 {offsets = [3, 0], sizes = [1, 32], strides = [1, 1]} : vector<4x32xf32> to vector<1x32xf32>
    %cst_325 = arith.constant dense<0.000000e+00> : vector<2x16xf32>
    %755 = vector.multi_reduction <add>, %752, %cst_325 [2] : vector<2x16x32xf32> to vector<2x16xf32>
    %756 = vector.shape_cast %755 : vector<2x16xf32> to vector<2x16x1xf32>
    %cst_326 = arith.constant 3.200000e+01 : f32
    %757 = vector.broadcast %cst_326 : f32 to vector<2x16x1xf32>
    %758 = arith.divf %756, %757 : vector<2x16x1xf32>
    %759 = vector.broadcast %758 : vector<2x16x1xf32> to vector<2x16x32xf32>
    %760 = arith.subf %752, %759 : vector<2x16x32xf32>
    %761 = arith.mulf %760, %760 : vector<2x16x32xf32>
    %cst_327 = arith.constant dense<0.000000e+00> : vector<2x16xf32>
    %762 = vector.multi_reduction <add>, %761, %cst_327 [2] : vector<2x16x32xf32> to vector<2x16xf32>
    %763 = vector.shape_cast %762 : vector<2x16xf32> to vector<2x16x1xf32>
    %cst_328 = arith.constant 3.200000e+01 : f32
    %764 = vector.broadcast %cst_328 : f32 to vector<2x16x1xf32>
    %765 = arith.divf %763, %764 : vector<2x16x1xf32>
    %cst_329 = arith.constant 9.99999974E-6 : f32
    %766 = vector.broadcast %cst_329 : f32 to vector<2x16x1xf32>
    %767 = arith.addf %765, %766 : vector<2x16x1xf32>
    %768 = math.rsqrt %767 : vector<2x16x1xf32>
    %769 = vector.broadcast %768 : vector<2x16x1xf32> to vector<2x16x32xf32>
    %770 = arith.mulf %760, %769 : vector<2x16x32xf32>
    %771 = vector.shape_cast %753 : vector<1x32xf32> to vector<1x1x32xf32>
    %772 = vector.broadcast %771 : vector<1x1x32xf32> to vector<2x16x32xf32>
    %773 = arith.mulf %770, %772 : vector<2x16x32xf32>
    %774 = vector.shape_cast %754 : vector<1x32xf32> to vector<1x1x32xf32>
    %775 = vector.broadcast %774 : vector<1x1x32xf32> to vector<2x16x32xf32>
    %776 = arith.addf %773, %775 : vector<2x16x32xf32>
    %c0_330 = arith.constant 0 : index
    %c0_331 = arith.constant 0 : index
    %c0_332 = arith.constant 0 : index
    %777 = vector.load %arg14[%c0_330, %c0_331, %c0_332] : memref<2x16x32xf32, #tpu.memory_space<vmem>>, vector<2x16x32xf32>
    tpu.vector_store %arg14[%c0_330, %c0_331, %c0_332], %776 {strides = array<i32>} : memref<2x16x32xf32, #tpu.memory_space<vmem>>, vector<2x16x32xf32>,
    return
  }
}

</mosaic_0001>

<bundles_post_ra>
// kernel: transformer_forward.1
= control target key start
LH: loop header
LB: loop body
LE: loop exit
PB: predicated region body
PF: predicated region fallthrough
CT: control target
= control target key end

     0   :  { %19 = vsyncpa [#allocation3], 0  ;;  %s19598_s0 = inlined_call_operand.hbm [shape: f32[2,16,32], index: 0, kind: input, shape index: {}]   ;;  %s19599_s1 = inlined_call_operand.vmem [shape: f32[16,32], index: 1, kind: input, shape index: {}]   ;;  %s19600_s2 = inlined_call_operand.vmem [shape: f32[2,96,32], index: 2, kind: input, shape index: {}]   ;;  %s19601_s3 = inlined_call_operand.vmem [shape: f32[2,1,96], index: 3, kind: input, shape index: {}]   ;;  %s19602_s4 = inlined_call_operand.vmem [shape: f32[2,32,32], index: 4, kind: input, shape index: {}]   ;;  %s19603_s5 = inlined_call_operand.vmem [shape: f32[2,1,32], index: 5, kind: input, shape index: {}]   ;;  %s19604_s6 = inlined_call_operand.vmem [shape: f32[2,48,16], index: 6, kind: input, shape index: {}]   ;;  %s19605_s7 = inlined_call_operand.vmem [shape: f32[2,1,48], index: 7, kind: input, shape index: {}]   ;;  %s19606_s8 = inlined_call_operand.hbm [shape: f32[2,16,16], index: 8, kind: input, shape index: {}]   ;;  %s19607_s9 = inlined_call_operand.hbm [shape: f32[2,1,16], index: 9, kind: input, shape index: {}]   ;;  %s19608_s10 = inlined_call_operand.hbm [shape: f32[2,4,32], index: 10, kind: input, shape index: {}]   ;;  %s19609_s11 = inlined_call_operand.hbm [shape: f32[2,3,32,32], index: 11, kind: input, shape index: {}]   ;;  %s19610_s12 = inlined_call_operand.vmem [shape: f32[2,5,32,32], index: 12, kind: input, shape index: {}]   ;;  %s19611_s13 = inlined_call_operand.hbm [shape: f32[2,16], index: 13, kind: input, shape index: {}]   ;;  %s19612_s14 = inlined_call_operand.hbm [shape: f32[2,16,32], index: 14, kind: output, shape index: {}]  }
   0x1   :  { %20 = vsyncpa [#allocation7], 0 }
   0x2   :  { %21 = vsyncpa [#allocation10], 0 }
   0x3   :  { %22 = vsyncpa [#allocation5], 0 }
   0x4   :  { %23 = vsyncpa [#allocation4], 0  ;;  %s16333_s29 = smov [#allocation6]   ;;  %s16334_s15 = smov [#allocation9]  }
   0x5   :  { %s55_s30 = sshll.u32 %s16333_s29, 4  ;;  %s79_s16 = sshll.u32 %s16334_s15, 4  ;;  %s56_s30 = int_to_ptr.vmem [resolvable:$true] %s55_s30  ;;  %s80_s16 = int_to_ptr.vmem [resolvable:$true] %s79_s16 }
   0x6   :  { %s16203_s17 = scalar_lea.vmem %s56_s30, 512  ;;  %p16208_p1 = scmp.lt.s32.totalorder %s56_s30, %s56_s30 }
   0x7   :  { %p16204_p0 = scmp.ne.s32.totalorder %s56_s30, %s16203_s17  ;;  %p16209_p2 = scmp.lt.s32.totalorder %s16203_s17, %s16203_s17 }
   0x9   :  { %p16210_p3 = por %p16209_p2, %p16208_p1 }
   0xb   :  { %p16211_p4 = pnand %p16210_p3, %p16204_p0 }
   0xd   :  { %16214 = shalt.err (!%p16211_p4)
}
   0xe   :  { %s19616_s18 = smov 128   ;;  %s19617_s19 = smov 8  }
   0xf   :  { %61 = dma.hbm_to_vmem [thread:$0]  %s19606_s8, 512, %s56_s30, [#allocation7], %s19616_s18, %s19616_s18, %s19617_s19  }
  0x10   :  { %s16223_s22 = scalar_lea.vmem %s80_s16, 128  ;;  %p16228_p6 = scmp.lt.s32.totalorder %s80_s16, %s80_s16 }
  0x11   :  { %p16224_p5 = scmp.ne.s32.totalorder %s80_s16, %s16223_s22  ;;  %p16229_p7 = scmp.lt.s32.totalorder %s16223_s22, %s16223_s22 }
  0x13   :  { %p16230_p8 = por %p16229_p7, %p16228_p6 }
  0x15   :  { %p16231_p9 = pnand %p16230_p8, %p16224_p5 }
  0x17   :  { %16234 = shalt.err (!%p16231_p9)
}
  0x18   :  { %s16337_s23 = smov 64   ;;  %s16338_s24 = smov 4  }
  0x19   :  { %85 = dma.hbm_to_vmem [thread:$0]  %s19608_s10, 128, %s80_s16, [#allocation10], %s16337_s23, %s16337_s23, %s16338_s24  }
  0x1a   :  { %s16339_s27 = smov [#allocation2]   ;;  %s16340_s29 = smov [#allocation8]  }
  0x1b   :  { %s29_s28 = sshll.u32 %s16339_s27, 4  ;;  %s67_s15 = sshll.u32 %s16340_s29, 4  ;;  %s30_s28 = int_to_ptr.vmem [resolvable:$true] %s29_s28  ;;  %s68_s15 = int_to_ptr.vmem [resolvable:$true] %s67_s15 }
  0x1c   :  { %s16243_s8 = scalar_lea.vmem %s30_s28, 512  ;;  %p16248_p11 = scmp.lt.s32.totalorder %s30_s28, %s30_s28 }
  0x1d   :  { %p16244_p10 = scmp.ne.s32.totalorder %s30_s28, %s16243_s8  ;;  %p16249_p12 = scmp.lt.s32.totalorder %s16243_s8, %s16243_s8 }
  0x1f   :  { %p16250_p13 = por %p16249_p12, %p16248_p11 }
  0x21   :  { %p16251_p0 = pnand %p16250_p13, %p16244_p10 }
  0x23   :  { %16254 = shalt.err (!%p16251_p0)
}
  0x24   :  { %35 = dma.hbm_to_vmem [thread:$0]  %s19598_s0, 512, %s30_s28, [#allocation3], %s19616_s18, %s19616_s18, %s19617_s19  }
  0x25   :  { %s16263_s10 = scalar_lea.vmem %s68_s15, 32  ;;  %p16268_p2 = scmp.lt.s32.totalorder %s68_s15, %s68_s15 }
  0x26   :  { %p16264_p1 = scmp.ne.s32.totalorder %s68_s15, %s16263_s10  ;;  %p16269_p3 = scmp.lt.s32.totalorder %s16263_s10, %s16263_s10 }
  0x28   :  { %p16270_p4 = por %p16269_p3, %p16268_p2 }
  0x2a   :  { %p16271_p5 = pnand %p16270_p4, %p16264_p1 }
  0x2c   :  { %16274 = shalt.err (!%p16271_p5)
}
  0x2d   :  { %s16341_s16 = smov 16   ;;  %s16342_s20 = smov 1  }
  0x2e   :  { %73 = dma.hbm_to_vmem [thread:$0]  %s19607_s9, 32, %s68_s15, [#allocation7], %s16341_s16, %s16341_s16, %s16342_s20  }
  0x2f   :  { %s16343_s24 = smov [#allocation11]  }
  0x30   :  { %s91_s25 = sshll.u32 %s16343_s24, 4  ;;  %s92_s25 = int_to_ptr.vmem [resolvable:$true] %s91_s25 }
  0x31   :  { %s16283_s26 = scalar_lea.vmem %s92_s25, 3072  ;;  %p16288_p7 = scmp.lt.s32.totalorder %s92_s25, %s92_s25 }
  0x32   :  { %p16284_p6 = scmp.ne.s32.totalorder %s92_s25, %s16283_s26  ;;  %p16289_p8 = scmp.lt.s32.totalorder %s16283_s26, %s16283_s26 }
  0x34   :  { %p16290_p9 = por %p16289_p8, %p16288_p7 }
  0x36   :  { %p16291_p10 = pnand %p16290_p9, %p16284_p6 }
  0x38   :  { %16294 = shalt.err (!%p16291_p10)
}
  0x39   :  { %97 = dma.hbm_to_vmem [thread:$0]  %s19609_s11, 3072, %s92_s25, [#allocation10], %s19616_s18, %s19616_s18, %s19617_s19  }
  0x3a   :  { %s16344_s28 = smov [#allocation12]  }
  0x3b   :  { %107 = dma.hbm_to_smem %s19611_s13, 32, %s16344_s28, [#allocation5]  }
  0x3c   :  { %16323 = dma.done.wait [#allocation3], 512  }
  0x3d   :  { %16324 = vsyncadd [#allocation3], 4294966784 }
  0x3e   :  { %16325 = dma.done.wait [#allocation7], 544  }
  0x3f   :  { %16326 = vsyncadd [#allocation7], 4294966752 }
  0x40   :  { %16327 = dma.done.wait [#allocation10], 3200  }
  0x41   :  { %16328 = vsyncadd [#allocation10], 4294964096 }
  0x42   :  { %16329 = dma.done.wait [#allocation5], 32  }
  0x43   :  { %16330 = vsyncadd [#allocation5], 4294967264 }
  0x44   :  { %126 = sfence }
  0x45   :  { %v148_v0 = vld [vmem:[%s19600_s2 + $0x58] sm:$0xff]  ;;  %vm161_vm0 = vcmask 261120   ;;  %v147_v1 = vld [vmem:[%s19600_s2 + $0x50] sm:$0xff]  ;;  %v146_v2 = vld [vmem:[%s19600_s2 + $0x48] sm:$0xff]  ;;  %s16345_s22 = smov 96   ;;  %vm305_vm1 = vcmask 64512  }
  0x46   :  { %14451 = vmatprep.subr.msk.mxu0 %vm161_vm0, %v148_v0  ;;  %v127_v3 = vld [vmem:[#allocation2] sm:$0xff]  ;;  %v144_v7 = vld [vmem:[%s19600_s2 + $0x38] sm:$0xff]  ;;  %v143_v8 = vld [vmem:[%s19600_s2 + $0x30] sm:$0xff]  ;;  %vm482_vm2 = vcmask 130048   ;;  %s16346_s24 = smov 88   ;;  %s16347_s25 = smov 120  }
  0x47   :  { %14452 = vmatpush3.xpose.msk.msra.mxu0 %vm161_vm0, %v148_v0  ;;  %v131_v4 = vld [vmem:[%s19599_s1] sm:$0xff]  ;;  %v142_v9 = vld [vmem:[%s19600_s2 + $0x28] sm:$0xff]  ;;  %v140_v11 = vld [vmem:[%s19600_s2 + $0x18] sm:$0xff]  ;;  %s16348_s26 = smov 56   ;;  %s16349_s0 = smov 80   ;;  %vm2614_vm3 = vcmask 31744  }
  0x48   :  { %14453 = vmatprep.subr.msk.mxu0 %vm161_vm0, %v147_v1  ;;  %v16481_v5 = vadd.f32 %v131_v4, %v127_v3  ;;  %v145_v6 = vld [vmem:[%s19600_s2 + $0x40] sm:$0xff]  ;;  %v139_v12 = vld [vmem:[%s19600_s2 + $0x10] sm:$0xff]  ;;  %v138_v13 = vld [vmem:[%s19600_s2 + $0x8] sm:$0xff]  ;;  %s16350_s27 = smov 112   ;;  %s16351_s17 = smov 48   ;;  %vm5535_vm8 = vcmask 1040384  }
  0x49   :  { %v141_v10 = vld [vmem:[%s19600_s2 + $0x20] sm:$0xff]  ;;  %v128_v15 = vld [vmem:[#allocation2 + $0x8] sm:$0xff]  ;;  %v129_v17 = vld [vmem:[#allocation2 + $0x10] sm:$0xff]  ;;  %s16352_s10 = smov 72   ;;  %s16353_s16 = smov 104   ;;  %vm5558_vm9 = vcmask 1046528  }
  0x4a   :  { %14475 = vmatprep.mubr.msk.f32.mxu0 %vm161_vm0, %v16481_v5  ;;  %v137_v14 = vld [vmem:[%s19600_s2] sm:$0xff]  ;;  %v132_v16 = vld [vmem:[%s19599_s1 + $0x8] sm:$0xff]  ;;  %v16538_v19 = vadd.f32 %v131_v4, %v129_v17  ;;  %v130_v20 = vld [vmem:[#allocation2 + $0x18] sm:$0xff]  ;;  %s16354_s20 = smov 40   ;;  %s16355_s9 = smov 108   ;;  %vm5760_vm10 = vcmask 1045504  }
  0x4b   :  { %14454 = vmatpush3.xpose.msk.msra.mxu0 %vm161_vm0, %v147_v1  ;;  %v16535_v18 = vadd.f32 %v132_v16, %v128_v15  ;;  %v16542_v21 = vadd.f32 %v132_v16, %v130_v20  ;;  %v13079_v22 = vld [vmem:[%s19601_s3] ss:$0 sm:$0xff]  ;;  %s16356_s15 = smov 124   ;;  %s16357_s30 = smov 92   ;;  %vm5920_vm13 = vcmask 1041408   ;;  %vm6256_vm14 = vcmask 1044480  }
  0x4c   :  { %14455 = vmatprep.subr.msk.mxu0 %vm161_vm0, %v146_v2  ;;  %19632 = vst [vmem:[#allocation20_spill] sm:$0xff] %v16538_v19  ;;  %s19622_s13 = smov 100   ;;  %s19620_s1 = smov 116   ;;  %vm6369_vm15 = vcmask 1043456  }
  0x4d   :  { %19631 = vst [vmem:[#allocation19_spill] sm:$0xff] %v16535_v18  ;;  %19633 = vst [vmem:[#allocation21_spill] sm:$0xff] %v16542_v21  ;;  %s19618_s21 = smov 84   ;;  %s13333_s8 = sld [smem:[#allocation12 + $0x5]] }
  0x4e   :  { %s5481_s29 = sld [smem:[#allocation12]] }
  0x4f   :  { %14456 = vmatpush3.xpose.msk.msra.mxu0 %vm161_vm0, %v146_v2  ;;  %s13350_s18 = sld [smem:[#allocation12 + $0xa]] }
  0x50   :  { %14457 = vmatprep.subr.msk.mxu0 %vm161_vm0, %v145_v6 }
  0x53   :  { %14458 = vmatpush3.xpose.msk.msra.mxu0 %vm161_vm0, %v145_v6  ;;  %s5502_s11 = sadd.f32 1e-05, %s13333_s8 }
  0x54   :  { %14459 = vmatprep.subr.msk.mxu0 %vm161_vm0, %v144_v7  ;;  %s13329_s8 = sld [smem:[#allocation12 + $0x1]] }
  0x57   :  { %14460 = vmatpush3.xpose.msk.msra.mxu0 %vm161_vm0, %v144_v7 }
  0x58   :  { %14461 = vmatprep.subr.msk.mxu0 %vm161_vm0, %v143_v8 }
  0x5b   :  { %14462 = vmatpush3.xpose.msk.msra.mxu0 %vm161_vm0, %v143_v8 }
  0x5c   :  { %14463 = vmatprep.subr.msk.mxu0 %vm161_vm0, %v142_v9 }
  0x5f   :  { %14464 = vmatpush3.xpose.msk.msra.mxu0 %vm161_vm0, %v142_v9 }
  0x60   :  { %14465 = vmatprep.subr.msk.mxu0 %vm161_vm0, %v141_v10 }
  0x63   :  { %14466 = vmatpush3.xpose.msk.msra.mxu0 %vm161_vm0, %v141_v10 }
  0x64   :  { %14467 = vmatprep.subr.msk.mxu0 %vm161_vm0, %v140_v11 }
  0x67   :  { %14468 = vmatpush3.xpose.msk.msra.mxu0 %vm161_vm0, %v140_v11 }
  0x68   :  { %14469 = vmatprep.subr.msk.mxu0 %vm161_vm0, %v139_v12 }
  0x6b   :  { %14470 = vmatpush3.xpose.msk.msra.mxu0 %vm161_vm0, %v139_v12 }
  0x6c   :  { %14471 = vmatprep.subr.msk.mxu0 %vm161_vm0, %v138_v13 }
  0x6f   :  { %14472 = vmatpush3.xpose.msk.msra.mxu0 %vm161_vm0, %v138_v13 }
  0x70   :  { %14473 = vmatprep.subr.msk.mxu0 %vm161_vm0, %v137_v14 }
  0x73   :  { %14474 = vmatpush3.xpose.msk.msra.mxu0 %vm161_vm0, %v137_v14 }
  0x76   :  { %14476 = vmatmul.mubr.msk.f32.vlgmr.msra.gmra.mxu0 %vm161_vm0, %v16535_v18 }
  0x77   :  { %14478 = vmatprep.mubr.msk.f32.mxu0 %vm161_vm0, %v16538_v19 }
  0x7a   :  { %14479 = vmatmul.mubr.msk.f32.gmra.mxu0 %vm161_vm0, %v16542_v21 }
 0x136   :  { %v14477_v23 = vpop.f32.mrf.mxu0 }
 0x137   :  { %v16551_v24 = vadd.f32 %v14477_v23, %v13079_v22 }
 0x138   :  { %v276_v25 = vpop.f32.mrf.mxu0 }
 0x139   :  { %v16553_v26 = vadd.f32 %v13079_v22, %v276_v25  ;;  %303 = vrot.lane.b32.xlu0 %v16551_v24, %s16345_s22  ;;  %v16577_v35 = vmul.f32 0.35355338, %v16551_v24 }
 0x13a   :  { %v14480_v27 = vpop.f32.mrf.mxu0 }
 0x13b   :  { %v16558_v28 = vmul.f32 0.35355338, %v16553_v26  ;;  %v16560_v29 = vadd.f32 %v14480_v27, %v13079_v22 }
 0x13c   :  { %v286_v30 = vpop.f32.mrf.mxu0 }
 0x13d   :  { %301 = vrot.lane.b32.xlu0 %v16553_v26, %s16345_s22  ;;  %14485 = vmatprep.mubr.msk.f32.mxu1 %vm305_vm1, %v16558_v28  ;;  %v16568_v31 = vadd.f32 %v13079_v22, %v286_v30  ;;  %v16591_v38 = vmul.f32 0.35355338, %v16560_v29 }
 0x13e   :  { %395 = vrot.lane.b32.xlu1 %v16560_v29, %s16345_s22 }
 0x13f   :  { %v16581_v36 = vmul.f32 0.35355338, %v16568_v31 }
 0x142   :  { %393 = vrot.lane.b32.xlu1 %v16568_v31, %s16345_s22 }
 0x1ab   :  { %v304_v32 = vpop.permute.xlu0 %303 }
 0x1ac   :  { %14481 = vmatprep.subr.msk.mxu1 %vm305_vm1, %v304_v32 }
 0x1ad   :  { %14482 = vmatpush3.xpose.msk.msra.mxu1 %vm305_vm1, %v304_v32 }
 0x1af   :  { %v302_v33 = vpop.permute.xlu0 %301 }
 0x1b0   :  { %14483 = vmatprep.subr.msk.mxu1 %vm305_vm1, %v302_v33  ;;  %v396_v34 = vpop.permute.xlu1 %395 }
 0x1b1   :  { %14484 = vmatpush3.xpose.msk.msra.mxu1 %vm305_vm1, %v302_v33 }
 0x1b2   :  { %14488 = vmatprep.subr.msk.mxu1 %vm305_vm1, %v396_v34 }
 0x1b4   :  { %14486 = vmatmul.mubr.msk.f32.vlgmr.msra.gmra.mxu1 %vm305_vm1, %v16577_v35  ;;  %v394_v37 = vpop.permute.xlu1 %393 }
 0x1b5   :  { %14489 = vmatpush3.xpose.msk.msra.mxu1 %vm305_vm1, %v396_v34  ;;  %14492 = vmatprep.mubr.msk.f32.mxu1 %vm305_vm1, %v16581_v36 }
 0x1b6   :  { %14490 = vmatprep.subr.msk.mxu1 %vm305_vm1, %v394_v37 }
 0x1b9   :  { %14491 = vmatpush3.xpose.msk.msra.mxu1 %vm305_vm1, %v394_v37 }
 0x1bc   :  { %14493 = vmatmul.mubr.msk.f32.vlgmr.msra.gmra.mxu1 %vm305_vm1, %v16591_v38 }
 0x274   :  { %v14487_v39 = vpop.f32.mrf.mxu1 }
 0x275   :  { %v486_v40 = vsel %vm482_vm2, %v14487_v39, -inf }
 0x276   :  { %487 = vmax.xlane.f32.xlu1 %v486_v40  ;;  %v382_v41 = vpop.f32.mrf.mxu1 }
 0x277   :  { %v483_v42 = vsel %vm482_vm2, %v382_v41, -inf }
 0x278   :  { %484 = vmax.xlane.f32.xlu0 %v483_v42 }
 0x27c   :  { %v14494_v43 = vpop.f32.mrf.mxu1 }
 0x27d   :  { %v492_v46 = vsel %vm482_vm2, %v14494_v43, -inf }
 0x27e   :  { %v473_v44 = vpop.f32.mrf.mxu1 }
 0x27f   :  { %v489_v45 = vsel %vm482_vm2, %v473_v44, -inf }
 0x280   :  { %490 = vmax.xlane.f32.xlu0 %v489_v45 }
 0x284   :  { %493 = vmax.xlane.f32.xlu0 %v492_v46 }
 0x287   :  { %529 = vrot.lane.b32.xlu1 %v16551_v24, %s16337_s23 }
 0x28b   :  { %616 = vrot.lane.b32.xlu1 %v16560_v29, %s16337_s23 }
 0x28f   :  { %614 = vrot.lane.b32.xlu1 %v16568_v31, %s16337_s23 }
 0x29a   :  { %527 = vrot.lane.b32.xlu0 %v16553_v26, %s16337_s23 }
 0x2ff   :  { %v488_v47 = vpop.xlane.xlu1 %487 }
 0x300   :  { %v496_v48 = vsub.f32 %v14487_v39, %v488_v47 }
 0x301   :  { %v485_v49 = vpop.xlane.xlu0 %484 }
 0x302   :  { %v501_v50 = vmul.f32 1.442695, %v496_v48  ;;  %v495_v51 = vsub.f32 %v382_v41, %v485_v49 }
 0x303   :  { %v530_v52 = vpop.permute.xlu1 %529 }
 0x304   :  { %15749 = vpow2.f32 %v501_v50  ;;  %v499_v53 = vmul.f32 1.442695, %v495_v51  ;;  %14495 = vmatprep.subr.mxu1 %v530_v52 }
 0x305   :  { %14496 = vmatpush3.msra.mxu1 %v530_v52 }
 0x306   :  { %15751 = vpow2.f32 %v499_v53 }
 0x307   :  { %v617_v62 = vpop.permute.xlu1 %616 }
 0x309   :  { %v491_v54 = vpop.xlane.xlu0 %490 }
 0x30a   :  { %v497_v2 = vsub.f32 %v473_v44, %v491_v54 }
 0x30b   :  { %v615_v7 = vpop.permute.xlu1 %614 }
 0x30c   :  { %v503_v3 = vmul.f32 1.442695, %v497_v2 }
 0x30d   :  { %v494_v55 = vpop.xlane.xlu0 %493 }
 0x30e   :  { %v498_v56 = vsub.f32 %v14494_v43, %v494_v55 }
 0x310   :  { %v505_v57 = vmul.f32 1.442695, %v498_v56 }
 0x311   :  { %v15750_v58 = vpop.eup %15749  ;;  %v528_v59 = vpop.permute.xlu0 %527 }
 0x312   :  { %15753 = vpow2.f32 %v505_v57  ;;  %14497 = vmatprep.subr.mxu1 %v528_v59  ;;  %v510_v60 = vsel %vm482_vm2, %v15750_v58, 0.0 }
 0x313   :  { %v15752_v61 = vpop.eup %15751  ;;  %511 = vadd.xlane.f32.xlu0 %v510_v60  ;;  %14498 = vmatpush3.msra.mxu1 %v528_v59  ;;  %15755 = vpow2.f32 %v503_v3 }
 0x314   :  { %14502 = vmatprep.subr.mxu1 %v617_v62  ;;  %v507_v63 = vsel %vm482_vm2, %v15752_v61, 0.0 }
 0x315   :  { %508 = vadd.xlane.f32.xlu1 %v507_v63 }
 0x31f   :  { %v15754_v0 = vpop.eup %15753 }
 0x320   :  { %v516_v1 = vsel %vm482_vm2, %v15754_v0, 0.0  ;;  %v15756_v4 = vpop.eup %15755 }
 0x321   :  { %517 = vadd.xlane.f32.xlu0 %v516_v1  ;;  %v513_v6 = vsel %vm482_vm2, %v15756_v4, 0.0 }
 0x326   :  { %705 = vrot.lane.b32.xlu1 %v16553_v26, %s16346_s24 }
 0x337   :  { %707 = vrot.lane.b32.xlu0 %v16551_v24, %s16346_s24 }
 0x33b   :  { %701 = vrot.lane.b32.xlu0 %v16558_v28, %s16347_s25 }
 0x33f   :  { %703 = vrot.lane.b32.xlu0 %v16577_v35, %s16347_s25 }
 0x343   :  { %792 = vrot.lane.b32.xlu0 %v16581_v36, %s16347_s25 }
 0x34a   :  { %514 = vadd.xlane.f32.xlu1 %v513_v6 }
 0x35b   :  { %798 = vrot.lane.b32.xlu1 %v16560_v29, %s16346_s24 }
 0x35f   :  { %796 = vrot.lane.b32.xlu1 %v16568_v31, %s16346_s24 }
 0x363   :  { %794 = vrot.lane.b32.xlu1 %v16591_v38, %s16347_s25 }
 0x39c   :  { %v512_v8 = vpop.xlane.xlu0 %511 }
 0x39d   :  { %15757 = vrcp.f32 %v512_v8  ;;  %v16681_v8 = vld [vmem:[%s19602_s4 + $0x8] sm:$0xff] }
 0x39e   :  { %v509_v9 = vpop.xlane.xlu1 %508 }
 0x39f   :  { %15759 = vrcp.f32 %v509_v9 }
 0x3a2   :  { %v706_v16 = vpop.permute.xlu1 %705 }
 0x3aa   :  { %v15758_v10 = vpop.eup %15757  ;;  %v518_v12 = vpop.xlane.xlu0 %517 }
 0x3ab   :  { %v524_v14 = vmul.f32 %v15758_v10, %v15750_v58  ;;  %15761 = vrcp.f32 %v518_v12  ;;  %v16706_v12 = vld [vmem:[%s19602_s4] sm:$0xff] }
 0x3ac   :  { %v15760_v11 = vpop.eup %15759 }
 0x3ad   :  { %v523_v13 = vmul.f32 %v15760_v11, %v15752_v61  ;;  %v16699_v11 = vld [vmem:[%s19602_s4 + $0x10] sm:$0xff] }
 0x3ae   :  { %v708_v15 = vpop.permute.xlu0 %707 }
 0x3af   :  { %14499 = vmatprep.mubr.msk.f32.mxu1 %vm482_vm2, %v523_v13 }
 0x3b0   :  { %14500 = vmatmul.mubr.msk.f32.vlgmr.msra.gmra.mxu1 %vm482_vm2, %v524_v14 }
 0x3b1   :  { %14503 = vmatpush3.msra.mxu1 %v617_v62 }
 0x3b2   :  { %14504 = vmatprep.subr.mxu1 %v615_v7  ;;  %v702_v23 = vpop.permute.xlu0 %701 }
 0x3b3   :  { %14505 = vmatpush3.msra.mxu1 %v615_v7  ;;  %v16674_v7 = vld [vmem:[%s19602_s4 + $0x18] sm:$0xff] }
 0x3b4   :  { %14509 = vmatprep.subr.msk.mxu1 %vm305_vm1, %v708_v15 }
 0x3b6   :  { %v704_v30 = vpop.permute.xlu0 %703 }
 0x3b8   :  { %v15762_v20 = vpop.eup %15761 }
 0x3b9   :  { %v526_v27 = vmul.f32 %v15762_v20, %v15754_v0 }
 0x3ba   :  { %v793_v33 = vpop.permute.xlu0 %792 }
 0x3d3   :  { %v515_v17 = vpop.xlane.xlu1 %514 }
 0x3d4   :  { %15763 = vrcp.f32 %v515_v17 }
 0x3d7   :  { %v799_v32 = vpop.permute.xlu1 %798 }
 0x3db   :  { %v797_v34 = vpop.permute.xlu1 %796 }
 0x3df   :  { %v795_v37 = vpop.permute.xlu1 %794 }
 0x3e1   :  { %v15764_v22 = vpop.eup %15763 }
 0x3e2   :  { %v525_v25 = vmul.f32 %v15764_v22, %v15756_v4 }
 0x3e4   :  { %14506 = vmatprep.mubr.msk.f32.mxu1 %vm482_vm2, %v525_v25 }
 0x3e5   :  { %14507 = vmatmul.mubr.msk.f32.vlgmr.msra.gmra.mxu1 %vm482_vm2, %v526_v27 }
 0x3e6   :  { %14510 = vmatpush3.xpose.msk.msra.mxu1 %vm305_vm1, %v708_v15  ;;  %14513 = vmatprep.mubr.msk.f32.mxu1 %vm305_vm1, %v702_v23 }
 0x3e7   :  { %14511 = vmatprep.subr.msk.mxu1 %vm305_vm1, %v706_v16 }
 0x3ea   :  { %14512 = vmatpush3.xpose.msk.msra.mxu1 %vm305_vm1, %v706_v16 }
 0x3eb   :  { %14516 = vmatprep.subr.msk.mxu1 %vm305_vm1, %v799_v32 }
 0x3ed   :  { %14514 = vmatmul.mubr.msk.f32.vlgmr.msra.gmra.mxu1 %vm305_vm1, %v704_v30 }
 0x3ee   :  { %14517 = vmatpush3.xpose.msk.msra.mxu1 %vm305_vm1, %v799_v32  ;;  %14520 = vmatprep.mubr.msk.f32.mxu1 %vm305_vm1, %v793_v33 }
 0x3ef   :  { %14518 = vmatprep.subr.msk.mxu1 %vm305_vm1, %v797_v34 }
 0x3f2   :  { %14519 = vmatpush3.xpose.msk.msra.mxu1 %vm305_vm1, %v797_v34 }
 0x3f5   :  { %14521 = vmatmul.mubr.msk.f32.vlgmr.msra.gmra.mxu1 %vm305_vm1, %v795_v37 }
 0x470   :  { %v16643_v39 = vpop.f32.mrf.mxu1 }
 0x472   :  { %v16645_v40 = vpop.f32.mrf.mxu1 }
 0x4a5   :  { %v16647_v41 = vpop.f32.mrf.mxu1 }
 0x4a7   :  { %v16649_v42 = vpop.f32.mrf.mxu1 }
 0x4ad   :  { %v14515_v43 = vpop.f32.mrf.mxu1 }
 0x4ae   :  { %v886_v44 = vsel %vm482_vm2, %v14515_v43, -inf }
 0x4af   :  { %887 = vmax.xlane.f32.xlu1 %v886_v44  ;;  %v783_v45 = vpop.f32.mrf.mxu1 }
 0x4b0   :  { %v883_v46 = vsel %vm482_vm2, %v783_v45, -inf }
 0x4b1   :  { %884 = vmax.xlane.f32.xlu0 %v883_v46 }
 0x4b5   :  { %v14522_v47 = vpop.f32.mrf.mxu1 }
 0x4b6   :  { %v892_v50 = vsel %vm482_vm2, %v14522_v47, -inf }
 0x4b7   :  { %v874_v48 = vpop.f32.mrf.mxu1 }
 0x4b8   :  { %v889_v49 = vsel %vm482_vm2, %v874_v48, -inf }
 0x4b9   :  { %890 = vmax.xlane.f32.xlu0 %v889_v49 }
 0x4bd   :  { %893 = vmax.xlane.f32.xlu0 %v892_v50 }
 0x4c0   :  { %929 = vrot.lane.b32.xlu1 %v16551_v24, %s16348_s26 }
 0x538   :  { %v888_v51 = vpop.xlane.xlu1 %887 }
 0x539   :  { %v896_v52 = vsub.f32 %v14515_v43, %v888_v51 }
 0x53a   :  { %v885_v53 = vpop.xlane.xlu0 %884 }
 0x53b   :  { %v901_v54 = vmul.f32 1.442695, %v896_v52  ;;  %v895_v55 = vsub.f32 %v783_v45, %v885_v53 }
 0x53c   :  { %v930_v56 = vpop.permute.xlu1 %929 }
 0x53d   :  { %15765 = vpow2.f32 %v901_v54  ;;  %v899_v57 = vmul.f32 1.442695, %v895_v55  ;;  %14523 = vmatprep.subr.mxu1 %v930_v56 }
 0x53e   :  { %14524 = vmatpush3.msra.mxu1 %v930_v56 }
 0x53f   :  { %15767 = vpow2.f32 %v899_v57 }
 0x542   :  { %v891_v58 = vpop.xlane.xlu0 %890 }
 0x543   :  { %v897_v4 = vsub.f32 %v874_v48, %v891_v58 }
 0x545   :  { %v903_v6 = vmul.f32 1.442695, %v897_v4 }
 0x546   :  { %v894_v59 = vpop.xlane.xlu0 %893 }
 0x547   :  { %v898_v60 = vsub.f32 %v14522_v47, %v894_v59 }
 0x549   :  { %v905_v61 = vmul.f32 1.442695, %v898_v60 }
 0x54a   :  { %v15766_v62 = vpop.eup %15765 }
 0x54b   :  { %15769 = vpow2.f32 %v905_v61  ;;  %v910_v63 = vsel %vm482_vm2, %v15766_v62, 0.0 }
 0x54c   :  { %v15768_v0 = vpop.eup %15767  ;;  %911 = vadd.xlane.f32.xlu0 %v910_v63  ;;  %15771 = vpow2.f32 %v903_v6 }
 0x54d   :  { %v907_v1 = vsel %vm482_vm2, %v15768_v0, 0.0 }
 0x54e   :  { %908 = vadd.xlane.f32.xlu1 %v907_v1 }
 0x558   :  { %v16659_v2 = vpop.eup %15769 }
 0x559   :  { %v916_v3 = vsel %vm482_vm2, %v16659_v2, 0.0  ;;  %v15772_v9 = vpop.eup %15771 }
 0x55a   :  { %917 = vadd.xlane.f32.xlu0 %v916_v3  ;;  %v913_v10 = vsel %vm482_vm2, %v15772_v9, 0.0 }
 0x55f   :  { %1016 = vrot.lane.b32.xlu1 %v16560_v29, %s16348_s26 }
 0x570   :  { %927 = vrot.lane.b32.xlu0 %v16553_v26, %s16348_s26 }
 0x574   :  { %1420 = vrot.lane.b32.xlu0 %v16560_v29, %s16349_s0 }
 0x578   :  { %1414 = vrot.lane.b32.xlu0 %v16581_v36, %s16350_s27 }
 0x57c   :  { %1111 = vrot.lane.b32.xlu0 %v16674_v7, %s16347_s25 }
 0x580   :  { %1107 = vrot.lane.b32.xlu0 %v16681_v8, %s16347_s25 }
 0x583   :  { %914 = vadd.xlane.f32.xlu1 %v913_v10 }
 0x584   :  { %1329 = vrot.lane.b32.xlu0 %v16551_v24, %s16349_s0 }
 0x588   :  { %1323 = vrot.lane.b32.xlu0 %v16558_v28, %s16350_s27 }
 0x594   :  { %1014 = vrot.lane.b32.xlu1 %v16568_v31, %s16348_s26 }
 0x598   :  { %1418 = vrot.lane.b32.xlu1 %v16568_v31, %s16349_s0 }
 0x59c   :  { %1416 = vrot.lane.b32.xlu1 %v16591_v38, %s16350_s27 }
 0x5a0   :  { %1109 = vrot.lane.b32.xlu1 %v16699_v11, %s16347_s25 }
 0x5a4   :  { %1105 = vrot.lane.b32.xlu1 %v16706_v12, %s16347_s25 }
 0x5a8   :  { %1327 = vrot.lane.b32.xlu1 %v16553_v26, %s16349_s0 }
 0x5ac   :  { %1325 = vrot.lane.b32.xlu1 %v16577_v35, %s16350_s27 }
 0x5d5   :  { %v912_v13 = vpop.xlane.xlu0 %911 }
 0x5d6   :  { %15773 = vrcp.f32 %v912_v13 }
 0x5d7   :  { %v909_v14 = vpop.xlane.xlu1 %908 }
 0x5d8   :  { %15775 = vrcp.f32 %v909_v14 }
 0x5db   :  { %v1017_v25 = vpop.permute.xlu1 %1016 }
 0x5e3   :  { %v918_v15 = vpop.xlane.xlu0 %917  ;;  %v15774_v16 = vpop.eup %15773 }
 0x5e4   :  { %v924_v23 = vmul.f32 %v15774_v16, %v15766_v62  ;;  %15777 = vrcp.f32 %v918_v15 }
 0x5e5   :  { %v15776_v17 = vpop.eup %15775 }
 0x5e6   :  { %v923_v20 = vmul.f32 %v15776_v17, %v15768_v0 }
 0x5e7   :  { %v928_v22 = vpop.permute.xlu0 %927 }
 0x5e8   :  { %14525 = vmatprep.subr.mxu1 %v928_v22  ;;  %14527 = vmatprep.mubr.msk.f32.mxu1 %vm482_vm2, %v923_v20 }
 0x5e9   :  { %14526 = vmatpush3.msra.mxu1 %v928_v22 }
 0x5ea   :  { %14528 = vmatmul.mubr.msk.f32.vlgmr.msra.gmra.mxu1 %vm482_vm2, %v924_v23  ;;  %14530 = vmatprep.subr.mxu1 %v1017_v25 }
 0x5eb   :  { %14531 = vmatpush3.msra.mxu1 %v1017_v25  ;;  %v1421_v27 = vpop.permute.xlu0 %1420 }
 0x5ef   :  { %v1415_v30 = vpop.permute.xlu0 %1414 }
 0x5f1   :  { %v15778_v44 = vpop.eup %15777 }
 0x5f2   :  { %v926_v48 = vmul.f32 %v15778_v44, %v16659_v2 }
 0x5f3   :  { %v1112_v32 = vpop.permute.xlu0 %1111 }
 0x5f4   :  { %14537 = vmatprep.subr.msk.mxu0 %vm305_vm1, %v1112_v32 }
 0x5f5   :  { %14538 = vmatpush3.xpose.msk.msra.mxu0 %vm305_vm1, %v1112_v32 }
 0x5f7   :  { %v1108_v49 = vpop.permute.xlu0 %1107 }
 0x5fb   :  { %v1330_v51 = vpop.permute.xlu0 %1329 }
 0x5ff   :  { %v1324_v53 = vpop.permute.xlu0 %1323 }
 0x60c   :  { %v915_v33 = vpop.xlane.xlu1 %914 }
 0x60d   :  { %15779 = vrcp.f32 %v915_v33 }
 0x610   :  { %v1015_v34 = vpop.permute.xlu1 %1014 }
 0x611   :  { %14532 = vmatprep.subr.mxu1 %v1015_v34 }
 0x612   :  { %14533 = vmatpush3.msra.mxu1 %v1015_v34 }
 0x613   :  { %14551 = vmatprep.subr.msk.mxu1 %vm305_vm1, %v16674_v7 }
 0x614   :  { %v1419_v37 = vpop.permute.xlu1 %1418 }
 0x618   :  { %v1417_v43 = vpop.permute.xlu1 %1416 }
 0x61a   :  { %v15780_v45 = vpop.eup %15779 }
 0x61b   :  { %v925_v46 = vmul.f32 %v15780_v45, %v15772_v9 }
 0x61c   :  { %v1110_v47 = vpop.permute.xlu1 %1109 }
 0x61d   :  { %14534 = vmatprep.mubr.msk.f32.mxu1 %vm482_vm2, %v925_v46  ;;  %14539 = vmatprep.subr.msk.mxu0 %vm305_vm1, %v1110_v47 }
 0x61e   :  { %14535 = vmatmul.mubr.msk.f32.vlgmr.msra.gmra.mxu1 %vm482_vm2, %v926_v48  ;;  %14540 = vmatpush3.xpose.msk.msra.mxu0 %vm305_vm1, %v1110_v47 }
 0x61f   :  { %14552 = vmatpush3.xpose.msk.msra.mxu1 %vm305_vm1, %v16674_v7  ;;  %14559 = vmatprep.mubr.msk.f32.mxu1 %vm305_vm1, %v16645_v40 }
 0x620   :  { %14541 = vmatprep.subr.msk.mxu0 %vm305_vm1, %v1108_v49  ;;  %14553 = vmatprep.subr.msk.mxu1 %vm305_vm1, %v16699_v11  ;;  %v1106_v50 = vpop.permute.xlu1 %1105 }
 0x622   :  { %14542 = vmatpush3.xpose.msk.msra.mxu0 %vm305_vm1, %v1108_v49 }
 0x623   :  { %14554 = vmatpush3.xpose.msk.msra.mxu1 %vm305_vm1, %v16699_v11  ;;  %14543 = vmatprep.subr.msk.mxu0 %vm305_vm1, %v1106_v50 }
 0x624   :  { %14555 = vmatprep.subr.msk.mxu1 %vm305_vm1, %v16681_v8 }
 0x626   :  { %14544 = vmatpush3.xpose.msk.msra.mxu0 %vm305_vm1, %v1106_v50 }
 0x627   :  { %14556 = vmatpush3.xpose.msk.msra.mxu1 %vm305_vm1, %v16681_v8  ;;  %14565 = vmatprep.subr.msk.mxu0 %vm305_vm1, %v1330_v51 }
 0x628   :  { %14557 = vmatprep.subr.msk.mxu1 %vm305_vm1, %v16706_v12 }
 0x62b   :  { %14558 = vmatpush3.xpose.msk.msra.mxu1 %vm305_vm1, %v16706_v12 }
 0x62c   :  { %14572 = vmatprep.subr.msk.mxu1 %vm305_vm1, %v1421_v27 }
 0x62e   :  { %14560 = vmatmul.mubr.msk.f32.vlgmr.msra.gmra.mxu1 %vm305_vm1, %v16643_v39  ;;  %v1328_v39 = vpop.permute.xlu1 %1327 }
 0x62f   :  { %14562 = vmatprep.mubr.msk.f32.mxu1 %vm305_vm1, %v16649_v42  ;;  %14573 = vmatpush3.xpose.msk.msra.mxu1 %vm305_vm1, %v1421_v27 }
 0x630   :  { %14574 = vmatprep.subr.msk.mxu1 %vm305_vm1, %v1419_v37 }
 0x632   :  { %14563 = vmatmul.mubr.msk.f32.gmra.mxu1 %vm305_vm1, %v16647_v41  ;;  %v1326_v54 = vpop.permute.xlu1 %1325 }
 0x633   :  { %14575 = vmatpush3.xpose.msk.msra.mxu1 %vm305_vm1, %v1419_v37  ;;  %14576 = vmatprep.mubr.msk.f32.mxu1 %vm305_vm1, %v1415_v30 }
 0x636   :  { %14577 = vmatmul.mubr.msk.f32.vlgmr.msra.gmra.mxu1 %vm305_vm1, %v1417_v43 }
 0x6aa   :  { %v14529_v40 = vpop.f32.mrf.mxu1 }
 0x6ac   :  { %v1005_v52 = vpop.f32.mrf.mxu1 }
 0x6ad   :  { %14545 = vmatprep.mubr.msk.f32.mxu0 %vm305_vm1, %v1005_v52 }
 0x6ae   :  { %14546 = vmatmul.mubr.msk.f32.vlgmr.msra.gmra.mxu0 %vm305_vm1, %v14529_v40 }
 0x6af   :  { %14566 = vmatpush3.xpose.msk.msra.mxu0 %vm305_vm1, %v1330_v51 }
 0x6b0   :  { %14567 = vmatprep.subr.msk.mxu0 %vm305_vm1, %v1328_v39 }
 0x6b3   :  { %14568 = vmatpush3.xpose.msk.msra.mxu0 %vm305_vm1, %v1328_v39 }
 0x6de   :  { %v14536_v41 = vpop.f32.mrf.mxu1 }
 0x6e0   :  { %v1092_v42 = vpop.f32.mrf.mxu1 }
 0x6e1   :  { %14548 = vmatprep.mubr.msk.f32.mxu0 %vm305_vm1, %v1092_v42 }
 0x6e2   :  { %14549 = vmatmul.mubr.msk.f32.gmra.mxu0 %vm305_vm1, %v14536_v41 }
 0x6e3   :  { %14569 = vmatprep.mubr.msk.f32.mxu0 %vm305_vm1, %v1324_v53 }
 0x6e6   :  { %14570 = vmatmul.mubr.msk.f32.vlgmr.msra.gmra.mxu0 %vm305_vm1, %v1326_v54 }
 0x6ee   :  { %v16767_v55 = vpop.f32.mrf.mxu1 }
 0x6f0   :  { %v16769_v56 = vpop.f32.mrf.mxu1 }
 0x6f2   :  { %v16771_v57 = vpop.f32.mrf.mxu1 }
 0x6f4   :  { %v16773_v58 = vpop.f32.mrf.mxu1 }
 0x6f5   :  { %19634 = vst [vmem:[#allocation22_spill] sm:$0xff] %v16773_v58 }
 0x6f6   :  { %v14578_v59 = vpop.f32.mrf.mxu1 }
 0x6f7   :  { %v1514_v60 = vsel %vm482_vm2, %v14578_v59, -inf }
 0x6f8   :  { %1515 = vmax.xlane.f32.xlu1 %v1514_v60  ;;  %v1496_v61 = vpop.f32.mrf.mxu1 }
 0x6f9   :  { %v1511_v62 = vsel %vm482_vm2, %v1496_v61, -inf }
 0x6fa   :  { %1512 = vmax.xlane.f32.xlu0 %v1511_v62 }
 0x709   :  { %1638 = vrot.lane.b32.xlu1 %v16560_v29, %s16351_s17 }
 0x70d   :  { %1846 = vrot.lane.b32.xlu1 %v16551_v24, %s16352_s10 }
 0x711   :  { %1844 = vrot.lane.b32.xlu1 %v16553_v26, %s16352_s10 }
 0x715   :  { %1937 = vrot.lane.b32.xlu1 %v16560_v29, %s16352_s10 }
 0x719   :  { %1935 = vrot.lane.b32.xlu1 %v16568_v31, %s16352_s10 }
 0x71d   :  { %1933 = vrot.lane.b32.xlu1 %v16591_v38, %s16353_s16 }
 0x76e   :  { %v16791_v38 = vpop.f32.mrf.mxu0 }
 0x770   :  { %v16793_v15 = vpop.f32.mrf.mxu0 }
 0x781   :  { %v1516_v63 = vpop.xlane.xlu1 %1515 }
 0x782   :  { %v1520_v0 = vsub.f32 %v14578_v59, %v1516_v63 }
 0x783   :  { %v1513_v1 = vpop.xlane.xlu0 %1512 }
 0x784   :  { %v1527_v2 = vmul.f32 1.442695, %v1520_v0  ;;  %v1519_v3 = vsub.f32 %v1496_v61, %v1513_v1 }
 0x785   :  { %v1639_v4 = vpop.permute.xlu1 %1638 }
 0x786   :  { %15781 = vpow2.f32 %v1527_v2  ;;  %v1525_v6 = vmul.f32 1.442695, %v1519_v3  ;;  %14586 = vmatprep.subr.mxu1 %v1639_v4 }
 0x787   :  { %14587 = vmatpush3.msra.mxu1 %v1639_v4 }
 0x788   :  { %15783 = vpow2.f32 %v1525_v6 }
 0x789   :  { %v1847_v27 = vpop.permute.xlu1 %1846 }
 0x78d   :  { %v1845_v30 = vpop.permute.xlu1 %1844 }
 0x791   :  { %v1938_v33 = vpop.permute.xlu1 %1937 }
 0x793   :  { %v15782_v9 = vpop.eup %15781 }
 0x794   :  { %v1538_v10 = vsel %vm482_vm2, %v15782_v9, 0.0 }
 0x795   :  { %v15784_v13 = vpop.eup %15783  ;;  %1539 = vadd.xlane.f32.xlu0 %v1538_v10  ;;  %v1936_v37 = vpop.permute.xlu1 %1935 }
 0x796   :  { %v1535_v14 = vsel %vm482_vm2, %v15784_v13, 0.0 }
 0x799   :  { %1536 = vadd.xlane.f32.xlu0 %v1535_v14 }
 0x7a2   :  { %v16795_v16 = vpop.f32.mrf.mxu0 }
 0x7a4   :  { %v16797_v17 = vpop.f32.mrf.mxu0 }
 0x7a5   :  { %19635 = vst [vmem:[#allocation23_spill] sm:$0xff] %v16797_v17 }
 0x7a6   :  { %v14571_v20 = vpop.f32.mrf.mxu0 }
 0x7a7   :  { %v1508_v22 = vsel %vm482_vm2, %v14571_v20, -inf }
 0x7a8   :  { %1509 = vmax.xlane.f32.xlu1 %v1508_v22  ;;  %v1405_v23 = vpop.f32.mrf.mxu0 }
 0x7a9   :  { %v1505_v25 = vsel %vm482_vm2, %v1405_v23, -inf }
 0x7af   :  { %1636 = vrot.lane.b32.xlu0 %v16568_v31, %s16351_s17 }
 0x7b3   :  { %1840 = vrot.lane.b32.xlu0 %v16558_v28, %s16353_s16 }
 0x7b7   :  { %1842 = vrot.lane.b32.xlu0 %v16577_v35, %s16353_s16  ;;  %v1934_v35 = vpop.permute.xlu1 %1933 }
 0x7b9   :  { %1551 = vrot.lane.b32.xlu1 %v16551_v24, %s16351_s17 }
 0x7bb   :  { %1931 = vrot.lane.b32.xlu0 %v16581_v36, %s16353_s16 }
 0x7da   :  { %1506 = vmax.xlane.f32.xlu0 %v1505_v25 }
 0x81e   :  { %v1540_v32 = vpop.xlane.xlu0 %1539 }
 0x81f   :  { %15785 = vrcp.f32 %v1540_v32 }
 0x822   :  { %v1537_v34 = vpop.xlane.xlu0 %1536 }
 0x823   :  { %15787 = vrcp.f32 %v1537_v34 }
 0x826   :  { %v1637_v28 = vpop.permute.xlu0 %1636 }
 0x827   :  { %14588 = vmatprep.subr.mxu1 %v1637_v28 }
 0x828   :  { %14589 = vmatpush3.msra.mxu1 %v1637_v28 }
 0x829   :  { %14607 = vmatprep.subr.msk.mxu1 %vm305_vm1, %v1847_v27 }
 0x82a   :  { %v1841_v44 = vpop.permute.xlu0 %1840 }
 0x82c   :  { %v15786_v43 = vpop.eup %15785 }
 0x82d   :  { %v1548_v48 = vmul.f32 %v15786_v43, %v15782_v9 }
 0x82e   :  { %v1843_v51 = vpop.permute.xlu0 %1842 }
 0x830   :  { %v15788_v36 = vpop.eup %15787 }
 0x831   :  { %v1510_v45 = vpop.xlane.xlu1 %1509  ;;  %v1547_v46 = vmul.f32 %v15788_v36, %v15784_v13 }
 0x832   :  { %v1518_v47 = vsub.f32 %v14571_v20, %v1510_v45  ;;  %v1932_v40 = vpop.permute.xlu0 %1931 }
 0x833   :  { %14590 = vmatprep.mubr.msk.f32.mxu1 %vm482_vm2, %v1547_v46 }
 0x834   :  { %v1523_v49 = vmul.f32 1.442695, %v1518_v47  ;;  %14591 = vmatmul.mubr.msk.f32.vlgmr.msra.gmra.mxu1 %vm482_vm2, %v1548_v48 }
 0x835   :  { %14608 = vmatpush3.xpose.msk.msra.mxu1 %vm305_vm1, %v1847_v27  ;;  %14611 = vmatprep.mubr.msk.f32.mxu1 %vm305_vm1, %v1841_v44  ;;  %v1552_v50 = vpop.permute.xlu1 %1551 }
 0x836   :  { %15789 = vpow2.f32 %v1523_v49  ;;  %14609 = vmatprep.subr.msk.mxu1 %vm305_vm1, %v1845_v30  ;;  %14579 = vmatprep.subr.mxu0 %v1552_v50 }
 0x837   :  { %14580 = vmatpush3.msra.mxu0 %v1552_v50 }
 0x839   :  { %14610 = vmatpush3.xpose.msk.msra.mxu1 %vm305_vm1, %v1845_v30 }
 0x83a   :  { %14614 = vmatprep.subr.msk.mxu1 %vm305_vm1, %v1938_v33 }
 0x83c   :  { %14612 = vmatmul.mubr.msk.f32.vlgmr.msra.gmra.mxu1 %vm305_vm1, %v1843_v51  ;;  %v2436_v51 = vld [vmem:[%s19604_s6 + $0x28] sm:$0xff] }
 0x83d   :  { %14615 = vmatpush3.xpose.msk.msra.mxu1 %vm305_vm1, %v1938_v33  ;;  %14618 = vmatprep.mubr.msk.f32.mxu1 %vm305_vm1, %v1932_v40 }
 0x83e   :  { %14616 = vmatprep.subr.msk.mxu1 %vm305_vm1, %v1936_v37 }
 0x841   :  { %14617 = vmatpush3.xpose.msk.msra.mxu1 %vm305_vm1, %v1936_v37 }
 0x843   :  { %v15790_v52 = vpop.eup %15789 }
 0x844   :  { %14619 = vmatmul.mubr.msk.f32.vlgmr.msra.gmra.mxu1 %vm305_vm1, %v1934_v35  ;;  %v1532_v39 = vsel %vm482_vm2, %v15790_v52, 0.0 }
 0x845   :  { %1533 = vadd.xlane.f32.xlu0 %v1532_v39 }
 0x863   :  { %v1507_v41 = vpop.xlane.xlu0 %1506 }
 0x864   :  { %v1517_v42 = vsub.f32 %v1405_v23, %v1507_v41 }
 0x866   :  { %v1521_v53 = vmul.f32 1.442695, %v1517_v42 }
 0x868   :  { %15791 = vpow2.f32 %v1521_v53 }
 0x875   :  { %v15792_v54 = vpop.eup %15791 }
 0x876   :  { %v1529_v59 = vsel %vm482_vm2, %v15792_v54, 0.0 }
 0x877   :  { %1530 = vadd.xlane.f32.xlu0 %v1529_v59 }
 0x88d   :  { %1549 = vrot.lane.b32.xlu0 %v16553_v26, %s16351_s17 }
 0x8ce   :  { %v1534_v62 = vpop.xlane.xlu0 %1533 }
 0x8cf   :  { %15793 = vrcp.f32 %v1534_v62 }
 0x8dc   :  { %v15794_v14 = vpop.eup %15793 }
 0x8dd   :  { %v1546_v23 = vmul.f32 %v15794_v14, %v15790_v52 }
 0x8f4   :  { %v16829_v60 = vpop.f32.mrf.mxu1 }
 0x8f6   :  { %v16831_v61 = vpop.f32.mrf.mxu1 }
 0x8fc   :  { %v16833_v63 = vpop.f32.mrf.mxu1 }
 0x8fd   :  { %v2025_v13 = vsel %vm482_vm2, %v16833_v63, -inf }
 0x8fe   :  { %v16835_v0 = vpop.f32.mrf.mxu1 }
 0x8ff   :  { %v2022_v1 = vsel %vm482_vm2, %v16835_v0, -inf }
 0x900   :  { %2023 = vmax.xlane.f32.xlu1 %v2022_v1  ;;  %v1531_v2 = vpop.xlane.xlu0 %1530  ;;  %v2431_v1 = vld [vmem:[%s19604_s6] sm:$0xff] }
 0x901   :  { %15795 = vrcp.f32 %v1531_v2 }
 0x904   :  { %v14620_v3 = vpop.f32.mrf.mxu1  ;;  %v1550_v4 = vpop.permute.xlu0 %1549 }
 0x905   :  { %v2031_v6 = vsel %vm482_vm2, %v14620_v3, -inf  ;;  %14581 = vmatprep.subr.mxu0 %v1550_v4 }
 0x906   :  { %v2013_v9 = vpop.f32.mrf.mxu1  ;;  %2032 = vmax.xlane.f32.xlu0 %v2031_v6  ;;  %14582 = vmatpush3.msra.mxu0 %v1550_v4 }
 0x907   :  { %v2028_v10 = vsel %vm482_vm2, %v2013_v9, -inf }
 0x908   :  { %2029 = vmax.xlane.f32.xlu1 %v2028_v10 }
 0x90a   :  { %2026 = vmax.xlane.f32.xlu0 %v2025_v13 }
 0x90e   :  { %v15796_v20 = vpop.eup %15795 }
 0x90f   :  { %v1545_v22 = vmul.f32 %v15796_v20, %v15792_v54 }
 0x911   :  { %14583 = vmatprep.mubr.msk.f32.mxu0 %vm482_vm2, %v1545_v22  ;;  %v1310_v22 = vadd.f32 %v16767_v55, %v16791_v38 }
 0x912   :  { %14584 = vmatmul.mubr.msk.f32.vlgmr.msra.gmra.mxu0 %vm482_vm2, %v1546_v23 }
 0x919   :  { %1729 = vrot.lane.b32.xlu1 %v16674_v7, %s16350_s27 }
 0x91d   :  { %1725 = vrot.lane.b32.xlu1 %v16681_v8, %s16350_s27 }
 0x920   :  { %1727 = vrot.lane.b32.xlu0 %v16699_v11, %s16350_s27 }
 0x921   :  { %1723 = vrot.lane.b32.xlu1 %v16706_v12, %s16350_s27 }
 0x924   :  { %2155 = vrot.lane.b32.xlu0 %v16560_v29, %s16354_s20 }
 0x925   :  { %2153 = vrot.lane.b32.xlu1 %v16568_v31, %s16354_s20 }
 0x989   :  { %v2024_v25 = vpop.xlane.xlu1 %2023 }
 0x98a   :  { %v2034_v40 = vsub.f32 %v16835_v0, %v2024_v25 }
 0x98c   :  { %v2038_v39 = vmul.f32 1.442695, %v2034_v40 }
 0x98f   :  { %v2033_v27 = vpop.xlane.xlu0 %2032 }
 0x990   :  { %v2037_v30 = vsub.f32 %v14620_v3, %v2033_v27 }
 0x991   :  { %v2030_v32 = vpop.xlane.xlu1 %2029 }
 0x992   :  { %v2044_v33 = vmul.f32 1.442695, %v2037_v30  ;;  %v2036_v34 = vsub.f32 %v2013_v9, %v2030_v32 }
 0x993   :  { %v2027_v28 = vpop.xlane.xlu0 %2026 }
 0x994   :  { %15797 = vpow2.f32 %v2044_v33  ;;  %v2042_v37 = vmul.f32 1.442695, %v2036_v34  ;;  %v2035_v52 = vsub.f32 %v16833_v63, %v2027_v28  ;;  %v1320_v33 = vadd.f32 %v16771_v57, %v16795_v16 }
 0x995   :  { %v1730_v35 = vpop.permute.xlu1 %1729 }
 0x996   :  { %15799 = vpow2.f32 %v2042_v37  ;;  %14593 = vmatprep.subr.msk.mxu0 %vm305_vm1, %v1730_v35  ;;  %v2040_v41 = vmul.f32 1.442695, %v2035_v52 }
 0x997   :  { %14594 = vmatpush3.xpose.msk.msra.mxu0 %vm305_vm1, %v1730_v35  ;;  %v1728_v43 = vpop.permute.xlu0 %1727  ;;  %15801 = vpow2.f32 %v2038_v39 }
 0x998   :  { %14595 = vmatprep.subr.msk.mxu0 %vm305_vm1, %v1728_v43  ;;  %15803 = vpow2.f32 %v2040_v41 }
 0x999   :  { %v1726_v29 = vpop.permute.xlu1 %1725 }
 0x99b   :  { %14596 = vmatpush3.xpose.msk.msra.mxu0 %vm305_vm1, %v1728_v43  ;;  %v2156_v46 = vpop.permute.xlu0 %2155 }
 0x99c   :  { %14597 = vmatprep.subr.msk.mxu0 %vm305_vm1, %v1726_v29 }
 0x99d   :  { %v1724_v31 = vpop.permute.xlu1 %1723 }
 0x99f   :  { %14598 = vmatpush3.xpose.msk.msra.mxu0 %vm305_vm1, %v1726_v29 }
 0x9a0   :  { %14599 = vmatprep.subr.msk.mxu0 %vm305_vm1, %v1724_v31 }
 0x9a1   :  { %v15798_v36 = vpop.eup %15797  ;;  %v2154_v50 = vpop.permute.xlu1 %2153 }
 0x9a2   :  { %v2055_v44 = vsel %vm482_vm2, %v15798_v36, 0.0 }
 0x9a3   :  { %v15800_v45 = vpop.eup %15799  ;;  %2056 = vadd.xlane.f32.xlu0 %v2055_v44  ;;  %14600 = vmatpush3.xpose.msk.msra.mxu0 %vm305_vm1, %v1724_v31 }
 0x9a4   :  { %14628 = vmatprep.subr.mxu0 %v2156_v46  ;;  %v2052_v47 = vsel %vm482_vm2, %v15800_v45, 0.0  ;;  %v16883_v42 = vpop.eup %15801 }
 0x9a5   :  { %2053 = vadd.xlane.f32.xlu1 %v2052_v47  ;;  %v16885_v53 = vpop.eup %15803  ;;  %v2046_v54 = vsel %vm482_vm2, %v16883_v42, 0.0  ;;  %v13177_v47 = vld [vmem:[%s19605_s7] ss:$0 sm:$0xff] }
 0x9a6   :  { %v2049_v59 = vsel %vm482_vm2, %v16885_v53, 0.0 }
 0x9d0   :  { %2367 = vxpose.xlu0.b32.start [1/2] (short) (narrow) %v16481_v5, 32 }
 0x9d2   :  { %v14585_v48 = vpop.f32.mrf.mxu0 }
 0x9d4   :  { %2368 = vxpose.xlu0.b32.end [2/2] (short) (narrow) %v16535_v18, 32  ;;  %v1627_v49 = vpop.f32.mrf.mxu0 }
 0x9d5   :  { %14601 = vmatprep.mubr.msk.f32.mxu0 %vm305_vm1, %v1627_v49 }
 0x9d6   :  { %14602 = vmatmul.mubr.msk.f32.vlgmr.msra.gmra.mxu0 %vm305_vm1, %v14585_v48 }
 0x9d7   :  { %14629 = vmatpush3.msra.mxu0 %v2156_v46  ;;  %14604 = vmatprep.mubr.msk.f32.mxu0 %vm305_vm1, %v16831_v61 }
 0x9d8   :  { %2399 = vxpose.xlu1.b32.start [1/2] (short) (narrow) %v16538_v19, 32  ;;  %14630 = vmatprep.subr.mxu0 %v2154_v50 }
 0x9d9   :  { %14631 = vmatpush3.msra.mxu0 %v2154_v50 }
 0x9da   :  { %14605 = vmatmul.mubr.msk.f32.gmra.mxu0 %vm305_vm1, %v16829_v60  ;;  %14649 = vmatprep.subr.msk.mxu0 %vm482_vm2, %v2436_v51 }
 0x9dc   :  { %2400 = vxpose.xlu1.b32.end [2/2] (short) (narrow) %v16542_v21, 32 }
 0xa09   :  { %2047 = vadd.xlane.f32.xlu0 %v2046_v54 }
 0xa0b   :  { %2050 = vadd.xlane.f32.xlu1 %v2049_v59 }
 0xa1c   :  { %2066 = vrot.lane.b32.xlu1 %v16553_v26, %s16354_s20 }
 0xa1f   :  { %2068 = vrot.lane.b32.xlu0 %v16551_v24, %s16354_s20 }
 0xa20   :  { %2244 = vrot.lane.b32.xlu1 %v16699_v11, %s16353_s16  ;;  %v2433_v11 = vld [vmem:[%s19604_s6 + $0x10] sm:$0xff] }
 0xa23   :  { %2246 = vrot.lane.b32.xlu0 %v16674_v7, %s16353_s16  ;;  %v2435_v7 = vld [vmem:[%s19604_s6 + $0x20] sm:$0xff] }
 0xa24   :  { %2240 = vrot.lane.b32.xlu1 %v16706_v12, %s16353_s16  ;;  %v2432_v12 = vld [vmem:[%s19604_s6 + $0x8] sm:$0xff] }
 0xa27   :  { %2242 = vrot.lane.b32.xlu0 %v16681_v8, %s16353_s16  ;;  %v2434_v8 = vld [vmem:[%s19604_s6 + $0x18] sm:$0xff] }
 0xa2c   :  { %v2057_v60 = vpop.xlane.xlu0 %2056 }
 0xa2d   :  { %15805 = vrcp.f32 %v2057_v60 }
 0xa2e   :  { %v2054_v61 = vpop.xlane.xlu1 %2053 }
 0xa2f   :  { %15807 = vrcp.f32 %v2054_v61 }
 0xa3a   :  { %v15806_v26 = vpop.eup %15805 }
 0xa3b   :  { %v2065_v24 = vmul.f32 %v15806_v26, %v15798_v36 }
 0xa3c   :  { %v15808_v62 = vpop.eup %15807 }
 0xa3d   :  { %v2064_v63 = vmul.f32 %v15808_v62, %v15800_v45 }
 0xa3f   :  { %14632 = vmatprep.mubr.msk.f32.mxu0 %vm482_vm2, %v2064_v63 }
 0xa40   :  { %14633 = vmatmul.mubr.msk.f32.vlgmr.msra.gmra.mxu0 %vm482_vm2, %v2065_v24 }
 0xa41   :  { %14650 = vmatpush3.xpose.msk.msra.mxu0 %vm482_vm2, %v2436_v51 }
 0xa42   :  { %14651 = vmatprep.subr.msk.mxu0 %vm482_vm2, %v2435_v7 }
 0xa45   :  { %14652 = vmatpush3.xpose.msk.msra.mxu0 %vm482_vm2, %v2435_v7 }
 0xa46   :  { %14653 = vmatprep.subr.msk.mxu0 %vm482_vm2, %v2434_v8 }
 0xa49   :  { %14654 = vmatpush3.xpose.msk.msra.mxu0 %vm482_vm2, %v2434_v8 }
 0xa4a   :  { %14655 = vmatprep.subr.msk.mxu0 %vm482_vm2, %v2433_v11 }
 0xa4c   :  { %v2383_v0 = vpop.trf.xlu0 }
 0xa4d   :  { %14656 = vmatpush3.xpose.msk.msra.mxu0 %vm482_vm2, %v2433_v11  ;;  %14661 = vmatprep.mubr.msk.f32.mxu0 %vm482_vm2, %v2383_v0 }
 0xa4e   :  { %14657 = vmatprep.subr.msk.mxu0 %vm482_vm2, %v2432_v12 }
 0xa50   :  { %v2384_v2 = vpop.trf.xlu0 }
 0xa51   :  { %14658 = vmatpush3.xpose.msk.msra.mxu0 %vm482_vm2, %v2432_v12 }
 0xa52   :  { %14659 = vmatprep.subr.msk.mxu0 %vm482_vm2, %v2431_v1 }
 0xa54   :  { %v2415_v3 = vpop.trf.xlu1  ;;  %v2385_v4 = vpop.trf.xlu0 }
 0xa55   :  { %14660 = vmatpush3.xpose.msk.msra.mxu0 %vm482_vm2, %v2431_v1 }
 0xa58   :  { %14662 = vmatmul.mubr.msk.f32.vlgmr.msra.gmra.mxu0 %vm482_vm2, %v2384_v2  ;;  %v2416_v6 = vpop.trf.xlu1  ;;  %v2386_v9 = vpop.trf.xlu0 }
 0xa59   :  { %14664 = vmatprep.mubr.msk.f32.mxu0 %vm482_vm2, %v2385_v4 }
 0xa5c   :  { %14665 = vmatmul.mubr.msk.f32.gmra.mxu0 %vm482_vm2, %v2386_v9  ;;  %v2417_v10 = vpop.trf.xlu1 }
 0xa5d   :  { %14667 = vmatprep.mubr.msk.f32.mxu0 %vm482_vm2, %v2415_v3 }
 0xa60   :  { %14668 = vmatmul.mubr.msk.f32.gmra.mxu0 %vm482_vm2, %v2416_v6  ;;  %v2418_v13 = vpop.trf.xlu1 }
 0xa61   :  { %14670 = vmatprep.mubr.msk.f32.mxu0 %vm482_vm2, %v2417_v10 }
 0xa64   :  { %14671 = vmatmul.mubr.msk.f32.gmra.mxu0 %vm482_vm2, %v2418_v13 }
 0xa92   :  { %v2048_v14 = vpop.xlane.xlu0 %2047 }
 0xa93   :  { %15809 = vrcp.f32 %v2048_v14 }
 0xa94   :  { %v2051_v20 = vpop.xlane.xlu1 %2050 }
 0xa95   :  { %15811 = vrcp.f32 %v2051_v20 }
 0xa96   :  { %v2069_v23 = vpop.permute.xlu0 %2068  ;;  %v14603_v25 = vpop.f32.mrf.mxu0 }
 0xa97   :  { %v16941_v27 = vadd.f32 %v14603_v25, %v1310_v22  ;;  %14621 = vmatprep.subr.mxu1 %v2069_v23 }
 0xa98   :  { %v2067_v30 = vpop.permute.xlu1 %2066  ;;  %14622 = vmatpush3.msra.mxu1 %v2069_v23  ;;  %v16943_v32 = vpop.f32.mrf.mxu0 }
 0xa99   :  { %14623 = vmatprep.subr.mxu1 %v2067_v30 }
 0xa9a   :  { %14624 = vmatpush3.msra.mxu1 %v2067_v30  ;;  %v14606_v34 = vpop.f32.mrf.mxu0  ;;  %v2247_v43 = vpop.permute.xlu0 %2246 }
 0xa9b   :  { %v16947_v28 = vadd.f32 %v14606_v34, %v1320_v33  ;;  %14635 = vmatprep.subr.msk.mxu1 %vm305_vm1, %v2247_v43 }
 0xa9c   :  { %v2245_v29 = vpop.permute.xlu1 %2244  ;;  %v16961_v31 = vpop.f32.mrf.mxu0 }
 0xa9d   :  { %19636 = vst [vmem:[#allocation24_spill] sm:$0xff] %v16961_v31 }
 0xa9e   :  { %v2243_v57 = vpop.permute.xlu0 %2242 }
 0xaa0   :  { %v15810_v37 = vpop.eup %15809  ;;  %v2241_v16 = vpop.permute.xlu1 %2240 }
 0xaa1   :  { %v2062_v55 = vmul.f32 %v15810_v37, %v16883_v42 }
 0xaa2   :  { %v15812_v38 = vpop.eup %15811 }
 0xaa3   :  { %14625 = vmatprep.mubr.msk.f32.mxu1 %vm482_vm2, %v2062_v55  ;;  %v2063_v35 = vmul.f32 %v15812_v38, %v16885_v53 }
 0xaa5   :  { %14626 = vmatmul.mubr.msk.f32.vlgmr.msra.gmra.mxu1 %vm482_vm2, %v2063_v35 }
 0xaa6   :  { %14636 = vmatpush3.xpose.msk.msra.mxu1 %vm305_vm1, %v2247_v43 }
 0xaa7   :  { %14637 = vmatprep.subr.msk.mxu1 %vm305_vm1, %v2245_v29 }
 0xaaa   :  { %14638 = vmatpush3.xpose.msk.msra.mxu1 %vm305_vm1, %v2245_v29 }
 0xaab   :  { %14639 = vmatprep.subr.msk.mxu1 %vm305_vm1, %v2243_v57 }
 0xaae   :  { %14640 = vmatpush3.xpose.msk.msra.mxu1 %vm305_vm1, %v2243_v57 }
 0xaaf   :  { %14641 = vmatprep.subr.msk.mxu1 %vm305_vm1, %v2241_v16 }
 0xab2   :  { %14642 = vmatpush3.xpose.msk.msra.mxu1 %vm305_vm1, %v2241_v16  ;;  %v13176_v16 = vld [vmem:[%s19603_s5] ss:$0 sm:$0xff] }
 0xb00   :  { %v14634_v36 = vpop.f32.mrf.mxu0 }
 0xb02   :  { %v2231_v44 = vpop.f32.mrf.mxu0 }
 0xb18   :  { %v14663_v45 = vpop.f32.mrf.mxu0 }
 0xb19   :  { %v16972_v52 = vadd.f32 %v14663_v45, %v13177_v47 }
 0xb1a   :  { %v2555_v46 = vpop.f32.mrf.mxu0 }
 0xb1b   :  { %v16980_v53 = vadd.f32 %v13177_v47, %v2555_v46  ;;  %v17035_v63 = vmul.f32 0.5, %v16972_v52 }
 0xb1c   :  { %v14666_v48 = vpop.f32.mrf.mxu0 }
 0xb1d   :  { %v16966_v49 = vadd.f32 %v14666_v48, %v13177_v47  ;;  %v17022_v62 = vmul.f32 0.5, %v16980_v53 }
 0xb1e   :  { %v2565_v50 = vpop.f32.mrf.mxu0 }
 0xb1f   :  { %v16968_v51 = vadd.f32 %v13177_v47, %v2565_v50  ;;  %2612 = vrot.lane.b32.xlu0 %v16966_v49, %s16350_s27  ;;  %v17069_v10 = vmul.f32 0.5, %v16966_v49 }
 0xb20   :  { %v14669_v40 = vpop.f32.mrf.mxu0 }
 0xb21   :  { %2610 = vrot.lane.b32.xlu1 %v16968_v51, %s16350_s27  ;;  %v16995_v26 = vadd.f32 %v14669_v40, %v13177_v47  ;;  %v17061_v6 = vmul.f32 0.5, %v16968_v51 }
 0xb22   :  { %v2575_v39 = vpop.f32.mrf.mxu0 }
 0xb23   :  { %v16976_v41 = vadd.f32 %v13177_v47, %v2575_v39  ;;  %2608 = vrot.lane.b32.xlu0 %v16972_v52, %s16350_s27  ;;  %v17078_v22 = vmul.f32 0.5, %v16995_v26 }
 0xb24   :  { %v14672_v42 = vpop.f32.mrf.mxu0 }
 0xb25   :  { %v16982_v54 = vadd.f32 %v14672_v42, %v13177_v47  ;;  %v16985_v59 = vmul.f32 0.5, %v16976_v41 }
 0xb26   :  { %v2585_v60 = vpop.f32.mrf.mxu0 }
 0xb27   :  { %2606 = vrot.lane.b32.xlu0 %v16980_v53, %s16350_s27  ;;  %14695 = vmatprep.mubr.msk.f32.mxu0 %vm2614_vm3, %v16985_v59  ;;  %v16993_v61 = vadd.f32 %v13177_v47, %v2585_v60  ;;  %v17088_v33 = vmul.f32 0.5, %v16982_v54 }
 0xb28   :  { %2730 = vrot.lane.b32.xlu1 %v16982_v54, %s16350_s27 }
 0xb29   :  { %v17081_v25 = vmul.f32 0.5, %v16993_v61 }
 0xb2b   :  { %2726 = vrot.lane.b32.xlu0 %v16995_v26, %s16350_s27 }
 0xb2c   :  { %2728 = vrot.lane.b32.xlu1 %v16993_v61, %s16350_s27 }
 0xb2f   :  { %2929 = vrot.lane.b32.xlu0 %v16968_v51, %s16345_s22 }
 0xb30   :  { %2724 = vrot.lane.b32.xlu1 %v16976_v41, %s16350_s27 }
 0xb33   :  { %3040 = vrot.lane.b32.xlu0 %v16982_v54, %s16345_s22 }
 0xb34   :  { %2931 = vrot.lane.b32.xlu1 %v16966_v49, %s16345_s22 }
 0xb37   :  { %3155 = vrot.lane.b32.xlu0 %v16968_v51, %s16355_s9 }
 0xb38   :  { %2927 = vrot.lane.b32.xlu1 %v16972_v52, %s16345_s22 }
 0xb3b   :  { %3153 = vrot.lane.b32.xlu0 %v16972_v52, %s16355_s9 }
 0xb3c   :  { %2925 = vrot.lane.b32.xlu1 %v16980_v53, %s16345_s22 }
 0xb3f   :  { %3151 = vrot.lane.b32.xlu0 %v16980_v53, %s16355_s9 }
 0xb40   :  { %3157 = vrot.lane.b32.xlu1 %v16966_v49, %s16355_s9 }
 0xb43   :  { %3143 = vrot.lane.b32.xlu0 %v17022_v62, %s16356_s15 }
 0xb44   :  { %3036 = vrot.lane.b32.xlu1 %v16995_v26, %s16345_s22 }
 0xb47   :  { %3038 = vrot.lane.b32.xlu0 %v16993_v61, %s16345_s22 }
 0xb48   :  { %3034 = vrot.lane.b32.xlu1 %v16976_v41, %s16345_s22 }
 0xb4c   :  { %3274 = vrot.lane.b32.xlu1 %v16982_v54, %s16355_s9 }
 0xb50   :  { %3145 = vrot.lane.b32.xlu1 %v17035_v63, %s16356_s15 }
 0xb54   :  { %3272 = vrot.lane.b32.xlu1 %v16993_v61, %s16355_s9 }
 0xb65   :  { %v14627_v24 = vpop.f32.mrf.mxu1 }
 0xb67   :  { %v2144_v7 = vpop.f32.mrf.mxu1 }
 0xb68   :  { %14643 = vmatprep.mubr.msk.f32.mxu1 %vm305_vm1, %v2144_v7 }
 0xb69   :  { %14644 = vmatmul.mubr.msk.f32.vlgmr.msra.gmra.mxu1 %vm305_vm1, %v14627_v24 }
 0xb6a   :  { %14646 = vmatprep.mubr.msk.f32.mxu1 %vm305_vm1, %v2231_v44 }
 0xb6d   :  { %14647 = vmatmul.mubr.msk.f32.gmra.mxu1 %vm305_vm1, %v14634_v36 }
 0xb6e   :  { %14681 = vmatprep.mubr.msk.f32.mxu1 %vm2614_vm3, %v17022_v62 }
 0xb91   :  { %v2613_v8 = vpop.permute.xlu0 %2612 }
 0xb92   :  { %14673 = vmatprep.subr.msk.mxu1 %vm2614_vm3, %v2613_v8 }
 0xb93   :  { %v2611_v11 = vpop.permute.xlu1 %2610  ;;  %14674 = vmatpush3.xpose.msk.msra.mxu1 %vm2614_vm3, %v2613_v8 }
 0xb94   :  { %14675 = vmatprep.subr.msk.mxu1 %vm2614_vm3, %v2611_v11 }
 0xb95   :  { %v2609_v12 = vpop.permute.xlu0 %2608 }
 0xb97   :  { %14676 = vmatpush3.xpose.msk.msra.mxu1 %vm2614_vm3, %v2611_v11 }
 0xb98   :  { %14677 = vmatprep.subr.msk.mxu1 %vm2614_vm3, %v2609_v12 }
 0xb99   :  { %v2607_v0 = vpop.permute.xlu0 %2606 }
 0xb9a   :  { %v2731_v1 = vpop.permute.xlu1 %2730 }
 0xb9b   :  { %14687 = vmatprep.subr.msk.mxu0 %vm2614_vm3, %v2731_v1  ;;  %14678 = vmatpush3.xpose.msk.msra.mxu1 %vm2614_vm3, %v2609_v12 }
 0xb9c   :  { %14688 = vmatpush3.xpose.msk.msra.mxu0 %vm2614_vm3, %v2731_v1  ;;  %14679 = vmatprep.subr.msk.mxu1 %vm2614_vm3, %v2607_v0 }
 0xb9d   :  { %v2727_v2 = vpop.permute.xlu0 %2726 }
 0xb9e   :  { %v2729_v3 = vpop.permute.xlu1 %2728 }
 0xb9f   :  { %14689 = vmatprep.subr.msk.mxu0 %vm2614_vm3, %v2729_v3  ;;  %14680 = vmatpush3.xpose.msk.msra.mxu1 %vm2614_vm3, %v2607_v0 }
 0xba0   :  { %14690 = vmatpush3.xpose.msk.msra.mxu0 %vm2614_vm3, %v2729_v3 }
 0xba1   :  { %14691 = vmatprep.subr.msk.mxu0 %vm2614_vm3, %v2727_v2  ;;  %v2930_v4 = vpop.permute.xlu0 %2929 }
 0xba2   :  { %v2725_v9 = vpop.permute.xlu1 %2724  ;;  %14682 = vmatmul.mubr.msk.f32.vlgmr.msra.gmra.mxu1 %vm2614_vm3, %v17035_v63 }
 0xba3   :  { %14684 = vmatprep.mubr.msk.f32.mxu1 %vm2614_vm3, %v17061_v6 }
 0xba4   :  { %14692 = vmatpush3.xpose.msk.msra.mxu0 %vm2614_vm3, %v2727_v2 }
 0xba5   :  { %14693 = vmatprep.subr.msk.mxu0 %vm2614_vm3, %v2725_v9  ;;  %v17072_v13 = vpop.permute.xlu0 %3040 }
 0xba6   :  { %v2932_v14 = vpop.permute.xlu1 %2931  ;;  %14685 = vmatmul.mubr.msk.f32.gmra.mxu1 %vm2614_vm3, %v17069_v10 }
 0xba7   :  { %14701 = vmatprep.subr.mxu1 %v2932_v14 }
 0xba8   :  { %14694 = vmatpush3.xpose.msk.msra.mxu0 %vm2614_vm3, %v2725_v9  ;;  %14702 = vmatpush3.msra.mxu1 %v2932_v14 }
 0xba9   :  { %14703 = vmatprep.subr.mxu1 %v2930_v4  ;;  %v3156_v20 = vpop.permute.xlu0 %3155 }
 0xbaa   :  { %v2928_v23 = vpop.permute.xlu1 %2927  ;;  %14704 = vmatpush3.msra.mxu1 %v2930_v4 }
 0xbab   :  { %14696 = vmatmul.mubr.msk.f32.vlgmr.msra.gmra.mxu0 %vm2614_vm3, %v17078_v22  ;;  %14705 = vmatprep.subr.mxu1 %v2928_v23 }
 0xbac   :  { %14698 = vmatprep.mubr.msk.f32.mxu0 %vm2614_vm3, %v17081_v25  ;;  %14706 = vmatpush3.msra.mxu1 %v2928_v23 }
 0xbad   :  { %v3154_v30 = vpop.permute.xlu0 %3153 }
 0xbae   :  { %v2926_v34 = vpop.permute.xlu1 %2925 }
 0xbaf   :  { %14699 = vmatmul.mubr.msk.f32.gmra.mxu0 %vm2614_vm3, %v17088_v33  ;;  %14707 = vmatprep.subr.mxu1 %v2926_v34 }
 0xbb0   :  { %14708 = vmatpush3.msra.mxu1 %v2926_v34 }
 0xbb1   :  { %14715 = vmatprep.subr.mxu1 %v17072_v13  ;;  %v3152_v37 = vpop.permute.xlu0 %3151 }
 0xbb2   :  { %v3158_v55 = vpop.permute.xlu1 %3157 }
 0xbb3   :  { %14729 = vmatprep.subr.msk.mxu0 %vm2614_vm3, %v3158_v55 }
 0xbb4   :  { %14730 = vmatpush3.xpose.msk.msra.mxu0 %vm2614_vm3, %v3158_v55 }
 0xbb5   :  { %14731 = vmatprep.subr.msk.mxu0 %vm2614_vm3, %v3156_v20  ;;  %v3144_v38 = vpop.permute.xlu0 %3143 }
 0xbb6   :  { %v17096_v35 = vpop.permute.xlu1 %3036  ;;  %14737 = vmatprep.mubr.msk.f32.mxu0 %vm2614_vm3, %v3144_v38 }
 0xbb8   :  { %14732 = vmatpush3.xpose.msk.msra.mxu0 %vm2614_vm3, %v3156_v20 }
 0xbb9   :  { %14733 = vmatprep.subr.msk.mxu0 %vm2614_vm3, %v3154_v30  ;;  %v17139_v20 = vpop.permute.xlu0 %3038 }
 0xbba   :  { %v17101_v43 = vpop.permute.xlu1 %3034 }
 0xbbc   :  { %14734 = vmatpush3.xpose.msk.msra.mxu0 %vm2614_vm3, %v3154_v30 }
 0xbbd   :  { %14735 = vmatprep.subr.msk.mxu0 %vm2614_vm3, %v3152_v37 }
 0xbbe   :  { %v17105_v29 = vpop.permute.xlu1 %3274 }
 0xbc0   :  { %14736 = vmatpush3.xpose.msk.msra.mxu0 %vm2614_vm3, %v3152_v37 }
 0xbc2   :  { %v3146_v57 = vpop.permute.xlu1 %3145 }
 0xbc3   :  { %14738 = vmatmul.mubr.msk.f32.vlgmr.msra.gmra.mxu0 %vm2614_vm3, %v3146_v57 }
 0xbc6   :  { %v17137_v14 = vpop.permute.xlu1 %3272 }
 0xc29   :  { %v14645_v36 = vpop.f32.mrf.mxu1 }
 0xc2a   :  { %v2354_v44 = vadd.f32 %v14645_v36, %v16941_v27 }
 0xc2b   :  { %v17113_v45 = vpop.f32.mrf.mxu1 }
 0xc2c   :  { %v17115_v46 = vadd.f32 %v13176_v16, %v2354_v44 }
 0xc2d   :  { %v14648_v47 = vpop.f32.mrf.mxu1 }
 0xc2e   :  { %19637 = vst [vmem:[#allocation25_spill] sm:$0xff] %v17115_v46  ;;  %v2356_v48 = vadd.f32 %v14648_v47, %v16947_v28 }
 0xc2f   :  { %v17120_v40 = vpop.f32.mrf.mxu1 }
 0xc30   :  { %v17118_v50 = vadd.f32 %v13176_v16, %v2356_v48  ;;  %19639 = vst [vmem:[#allocation27_spill] sm:$0xff] %v17120_v40 }
 0xc32   :  { %19638 = vst [vmem:[#allocation26_spill] sm:$0xff] %v17118_v50 }
 0xc62   :  { %v14683_v39 = vpop.f32.mrf.mxu1 }
 0xc63   :  { %v2840_v42 = vsel %vm161_vm0, %v14683_v39, -inf }
 0xc64   :  { %2841 = vmax.xlane.f32.xlu1 %v2840_v42  ;;  %v2701_v60 = vpop.f32.mrf.mxu1 }
 0xc65   :  { %v2837_v24 = vsel %vm161_vm0, %v2701_v60, -inf }
 0xc66   :  { %2838 = vmax.xlane.f32.xlu0 %v2837_v24  ;;  %v14686_v27 = vpop.f32.mrf.mxu1 }
 0xc67   :  { %v2846_v7 = vsel %vm161_vm0, %v14686_v27, -inf }
 0xc68   :  { %v2711_v8 = vpop.f32.mrf.mxu1 }
 0xc69   :  { %v2843_v28 = vsel %vm161_vm0, %v2711_v8, -inf }
 0xc6a   :  { %2847 = vmax.xlane.f32.xlu0 %v2846_v7 }
 0xc6b   :  { %v14697_v11 = vpop.f32.mrf.mxu0 }
 0xc6c   :  { %v2852_v3 = vsel %vm161_vm0, %v14697_v11, -inf }
 0xc6d   :  { %v2818_v12 = vpop.f32.mrf.mxu0 }
 0xc6e   :  { %2844 = vmax.xlane.f32.xlu0 %v2843_v28  ;;  %v2849_v0 = vsel %vm161_vm0, %v2818_v12, -inf }
 0xc6f   :  { %2850 = vmax.xlane.f32.xlu1 %v2849_v0  ;;  %v17127_v1 = vpop.f32.mrf.mxu0 }
 0xc70   :  { %v2858_v9 = vsel %vm161_vm0, %v17127_v1, -inf }
 0xc71   :  { %v2828_v2 = vpop.f32.mrf.mxu0 }
 0xc72   :  { %2853 = vmax.xlane.f32.xlu0 %v2852_v3  ;;  %v2855_v4 = vsel %vm161_vm0, %v2828_v2, -inf }
 0xc73   :  { %2856 = vmax.xlane.f32.xlu1 %v2855_v4 }
 0xc76   :  { %2859 = vmax.xlane.f32.xlu0 %v2858_v9 }
 0xc84   :  { %3147 = vrot.lane.b32.xlu1 %v17061_v6, %s16356_s15 }
 0xc8c   :  { %3270 = vrot.lane.b32.xlu0 %v16995_v26, %s16355_s9 }
 0xced   :  { %v2842_v23 = vpop.xlane.xlu1 %2841 }
 0xcee   :  { %v2862_v30 = vsub.f32 %v14683_v39, %v2842_v23 }
 0xcef   :  { %v2839_v34 = vpop.xlane.xlu0 %2838 }
 0xcf0   :  { %v2871_v37 = vmul.f32 1.442695, %v2862_v30  ;;  %v2861_v55 = vsub.f32 %v2701_v60, %v2839_v34 }
 0xcf2   :  { %15813 = vpow2.f32 %v2871_v37  ;;  %v2869_v38 = vmul.f32 1.442695, %v2861_v55 }
 0xcf3   :  { %v2848_v57 = vpop.xlane.xlu0 %2847 }
 0xcf4   :  { %15815 = vpow2.f32 %v2869_v38  ;;  %v2864_v16 = vsub.f32 %v14686_v27, %v2848_v57 }
 0xcf6   :  { %v2875_v36 = vmul.f32 1.442695, %v2864_v16 }
 0xcf7   :  { %v2845_v44 = vpop.xlane.xlu0 %2844 }
 0xcf8   :  { %15817 = vpow2.f32 %v2875_v36  ;;  %v2851_v47 = vpop.xlane.xlu1 %2850  ;;  %v2863_v48 = vsub.f32 %v2711_v8, %v2845_v44 }
 0xcf9   :  { %v2865_v42 = vsub.f32 %v2818_v12, %v2851_v47 }
 0xcfa   :  { %v2873_v24 = vmul.f32 1.442695, %v2863_v48 }
 0xcfb   :  { %v2877_v7 = vmul.f32 1.442695, %v2865_v42  ;;  %v2854_v28 = vpop.xlane.xlu0 %2853 }
 0xcfc   :  { %15819 = vpow2.f32 %v2873_v24  ;;  %v2857_v0 = vpop.xlane.xlu1 %2856  ;;  %v2866_v39 = vsub.f32 %v14697_v11, %v2854_v28 }
 0xcfd   :  { %15821 = vpow2.f32 %v2877_v7  ;;  %v2867_v16 = vsub.f32 %v2828_v2, %v2857_v0 }
 0xcfe   :  { %v2879_v3 = vmul.f32 1.442695, %v2866_v39 }
 0xcff   :  { %v15814_v60 = vpop.eup %15813  ;;  %v2860_v57 = vpop.xlane.xlu0 %2859  ;;  %v2881_v44 = vmul.f32 1.442695, %v2867_v16 }
 0xd00   :  { %15823 = vpow2.f32 %v2879_v3  ;;  %v3148_v4 = vpop.permute.xlu1 %3147  ;;  %v2888_v9 = vsel %vm161_vm0, %v15814_v60, 0.0  ;;  %v2868_v36 = vsub.f32 %v17127_v1, %v2860_v57  ;;  %v17178_v1 = vpop.f32.mrf.mxu0 }
 0xd01   :  { %v15816_v27 = vpop.eup %15815  ;;  %14740 = vmatprep.mubr.msk.f32.mxu0 %vm2614_vm3, %v3148_v4  ;;  %2889 = vadd.xlane.f32.xlu0 %v2888_v9  ;;  %15825 = vpow2.f32 %v2881_v44  ;;  %v3380_v28 = vsel %vm161_vm0, %v17178_v1, -inf }
 0xd02   :  { %v2885_v8 = vsel %vm161_vm0, %v15816_v27, 0.0  ;;  %v2883_v47 = vmul.f32 1.442695, %v2868_v36  ;;  %v17180_v2 = vpop.f32.mrf.mxu0 }
 0xd03   :  { %2886 = vadd.xlane.f32.xlu1 %v2885_v8  ;;  %v3377_v0 = vsel %vm161_vm0, %v17180_v2, -inf  ;;  %v3271_v39 = vpop.permute.xlu0 %3270 }
 0xd04   :  { %15827 = vpow2.f32 %v2883_v47 }
 0xd05   :  { %v17144_v12 = vpop.eup %15817 }
 0xd06   :  { %v2894_v23 = vsel %vm161_vm0, %v17144_v12, 0.0 }
 0xd07   :  { %2895 = vadd.xlane.f32.xlu0 %v2894_v23 }
 0xd09   :  { %v15820_v11 = vpop.eup %15819 }
 0xd0a   :  { %v2891_v30 = vsel %vm161_vm0, %v15820_v11, 0.0  ;;  %v17149_v34 = vpop.eup %15821 }
 0xd0b   :  { %2892 = vadd.xlane.f32.xlu1 %v2891_v30  ;;  %v2897_v55 = vsel %vm161_vm0, %v17149_v34, 0.0 }
 0xd0d   :  { %v17151_v37 = vpop.eup %15823 }
 0xd0e   :  { %v2900_v38 = vsel %vm161_vm0, %v17151_v37, 0.0  ;;  %v17162_v48 = vpop.eup %15825 }
 0xd0f   :  { %2898 = vadd.xlane.f32.xlu1 %v2897_v55  ;;  %2901 = vadd.xlane.f32.xlu0 %v2900_v38  ;;  %v2903_v24 = vsel %vm161_vm0, %v17162_v48, 0.0 }
 0xd11   :  { %v17164_v42 = vpop.eup %15827 }
 0xd12   :  { %v2906_v7 = vsel %vm161_vm0, %v17164_v42, 0.0 }
 0xd20   :  { %3268 = vrot.lane.b32.xlu1 %v16976_v41, %s16355_s9 }
 0xd25   :  { %3149 = vrot.lane.b32.xlu0 %v17069_v10, %s16356_s15 }
 0xd44   :  { %2904 = vadd.xlane.f32.xlu1 %v2903_v24  ;;  %2907 = vadd.xlane.f32.xlu0 %v2906_v7 }
 0xd55   :  { %3262 = vrot.lane.b32.xlu1 %v17078_v22, %s16356_s15 }
 0xd59   :  { %3266 = vrot.lane.b32.xlu1 %v17088_v33, %s16356_s15 }
 0xd5a   :  { %3260 = vrot.lane.b32.xlu0 %v16985_v59, %s16356_s15 }
 0xd5e   :  { %3264 = vrot.lane.b32.xlu0 %v17081_v25, %s16356_s15 }
 0xd7d   :  { %3381 = vmax.xlane.f32.xlu1 %v3380_v28  ;;  %3378 = vmax.xlane.f32.xlu0 %v3377_v0 }
 0xd8a   :  { %v2890_v3 = vpop.xlane.xlu0 %2889 }
 0xd8b   :  { %15829 = vrcp.f32 %v2890_v3 }
 0xd8c   :  { %v2887_v4 = vpop.xlane.xlu1 %2886 }
 0xd8d   :  { %15831 = vrcp.f32 %v2887_v4 }
 0xd90   :  { %v2896_v9 = vpop.xlane.xlu0 %2895 }
 0xd91   :  { %15833 = vrcp.f32 %v2896_v9 }
 0xd94   :  { %v2893_v8 = vpop.xlane.xlu1 %2892 }
 0xd95   :  { %15835 = vrcp.f32 %v2893_v8 }
 0xd98   :  { %v2899_v23 = vpop.xlane.xlu1 %2898  ;;  %v2902_v30 = vpop.xlane.xlu0 %2901 }
 0xd99   :  { %v15830_v55 = vpop.eup %15829  ;;  %15837 = vrcp.f32 %v2899_v23 }
 0xd9a   :  { %v15832_v38 = vpop.eup %15831  ;;  %15839 = vrcp.f32 %v2902_v30  ;;  %v2918_v16 = vmul.f32 %v15830_v55, %v15814_v60 }
 0xd9b   :  { %v2917_v57 = vmul.f32 %v15832_v38, %v15816_v27 }
 0xd9c   :  { %v3150_v36 = vpop.permute.xlu0 %3149 }
 0xd9d   :  { %14709 = vmatprep.mubr.msk.f32.mxu1 %vm161_vm0, %v2917_v57  ;;  %14741 = vmatmul.mubr.msk.f32.gmra.mxu0 %vm2614_vm3, %v3150_v36 }
 0xd9e   :  { %14710 = vmatmul.mubr.msk.f32.vlgmr.msra.gmra.mxu1 %vm161_vm0, %v2918_v16  ;;  %v15834_v44 = vpop.eup %15833 }
 0xd9f   :  { %14716 = vmatpush3.msra.mxu1 %v17072_v13  ;;  %v2920_v27 = vmul.f32 %v15834_v44, %v17144_v12 }
 0xda0   :  { %14717 = vmatprep.subr.mxu1 %v17139_v20 }
 0xda1   :  { %14718 = vmatpush3.msra.mxu1 %v17139_v20 }
 0xda2   :  { %v15836_v47 = vpop.eup %15835  ;;  %14719 = vmatprep.subr.mxu1 %v17096_v35 }
 0xda3   :  { %14720 = vmatpush3.msra.mxu1 %v17096_v35  ;;  %v2919_v60 = vmul.f32 %v15836_v47, %v15820_v11 }
 0xda4   :  { %14721 = vmatprep.subr.mxu1 %v17101_v43 }
 0xda5   :  { %14722 = vmatpush3.msra.mxu1 %v17101_v43  ;;  %14712 = vmatprep.mubr.msk.f32.mxu1 %vm161_vm0, %v2919_v60  ;;  %v3269_v43 = vpop.permute.xlu1 %3268 }
 0xda6   :  { %v15838_v13 = vpop.eup %15837  ;;  %14743 = vmatprep.subr.msk.mxu1 %vm2614_vm3, %v17105_v29  ;;  %14713 = vmatmul.mubr.msk.f32.gmra.mxu1 %vm161_vm0, %v2920_v27 }
 0xda7   :  { %v15840_v20 = vpop.eup %15839  ;;  %v2921_v24 = vmul.f32 %v15838_v13, %v17149_v34 }
 0xda8   :  { %v2922_v35 = vmul.f32 %v15840_v20, %v17151_v37 }
 0xda9   :  { %14723 = vmatprep.mubr.msk.f32.mxu1 %vm161_vm0, %v2921_v24 }
 0xdaa   :  { %14724 = vmatmul.mubr.msk.f32.vlgmr.msra.gmra.mxu1 %vm161_vm0, %v2922_v35 }
 0xdab   :  { %14744 = vmatpush3.xpose.msk.msra.mxu1 %vm2614_vm3, %v17105_v29 }
 0xdac   :  { %14745 = vmatprep.subr.msk.mxu1 %vm2614_vm3, %v17137_v14 }
 0xdaf   :  { %14746 = vmatpush3.xpose.msk.msra.mxu1 %vm2614_vm3, %v17137_v14 }
 0xdb0   :  { %14747 = vmatprep.subr.msk.mxu1 %vm2614_vm3, %v3271_v39 }
 0xdb3   :  { %14748 = vmatpush3.xpose.msk.msra.mxu1 %vm2614_vm3, %v3271_v39 }
 0xdb4   :  { %14749 = vmatprep.subr.msk.mxu1 %vm2614_vm3, %v3269_v43 }
 0xdb7   :  { %14750 = vmatpush3.xpose.msk.msra.mxu1 %vm2614_vm3, %v3269_v43 }
 0xdcd   :  { %v2905_v12 = vpop.xlane.xlu1 %2904  ;;  %v2908_v11 = vpop.xlane.xlu0 %2907 }
 0xdce   :  { %15841 = vrcp.f32 %v2905_v12 }
 0xdcf   :  { %15843 = vrcp.f32 %v2908_v11 }
 0xdd1   :  { %v3261_v7 = vpop.permute.xlu0 %3260  ;;  %v3263_v28 = vpop.permute.xlu1 %3262 }
 0xdd5   :  { %v3265_v0 = vpop.permute.xlu0 %3264  ;;  %v3267_v39 = vpop.permute.xlu1 %3266 }
 0xddb   :  { %v15842_v29 = vpop.eup %15841 }
 0xddc   :  { %v15844_v34 = vpop.eup %15843  ;;  %v2923_v37 = vmul.f32 %v15842_v29, %v17162_v48 }
 0xddd   :  { %v2924_v14 = vmul.f32 %v15844_v34, %v17164_v42 }
 0xdde   :  { %14726 = vmatprep.mubr.msk.f32.mxu1 %vm161_vm0, %v2923_v37 }
 0xddf   :  { %14727 = vmatmul.mubr.msk.f32.gmra.mxu1 %vm161_vm0, %v2924_v14 }
 0xde0   :  { %14751 = vmatprep.mubr.msk.f32.mxu1 %vm2614_vm3, %v3261_v7 }
 0xde3   :  { %14752 = vmatmul.mubr.msk.f32.vlgmr.msra.gmra.mxu1 %vm2614_vm3, %v3263_v28 }
 0xde4   :  { %14754 = vmatprep.mubr.msk.f32.mxu1 %vm2614_vm3, %v3265_v0 }
 0xde7   :  { %14755 = vmatmul.mubr.msk.f32.gmra.mxu1 %vm2614_vm3, %v3267_v39 }
 0xe06   :  { %v3382_v23 = vpop.xlane.xlu1 %3381  ;;  %v3379_v55 = vpop.xlane.xlu0 %3378 }
 0xe07   :  { %v3402_v38 = vsub.f32 %v17178_v1, %v3382_v23  ;;  %v3401_v16 = vsub.f32 %v17180_v2, %v3379_v55 }
 0xe09   :  { %v3411_v36 = vmul.f32 1.442695, %v3402_v38  ;;  %v3409_v47 = vmul.f32 1.442695, %v3401_v16 }
 0xe0b   :  { %15845 = vpow2.f32 %v3411_v36 }
 0xe0c   :  { %15847 = vpow2.f32 %v3409_v47 }
 0xe18   :  { %v17246_v12 = vpop.eup %15845 }
 0xe19   :  { %v15848_v34 = vpop.eup %15847  ;;  %v3428_v37 = vsel %vm161_vm0, %v17246_v12, 0.0 }
 0xe1a   :  { %v3425_v7 = vsel %vm161_vm0, %v15848_v34, 0.0 }
 0xe5d   :  { %v14742_v3 = vpop.f32.mrf.mxu0 }
 0xe5e   :  { %v3386_v42 = vsel %vm161_vm0, %v14742_v3, -inf  ;;  %v17225_v9 = vpop.f32.mrf.mxu1 }
 0xe5f   :  { %v3251_v48 = vpop.f32.mrf.mxu0 }
 0xe60   :  { %v3383_v4 = vsel %vm161_vm0, %v3251_v48, -inf  ;;  %v17227_v8 = vpop.f32.mrf.mxu1 }
 0xe61   :  { %3384 = vmax.xlane.f32.xlu0 %v3383_v4 }
 0xe65   :  { %3387 = vmax.xlane.f32.xlu0 %v3386_v42 }
 0xe66   :  { %v17229_v30 = vpop.f32.mrf.mxu1 }
 0xe68   :  { %v17232_v57 = vpop.f32.mrf.mxu1 }
 0xe6a   :  { %v17235_v44 = vpop.f32.mrf.mxu1 }
 0xe6c   :  { %v17237_v60 = vpop.f32.mrf.mxu1 }
 0xe9f   :  { %v17239_v27 = vpop.f32.mrf.mxu1 }
 0xea1   :  { %v17241_v13 = vpop.f32.mrf.mxu1 }
 0xea3   :  { %v14753_v20 = vpop.f32.mrf.mxu1 }
 0xea4   :  { %v3392_v24 = vsel %vm161_vm0, %v14753_v20, -inf }
 0xea5   :  { %3393 = vmax.xlane.f32.xlu0 %v3392_v24  ;;  %v3358_v1 = vpop.f32.mrf.mxu1 }
 0xea6   :  { %v3389_v35 = vsel %vm161_vm0, %v3358_v1, -inf }
 0xea7   :  { %3390 = vmax.xlane.f32.xlu1 %v3389_v35  ;;  %v14756_v2 = vpop.f32.mrf.mxu1 }
 0xea8   :  { %v3398_v43 = vsel %vm161_vm0, %v14756_v2, -inf }
 0xea9   :  { %3399 = vmax.xlane.f32.xlu0 %v3398_v43  ;;  %v3368_v11 = vpop.f32.mrf.mxu1 }
 0xeaa   :  { %v3395_v29 = vsel %vm161_vm0, %v3368_v11, -inf }
 0xeab   :  { %3396 = vmax.xlane.f32.xlu1 %v3395_v29 }
 0xead   :  { %3429 = vadd.xlane.f32.xlu0 %v3428_v37 }
 0xeaf   :  { %3426 = vadd.xlane.f32.xlu1 %v3425_v7 }
 0xeea   :  { %v3385_v14 = vpop.xlane.xlu0 %3384 }
 0xeeb   :  { %v3403_v28 = vsub.f32 %v3251_v48, %v3385_v14 }
 0xeed   :  { %v3413_v0 = vmul.f32 1.442695, %v3403_v28 }
 0xeee   :  { %v3388_v39 = vpop.xlane.xlu0 %3387 }
 0xeef   :  { %15849 = vpow2.f32 %v3413_v0  ;;  %v3404_v4 = vsub.f32 %v14742_v3, %v3388_v39 }
 0xef1   :  { %v3415_v42 = vmul.f32 1.442695, %v3404_v4 }
 0xef3   :  { %15851 = vpow2.f32 %v3415_v42 }
 0xefc   :  { %v17252_v23 = vpop.eup %15849 }
 0xefd   :  { %v3431_v55 = vsel %vm161_vm0, %v17252_v23, 0.0 }
 0xefe   :  { %3432 = vadd.xlane.f32.xlu1 %v3431_v55 }
 0xf00   :  { %v17256_v38 = vpop.eup %15851 }
 0xf01   :  { %v3434_v16 = vsel %vm161_vm0, %v17256_v38, 0.0 }
 0xf02   :  { %3435 = vadd.xlane.f32.xlu0 %v3434_v16 }
 0xf0f   :  { %3471 = vrot.lane.b32.xlu1 %v16966_v49, %s16357_s30 }
 0xf13   :  { %3467 = vrot.lane.b32.xlu1 %v16972_v52, %s16357_s30 }
 0xf17   :  { %3465 = vrot.lane.b32.xlu1 %v16980_v53, %s16357_s30 }
 0xf18   :  { %3469 = vrot.lane.b32.xlu0 %v16968_v51, %s16357_s30 }
 0xf1b   :  { %3578 = vrot.lane.b32.xlu1 %v16993_v61, %s16357_s30 }
 0xf1c   :  { %3580 = vrot.lane.b32.xlu0 %v16982_v54, %s16357_s30 }
 0xf2e   :  { %v3394_v3 = vpop.xlane.xlu0 %3393 }
 0xf2f   :  { %v3406_v48 = vsub.f32 %v14753_v20, %v3394_v3 }
 0xf30   :  { %v3391_v36 = vpop.xlane.xlu1 %3390 }
 0xf31   :  { %v3419_v47 = vmul.f32 1.442695, %v3406_v48  ;;  %v3405_v24 = vsub.f32 %v3358_v1, %v3391_v36  ;;  %v17291_v48 = vld [vmem:[#allocation6] sm:$0xff]  ;;  %v17297_v36 = vld [vmem:[#allocation6 + $0x8] sm:$0xff] }
 0xf32   :  { %v3400_v35 = vpop.xlane.xlu0 %3399 }
 0xf33   :  { %15853 = vpow2.f32 %v3419_v47  ;;  %v3417_v43 = vmul.f32 1.442695, %v3405_v24  ;;  %v3408_v29 = vsub.f32 %v14756_v2, %v3400_v35 }
 0xf34   :  { %v3397_v37 = vpop.xlane.xlu1 %3396 }
 0xf35   :  { %15855 = vpow2.f32 %v3417_v43  ;;  %v3423_v7 = vmul.f32 1.442695, %v3408_v29  ;;  %v3407_v14 = vsub.f32 %v3368_v11, %v3397_v37 }
 0xf37   :  { %15857 = vpow2.f32 %v3423_v7  ;;  %v3421_v28 = vmul.f32 1.442695, %v3407_v14 }
 0xf38   :  { %v3427_v0 = vpop.xlane.xlu1 %3426 }
 0xf39   :  { %15859 = vpow2.f32 %v3421_v28 }
 0xf3a   :  { %15861 = vrcp.f32 %v3427_v0 }
 0xf40   :  { %v17272_v39 = vpop.eup %15853 }
 0xf41   :  { %v3440_v20 = vsel %vm161_vm0, %v17272_v39, 0.0 }
 0xf42   :  { %v17276_v4 = vpop.eup %15855  ;;  %3441 = vadd.xlane.f32.xlu0 %v3440_v20 }
 0xf43   :  { %v3437_v1 = vsel %vm161_vm0, %v17276_v4, 0.0 }
 0xf44   :  { %v17280_v2 = vpop.eup %15857  ;;  %3438 = vadd.xlane.f32.xlu1 %v3437_v1 }
 0xf45   :  { %v3446_v11 = vsel %vm161_vm0, %v17280_v2, 0.0 }
 0xf46   :  { %v17284_v42 = vpop.eup %15859  ;;  %3447 = vadd.xlane.f32.xlu0 %v3446_v11 }
 0xf47   :  { %v15862_v55 = vpop.eup %15861  ;;  %v3443_v16 = vsel %vm161_vm0, %v17284_v42, 0.0 }
 0xf48   :  { %3444 = vadd.xlane.f32.xlu1 %v3443_v16  ;;  %v3457_v3 = vmul.f32 %v15862_v55, %v15848_v34  ;;  %v3430_v34 = vpop.xlane.xlu0 %3429 }
 0xf49   :  { %15863 = vrcp.f32 %v3430_v34 }
 0xf4a   :  { %14765 = vmatprep.mubr.msk.f32.mxu0 %vm161_vm0, %v3457_v3 }
 0xf56   :  { %v15864_v37 = vpop.eup %15863 }
 0xf57   :  { %v3458_v28 = vmul.f32 %v15864_v37, %v17246_v12 }
 0xf59   :  { %3574 = vrot.lane.b32.xlu1 %v16976_v41, %s16357_s30 }
 0xf5c   :  { %3576 = vrot.lane.b32.xlu0 %v16995_v26, %s16357_s30 }
 0xf5d   :  { %3685 = vrot.lane.b32.xlu1 %v17291_v48, %s16356_s15 }
 0xf60   :  { %3687 = vrot.lane.b32.xlu0 %v17297_v36, %s16356_s15 }
 0xf61   :  { %3967 = vrot.lane.b32.xlu1 %v16968_v51, %s16353_s16 }
 0xf64   :  { %3969 = vrot.lane.b32.xlu0 %v16966_v49, %s16353_s16 }
 0xf65   :  { %4086 = vrot.lane.b32.xlu1 %v16982_v54, %s16353_s16 }
 0xf68   :  { %3965 = vrot.lane.b32.xlu0 %v16972_v52, %s16353_s16 }
 0xf69   :  { %4084 = vrot.lane.b32.xlu1 %v16993_v61, %s16353_s16 }
 0xf6c   :  { %3963 = vrot.lane.b32.xlu0 %v16980_v53, %s16353_s16 }
 0xf6d   :  { %3957 = vrot.lane.b32.xlu1 %v17035_v63, %s16347_s25 }
 0xf70   :  { %3955 = vrot.lane.b32.xlu0 %v17022_v62, %s16347_s25 }
 0xf71   :  { %3959 = vrot.lane.b32.xlu1 %v17061_v6, %s16347_s25 }
 0xf74   :  { %4082 = vrot.lane.b32.xlu0 %v16995_v26, %s16353_s16 }
 0xf75   :  { %4080 = vrot.lane.b32.xlu1 %v16976_v41, %s16353_s16 }
 0xf78   :  { %3961 = vrot.lane.b32.xlu0 %v17069_v10, %s16347_s25 }
 0xf79   :  { %4074 = vrot.lane.b32.xlu1 %v17078_v22, %s16347_s25 }
 0xf7c   :  { %4072 = vrot.lane.b32.xlu0 %v16985_v59, %s16347_s25 }
 0xf7d   :  { %4078 = vrot.lane.b32.xlu1 %v17088_v33, %s16347_s25 }
 0xf80   :  { %4076 = vrot.lane.b32.xlu0 %v17081_v25, %s16347_s25 }
 0xf87   :  { %v3433_v47 = vpop.xlane.xlu1 %3432 }
 0xf88   :  { %15865 = vrcp.f32 %v3433_v47 }
 0xf8b   :  { %v3472_v24 = vpop.permute.xlu1 %3471  ;;  %v3436_v35 = vpop.xlane.xlu0 %3435 }
 0xf8c   :  { %15867 = vrcp.f32 %v3436_v35  ;;  %14757 = vmatprep.subr.mxu0 %v3472_v24 }
 0xf8d   :  { %14758 = vmatpush3.msra.mxu0 %v3472_v24 }
 0xf8f   :  { %v3468_v43 = vpop.permute.xlu1 %3467  ;;  %v3470_v29 = vpop.permute.xlu0 %3469 }
 0xf90   :  { %14759 = vmatprep.subr.mxu0 %v3470_v29 }
 0xf91   :  { %14760 = vmatpush3.msra.mxu0 %v3470_v29 }
 0xf92   :  { %14761 = vmatprep.subr.mxu0 %v3468_v43 }
 0xf93   :  { %v3466_v7 = vpop.permute.xlu1 %3465  ;;  %14762 = vmatpush3.msra.mxu0 %v3468_v43  ;;  %v3581_v14 = vpop.permute.xlu0 %3580 }
 0xf94   :  { %14763 = vmatprep.subr.mxu0 %v3466_v7  ;;  %14771 = vmatprep.subr.mxu1 %v3581_v14 }
 0xf95   :  { %v15866_v0 = vpop.eup %15865  ;;  %14764 = vmatpush3.msra.mxu0 %v3466_v7  ;;  %14772 = vmatpush3.msra.mxu1 %v3581_v14 }
 0xf96   :  { %14766 = vmatmul.mubr.msk.f32.vlgmr.msra.gmra.mxu0 %vm161_vm0, %v3458_v28  ;;  %v3459_v20 = vmul.f32 %v15866_v0, %v17252_v23 }
 0xf97   :  { %v3579_v1 = vpop.permute.xlu1 %3578 }
 0xf98   :  { %14768 = vmatprep.mubr.msk.f32.mxu0 %vm161_vm0, %v3459_v20  ;;  %14773 = vmatprep.subr.mxu1 %v3579_v1 }
 0xf99   :  { %v15868_v11 = vpop.eup %15867  ;;  %14774 = vmatpush3.msra.mxu1 %v3579_v1 }
 0xf9a   :  { %v3460_v55 = vmul.f32 %v15868_v11, %v17256_v38 }
 0xf9c   :  { %14769 = vmatmul.mubr.msk.f32.gmra.mxu0 %vm161_vm0, %v3460_v55 }
 0xfcb   :  { %v3442_v12 = vpop.xlane.xlu0 %3441 }
 0xfcc   :  { %15869 = vrcp.f32 %v3442_v12 }
 0xfcd   :  { %v3439_v16 = vpop.xlane.xlu1 %3438 }
 0xfce   :  { %15871 = vrcp.f32 %v3439_v16 }
 0xfcf   :  { %v3448_v3 = vpop.xlane.xlu0 %3447 }
 0xfd0   :  { %15873 = vrcp.f32 %v3448_v3 }
 0xfd1   :  { %v3445_v34 = vpop.xlane.xlu1 %3444 }
 0xfd2   :  { %15875 = vrcp.f32 %v3445_v34 }
 0xfd3   :  { %v3577_v47 = vpop.permute.xlu0 %3576 }
 0xfd4   :  { %14775 = vmatprep.subr.mxu1 %v3577_v47 }
 0xfd5   :  { %v3575_v23 = vpop.permute.xlu1 %3574  ;;  %14776 = vmatpush3.msra.mxu1 %v3577_v47 }
 0xfd6   :  { %14777 = vmatprep.subr.mxu1 %v3575_v23 }
 0xfd7   :  { %14778 = vmatpush3.msra.mxu1 %v3575_v23  ;;  %v3688_v24 = vpop.permute.xlu0 %3687 }
 0xfd8   :  { %14785 = vmatprep.subr.msk.mxu0 %vm2614_vm3, %v3688_v24  ;;  %14801 = vmatprep.subr.msk.mxu1 %vm2614_vm3, %v17297_v36 }
 0xfd9   :  { %v3686_v38 = vpop.permute.xlu1 %3685  ;;  %14786 = vmatpush3.xpose.msk.msra.mxu0 %vm2614_vm3, %v3688_v24  ;;  %v15870_v35 = vpop.eup %15869 }
 0xfda   :  { %14787 = vmatprep.subr.msk.mxu0 %vm2614_vm3, %v3686_v38  ;;  %v3462_v7 = vmul.f32 %v15870_v35, %v17272_v39 }
 0xfdb   :  { %v15872_v43 = vpop.eup %15871  ;;  %v3970_v29 = vpop.permute.xlu0 %3969 }
 0xfdc   :  { %v3461_v37 = vmul.f32 %v15872_v43, %v17276_v4 }
 0xfdd   :  { %v3968_v14 = vpop.permute.xlu1 %3967  ;;  %14788 = vmatpush3.xpose.msk.msra.mxu0 %vm2614_vm3, %v3686_v38  ;;  %v15874_v28 = vpop.eup %15873 }
 0xfde   :  { %14779 = vmatprep.mubr.msk.f32.mxu1 %vm161_vm0, %v3461_v37  ;;  %14817 = vmatprep.subr.msk.mxu0 %vm2614_vm3, %v3970_v29  ;;  %v3464_v39 = vmul.f32 %v15874_v28, %v17280_v2 }
 0xfdf   :  { %v15876_v0 = vpop.eup %15875  ;;  %14780 = vmatmul.mubr.msk.f32.vlgmr.msra.gmra.mxu1 %vm161_vm0, %v3462_v7  ;;  %v3966_v20 = vpop.permute.xlu0 %3965 }
 0xfe0   :  { %14802 = vmatpush3.xpose.msk.msra.mxu1 %vm2614_vm3, %v17297_v36  ;;  %v3463_v1 = vmul.f32 %v15876_v0, %v17284_v42 }
 0xfe1   :  { %v4087_v4 = vpop.permute.xlu1 %4086  ;;  %14803 = vmatprep.subr.msk.mxu1 %vm2614_vm3, %v17291_v48 }
 0xfe2   :  { %14782 = vmatprep.mubr.msk.f32.mxu1 %vm161_vm0, %v3463_v1 }
 0xfe3   :  { %14783 = vmatmul.mubr.msk.f32.gmra.mxu1 %vm161_vm0, %v3464_v39  ;;  %v3964_v11 = vpop.permute.xlu0 %3963 }
 0xfe4   :  { %14804 = vmatpush3.xpose.msk.msra.mxu1 %vm2614_vm3, %v17291_v48  ;;  %14805 = vmatprep.mubr.msk.f32.mxu1 %vm2614_vm3, %v17227_v8 }
 0xfe5   :  { %14831 = vmatprep.subr.msk.mxu1 %vm2614_vm3, %v4087_v4  ;;  %v4085_v42 = vpop.permute.xlu1 %4084 }
 0xfe7   :  { %14806 = vmatmul.mubr.msk.f32.vlgmr.msra.gmra.mxu1 %vm2614_vm3, %v17225_v9  ;;  %v3956_v55 = vpop.permute.xlu0 %3955 }
 0xfe8   :  { %14832 = vmatpush3.xpose.msk.msra.mxu1 %vm2614_vm3, %v4087_v4  ;;  %14808 = vmatprep.mubr.msk.f32.mxu1 %vm2614_vm3, %v17232_v57 }
 0xfe9   :  { %14833 = vmatprep.subr.msk.mxu1 %vm2614_vm3, %v4085_v42  ;;  %v3958_v2 = vpop.permute.xlu1 %3957 }
 0xfeb   :  { %14809 = vmatmul.mubr.msk.f32.gmra.mxu1 %vm2614_vm3, %v17229_v30  ;;  %v4083_v12 = vpop.permute.xlu0 %4082 }
 0xfec   :  { %14834 = vmatpush3.xpose.msk.msra.mxu1 %vm2614_vm3, %v4085_v42  ;;  %14811 = vmatprep.mubr.msk.f32.mxu1 %vm2614_vm3, %v17237_v60 }
 0xfed   :  { %14835 = vmatprep.subr.msk.mxu1 %vm2614_vm3, %v4083_v12  ;;  %v3960_v9 = vpop.permute.xlu1 %3959 }
 0xfef   :  { %14812 = vmatmul.mubr.msk.f32.gmra.mxu1 %vm2614_vm3, %v17235_v44  ;;  %v3962_v8 = vpop.permute.xlu0 %3961 }
 0xff0   :  { %14836 = vmatpush3.xpose.msk.msra.mxu1 %vm2614_vm3, %v4083_v12  ;;  %14814 = vmatprep.mubr.msk.f32.mxu1 %vm2614_vm3, %v17241_v13 }
 0xff1   :  { %v4081_v57 = vpop.permute.xlu1 %4080 }
 0xff2   :  { %14837 = vmatprep.subr.msk.mxu1 %vm2614_vm3, %v4081_v57 }
 0xff3   :  { %14815 = vmatmul.mubr.msk.f32.gmra.mxu1 %vm2614_vm3, %v17239_v27  ;;  %v4073_v30 = vpop.permute.xlu0 %4072 }
 0xff4   :  { %14838 = vmatpush3.xpose.msk.msra.mxu1 %vm2614_vm3, %v4081_v57  ;;  %14839 = vmatprep.mubr.msk.f32.mxu1 %vm2614_vm3, %v4073_v30 }
 0xff5   :  { %v4075_v60 = vpop.permute.xlu1 %4074 }
 0xff7   :  { %14840 = vmatmul.mubr.msk.f32.vlgmr.msra.gmra.mxu1 %vm2614_vm3, %v4075_v60  ;;  %v4077_v44 = vpop.permute.xlu0 %4076 }
 0xff8   :  { %14842 = vmatprep.mubr.msk.f32.mxu1 %vm2614_vm3, %v4077_v44 }
 0xff9   :  { %v4079_v16 = vpop.permute.xlu1 %4078 }
 0xffb   :  { %14843 = vmatmul.mubr.msk.f32.gmra.mxu1 %vm2614_vm3, %v4079_v16 }
0x1056   :  { %v14767_v13 = vpop.f32.mrf.mxu0 }
0x1058   :  { %v3555_v3 = vpop.f32.mrf.mxu0 }
0x1059   :  { %14789 = vmatprep.mubr.msk.f32.mxu0 %vm2614_vm3, %v3555_v3 }
0x105a   :  { %14790 = vmatmul.mubr.msk.f32.vlgmr.msra.gmra.mxu0 %vm2614_vm3, %v14767_v13 }
0x105b   :  { %14818 = vmatpush3.xpose.msk.msra.mxu0 %vm2614_vm3, %v3970_v29 }
0x105c   :  { %14819 = vmatprep.subr.msk.mxu0 %vm2614_vm3, %v3968_v14  ;;  %v14770_v27 = vpop.f32.mrf.mxu0 }
0x105e   :  { %v3565_v34 = vpop.f32.mrf.mxu0 }
0x105f   :  { %14820 = vmatpush3.xpose.msk.msra.mxu0 %vm2614_vm3, %v3968_v14  ;;  %14792 = vmatprep.mubr.msk.f32.mxu0 %vm2614_vm3, %v3565_v34 }
0x1060   :  { %14821 = vmatprep.subr.msk.mxu0 %vm2614_vm3, %v3966_v20  ;;  %14793 = vmatmul.mubr.msk.f32.gmra.mxu0 %vm2614_vm3, %v14770_v27 }
0x1063   :  { %14822 = vmatpush3.xpose.msk.msra.mxu0 %vm2614_vm3, %v3966_v20 }
0x1064   :  { %14823 = vmatprep.subr.msk.mxu0 %vm2614_vm3, %v3964_v11 }
0x1067   :  { %14824 = vmatpush3.xpose.msk.msra.mxu0 %vm2614_vm3, %v3964_v11 }
0x109f   :  { %v14781_v47 = vpop.f32.mrf.mxu1 }
0x10a1   :  { %v3664_v23 = vpop.f32.mrf.mxu1 }
0x10a2   :  { %14795 = vmatprep.mubr.msk.f32.mxu0 %vm2614_vm3, %v3664_v23 }
0x10a3   :  { %v14784_v24 = vpop.f32.mrf.mxu1  ;;  %14796 = vmatmul.mubr.msk.f32.gmra.mxu0 %vm2614_vm3, %v14781_v47 }
0x10a5   :  { %v3674_v38 = vpop.f32.mrf.mxu1 }
0x10a6   :  { %14798 = vmatprep.mubr.msk.f32.mxu0 %vm2614_vm3, %v3674_v38 }
0x10a7   :  { %14799 = vmatmul.mubr.msk.f32.gmra.mxu0 %vm2614_vm3, %v14784_v24  ;;  %v17407_v35 = vpop.f32.mrf.mxu1 }
0x10a8   :  { %14825 = vmatprep.mubr.msk.f32.mxu0 %vm2614_vm3, %v3956_v55 }
0x10a9   :  { %v17409_v43 = vpop.f32.mrf.mxu1 }
0x10ab   :  { %14826 = vmatmul.mubr.msk.f32.vlgmr.msra.gmra.mxu0 %vm2614_vm3, %v3958_v2  ;;  %v17411_v29 = vpop.f32.mrf.mxu1 }
0x10ac   :  { %14828 = vmatprep.mubr.msk.f32.mxu0 %vm2614_vm3, %v3960_v9 }
0x10ad   :  { %v17413_v37 = vpop.f32.mrf.mxu1 }
0x10af   :  { %14829 = vmatmul.mubr.msk.f32.gmra.mxu0 %vm2614_vm3, %v3962_v8  ;;  %v17415_v7 = vpop.f32.mrf.mxu1 }
0x10b1   :  { %v17419_v28 = vpop.f32.mrf.mxu1 }
0x10b3   :  { %v17423_v20 = vpop.f32.mrf.mxu1 }
0x10b5   :  { %v17427_v4 = vpop.f32.mrf.mxu1 }
0x10b7   :  { %v14841_v42 = vpop.f32.mrf.mxu1 }
0x10b8   :  { %v4204_v24 = vsel %vm161_vm0, %v14841_v42, -inf }
0x10b9   :  { %v4170_v12 = vpop.f32.mrf.mxu1 }
0x10ba   :  { %v4201_v13 = vsel %vm161_vm0, %v4170_v12, -inf }
0x10bb   :  { %v14844_v30 = vpop.f32.mrf.mxu1 }
0x10bc   :  { %v4210_v38 = vsel %vm161_vm0, %v14844_v30, -inf }
0x10bd   :  { %v4180_v3 = vpop.f32.mrf.mxu1 }
0x10be   :  { %v4207_v47 = vsel %vm161_vm0, %v4180_v3, -inf }
0x111a   :  { %v17417_v14 = vpop.f32.mrf.mxu0 }
0x111c   :  { %v17421_v0 = vpop.f32.mrf.mxu0 }
0x1120   :  { %v17425_v1 = vpop.f32.mrf.mxu0 }
0x1122   :  { %v17429_v39 = vpop.f32.mrf.mxu0 }
0x1163   :  { %v17431_v11 = vpop.f32.mrf.mxu0 }
0x1165   :  { %v17433_v55 = vpop.f32.mrf.mxu0 }
0x1167   :  { %v17435_v2 = vpop.f32.mrf.mxu0 }
0x1169   :  { %v17437_v9 = vpop.f32.mrf.mxu0 }
0x116b   :  { %v17439_v8 = vpop.f32.mrf.mxu0 }
0x116c   :  { %v4192_v57 = vsel %vm161_vm0, %v17439_v8, -inf }
0x116d   :  { %4193 = vmax.xlane.f32.xlu1 %v4192_v57  ;;  %v4053_v60 = vpop.f32.mrf.mxu0 }
0x116e   :  { %v4189_v44 = vsel %vm161_vm0, %v4053_v60, -inf }
0x116f   :  { %4190 = vmax.xlane.f32.xlu0 %v4189_v44  ;;  %v14830_v16 = vpop.f32.mrf.mxu0 }
0x1170   :  { %v4198_v23 = vsel %vm161_vm0, %v14830_v16, -inf }
0x1171   :  { %v4063_v27 = vpop.f32.mrf.mxu0  ;;  %4202 = vmax.xlane.f32.xlu1 %v4201_v13 }
0x1172   :  { %v4195_v34 = vsel %vm161_vm0, %v4063_v27, -inf }
0x1173   :  { %4196 = vmax.xlane.f32.xlu0 %v4195_v34 }
0x1175   :  { %4208 = vmax.xlane.f32.xlu1 %v4207_v47 }
0x1177   :  { %4199 = vmax.xlane.f32.xlu0 %v4198_v23 }
0x117b   :  { %4205 = vmax.xlane.f32.xlu0 %v4204_v24 }
0x117f   :  { %4211 = vmax.xlane.f32.xlu0 %v4210_v38 }
0x11f6   :  { %v4194_v57 = vpop.xlane.xlu1 %4193 }
0x11f8   :  { %v4191_v44 = vpop.xlane.xlu0 %4190 }
0x11fa   :  { %v4203_v50 = vpop.xlane.xlu1 %4202 }
0x11fb   :  { %v4217_v21 = vsub.f32 %v4170_v12, %v4203_v50 }
0x11fc   :  { %v4197_v13 = vpop.xlane.xlu0 %4196 }
0x11fd   :  { %v4229_v19 = vmul.f32 1.442695, %v4217_v21 }
0x11fe   :  { %v4209_v40 = vpop.xlane.xlu1 %4208 }
0x11ff   :  { %15877 = vpow2.f32 %v4229_v19  ;;  %v4219_v34 = vsub.f32 %v4180_v3, %v4209_v40 }
0x1200   :  { %v4200_v31 = vpop.xlane.xlu0 %4199 }
0x1201   :  { %v4233_v47 = vmul.f32 1.442695, %v4219_v34  ;;  %v4216_v34 = vsub.f32 %v14830_v16, %v4200_v31 }
0x1203   :  { %15879 = vpow2.f32 %v4233_v47 }
0x1204   :  { %v4206_v58 = vpop.xlane.xlu0 %4205 }
0x1205   :  { %v4218_v23 = vsub.f32 %v14841_v42, %v4206_v58  ;;  %v4214_v42 = vsub.f32 %v17439_v8, %v4194_v57 }
0x1207   :  { %v4231_v17 = vmul.f32 1.442695, %v4218_v23  ;;  %v4223_v3 = vmul.f32 1.442695, %v4214_v42  ;;  %v4227_v23 = vmul.f32 1.442695, %v4216_v34 }
0x1208   :  { %v4212_v46 = vpop.xlane.xlu0 %4211 }
0x1209   :  { %15881 = vpow2.f32 %v4231_v17  ;;  %v4220_v24 = vsub.f32 %v14844_v30, %v4212_v46  ;;  %v4213_v46 = vsub.f32 %v4053_v60, %v4191_v44  ;;  %v4215_v30 = vsub.f32 %v4063_v27, %v4197_v13 }
0x120b   :  { %v4235_v18 = vmul.f32 1.442695, %v4220_v24  ;;  %v4221_v12 = vmul.f32 1.442695, %v4213_v46  ;;  %v4225_v47 = vmul.f32 1.442695, %v4215_v30 }
0x120c   :  { %v17450_v38 = vpop.eup %15877 }
0x120d   :  { %15883 = vpow2.f32 %v4235_v18  ;;  %v4249_v50 = vsel %vm161_vm0, %v17450_v38, 0.0 }
0x120e   :  { %4250 = vadd.xlane.f32.xlu1 %v4249_v50  ;;  %15885 = vpow2.f32 %v4221_v12 }
0x120f   :  { %15887 = vpow2.f32 %v4223_v3 }
0x1210   :  { %v17454_v21 = vpop.eup %15879  ;;  %15889 = vpow2.f32 %v4225_v47 }
0x1211   :  { %v4255_v19 = vsel %vm161_vm0, %v17454_v21, 0.0  ;;  %15891 = vpow2.f32 %v4227_v23 }
0x1212   :  { %4256 = vadd.xlane.f32.xlu1 %v4255_v19 }
0x1216   :  { %v17458_v40 = vpop.eup %15881 }
0x1217   :  { %v4252_v58 = vsel %vm161_vm0, %v17458_v40, 0.0 }
0x1218   :  { %4253 = vadd.xlane.f32.xlu0 %v4252_v58 }
0x121a   :  { %v17462_v17 = vpop.eup %15883 }
0x121b   :  { %v4258_v18 = vsel %vm161_vm0, %v17462_v17, 0.0  ;;  %v17479_v24 = vpop.eup %15885 }
0x121c   :  { %4259 = vadd.xlane.f32.xlu0 %v4258_v18  ;;  %v17481_v50 = vpop.eup %15887  ;;  %v4237_v19 = vsel %vm161_vm0, %v17479_v24, 0.0 }
0x121d   :  { %v17485_v60 = vpop.eup %15889  ;;  %v4240_v8 = vsel %vm161_vm0, %v17481_v50, 0.0 }
0x121e   :  { %v17489_v31 = vpop.eup %15891  ;;  %v4243_v16 = vsel %vm161_vm0, %v17485_v60, 0.0 }
0x121f   :  { %v4246_v27 = vsel %vm161_vm0, %v17489_v31, 0.0 }
0x1223   :  { %4283 = vrot.lane.b32.xlu1 %v16966_v49, %s16346_s24 }
0x1227   :  { %4279 = vrot.lane.b32.xlu1 %v16972_v52, %s16346_s24 }
0x122b   :  { %4277 = vrot.lane.b32.xlu1 %v16980_v53, %s16346_s24 }
0x122f   :  { %4390 = vrot.lane.b32.xlu1 %v16993_v61, %s16346_s24 }
0x1232   :  { %4281 = vrot.lane.b32.xlu0 %v16968_v51, %s16346_s24 }
0x1236   :  { %4392 = vrot.lane.b32.xlu0 %v16982_v54, %s16346_s24 }
0x1253   :  { %4238 = vadd.xlane.f32.xlu1 %v4237_v19 }
0x1255   :  { %4241 = vadd.xlane.f32.xlu0 %v4240_v8 }
0x1257   :  { %4244 = vadd.xlane.f32.xlu1 %v4243_v16 }
0x1259   :  { %4247 = vadd.xlane.f32.xlu0 %v4246_v27 }
0x1268   :  { %4386 = vrot.lane.b32.xlu1 %v16976_v41, %s16346_s24 }
0x126c   :  { %4654 = vrot.lane.b32.xlu1 %v16966_v49, %s19622_s13 }
0x126f   :  { %4388 = vrot.lane.b32.xlu0 %v16995_v26, %s16346_s24 }
0x1270   :  { %4652 = vrot.lane.b32.xlu1 %v16968_v51, %s19622_s13 }
0x1273   :  { %4497 = vrot.lane.b32.xlu0 %v17297_v36, %s16347_s25 }
0x1274   :  { %4771 = vrot.lane.b32.xlu1 %v16982_v54, %s19622_s13 }
0x1277   :  { %4495 = vrot.lane.b32.xlu0 %v17291_v48, %s16347_s25 }
0x1278   :  { %4769 = vrot.lane.b32.xlu1 %v16993_v61, %s19622_s13 }
0x127b   :  { %4650 = vrot.lane.b32.xlu0 %v16972_v52, %s19622_s13 }
0x127c   :  { %4642 = vrot.lane.b32.xlu1 %v17035_v63, %s19620_s1 }
0x127f   :  { %4648 = vrot.lane.b32.xlu0 %v16980_v53, %s19622_s13 }
0x1280   :  { %4644 = vrot.lane.b32.xlu1 %v17061_v6, %s19620_s1 }
0x1283   :  { %4640 = vrot.lane.b32.xlu0 %v17022_v62, %s19620_s1 }
0x1284   :  { %4765 = vrot.lane.b32.xlu1 %v16976_v41, %s19622_s13 }
0x1287   :  { %4767 = vrot.lane.b32.xlu0 %v16995_v26, %s19622_s13 }
0x1288   :  { %4759 = vrot.lane.b32.xlu1 %v17078_v22, %s19620_s1 }
0x128b   :  { %4646 = vrot.lane.b32.xlu0 %v17069_v10, %s19620_s1 }
0x128c   :  { %4763 = vrot.lane.b32.xlu1 %v17088_v33, %s19620_s1 }
0x128f   :  { %4757 = vrot.lane.b32.xlu0 %v16985_v59, %s19620_s1 }
0x1293   :  { %4761 = vrot.lane.b32.xlu0 %v17081_v25, %s19620_s1 }
0x1297   :  { %v4251_v62 = vpop.xlane.xlu1 %4250 }
0x1298   :  { %15893 = vrcp.f32 %v4251_v62 }
0x129b   :  { %v4257_v63 = vpop.xlane.xlu1 %4256 }
0x129f   :  { %v4284_v6 = vpop.permute.xlu1 %4283 }
0x12a0   :  { %14845 = vmatprep.subr.mxu0 %v4284_v6 }
0x12a1   :  { %14846 = vmatpush3.msra.mxu0 %v4284_v6  ;;  %v4254_v48 = vpop.xlane.xlu0 %4253 }
0x12a2   :  { %15895 = vrcp.f32 %v4254_v48 }
0x12a3   :  { %v4280_v22 = vpop.permute.xlu1 %4279  ;;  %15897 = vrcp.f32 %v4257_v63 }
0x12a5   :  { %v15894_v36 = vpop.eup %15893  ;;  %v4260_v57 = vpop.xlane.xlu0 %4259 }
0x12a6   :  { %v4273_v10 = vmul.f32 %v15894_v36, %v17450_v38  ;;  %15899 = vrcp.f32 %v4260_v57 }
0x12a7   :  { %v4278_v33 = vpop.permute.xlu1 %4277 }
0x12a8   :  { %14867 = vmatprep.mubr.msk.f32.mxu1 %vm161_vm0, %v4273_v10 }
0x12a9   :  { %v4282_v44 = vpop.permute.xlu0 %4281 }
0x12aa   :  { %14847 = vmatprep.subr.mxu0 %v4282_v44 }
0x12ab   :  { %14848 = vmatpush3.msra.mxu0 %v4282_v44  ;;  %v4391_v25 = vpop.permute.xlu1 %4390 }
0x12ac   :  { %14849 = vmatprep.subr.mxu0 %v4280_v22 }
0x12ad   :  { %14850 = vmatpush3.msra.mxu0 %v4280_v22  ;;  %v4393_v59 = vpop.permute.xlu0 %4392 }
0x12ae   :  { %14851 = vmatprep.subr.mxu0 %v4278_v33  ;;  %14859 = vmatprep.subr.mxu1 %v4393_v59 }
0x12af   :  { %14852 = vmatpush3.msra.mxu0 %v4278_v33  ;;  %14860 = vmatpush3.msra.mxu1 %v4393_v59  ;;  %v15896_v42 = vpop.eup %15895 }
0x12b0   :  { %14861 = vmatprep.subr.mxu1 %v4391_v25  ;;  %v15898_v30 = vpop.eup %15897  ;;  %v4274_v47 = vmul.f32 %v15896_v42, %v17458_v40 }
0x12b1   :  { %14862 = vmatpush3.msra.mxu1 %v4391_v25  ;;  %v4275_v8 = vmul.f32 %v15898_v30, %v17454_v21 }
0x12b3   :  { %v15900_v34 = vpop.eup %15899 }
0x12b4   :  { %v4276_v21 = vmul.f32 %v15900_v34, %v17462_v17 }
0x12dc   :  { %v4239_v13 = vpop.xlane.xlu1 %4238 }
0x12dd   :  { %15901 = vrcp.f32 %v4239_v13 }
0x12de   :  { %v4242_v38 = vpop.xlane.xlu0 %4241 }
0x12df   :  { %15903 = vrcp.f32 %v4242_v38 }
0x12e0   :  { %v4245_v58 = vpop.xlane.xlu1 %4244 }
0x12e1   :  { %15905 = vrcp.f32 %v4245_v58 }
0x12e2   :  { %v4248_v18 = vpop.xlane.xlu0 %4247 }
0x12e3   :  { %15907 = vrcp.f32 %v4248_v18 }
0x12e4   :  { %v4387_v46 = vpop.permute.xlu1 %4386 }
0x12e6   :  { %v4389_v12 = vpop.permute.xlu0 %4388 }
0x12e7   :  { %14863 = vmatprep.subr.mxu1 %v4389_v12 }
0x12e8   :  { %v4655_v3 = vpop.permute.xlu1 %4654  ;;  %14864 = vmatpush3.msra.mxu1 %v4389_v12 }
0x12e9   :  { %14865 = vmatprep.subr.mxu1 %v4387_v46 }
0x12ea   :  { %v15902_v23 = vpop.eup %15901  ;;  %14866 = vmatpush3.msra.mxu1 %v4387_v46  ;;  %v4498_v19 = vpop.permute.xlu0 %4497 }
0x12eb   :  { %14868 = vmatmul.mubr.msk.f32.vlgmr.msra.gmra.mxu1 %vm161_vm0, %v4274_v47  ;;  %14889 = vmatprep.subr.msk.mxu1 %vm2614_vm3, %v4655_v3  ;;  %v4269_v16 = vmul.f32 %v15902_v23, %v17479_v24 }
0x12ec   :  { %v15904_v27 = vpop.eup %15903  ;;  %v4653_v62 = vpop.permute.xlu1 %4652  ;;  %14870 = vmatprep.mubr.msk.f32.mxu1 %vm161_vm0, %v4275_v8  ;;  %14890 = vmatpush3.xpose.msk.msra.mxu1 %vm2614_vm3, %v4655_v3 }
0x12ed   :  { %v4270_v40 = vmul.f32 %v15904_v27, %v17481_v50  ;;  %14853 = vmatprep.mubr.msk.f32.mxu0 %vm161_vm0, %v4269_v16  ;;  %14891 = vmatprep.subr.msk.mxu1 %vm2614_vm3, %v4653_v62 }
0x12ee   :  { %v15906_v63 = vpop.eup %15905  ;;  %14873 = vmatprep.subr.msk.mxu0 %vm2614_vm3, %v4498_v19  ;;  %v4496_v6 = vpop.permute.xlu0 %4495 }
0x12ef   :  { %14854 = vmatmul.mubr.msk.f32.vlgmr.msra.gmra.mxu0 %vm161_vm0, %v4270_v40  ;;  %14871 = vmatmul.mubr.msk.f32.gmra.mxu1 %vm161_vm0, %v4276_v21  ;;  %v4271_v24 = vmul.f32 %v15906_v63, %v17485_v60 }
0x12f0   :  { %v15908_v48 = vpop.eup %15907  ;;  %14874 = vmatpush3.xpose.msk.msra.mxu0 %vm2614_vm3, %v4498_v19  ;;  %v4772_v50 = vpop.permute.xlu1 %4771  ;;  %14892 = vmatpush3.xpose.msk.msra.mxu1 %vm2614_vm3, %v4653_v62 }
0x12f1   :  { %14856 = vmatprep.mubr.msk.f32.mxu0 %vm161_vm0, %v4271_v24  ;;  %14875 = vmatprep.subr.msk.mxu0 %vm2614_vm3, %v4496_v6  ;;  %v4272_v17 = vmul.f32 %v15908_v48, %v17489_v31  ;;  %v3922_v48 = vadd.f32 %v17407_v35, %v17417_v14  ;;  %v3942_v35 = vadd.f32 %v17415_v7, %v17431_v11 }
0x12f2   :  { %v4651_v22 = vpop.permute.xlu0 %4650 }
0x12f3   :  { %14857 = vmatmul.mubr.msk.f32.gmra.mxu0 %vm161_vm0, %v4272_v17  ;;  %14893 = vmatprep.subr.msk.mxu1 %vm2614_vm3, %v4651_v22 }
0x12f4   :  { %14876 = vmatpush3.xpose.msk.msra.mxu0 %vm2614_vm3, %v4496_v6  ;;  %v4770_v60 = vpop.permute.xlu1 %4769  ;;  %14894 = vmatpush3.xpose.msk.msra.mxu1 %vm2614_vm3, %v4651_v22 }
0x12f5   :  { %14903 = vmatprep.subr.msk.mxu0 %vm2614_vm3, %v4772_v50 }
0x12f6   :  { %v4649_v36 = vpop.permute.xlu0 %4648 }
0x12f7   :  { %14895 = vmatprep.subr.msk.mxu1 %vm2614_vm3, %v4649_v36 }
0x12f8   :  { %v4643_v57 = vpop.permute.xlu1 %4642  ;;  %14896 = vmatpush3.xpose.msk.msra.mxu1 %vm2614_vm3, %v4649_v36 }
0x12fa   :  { %v4641_v10 = vpop.permute.xlu0 %4640 }
0x12fb   :  { %14897 = vmatprep.mubr.msk.f32.mxu1 %vm2614_vm3, %v4641_v10 }
0x12fc   :  { %v4645_v31 = vpop.permute.xlu1 %4644  ;;  %14898 = vmatmul.mubr.msk.f32.vlgmr.msra.gmra.mxu1 %vm2614_vm3, %v4643_v57  ;;  %v3932_v57 = vadd.f32 %v17411_v29, %v17425_v1  ;;  %v3952_v29 = vadd.f32 %v17423_v20, %v17435_v2 }
0x12fd   :  { %14900 = vmatprep.mubr.msk.f32.mxu1 %vm2614_vm3, %v4645_v31 }
0x12fe   :  { %v4768_v33 = vpop.permute.xlu0 %4767 }
0x1300   :  { %v4766_v42 = vpop.permute.xlu1 %4765 }
0x1302   :  { %v4647_v44 = vpop.permute.xlu0 %4646 }
0x1303   :  { %14901 = vmatmul.mubr.msk.f32.gmra.mxu1 %vm2614_vm3, %v4647_v44 }
0x1304   :  { %v4760_v19 = vpop.permute.xlu1 %4759 }
0x1306   :  { %v4758_v3 = vpop.permute.xlu0 %4757 }
0x1308   :  { %v4764_v62 = vpop.permute.xlu1 %4763 }
0x130a   :  { %v4762_v8 = vpop.permute.xlu0 %4761 }
0x13ab   :  { %v14869_v59 = vpop.f32.mrf.mxu1 }
0x13ad   :  { %v4476_v38 = vpop.f32.mrf.mxu1 }
0x13af   :  { %v14855_v25 = vpop.f32.mrf.mxu0  ;;  %v14872_v46 = vpop.f32.mrf.mxu1 }
0x13b1   :  { %v4367_v13 = vpop.f32.mrf.mxu0  ;;  %v4486_v12 = vpop.f32.mrf.mxu1 }
0x13b2   :  { %14877 = vmatprep.mubr.msk.f32.mxu0 %vm2614_vm3, %v4367_v13 }
0x13b3   :  { %v14858_v58 = vpop.f32.mrf.mxu0  ;;  %14878 = vmatmul.mubr.msk.f32.vlgmr.msra.gmra.mxu0 %vm2614_vm3, %v14855_v25 }
0x13b4   :  { %14904 = vmatpush3.xpose.msk.msra.mxu0 %vm2614_vm3, %v4772_v50 }
0x13b5   :  { %14905 = vmatprep.subr.msk.mxu0 %vm2614_vm3, %v4770_v60  ;;  %v4377_v18 = vpop.f32.mrf.mxu0 }
0x13b6   :  { %14880 = vmatprep.mubr.msk.f32.mxu0 %vm2614_vm3, %v4377_v18 }
0x13b7   :  { %14881 = vmatmul.mubr.msk.f32.gmra.mxu0 %vm2614_vm3, %v14858_v58 }
0x13b8   :  { %14906 = vmatpush3.xpose.msk.msra.mxu0 %vm2614_vm3, %v4770_v60  ;;  %14883 = vmatprep.mubr.msk.f32.mxu0 %vm2614_vm3, %v4476_v38 }
0x13b9   :  { %14907 = vmatprep.subr.msk.mxu0 %vm2614_vm3, %v4768_v33 }
0x13bb   :  { %14884 = vmatmul.mubr.msk.f32.gmra.mxu0 %vm2614_vm3, %v14869_v59 }
0x13bc   :  { %14908 = vmatpush3.xpose.msk.msra.mxu0 %vm2614_vm3, %v4768_v33  ;;  %14886 = vmatprep.mubr.msk.f32.mxu0 %vm2614_vm3, %v4486_v12  ;;  %v14899_v30 = vpop.f32.mrf.mxu1 }
0x13bd   :  { %14909 = vmatprep.subr.msk.mxu0 %vm2614_vm3, %v4766_v42  ;;  %v4877_v34 = vsel %vm161_vm0, %v14899_v30, -inf }
0x13be   :  { %4878 = vmax.xlane.f32.xlu1 %v4877_v34  ;;  %v4738_v47 = vpop.f32.mrf.mxu1 }
0x13bf   :  { %14887 = vmatmul.mubr.msk.f32.gmra.mxu0 %vm2614_vm3, %v14872_v46  ;;  %v4874_v23 = vsel %vm161_vm0, %v4738_v47, -inf }
0x13c0   :  { %14910 = vmatpush3.xpose.msk.msra.mxu0 %vm2614_vm3, %v4766_v42  ;;  %4875 = vmax.xlane.f32.xlu0 %v4874_v23 }
0x13c1   :  { %14911 = vmatprep.mubr.msk.f32.mxu0 %vm2614_vm3, %v4758_v3 }
0x13c3   :  { %v14902_v16 = vpop.f32.mrf.mxu1  ;;  %14912 = vmatmul.mubr.msk.f32.vlgmr.msra.gmra.mxu0 %vm2614_vm3, %v4760_v19 }
0x13c4   :  { %14914 = vmatprep.mubr.msk.f32.mxu0 %vm2614_vm3, %v4762_v8  ;;  %v4883_v21 = vsel %vm161_vm0, %v14902_v16, -inf }
0x13c5   :  { %v4748_v27 = vpop.f32.mrf.mxu1 }
0x13c6   :  { %v4880_v40 = vsel %vm161_vm0, %v4748_v27, -inf }
0x13c7   :  { %4881 = vmax.xlane.f32.xlu0 %v4880_v40  ;;  %14915 = vmatmul.mubr.msk.f32.gmra.mxu0 %vm2614_vm3, %v4764_v62 }
0x13cb   :  { %4884 = vmax.xlane.f32.xlu0 %v4883_v21 }
0x1447   :  { %v4879_v24 = vpop.xlane.xlu1 %4878 }
0x1448   :  { %v4899_v17 = vsub.f32 %v14899_v30, %v4879_v24 }
0x1449   :  { %v4876_v63 = vpop.xlane.xlu0 %4875 }
0x144a   :  { %v4898_v10 = vsub.f32 %v4738_v47, %v4876_v63  ;;  %v4908_v33 = vmul.f32 1.442695, %v4899_v17 }
0x144c   :  { %v4906_v14 = vmul.f32 1.442695, %v4898_v10  ;;  %15909 = vpow2.f32 %v4908_v33 }
0x144e   :  { %15911 = vpow2.f32 %v4906_v14 }
0x1450   :  { %v4882_v6 = vpop.xlane.xlu0 %4881 }
0x1451   :  { %v4900_v13 = vsub.f32 %v4748_v27, %v4882_v6 }
0x1453   :  { %v4910_v1 = vmul.f32 1.442695, %v4900_v13 }
0x1454   :  { %v4885_v60 = vpop.xlane.xlu0 %4884 }
0x1455   :  { %v4901_v44 = vsub.f32 %v14902_v16, %v4885_v60 }
0x1457   :  { %v4912_v58 = vmul.f32 1.442695, %v4901_v44 }
0x1459   :  { %15913 = vpow2.f32 %v4912_v58  ;;  %v17618_v2 = vpop.eup %15909 }
0x145a   :  { %15915 = vpow2.f32 %v4910_v1  ;;  %v4925_v16 = vsel %vm161_vm0, %v17618_v2, 0.0 }
0x145b   :  { %v17621_v8 = vpop.eup %15911 }
0x145c   :  { %v4922_v62 = vsel %vm161_vm0, %v17621_v8, 0.0 }
0x1466   :  { %v17625_v27 = vpop.eup %15913 }
0x1467   :  { %v17629_v40 = vpop.eup %15915  ;;  %v4931_v21 = vsel %vm161_vm0, %v17625_v27, 0.0 }
0x1468   :  { %v4928_v63 = vsel %vm161_vm0, %v17629_v40, 0.0 }
0x1473   :  { %v14879_v50 = vpop.f32.mrf.mxu0 }
0x1474   :  { %v17593_v22 = vadd.f32 %v14879_v50, %v3922_v48 }
0x1475   :  { %v17595_v36 = vpop.f32.mrf.mxu0 }
0x1477   :  { %v14882_v31 = vpop.f32.mrf.mxu0 }
0x1478   :  { %v17599_v59 = vadd.f32 %v14882_v31, %v3932_v57 }
0x1479   :  { %v17601_v25 = vpop.f32.mrf.mxu0 }
0x147b   :  { %v14885_v38 = vpop.f32.mrf.mxu0 }
0x147c   :  { %v17605_v18 = vadd.f32 %v14885_v38, %v3942_v35 }
0x147d   :  { %v17607_v46 = vpop.f32.mrf.mxu0 }
0x147f   :  { %v14888_v42 = vpop.f32.mrf.mxu0 }
0x1480   :  { %v17611_v12 = vadd.f32 %v14888_v42, %v3952_v29 }
0x1481   :  { %v17613_v30 = vpop.f32.mrf.mxu0 }
0x1483   :  { %v14913_v7 = vpop.f32.mrf.mxu0 }
0x1484   :  { %v4889_v11 = vsel %vm161_vm0, %v14913_v7, -inf }
0x1485   :  { %4890 = vmax.xlane.f32.xlu0 %v4889_v11  ;;  %v4855_v3 = vpop.f32.mrf.mxu0 }
0x1486   :  { %v4886_v34 = vsel %vm161_vm0, %v4855_v3, -inf }
0x1487   :  { %4887 = vmax.xlane.f32.xlu1 %v4886_v34  ;;  %v14916_v47 = vpop.f32.mrf.mxu0 }
0x1488   :  { %v4895_v20 = vsel %vm161_vm0, %v14916_v47, -inf }
0x1489   :  { %4896 = vmax.xlane.f32.xlu0 %v4895_v20  ;;  %v4865_v23 = vpop.f32.mrf.mxu0 }
0x148a   :  { %v4892_v19 = vsel %vm161_vm0, %v4865_v23, -inf }
0x148b   :  { %4893 = vmax.xlane.f32.xlu1 %v4892_v19 }
0x148d   :  { %4926 = vadd.xlane.f32.xlu0 %v4925_v16 }
0x148f   :  { %4923 = vadd.xlane.f32.xlu1 %v4922_v62 }
0x1491   :  { %4932 = vadd.xlane.f32.xlu0 %v4931_v21 }
0x1493   :  { %4929 = vadd.xlane.f32.xlu1 %v4928_v63 }
0x14a4   :  { %4968 = vrot.lane.b32.xlu1 %v16966_v49, %s19618_s21 }
0x14a7   :  { %4966 = vrot.lane.b32.xlu0 %v16968_v51, %s19618_s21 }
0x14a8   :  { %4964 = vrot.lane.b32.xlu1 %v16972_v52, %s19618_s21 }
0x14ab   :  { %5077 = vrot.lane.b32.xlu0 %v16982_v54, %s19618_s21 }
0x14ac   :  { %4962 = vrot.lane.b32.xlu1 %v16980_v53, %s19618_s21 }
0x14b0   :  { %5075 = vrot.lane.b32.xlu1 %v16993_v61, %s19618_s21 }
0x150e   :  { %v4891_v6 = vpop.xlane.xlu0 %4890 }
0x150f   :  { %v4903_v24 = vsub.f32 %v14913_v7, %v4891_v6 }
0x1510   :  { %v4888_v48 = vpop.xlane.xlu1 %4887 }
0x1511   :  { %v4916_v50 = vmul.f32 1.442695, %v4903_v24  ;;  %v4902_v49 = vsub.f32 %v4855_v3, %v4888_v48 }
0x1512   :  { %v4897_v17 = vpop.xlane.xlu0 %4896 }
0x1513   :  { %15917 = vpow2.f32 %v4916_v50  ;;  %v4914_v51 = vmul.f32 1.442695, %v4902_v49  ;;  %v4905_v60 = vsub.f32 %v14916_v47, %v4897_v17 }
0x1514   :  { %v4894_v57 = vpop.xlane.xlu1 %4893 }
0x1515   :  { %15919 = vpow2.f32 %v4914_v51  ;;  %v4920_v52 = vmul.f32 1.442695, %v4905_v60  ;;  %v4904_v10 = vsub.f32 %v4865_v23, %v4894_v57 }
0x1516   :  { %v4927_v54 = vpop.xlane.xlu0 %4926 }
0x1517   :  { %15921 = vpow2.f32 %v4920_v52  ;;  %v4918_v31 = vmul.f32 1.442695, %v4904_v10 }
0x1518   :  { %15923 = vrcp.f32 %v4927_v54  ;;  %v4924_v53 = vpop.xlane.xlu1 %4923 }
0x1519   :  { %15925 = vpow2.f32 %v4918_v31 }
0x151a   :  { %15927 = vrcp.f32 %v4924_v53  ;;  %v4933_v61 = vpop.xlane.xlu0 %4932 }
0x151b   :  { %15929 = vrcp.f32 %v4933_v61 }
0x151c   :  { %v4930_v33 = vpop.xlane.xlu1 %4929 }
0x151d   :  { %15931 = vrcp.f32 %v4930_v33 }
0x151e   :  { %v4967_v44 = vpop.permute.xlu0 %4966 }
0x1520   :  { %v17647_v35 = vpop.eup %15917  ;;  %v4969_v14 = vpop.permute.xlu1 %4968 }
0x1521   :  { %14917 = vmatprep.subr.mxu1 %v4969_v14  ;;  %v4937_v13 = vsel %vm161_vm0, %v17647_v35, 0.0 }
0x1522   :  { %v17651_v38 = vpop.eup %15919  ;;  %14918 = vmatpush3.msra.mxu1 %v4969_v14  ;;  %4938 = vadd.xlane.f32.xlu0 %v4937_v13  ;;  %v5078_v58 = vpop.permute.xlu0 %5077 }
0x1523   :  { %14919 = vmatprep.subr.mxu1 %v4967_v44  ;;  %14931 = vmatprep.subr.mxu0 %v5078_v58  ;;  %v4934_v29 = vsel %vm161_vm0, %v17651_v38, 0.0 }
0x1524   :  { %v17655_v1 = vpop.eup %15921  ;;  %4935 = vadd.xlane.f32.xlu1 %v4934_v29  ;;  %v4965_v42 = vpop.permute.xlu1 %4964  ;;  %14920 = vmatpush3.msra.mxu1 %v4967_v44 }
0x1525   :  { %v15924_v7 = vpop.eup %15923  ;;  %14932 = vmatpush3.msra.mxu0 %v5078_v58  ;;  %14921 = vmatprep.subr.mxu1 %v4965_v42  ;;  %v4943_v11 = vsel %vm161_vm0, %v17655_v1, 0.0  ;;  %v3917_v58 = vadd.f32 %v17409_v43, %v17421_v0 }
0x1526   :  { %v15926_v3 = vpop.eup %15925  ;;  %4944 = vadd.xlane.f32.xlu0 %v4943_v11  ;;  %14922 = vmatpush3.msra.mxu1 %v4965_v42  ;;  %v4955_v16 = vmul.f32 %v15924_v7, %v17618_v2  ;;  %v16189_v2 = vld [vmem:[#allocation6] sm:$0xff] }
0x1527   :  { %v15928_v34 = vpop.eup %15927  ;;  %v4940_v47 = vsel %vm161_vm0, %v15926_v3, 0.0  ;;  %v13328_v11 = vld [vmem:[#allocation8] ss:$0 sm:$0xff] }
0x1528   :  { %4941 = vadd.xlane.f32.xlu1 %v4940_v47  ;;  %v4963_v20 = vpop.permute.xlu1 %4962  ;;  %v4954_v23 = vmul.f32 %v15928_v34, %v17621_v8  ;;  %v15930_v19 = vpop.eup %15929  ;;  %v16190_v8 = vld [vmem:[#allocation6 + $0x8] sm:$0xff]  ;;  %v3927_v34 = vadd.f32 %v17413_v37, %v17429_v39 }
0x1529   :  { %14923 = vmatprep.subr.mxu1 %v4963_v20  ;;  %v4957_v6 = vmul.f32 %v15930_v19, %v17625_v27 }
0x152a   :  { %v15932_v62 = vpop.eup %15931  ;;  %14925 = vmatprep.mubr.msk.f32.mxu1 %vm161_vm0, %v4954_v23  ;;  %14924 = vmatpush3.msra.mxu1 %v4963_v20  ;;  %v4634_v19 = vadd.f32 %v17601_v25, %v3927_v34 }
0x152b   :  { %14926 = vmatmul.mubr.msk.f32.vlgmr.msra.gmra.mxu1 %vm161_vm0, %v4955_v16  ;;  %v4956_v21 = vmul.f32 %v15932_v62, %v17629_v40 }
0x152c   :  { %v5076_v63 = vpop.permute.xlu1 %5075 }
0x152d   :  { %14928 = vmatprep.mubr.msk.f32.mxu1 %vm161_vm0, %v4956_v21  ;;  %14933 = vmatprep.subr.mxu0 %v5076_v63  ;;  %v1305_v21 = vadd.f32 %v16769_v56, %v16793_v15 }
0x152e   :  { %14934 = vmatpush3.msra.mxu0 %v5076_v63 }
0x152f   :  { %14929 = vmatmul.mubr.msk.f32.gmra.mxu1 %vm161_vm0, %v4957_v6  ;;  %v1836_v37 = vadd.f32 %v16943_v32, %v1305_v21 }
0x1531   :  { %v2353_v39 = vadd.f32 %v17113_v45, %v1836_v37 }
0x1539   :  { %5071 = vrot.lane.b32.xlu1 %v16976_v41, %s19618_s21 }
0x153c   :  { %5073 = vrot.lane.b32.xlu0 %v16995_v26, %s19618_s21  ;;  %s5887_s21 = sadd.f32 1e-05, %s13350_s18 }
0x153d   :  { %5180 = vrot.lane.b32.xlu1 %v16189_v2, %s19620_s1 }
0x1540   :  { %5182 = vrot.lane.b32.xlu0 %v16190_v8, %s19620_s1  ;;  %v3937_v8 = vadd.f32 %v17419_v28, %v17433_v55  ;;  %s13331_s1 = sld [smem:[#allocation12 + $0x3]] }
0x1542   :  { %v4636_v15 = vadd.f32 %v17607_v46, %v3937_v8  ;;  %v5773_v8 = vld [vmem:[#allocation11 + $0x48] sm:$0xff] }
0x15ab   :  { %v4939_v40 = vpop.xlane.xlu0 %4938 }
0x15ac   :  { %15933 = vrcp.f32 %v4939_v40 }
0x15ad   :  { %v4936_v24 = vpop.xlane.xlu1 %4935 }
0x15ae   :  { %15935 = vrcp.f32 %v4936_v24  ;;  %v3947_v24 = vadd.f32 %v17427_v4, %v17437_v9 }
0x15af   :  { %v4945_v27 = vpop.xlane.xlu0 %4944 }
0x15b0   :  { %15937 = vrcp.f32 %v4945_v27 }
0x15b1   :  { %v4942_v48 = vpop.xlane.xlu1 %4941 }
0x15b2   :  { %15939 = vrcp.f32 %v4942_v48 }
0x15b3   :  { %v5074_v50 = vpop.permute.xlu0 %5073 }
0x15b4   :  { %14935 = vmatprep.subr.mxu0 %v5074_v50 }
0x15b5   :  { %v5072_v41 = vpop.permute.xlu1 %5071  ;;  %14936 = vmatpush3.msra.mxu0 %v5074_v50  ;;  %v4638_v50 = vadd.f32 %v17613_v30, %v3947_v24 }
0x15b6   :  { %14937 = vmatprep.subr.mxu0 %v5072_v41 }
0x15b7   :  { %14938 = vmatpush3.msra.mxu0 %v5072_v41  ;;  %v5183_v26 = vpop.permute.xlu0 %5182 }
0x15b8   :  { %14945 = vmatprep.subr.msk.mxu1 %vm2614_vm3, %v5183_v26 }
0x15b9   :  { %14946 = vmatpush3.xpose.msk.msra.mxu1 %vm2614_vm3, %v5183_v26  ;;  %v5181_v49 = vpop.permute.xlu1 %5180  ;;  %v15934_v17 = vpop.eup %15933 }
0x15ba   :  { %14947 = vmatprep.subr.msk.mxu1 %vm2614_vm3, %v5181_v49  ;;  %v4959_v57 = vmul.f32 %v15934_v17, %v17647_v35 }
0x15bb   :  { %v15936_v51 = vpop.eup %15935 }
0x15bc   :  { %v4958_v60 = vmul.f32 %v15936_v51, %v17651_v38 }
0x15bd   :  { %14948 = vmatpush3.xpose.msk.msra.mxu1 %vm2614_vm3, %v5181_v49  ;;  %v15938_v52 = vpop.eup %15937  ;;  %v5503_v49 = vstv %s5502_s11  ;;  %s13330_s11 = sld [smem:[#allocation12 + $0x2]] }
0x15be   :  { %14939 = vmatprep.mubr.msk.f32.mxu0 %vm161_vm0, %v4958_v60  ;;  %v4961_v31 = vmul.f32 %v15938_v52, %v17655_v1  ;;  %v4632_v1 = vadd.f32 %v17595_v36, %v3917_v58  ;;  %15941 = vrsqrt.f32 %v5503_v49  ;;  %vm5506_vm4 = vcmp.eq.f32.partialorder %v5503_v49, inf  ;;  %v19640_v60 = vld [vmem:[#allocation19_spill] sm:$0xff] }
0x15bf   :  { %v15940_v10 = vpop.eup %15939  ;;  %14940 = vmatmul.mubr.msk.f32.vlgmr.msra.gmra.mxu0 %vm161_vm0, %v4959_v57  ;;  %v5509_v9 = vand.u32 2147483648, %v5503_v49  ;;  %vm5508_vm5 = vcmp.eq.f32.partialorder %v5503_v49, 0.0  ;;  %v19641_v57 = vld [vmem:[#allocation25_spill] sm:$0xff] }
0x15c0   :  { %v4960_v54 = vmul.f32 %v15940_v10, %v15926_v3  ;;  %v5405_v52 = vadd.f32 %v19641_v57, %v19640_v60 }
0x15c2   :  { %14942 = vmatprep.mubr.msk.f32.mxu0 %vm161_vm0, %v4960_v54 }
0x15c3   :  { %14943 = vmatmul.mubr.msk.f32.gmra.mxu0 %vm161_vm0, %v4961_v31 }
0x15cb   :  { %v15942_v4 = vpop.eup %15941 }
0x15eb   :  { %v14927_v53 = vpop.f32.mrf.mxu1 }
0x15ed   :  { %v5052_v61 = vpop.f32.mrf.mxu1 }
0x15ee   :  { %14949 = vmatprep.mubr.msk.f32.mxu1 %vm2614_vm3, %v5052_v61  ;;  %v19643_v61 = vld [vmem:[#allocation22_spill] sm:$0xff] }
0x15ef   :  { %v14930_v33 = vpop.f32.mrf.mxu1  ;;  %14950 = vmatmul.mubr.msk.f32.vlgmr.msra.gmra.mxu1 %vm2614_vm3, %v14927_v53  ;;  %v19642_v53 = vld [vmem:[#allocation23_spill] sm:$0xff] }
0x15f1   :  { %v5062_v44 = vpop.f32.mrf.mxu1 }
0x15f2   :  { %14952 = vmatprep.mubr.msk.f32.mxu1 %vm2614_vm3, %v5062_v44  ;;  %v19644_v44 = vld [vmem:[#allocation24_spill] sm:$0xff] }
0x15f3   :  { %14953 = vmatmul.mubr.msk.f32.gmra.mxu1 %vm2614_vm3, %v14930_v33  ;;  %v1315_v33 = vadd.f32 %v19643_v61, %v19642_v53  ;;  %v17774_v61 = vstv %s5481_s29  ;;  %s13334_s29 = sld [smem:[#allocation12 + $0x6]] }
0x167f   :  { %v14941_v35 = vpop.f32.mrf.mxu0 }
0x1681   :  { %v5161_v14 = vpop.f32.mrf.mxu0 }
0x1682   :  { %14955 = vmatprep.mubr.msk.f32.mxu1 %vm2614_vm3, %v5161_v14  ;;  %v19645_v14 = vld [vmem:[#allocation27_spill] sm:$0xff] }
0x1683   :  { %v14944_v13 = vpop.f32.mrf.mxu0  ;;  %14956 = vmatmul.mubr.msk.f32.gmra.mxu1 %vm2614_vm3, %v14941_v35  ;;  %v1838_v35 = vadd.f32 %v19644_v44, %v1315_v33  ;;  %v17778_v44 = vstv %s13329_s8  ;;  %s13347_s8 = sld [smem:[#allocation12 + $0x7]] }
0x1685   :  { %v5171_v38 = vpop.f32.mrf.mxu0 }
0x1686   :  { %14958 = vmatprep.mubr.msk.f32.mxu1 %vm2614_vm3, %v5171_v38 }
0x1687   :  { %14959 = vmatmul.mubr.msk.f32.gmra.mxu1 %vm2614_vm3, %v14944_v13  ;;  %v2355_v13 = vadd.f32 %v19645_v14, %v1838_v35 }
0x16af   :  { %v14951_v29 = vpop.f32.mrf.mxu1 }
0x16b0   :  { %v5318_v47 = vadd.f32 %v14951_v29, %v17593_v22  ;;  %v16191_v22 = vld [vmem:[%s19603_s5] ss:$0 sm:$0xff] }
0x16b1   :  { %v5278_v42 = vpop.f32.mrf.mxu1  ;;  %v2363_v25 = vadd.f32 %v16191_v22, %v2353_v39  ;;  %v2365_v29 = vadd.f32 %v16191_v22, %v2355_v13  ;;  %v5888_v13 = vstv %s5887_s21 }
0x16b2   :  { %v5317_v7 = vadd.f32 %v5278_v42, %v4632_v1  ;;  %v5332_v16 = vadd.f32 %v13328_v11, %v5318_v47  ;;  %vm5891_vm6 = vcmp.eq.f32.partialorder %v5888_v13, inf  ;;  %vm5893_vm7 = vcmp.eq.f32.partialorder %v5888_v13, 0.0 }
0x16b3   :  { %v14954_v3 = vpop.f32.mrf.mxu1  ;;  %v5404_v63 = vadd.f32 %v2363_v25, %v16481_v5  ;;  %v5573_v25 = vld [vmem:[#allocation11 + $0x38] sm:$0xff] }
0x16b4   :  { %v5331_v20 = vadd.f32 %v13328_v11, %v5317_v7  ;;  %v5320_v43 = vadd.f32 %v14954_v3, %v17599_v59  ;;  %v19646_v7 = vld [vmem:[#allocation20_spill] sm:$0xff]  ;;  %14961 = vmatprep.subr.mxu0 %v5573_v25 }
0x16b5   :  { %v5288_v23 = vpop.f32.mrf.mxu1  ;;  %14962 = vmatpush3.msra.mxu0 %v5573_v25 }
0x16b6   :  { %5339 = vxpose.xlu0.b32.start [1/4] (short) (narrow) %v5331_v20, 16  ;;  %v5319_v62 = vadd.f32 %v5288_v23, %v4634_v19  ;;  %v5334_v36 = vadd.f32 %v13328_v11, %v5320_v43  ;;  %v19647_v23 = vld [vmem:[#allocation21_spill] sm:$0xff]  ;;  %v19648_v19 = vld [vmem:[#allocation26_spill] sm:$0xff] }
0x16b8   :  { %v5333_v0 = vadd.f32 %v13328_v11, %v5319_v62 }
0x16ba   :  { %5340 = vxpose.xlu0.b32.cont [2/4] (short) (narrow) %v5332_v16, 16  ;;  %v5407_v16 = vadd.f32 %v19648_v19, %v19647_v23  ;;  %v5894_v19 = vand.u32 2147483648, %v5888_v13 }
0x16be   :  { %5341 = vxpose.xlu0.b32.cont [3/4] (short) (narrow) %v5333_v0, 16 }
0x16c2   :  { %5342 = vxpose.xlu0.b32.end [4/4] (short) (narrow) %v5334_v36, 16 }
0x1732   :  { %v5355_v6 = vpop.trf.xlu0 }
0x1733   :  { %v5408_v59 = vadd.f32 %v5404_v63, %v5355_v6  ;;  %v5775_v63 = vld [vmem:[#allocation11 + $0x58] sm:$0xff]  ;;  %v5572_v6 = vld [vmem:[#allocation11 + $0x30] sm:$0xff] }
0x1734   :  { %14989 = vmatprep.subr.mxu1 %v5775_v63  ;;  %14963 = vmatprep.subr.mxu0 %v5572_v6 }
0x1735   :  { %v5412_v2 = vsel %vm161_vm0, %v5408_v59, 0.0  ;;  %14990 = vmatpush3.msra.mxu1 %v5775_v63  ;;  %14964 = vmatpush3.msra.mxu0 %v5572_v6 }
0x1736   :  { %5413 = vadd.xlane.f32.xlu0 %v5412_v2  ;;  %v5356_v51 = vpop.trf.xlu0  ;;  %v5571_v2 = vld [vmem:[#allocation11 + $0x28] sm:$0xff] }
0x1737   :  { %14965 = vmatprep.subr.mxu0 %v5571_v2 }
0x1738   :  { %14966 = vmatpush3.msra.mxu0 %v5571_v2 }
0x1743   :  { %v14957_v56 = vpop.f32.mrf.mxu1 }
0x1744   :  { %v5322_v27 = vadd.f32 %v14957_v56, %v17605_v18  ;;  %v5505_v18 = vmul.f32 %v15942_v4, %v5503_v49  ;;  %v5570_v56 = vld [vmem:[#allocation11 + $0x20] sm:$0xff]  ;;  %v5465_v4 = vlaneseq }
0x1745   :  { %v5298_v32 = vpop.f32.mrf.mxu1  ;;  %14967 = vmatprep.subr.mxu0 %v5570_v56 }
0x1746   :  { %v5321_v45 = vadd.f32 %v5298_v32, %v4636_v15  ;;  %v5336_v41 = vadd.f32 %v13328_v11, %v5322_v27  ;;  %v5507_v30 = vsel %vm5506_vm4, %v5503_v49, %v5505_v18  ;;  %v5772_v15 = vld [vmem:[#allocation11 + $0x40] sm:$0xff]  ;;  %14968 = vmatpush3.msra.mxu0 %v5570_v56  ;;  %v17750_v49 = vld [vmem:[#allocation11 + $0x18] sm:$0xff] }
0x1747   :  { %v14960_v40 = vpop.f32.mrf.mxu1  ;;  %v5510_v17 = vsel %vm5508_vm5, %v5509_v9, %v5507_v30  ;;  %14975 = vmatprep.subr.mxu0 %v17750_v49  ;;  %v17753_v9 = vshrl.u32 %v5465_v4, 7 }
0x1748   :  { %v5335_v5 = vadd.f32 %v13328_v11, %v5321_v45  ;;  %v5324_v28 = vadd.f32 %v14960_v40, %v17611_v12  ;;  %15695 = vpush %v5510_v17  ;;  %v5409_v12 = vadd.f32 %v5405_v52, %v5356_v51  ;;  %v17756_v17 = vld [vmem:[#allocation9] sm:$0xf] }
0x1749   :  { %v5308_v48 = vpop.f32.mrf.mxu1  ;;  %19649 = vst [vmem:[#allocation19_spill] sm:$0xff] %v17753_v9  ;;  %v19627_v18 = vsub.s32 0, %v17753_v9  ;;  %v19626_v57 = vsub.s32 1, %v17753_v9 }
0x174a   :  { %5371 = vxpose.xlu1.b32.start [1/4] (short) (narrow) %v5335_v5, 16  ;;  %v5323_v26 = vadd.f32 %v5308_v48, %v4638_v50  ;;  %v5338_v46 = vadd.f32 %v13328_v11, %v5324_v28  ;;  %v5415_v10 = vsel %vm161_vm0, %v5409_v12, 0.0 }
0x174b   :  { %v17762_v60 = vrot.slane %v17756_v17, %v19627_v18 }
0x174c   :  { %v5337_v55 = vadd.f32 %v13328_v11, %v5323_v26  ;;  %v5406_v11 = vadd.f32 %v2365_v29, %v19646_v7  ;;  %v17788_v7 = vstv %s13331_s1  ;;  %s13391_s1 = sld [smem:[#allocation12 + $0xf]] }
0x174e   :  { %5372 = vxpose.xlu1.b32.cont [2/4] (short) (narrow) %v5336_v41, 16 }
0x1752   :  { %5373 = vxpose.xlu1.b32.cont [3/4] (short) (narrow) %v5337_v55, 16  ;;  %s6496_s21 = sadd.f32 1e-05, %s13391_s1 }
0x1753   :  { %s13669_s1 = sld [smem:[#allocation12 + $0x82]] }
0x1756   :  { %5374 = vxpose.xlu1.b32.end [4/4] (short) (narrow) %v5338_v46, 16 }
0x1779   :  { %s15696_s28 = spop %15695 }
0x177a   :  { %v5512_v54 = vstv %s15696_s28  ;;  %s13332_s28 = sld [smem:[#allocation12 + $0x4]] }
0x177b   :  { %15943 = vrcp.f32 %v5512_v54 }
0x177d   :  { %5416 = vadd.xlane.f32.xlu1 %v5415_v10 }
0x1780   :  { %v17781_v14 = vstv %s13332_s28  ;;  %s13349_s28 = sld [smem:[#allocation12 + $0x9]] }
0x1788   :  { %v15944_v31 = vpop.eup %15943 }
0x1789   :  { %15697 = vpush %v15944_v31 }
0x17ba   :  { %s15698_s19 = spop %15697 }
0x17bb   :  { %s5515_s13 = smul.f32 %s15698_s19, %s13330_s11  ;;  %s13348_s19 = sld [smem:[#allocation12 + $0x8]] }
0x17bf   :  { %v5414_v38 = vpop.xlane.xlu0 %5413 }
0x17c0   :  { %v5425_v58 = vmul.f32 0.03125, %v5414_v38 }
0x17c2   :  { %v17725_v1 = vsub.f32 %v5408_v59, %v5425_v58  ;;  %v5774_v59 = vld [vmem:[#allocation11 + $0x50] sm:$0xff]  ;;  %v17784_v58 = vstv %s5515_s13 }
0x17c3   :  { %14991 = vmatprep.subr.mxu1 %v5774_v59 }
0x17c4   :  { %v5433_v42 = vmul.f32 %v17725_v1, %v17725_v1  ;;  %14992 = vmatpush3.msra.mxu1 %v5774_v59 }
0x17c5   :  { %14993 = vmatprep.subr.mxu1 %v5773_v8 }
0x17c6   :  { %v5387_v3 = vpop.trf.xlu1  ;;  %v5437_v34 = vsel %vm161_vm0, %v5433_v42, 0.0  ;;  %14994 = vmatpush3.msra.mxu1 %v5773_v8 }
0x17c7   :  { %v5410_v47 = vadd.f32 %v5406_v11, %v5387_v3  ;;  %5438 = vadd.xlane.f32.xlu1 %v5437_v34  ;;  %14995 = vmatprep.subr.mxu1 %v5772_v15 }
0x17c8   :  { %14996 = vmatpush3.msra.mxu1 %v5772_v15 }
0x17c9   :  { %v5418_v20 = vsel %vm161_vm0, %v5410_v47, 0.0 }
0x17ca   :  { %5419 = vadd.xlane.f32.xlu0 %v5418_v20  ;;  %v5388_v62 = vpop.trf.xlu1 }
0x17cb   :  { %v5411_v43 = vadd.f32 %v5407_v16, %v5388_v62 }
0x17cd   :  { %v5421_v0 = vsel %vm161_vm0, %v5411_v43, 0.0 }
0x17ce   :  { %5422 = vadd.xlane.f32.xlu0 %v5421_v0 }
0x1806   :  { %v5417_v36 = vpop.xlane.xlu1 %5416 }
0x1807   :  { %v5426_v21 = vmul.f32 0.03125, %v5417_v36 }
0x1809   :  { %v17735_v37 = vsub.f32 %v5409_v12, %v5426_v21  ;;  %v17769_v12 = vrot.slane %v17756_v17, %v19626_v57 }
0x180b   :  { %v5434_v39 = vmul.f32 %v17735_v37, %v17735_v37 }
0x180d   :  { %v5440_v22 = vsel %vm161_vm0, %v5434_v39, 0.0 }
0x180e   :  { %5441 = vadd.xlane.f32.xlu0 %v5440_v22 }
0x1850   :  { %v5439_v28 = vpop.xlane.xlu1 %5438 }
0x1851   :  { %v5449_v55 = vmul.f32 0.03125, %v5439_v28  ;;  %v5550_v28 = vld [vmem:[#allocation11] sm:$0xff] }
0x1853   :  { %v5420_v32 = vpop.xlane.xlu0 %5419  ;;  %v5453_v46 = vadd.f32 1e-05, %v5449_v55 }
0x1854   :  { %v5427_v45 = vmul.f32 0.03125, %v5420_v32 }
0x1855   :  { %15945 = vrsqrt.f32 %v5453_v46 }
0x1856   :  { %v17740_v40 = vsub.f32 %v5410_v47, %v5427_v45 }
0x1857   :  { %v5423_v24 = vpop.xlane.xlu0 %5422 }
0x1858   :  { %v5428_v27 = vmul.f32 0.03125, %v5423_v24  ;;  %v5435_v5 = vmul.f32 %v17740_v40, %v17740_v40 }
0x185a   :  { %v17744_v48 = vsub.f32 %v5411_v43, %v5428_v27  ;;  %v5443_v50 = vsel %vm161_vm0, %v5435_v5, 0.0 }
0x185b   :  { %5444 = vadd.xlane.f32.xlu1 %v5443_v50 }
0x185c   :  { %v5436_v41 = vmul.f32 %v17744_v48, %v17744_v48 }
0x185e   :  { %v5446_v26 = vsel %vm161_vm0, %v5436_v41, 0.0  ;;  %v5552_v41 = vld [vmem:[#allocation11 + $0x10] sm:$0xff] }
0x185f   :  { %5447 = vadd.xlane.f32.xlu0 %v5446_v26  ;;  %v5551_v26 = vld [vmem:[#allocation11 + $0x8] sm:$0xff] }
0x1862   :  { %v15946_v30 = vpop.eup %15945 }
0x1863   :  { %v5461_v51 = vmul.f32 %v15946_v30, %v17725_v1 }
0x1865   :  { %v5469_v52 = vmul.f32 %v17762_v60, %v5461_v51 }
0x1867   :  { %v17772_v53 = vadd.f32 %v17769_v12, %v5469_v52 }
0x1869   :  { %v5483_v33 = vmul.f32 %v17774_v61, %v17772_v53 }
0x186b   :  { %v5489_v35 = vadd.f32 %v17778_v44, %v5483_v33 }
0x186d   :  { %v5498_v38 = vsub.f32 %v5489_v35, %v17781_v14 }
0x186f   :  { %v5517_v42 = vmul.f32 %v17784_v58, %v5498_v38 }
0x1871   :  { %v5522_v34 = vadd.f32 %v17788_v7, %v5517_v42 }
0x1873   :  { %v5526_v16 = vmax.f32 %v5522_v34, 0.0 }
0x1897   :  { %v5442_v10 = vpop.xlane.xlu0 %5441 }
0x1898   :  { %v5450_v54 = vmul.f32 0.03125, %v5442_v10 }
0x189a   :  { %v5454_v31 = vadd.f32 1e-05, %v5450_v54 }
0x189c   :  { %15947 = vrsqrt.f32 %v5454_v31 }
0x189d   :  { %15949 = vrsqrt.f32 %v5888_v13 }
0x18a9   :  { %v15948_v29 = vpop.eup %15947 }
0x18aa   :  { %v5462_v1 = vmul.f32 %v15948_v29, %v17735_v37  ;;  %v15950_v20 = vpop.eup %15949  ;;  %v5536_v37 = vrot.slane %v5526_v16, 7 }
0x18ab   :  { %v5890_v62 = vmul.f32 %v15950_v20, %v5888_v13 }
0x18ac   :  { %v5470_v11 = vmul.f32 %v17762_v60, %v5462_v1  ;;  %v17802_v25 = vsel %vm5535_vm8, 0.0, %v5536_v37 }
0x18ad   :  { %v5892_v0 = vsel %vm5891_vm6, %v5888_v13, %v5890_v62  ;;  %v5559_v59 = vrot.slane %v17802_v25, 1  ;;  %v5761_v2 = vrot.slane %v17802_v25, 2 }
0x18ae   :  { %v17792_v3 = vadd.f32 %v17769_v12, %v5470_v11  ;;  %v5895_v21 = vsel %vm5893_vm7, %v5894_v19, %v5892_v0 }
0x18af   :  { %15699 = vpush %v5895_v21 }
0x18b0   :  { %v5484_v47 = vmul.f32 %v17774_v61, %v17792_v3 }
0x18b2   :  { %v5490_v23 = vadd.f32 %v17778_v44, %v5484_v47 }
0x18b4   :  { %v5499_v43 = vsub.f32 %v5490_v23, %v17781_v14 }
0x18b6   :  { %v5518_v36 = vmul.f32 %v17784_v58, %v5499_v43 }
0x18b8   :  { %v5523_v39 = vadd.f32 %v17788_v7, %v5518_v36 }
0x18ba   :  { %v5527_v22 = vmax.f32 %v5523_v39, 0.0 }
0x18bc   :  { %v5537_v63 = vrot.slane %v5527_v22, 7 }
0x18be   :  { %v17805_v6 = vsel %vm5535_vm8, %v5536_v37, %v5537_v63  ;;  %v5548_v8 = vsel %vm5535_vm8, %v5537_v63, 0.0 }
0x18bf   :  { %v5560_v56 = vrot.slane %v17805_v6, 1  ;;  %v5762_v15 = vrot.slane %v17805_v6, 2  ;;  %v5562_v32 = vrot.slane %v5548_v8, 1  ;;  %v5764_v45 = vrot.slane %v5548_v8, 2  ;;  %v5937_v8 = vld [vmem:[%s19610_s12 + $0x10] sm:$0xff] }
0x18c1   :  { %v5561_v24 = vsel %vm5558_vm9, %v5559_v59, %v5560_v56  ;;  %v5763_v27 = vsel %vm5760_vm10, %v5761_v2, %v5762_v15  ;;  %v5563_v5 = vsel %vm5558_vm9, %v5560_v56, %v5562_v32  ;;  %v5765_v50 = vsel %vm5760_vm10, %v5762_v15, %v5764_v45  ;;  %v5938_v2 = vld [vmem:[%s19610_s12 + $0x18] sm:$0xff]  ;;  %v13354_v56 = vld [vmem:[%s19610_s12 + $0x30] sm:$0xff]  ;;  %v5935_v15 = vld [vmem:[%s19610_s12] sm:$0xff] }
0x18c2   :  { %14969 = vmatprep.mubr.msk.f32.mxu0 %vm161_vm0, %v5561_v24  ;;  %14997 = vmatprep.mubr.msk.f32.mxu1 %vm161_vm0, %v5763_v27  ;;  %v13353_v32 = vld [vmem:[%s19610_s12 + $0x28] sm:$0xff]  ;;  %v17884_v45 = vld [vmem:[%s19610_s12 + $0x78] sm:$0xff]  ;;  %v13352_v24 = vld [vmem:[%s19610_s12 + $0x20] sm:$0xff] }
0x18c3   :  { %14970 = vmatmul.mubr.msk.f32.vlgmr.msra.gmra.mxu0 %vm161_vm0, %v5563_v5  ;;  %14998 = vmatmul.mubr.msk.f32.vlgmr.msra.gmra.mxu1 %vm161_vm0, %v5765_v50  ;;  %v17893_v27 = vld [vmem:[%s19610_s12 + $0x58] sm:$0xff]  ;;  %v6497_v5 = vstv %s6496_s21  ;;  %s13671_s21 = sld [smem:[#allocation12 + $0x84]] }
0x18c4   :  { %14976 = vmatpush3.msra.mxu0 %v17750_v49  ;;  %15017 = vmatprep.subr.mxu1 %v5938_v2  ;;  %vm6500_vm11 = vcmp.eq.f32.partialorder %v6497_v5, inf  ;;  %vm6502_vm12 = vcmp.eq.f32.partialorder %v6497_v5, 0.0 }
0x18c5   :  { %14977 = vmatprep.subr.mxu0 %v5552_v41  ;;  %15018 = vmatpush3.msra.mxu1 %v5938_v2 }
0x18c6   :  { %14978 = vmatpush3.msra.mxu0 %v5552_v41  ;;  %15019 = vmatprep.subr.mxu1 %v5937_v8  ;;  %v6503_v41 = vand.u32 2147483648, %v6497_v5 }
0x18c7   :  { %14979 = vmatprep.subr.mxu0 %v5551_v26  ;;  %15020 = vmatpush3.msra.mxu1 %v5937_v8 }
0x18c8   :  { %14980 = vmatpush3.msra.mxu0 %v5551_v26 }
0x18c9   :  { %14981 = vmatprep.subr.mxu0 %v5550_v28 }
0x18ca   :  { %14982 = vmatpush3.msra.mxu0 %v5550_v28 }
0x18e0   :  { %s15700_s18 = spop %15699 }
0x18e1   :  { %v5897_v47 = vstv %s15700_s18 }
0x18e4   :  { %v5445_v55 = vpop.xlane.xlu1 %5444 }
0x18e5   :  { %v5451_v46 = vmul.f32 0.03125, %v5445_v55 }
0x18e7   :  { %v5455_v4 = vadd.f32 1e-05, %v5451_v46 }
0x18e8   :  { %v5448_v30 = vpop.xlane.xlu0 %5447 }
0x18e9   :  { %15951 = vrsqrt.f32 %v5455_v4  ;;  %v5452_v51 = vmul.f32 0.03125, %v5448_v30 }
0x18eb   :  { %v5456_v52 = vadd.f32 1e-05, %v5452_v51 }
0x18ed   :  { %15953 = vrsqrt.f32 %v5456_v52 }
0x18ee   :  { %15955 = vrcp.f32 %v5897_v47 }
0x18ef   :  { %15957 = vrsqrt.f32 %v6497_v5 }
0x18f6   :  { %v15952_v10 = vpop.eup %15951 }
0x18f7   :  { %v5463_v54 = vmul.f32 %v15952_v10, %v17740_v40 }
0x18f9   :  { %v5471_v49 = vmul.f32 %v17762_v60, %v5463_v54 }
0x18fa   :  { %v15954_v31 = vpop.eup %15953 }
0x18fb   :  { %v17824_v33 = vadd.f32 %v17769_v12, %v5471_v49  ;;  %v5464_v35 = vmul.f32 %v15954_v31, %v17744_v48  ;;  %v15956_v59 = vpop.eup %15955 }
0x18fc   :  { %15701 = vpush %v15956_v59  ;;  %v15958_v50 = vpop.eup %15957 }
0x18fd   :  { %v5472_v13 = vmul.f32 %v17762_v60, %v5464_v35  ;;  %v5485_v38 = vmul.f32 %v17774_v61, %v17824_v33  ;;  %v6499_v26 = vmul.f32 %v15958_v50, %v6497_v5  ;;  %v5873_v35 = vstv %s13334_s29  ;;  %s13351_s29 = sld [smem:[#allocation12 + $0xb]] }
0x18ff   :  { %v17831_v29 = vadd.f32 %v17769_v12, %v5472_v13  ;;  %v5491_v1 = vadd.f32 %v17778_v44, %v5485_v38  ;;  %v6501_v28 = vsel %vm6500_vm11, %v6497_v5, %v6499_v26 }
0x1900   :  { %v6504_v55 = vsel %vm6502_vm12, %v6503_v41, %v6501_v28 }
0x1901   :  { %v5486_v40 = vmul.f32 %v17774_v61, %v17831_v29  ;;  %v5500_v42 = vsub.f32 %v5491_v1, %v17781_v14  ;;  %15703 = vpush %v6504_v55 }
0x1903   :  { %v5492_v11 = vadd.f32 %v17778_v44, %v5486_v40  ;;  %v5519_v34 = vmul.f32 %v17784_v58, %v5500_v42  ;;  %v5882_v42 = vstv %s13349_s28 }
0x1905   :  { %v5501_v48 = vsub.f32 %v5492_v11, %v17781_v14  ;;  %v5524_v60 = vadd.f32 %v17788_v7, %v5519_v34 }
0x1907   :  { %v5520_v12 = vmul.f32 %v17784_v58, %v5501_v48  ;;  %v5528_v20 = vmax.f32 %v5524_v60, 0.0 }
0x1909   :  { %v5525_v23 = vadd.f32 %v17788_v7, %v5520_v12  ;;  %v5539_v19 = vrot.slane %v5528_v20, 7 }
0x190b   :  { %v5529_v61 = vmax.f32 %v5525_v23, 0.0  ;;  %v5547_v16 = vsel %vm5535_vm8, 0.0, %v5539_v19 }
0x190c   :  { %v5564_v43 = vrot.slane %v5547_v16, 1  ;;  %v5766_v0 = vrot.slane %v5547_v16, 2 }
0x190d   :  { %v5540_v62 = vrot.slane %v5529_v61, 7 }
0x190f   :  { %v5541_v44 = vsel %vm5535_vm8, %v5539_v19, %v5540_v62  ;;  %v5549_v14 = vsel %vm5535_vm8, %v5540_v62, 0.0  ;;  %v5906_v62 = vstv %s13348_s19 }
0x1910   :  { %v5565_v36 = vrot.slane %v5541_v44, 1  ;;  %v5767_v21 = vrot.slane %v5541_v44, 2  ;;  %v5567_v37 = vrot.slane %v5549_v14, 1  ;;  %v5769_v39 = vrot.slane %v5549_v14, 2 }
0x1912   :  { %v5566_v58 = vsel %vm5558_vm9, %v5564_v43, %v5565_v36  ;;  %v5768_v22 = vsel %vm5760_vm10, %v5766_v0, %v5767_v21  ;;  %v5568_v7 = vsel %vm5558_vm9, %v5565_v36, %v5567_v37  ;;  %v5770_v63 = vsel %vm5760_vm10, %v5767_v21, %v5769_v39 }
0x1913   :  { %14972 = vmatprep.mubr.msk.f32.mxu0 %vm161_vm0, %v5566_v58  ;;  %15000 = vmatprep.mubr.msk.f32.mxu1 %vm161_vm0, %v5768_v22 }
0x1914   :  { %14973 = vmatmul.mubr.msk.f32.gmra.mxu0 %vm161_vm0, %v5568_v7  ;;  %15001 = vmatmul.mubr.msk.f32.gmra.mxu1 %vm161_vm0, %v5770_v63 }
0x1915   :  { %14983 = vmatprep.mubr.msk.f32.mxu0 %vm161_vm0, %v17802_v25  ;;  %v13355_v25 = vld [vmem:[%s19610_s12 + $0x38] sm:$0xff] }
0x1916   :  { %15003 = vmatprep.subr.mxu0 %v13355_v25 }
0x1918   :  { %14984 = vmatmul.mubr.msk.f32.vlgmr.msra.gmra.mxu0 %vm161_vm0, %v17805_v6  ;;  %v5936_v6 = vld [vmem:[%s19610_s12 + $0x8] sm:$0xff] }
0x1919   :  { %14986 = vmatprep.mubr.msk.f32.mxu0 %vm161_vm0, %v5547_v16  ;;  %15004 = vmatpush3.msra.mxu0 %v13355_v25 }
0x191a   :  { %15021 = vmatprep.subr.mxu1 %v5936_v6  ;;  %15005 = vmatprep.subr.mxu0 %v13354_v56 }
0x191b   :  { %15022 = vmatpush3.msra.mxu1 %v5936_v6  ;;  %15006 = vmatpush3.msra.mxu0 %v13354_v56 }
0x191c   :  { %14987 = vmatmul.mubr.msk.f32.gmra.mxu0 %vm161_vm0, %v5541_v44  ;;  %15023 = vmatprep.subr.mxu1 %v5935_v15 }
0x191d   :  { %15007 = vmatprep.subr.mxu0 %v13353_v32  ;;  %15024 = vmatpush3.msra.mxu1 %v5935_v15 }
0x191e   :  { %15008 = vmatpush3.msra.mxu0 %v13353_v32  ;;  %15045 = vmatprep.subr.mxu1 %v17884_v45 }
0x191f   :  { %15009 = vmatprep.subr.mxu0 %v13352_v24 }
0x1920   :  { %15010 = vmatpush3.msra.mxu0 %v13352_v24 }
0x1921   :  { %15031 = vmatprep.subr.mxu0 %v17893_v27 }
0x192d   :  { %s15702_s11 = spop %15701 }
0x192e   :  { %s5900_s13 = smul.f32 %s15702_s11, %s13347_s8  ;;  %s18010_s8 = sld [smem:[#allocation12 + $0xc]] }
0x192f   :  { %s13390_s11 = sld [smem:[#allocation12 + $0xe]] }
0x1930   :  { %v5901_v47 = vstv %s5900_s13  ;;  %s13668_s13 = sld [smem:[#allocation12 + $0x81]] }
0x1932   :  { %s15704_s18 = spop %15703 }
0x1933   :  { %v6506_v51 = vstv %s15704_s18  ;;  %s13389_s18 = sld [smem:[#allocation12 + $0xd]] }
0x1934   :  { %15959 = vrcp.f32 %v6506_v51 }
0x1941   :  { %v15960_v36 = vpop.eup %15959 }
0x1942   :  { %15705 = vpush %v15960_v36 }
0x1973   :  { %s15706_s28 = spop %15705 }
0x1974   :  { %s6509_s19 = smul.f32 %s15706_s28, %s18010_s8 }
0x1983   :  { %v14971_v46 = vpop.f32.mrf.mxu0  ;;  %v14999_v52 = vpop.f32.mrf.mxu1 }
0x1985   :  { %v5648_v4 = vpop.f32.mrf.mxu0  ;;  %v5850_v31 = vpop.f32.mrf.mxu1 }
0x19d4   :  { %v14974_v30 = vpop.f32.mrf.mxu0  ;;  %v15002_v40 = vpop.f32.mrf.mxu1 }
0x19d6   :  { %v5658_v10 = vpop.f32.mrf.mxu0  ;;  %v5860_v16 = vpop.f32.mrf.mxu1 }
0x19d8   :  { %v14985_v54 = vpop.f32.mrf.mxu0 }
0x19d9   :  { %v5747_v49 = vadd.f32 %v14985_v54, %v14971_v46  ;;  %v13374_v46 = vld [vmem:[%s19610_s12 + $0x70] sm:$0xff] }
0x19da   :  { %v5741_v13 = vpop.f32.mrf.mxu0 }
0x19db   :  { %v5870_v38 = vadd.f32 %v14999_v52, %v5747_v49  ;;  %v5742_v1 = vadd.f32 %v5741_v13, %v5648_v4  ;;  %v13366_v13 = vld [vmem:[%s19610_s12 + $0x50] sm:$0xff] }
0x19dc   :  { %v14988_v11 = vpop.f32.mrf.mxu0 }
0x19dd   :  { %v5875_v34 = vadd.f32 %v5873_v35, %v5870_v38  ;;  %v5869_v48 = vadd.f32 %v5850_v31, %v5742_v1  ;;  %v5757_v60 = vadd.f32 %v14988_v11, %v14974_v30  ;;  %v13373_v31 = vld [vmem:[%s19610_s12 + $0x68] sm:$0xff]  ;;  %v13372_v11 = vld [vmem:[%s19610_s12 + $0x60] sm:$0xff] }
0x19de   :  { %v5751_v12 = vpop.f32.mrf.mxu0 }
0x19df   :  { %v5884_v20 = vsub.f32 %v5875_v34, %v5882_v42  ;;  %v5874_v23 = vadd.f32 %v5873_v35, %v5869_v48  ;;  %v5872_v19 = vadd.f32 %v15002_v40, %v5757_v60  ;;  %v5752_v61 = vadd.f32 %v5751_v12, %v5658_v10 }
0x19e1   :  { %v5877_v44 = vadd.f32 %v5873_v35, %v5872_v19  ;;  %v5883_v43 = vsub.f32 %v5874_v23, %v5882_v42  ;;  %v5903_v0 = vmul.f32 %v5901_v47, %v5884_v20  ;;  %v5871_v14 = vadd.f32 %v5860_v16, %v5752_v61  ;;  %v13364_v19 = vld [vmem:[%s19610_s12 + $0x40] sm:$0xff] }
0x19e3   :  { %v5886_v21 = vsub.f32 %v5877_v44, %v5882_v42  ;;  %v5902_v37 = vmul.f32 %v5901_v47, %v5883_v43  ;;  %v5908_v39 = vadd.f32 %v5906_v62, %v5903_v0  ;;  %v5876_v58 = vadd.f32 %v5873_v35, %v5871_v14  ;;  %v13383_v14 = vld [vmem:[%s19610_s12 + $0x98] sm:$0xff] }
0x19e5   :  { %v5905_v22 = vmul.f32 %v5901_v47, %v5886_v21  ;;  %v5907_v7 = vadd.f32 %v5906_v62, %v5902_v37  ;;  %v5912_v63 = vmax.f32 %v5908_v39, 0.0  ;;  %v5885_v59 = vsub.f32 %v5876_v58, %v5882_v42  ;;  %v13382_v58 = vld [vmem:[%s19610_s12 + $0x90] sm:$0xff] }
0x19e7   :  { %v5910_v2 = vadd.f32 %v5906_v62, %v5905_v22  ;;  %v5911_v8 = vmax.f32 %v5907_v7, 0.0  ;;  %v5922_v25 = vrot.slane %v5912_v63, 6  ;;  %v5904_v6 = vmul.f32 %v5901_v47, %v5885_v59  ;;  %v13381_v59 = vld [vmem:[%s19610_s12 + $0x88] sm:$0xff] }
0x19e9   :  { %v5914_v56 = vmax.f32 %v5910_v2, 0.0  ;;  %v17897_v15 = vsel %vm5920_vm13, %v5922_v25, 0.0  ;;  %v5921_v32 = vrot.slane %v5911_v8, 6  ;;  %v5909_v24 = vadd.f32 %v5906_v62, %v5904_v6  ;;  %v13380_v8 = vld [vmem:[%s19610_s12 + $0x80] sm:$0xff] }
0x19ea   :  { %v5946_v4 = vrot.slane %v17897_v15, 1  ;;  %v6260_v23 = vrot.slane %v17897_v15, 3  ;;  %v6147_v0 = vrot.slane %v17897_v15, 2 }
0x19eb   :  { %v5925_v5 = vrot.slane %v5914_v56, 6  ;;  %v17900_v50 = vsel %vm5920_vm13, 0.0, %v5921_v32  ;;  %v17903_v41 = vsel %vm5920_vm13, %v5921_v32, %v5922_v25  ;;  %v5913_v26 = vmax.f32 %v5909_v24, 0.0 }
0x19ec   :  { %15025 = vmatprep.mubr.msk.f32.mxu1 %vm161_vm0, %v17900_v50  ;;  %v5943_v28 = vrot.slane %v17900_v50, 1  ;;  %v5944_v55 = vrot.slane %v17903_v41, 1  ;;  %v6257_v35 = vrot.slane %v17900_v50, 3  ;;  %v6144_v60 = vrot.slane %v17900_v50, 2 }
0x19ed   :  { %15026 = vmatmul.mubr.msk.f32.vlgmr.msra.gmra.mxu1 %vm161_vm0, %v17903_v41  ;;  %v5924_v30 = vrot.slane %v5913_v26, 6  ;;  %v17916_v51 = vsel %vm5920_vm13, %v5925_v5, 0.0  ;;  %v6145_v47 = vrot.slane %v17903_v41, 2  ;;  %v6370_v22 = vrot.slane %v17900_v50, 4 }
0x19ee   :  { %15046 = vmatpush3.msra.mxu1 %v17884_v45  ;;  %v5945_v52 = vsel %vm5558_vm9, %v5943_v28, %v5944_v55  ;;  %v5947_v10 = vsel %vm5558_vm9, %v5944_v55, %v5946_v4  ;;  %v6258_v45 = vrot.slane %v17903_v41, 3  ;;  %v5951_v40 = vrot.slane %v17916_v51, 1 }
0x19ef   :  { %15011 = vmatprep.mubr.msk.f32.mxu0 %vm161_vm0, %v5945_v52  ;;  %15047 = vmatprep.subr.mxu1 %v13374_v46  ;;  %v17923_v54 = vsel %vm5920_vm13, 0.0, %v5924_v30  ;;  %v17926_v49 = vsel %vm5920_vm13, %v5924_v30, %v5925_v5  ;;  %v6146_v61 = vsel %vm5760_vm10, %v6144_v60, %v6145_v47  ;;  %v6265_v36 = vrot.slane %v17916_v51, 3 }
0x19f0   :  { %15012 = vmatmul.mubr.msk.f32.vlgmr.msra.gmra.mxu0 %vm161_vm0, %v5947_v10  ;;  %15028 = vmatprep.mubr.msk.f32.mxu1 %vm161_vm0, %v17923_v54  ;;  %v5948_v38 = vrot.slane %v17923_v54, 1  ;;  %v5949_v1 = vrot.slane %v17926_v49, 1  ;;  %v6259_v34 = vsel %vm6256_vm14, %v6257_v35, %v6258_v45  ;;  %v6262_v12 = vrot.slane %v17923_v54, 3 }
0x19f1   :  { %15048 = vmatpush3.msra.mxu1 %v13374_v46  ;;  %15032 = vmatpush3.msra.mxu0 %v17893_v27  ;;  %v13365_v27 = vld [vmem:[%s19610_s12 + $0x48] sm:$0xff]  ;;  %v6263_v20 = vrot.slane %v17926_v49, 3  ;;  %v6261_v16 = vsel %vm6256_vm14, %v6258_v45, %v6260_v23  ;;  %v6149_v62 = vrot.slane %v17923_v54, 2  ;;  %v6150_v44 = vrot.slane %v17926_v49, 2 }
0x19f2   :  { %15029 = vmatmul.mubr.msk.f32.gmra.mxu1 %vm161_vm0, %v17926_v49  ;;  %15049 = vmatprep.subr.mxu1 %v13373_v31  ;;  %v5950_v42 = vsel %vm5558_vm9, %v5948_v38, %v5949_v1  ;;  %v5952_v48 = vsel %vm5558_vm9, %v5949_v1, %v5951_v40  ;;  %v6148_v21 = vsel %vm5760_vm10, %v6145_v47, %v6147_v0  ;;  %v6371_v7 = vrot.slane %v17903_v41, 4 }
0x19f3   :  { %15033 = vmatprep.subr.mxu0 %v13366_v13  ;;  %15050 = vmatpush3.msra.mxu1 %v13373_v31  ;;  %v6264_v43 = vsel %vm6256_vm14, %v6262_v12, %v6263_v20  ;;  %v6151_v37 = vsel %vm5760_vm10, %v6149_v62, %v6150_v44  ;;  %v6266_v39 = vsel %vm6256_vm14, %v6263_v20, %v6265_v36  ;;  %v6152_v63 = vrot.slane %v17916_v51, 2 }
0x19f4   :  { %15053 = vmatprep.mubr.msk.f32.mxu1 %vm161_vm0, %v6259_v34  ;;  %15014 = vmatprep.mubr.msk.f32.mxu0 %vm161_vm0, %v5950_v42  ;;  %v6372_v25 = vsel %vm6369_vm15, %v6370_v22, %v6371_v7  ;;  %v6375_v6 = vrot.slane %v17923_v54, 4  ;;  %v6376_v56 = vrot.slane %v17926_v49, 4  ;;  %v6373_v32 = vrot.slane %v17897_v15, 4 }
0x19f5   :  { %15034 = vmatpush3.msra.mxu0 %v13366_v13  ;;  %15051 = vmatprep.subr.mxu1 %v13372_v11  ;;  %v6153_v2 = vsel %vm5760_vm10, %v6150_v44, %v6152_v63  ;;  %v6378_v50 = vrot.slane %v17916_v51, 4  ;;  %v6482_v60 = vstv %s13351_s29  ;;  %v6491_v23 = vstv %s13390_s11  ;;  %s13689_s29 = sld [smem:[#allocation12 + $0x8a]] }
0x19f6   :  { %15015 = vmatmul.mubr.msk.f32.gmra.mxu0 %vm161_vm0, %v5952_v48  ;;  %15035 = vmatprep.subr.mxu0 %v13365_v27  ;;  %v6374_v24 = vsel %vm6369_vm15, %v6371_v7, %v6373_v32  ;;  %v6377_v5 = vsel %vm6369_vm15, %v6375_v6, %v6376_v56 }
0x19f7   :  { %15052 = vmatpush3.msra.mxu1 %v13372_v11  ;;  %15036 = vmatpush3.msra.mxu0 %v13365_v27  ;;  %v6379_v41 = vsel %vm6369_vm15, %v6376_v56, %v6378_v50 }
0x19f8   :  { %15039 = vmatprep.mubr.msk.f32.mxu0 %vm161_vm0, %v6146_v61  ;;  %15054 = vmatmul.mubr.msk.f32.vlgmr.msra.gmra.mxu1 %vm161_vm0, %v6261_v16 }
0x19f9   :  { %15037 = vmatprep.subr.mxu0 %v13364_v19  ;;  %15056 = vmatprep.mubr.msk.f32.mxu1 %vm161_vm0, %v6264_v43  ;;  %v6510_v43 = vstv %s6509_s19  ;;  %s13667_s19 = sld [smem:[#allocation12 + $0x80]] }
0x19fa   :  { %15038 = vmatpush3.msra.mxu0 %v13364_v19 }
0x19fb   :  { %15040 = vmatmul.mubr.msk.f32.vlgmr.msra.gmra.mxu0 %vm161_vm0, %v6148_v21  ;;  %15059 = vmatprep.subr.mxu0 %v13383_v14 }
0x19fc   :  { %15042 = vmatprep.mubr.msk.f32.mxu0 %vm161_vm0, %v6151_v37  ;;  %15057 = vmatmul.mubr.msk.f32.gmra.mxu1 %vm161_vm0, %v6266_v39 }
0x19fd   :  { %15060 = vmatpush3.msra.mxu0 %v13383_v14 }
0x19fe   :  { %15061 = vmatprep.subr.mxu0 %v13382_v58 }
0x19ff   :  { %15062 = vmatpush3.msra.mxu0 %v13382_v58  ;;  %v6515_v58 = vstv %s13389_s18 }
0x1a00   :  { %15043 = vmatmul.mubr.msk.f32.gmra.mxu0 %vm161_vm0, %v6153_v2  ;;  %15063 = vmatprep.subr.mxu0 %v13381_v59 }
0x1a01   :  { %15064 = vmatpush3.msra.mxu0 %v13381_v59  ;;  %15067 = vmatprep.mubr.msk.f32.mxu0 %vm161_vm0, %v6372_v25 }
0x1a02   :  { %15065 = vmatprep.subr.mxu0 %v13380_v8 }
0x1a03   :  { %15066 = vmatpush3.msra.mxu0 %v13380_v8 }
0x1a04   :  { %15068 = vmatmul.mubr.msk.f32.vlgmr.msra.gmra.mxu0 %vm161_vm0, %v6374_v24 }
0x1a05   :  { %15070 = vmatprep.mubr.msk.f32.mxu0 %vm161_vm0, %v6377_v5 }
0x1a08   :  { %15071 = vmatmul.mubr.msk.f32.gmra.mxu0 %vm161_vm0, %v6379_v41 }
0x1aad   :  { %v15027_v26 = vpop.f32.mrf.mxu1 }
0x1aaf   :  { %v6125_v28 = vpop.f32.mrf.mxu1 }
0x1ab0   :  { %v15013_v55 = vpop.f32.mrf.mxu0 }
0x1ab1   :  { %v6131_v49 = vadd.f32 %v15027_v26, %v15013_v55 }
0x1ab2   :  { %v6032_v15 = vpop.f32.mrf.mxu0  ;;  %v15030_v46 = vpop.f32.mrf.mxu1 }
0x1ab3   :  { %v6126_v51 = vadd.f32 %v6125_v28, %v6032_v15 }
0x1ab4   :  { %v6135_v30 = vpop.f32.mrf.mxu1 }
0x1ab6   :  { %v15016_v4 = vpop.f32.mrf.mxu0 }
0x1ab7   :  { %v6141_v38 = vadd.f32 %v15030_v46, %v15016_v4 }
0x1ab8   :  { %v6042_v52 = vpop.f32.mrf.mxu0  ;;  %v15055_v54 = vpop.f32.mrf.mxu1 }
0x1ab9   :  { %v6136_v42 = vadd.f32 %v6135_v30, %v6042_v52 }
0x1aba   :  { %v6346_v45 = vpop.f32.mrf.mxu1 }
0x1abb   :  { %v15041_v10 = vpop.f32.mrf.mxu0 }
0x1abc   :  { %v6253_v35 = vadd.f32 %v15041_v10, %v6131_v49  ;;  %v15058_v48 = vpop.f32.mrf.mxu1 }
0x1abd   :  { %v6233_v31 = vpop.f32.mrf.mxu0 }
0x1abe   :  { %v6252_v1 = vadd.f32 %v6233_v31, %v6126_v51  ;;  %v6366_v34 = vadd.f32 %v15055_v54, %v6253_v35  ;;  %v6356_v44 = vpop.f32.mrf.mxu1  ;;  %v13402_v31 = vld [vmem:[%s19600_s2 + $0xb0] sm:$0xff]  ;;  %v13399_v51 = vld [vmem:[%s19600_s2 + $0x98] sm:$0xff] }
0x1abf   :  { %v13398_v35 = vld [vmem:[%s19600_s2 + $0x90] sm:$0xff] }
0x1ac0   :  { %v15044_v13 = vpop.f32.mrf.mxu0  ;;  %v6365_v20 = vadd.f32 %v6346_v45, %v6252_v1 }
0x1ac1   :  { %v6255_v11 = vadd.f32 %v15044_v13, %v6141_v38 }
0x1ac2   :  { %v6243_v40 = vpop.f32.mrf.mxu0 }
0x1ac3   :  { %v6254_v47 = vadd.f32 %v6243_v40, %v6136_v42  ;;  %v6368_v62 = vadd.f32 %v15058_v48, %v6255_v11 }
0x1ac4   :  { %v15069_v27 = vpop.f32.mrf.mxu0 }
0x1ac5   :  { %v6479_v12 = vadd.f32 %v15069_v27, %v6366_v34  ;;  %v6367_v37 = vadd.f32 %v6356_v44, %v6254_v47 }
0x1ac6   :  { %v6459_v19 = vpop.f32.mrf.mxu0 }
0x1ac7   :  { %v6484_v61 = vadd.f32 %v6482_v60, %v6479_v12  ;;  %v6478_v16 = vadd.f32 %v6459_v19, %v6365_v20 }
0x1ac8   :  { %v15072_v0 = vpop.f32.mrf.mxu0 }
0x1ac9   :  { %v6493_v14 = vsub.f32 %v6484_v61, %v6491_v23  ;;  %v6483_v36 = vadd.f32 %v6482_v60, %v6478_v16  ;;  %v6481_v21 = vadd.f32 %v15072_v0, %v6368_v62  ;;  %v13396_v0 = vld [vmem:[%s19600_s2 + $0x80] sm:$0xff] }
0x1aca   :  { %v6469_v39 = vpop.f32.mrf.mxu0 }
0x1acb   :  { %v6492_v22 = vsub.f32 %v6483_v36, %v6491_v23  ;;  %v6512_v7 = vmul.f32 %v6510_v43, %v6493_v14  ;;  %v6486_v63 = vadd.f32 %v6482_v60, %v6481_v21  ;;  %v6480_v59 = vadd.f32 %v6469_v39, %v6367_v37  ;;  %v13395_v14 = vld [vmem:[%s19600_s2 + $0x78] sm:$0xff]  ;;  %v13394_v36 = vld [vmem:[%s19600_s2 + $0x70] sm:$0xff]  ;;  %v13393_v21 = vld [vmem:[%s19600_s2 + $0x68] sm:$0xff] }
0x1acc   :  { %v13392_v37 = vld [vmem:[%s19600_s2 + $0x60] sm:$0xff] }
0x1acd   :  { %v6511_v2 = vmul.f32 %v6510_v43, %v6492_v22  ;;  %v6495_v8 = vsub.f32 %v6486_v63, %v6491_v23  ;;  %v6485_v25 = vadd.f32 %v6482_v60, %v6480_v59  ;;  %v6517_v6 = vadd.f32 %v6515_v58, %v6512_v7 }
0x1acf   :  { %v6514_v56 = vmul.f32 %v6510_v43, %v6495_v8  ;;  %v6494_v32 = vsub.f32 %v6485_v25, %v6491_v23  ;;  %v6521_v24 = vmax.f32 %v6517_v6, 0.0  ;;  %v6516_v5 = vadd.f32 %v6515_v58, %v6511_v2 }
0x1ad1   :  { %v6513_v50 = vmul.f32 %v6510_v43, %v6494_v32  ;;  %v6525_v41 = vadd.f32 %v6521_v24, %v17792_v3  ;;  %v6520_v26 = vmax.f32 %v6516_v5, 0.0  ;;  %v6519_v28 = vadd.f32 %v6515_v58, %v6514_v56  ;;  %v13397_v43 = vld [vmem:[%s19600_s2 + $0x88] sm:$0xff] }
0x1ad2   :  { %v19625_v24 = vsub.s32 2, %v17753_v9 }
0x1ad3   :  { %v6531_v55 = vsel %vm161_vm0, %v6525_v41, 0.0  ;;  %v6524_v15 = vadd.f32 %v6520_v26, %v17772_v53  ;;  %v6523_v46 = vmax.f32 %v6519_v28, 0.0  ;;  %v6518_v4 = vadd.f32 %v6515_v58, %v6513_v50  ;;  %v13403_v53 = vld [vmem:[%s19600_s2 + $0xb8] sm:$0xff] }
0x1ad4   :  { %6532 = vadd.xlane.f32.xlu0 %v6531_v55  ;;  %15073 = vmatprep.subr.msk.mxu1 %vm161_vm0, %v13403_v53  ;;  %v6583_v50 = vrot.slane %v17756_v17, %v19625_v24 }
0x1ad5   :  { %v6528_v30 = vsel %vm161_vm0, %v6524_v15, 0.0  ;;  %v6527_v52 = vadd.f32 %v6523_v46, %v17831_v29  ;;  %v6522_v10 = vmax.f32 %v6518_v4, 0.0  ;;  %15074 = vmatpush3.xpose.msk.msra.mxu1 %vm161_vm0, %v13403_v53  ;;  %v13400_v29 = vld [vmem:[%s19600_s2 + $0xa0] sm:$0xff] }
0x1ad6   :  { %6529 = vadd.xlane.f32.xlu1 %v6528_v30  ;;  %15075 = vmatprep.subr.msk.mxu1 %vm161_vm0, %v13402_v31 }
0x1ad7   :  { %v6537_v54 = vsel %vm161_vm0, %v6527_v52, 0.0  ;;  %v6526_v49 = vadd.f32 %v6522_v10, %v17824_v33  ;;  %v13401_v33 = vld [vmem:[%s19600_s2 + $0xa8] sm:$0xff] }
0x1ad8   :  { %6538 = vadd.xlane.f32.xlu0 %v6537_v54 }
0x1ad9   :  { %v6534_v3 = vsel %vm161_vm0, %v6526_v49, 0.0  ;;  %15076 = vmatpush3.xpose.msk.msra.mxu1 %vm161_vm0, %v13402_v31 }
0x1ada   :  { %6535 = vadd.xlane.f32.xlu1 %v6534_v3  ;;  %15077 = vmatprep.subr.msk.mxu1 %vm161_vm0, %v13401_v33 }
0x1add   :  { %15078 = vmatpush3.xpose.msk.msra.mxu1 %vm161_vm0, %v13401_v33 }
0x1ade   :  { %15079 = vmatprep.subr.msk.mxu1 %vm161_vm0, %v13400_v29 }
0x1ae1   :  { %15080 = vmatpush3.xpose.msk.msra.mxu1 %vm161_vm0, %v13400_v29  ;;  %v13410_v29 = vld [vmem:[%s19601_s3 + $0x1] ss:$0 sm:$0xff] }
0x1ae2   :  { %15081 = vmatprep.subr.msk.mxu1 %vm161_vm0, %v13399_v51 }
0x1ae5   :  { %15082 = vmatpush3.xpose.msk.msra.mxu1 %vm161_vm0, %v13399_v51 }
0x1ae6   :  { %15083 = vmatprep.subr.msk.mxu1 %vm161_vm0, %v13398_v35 }
0x1ae9   :  { %15084 = vmatpush3.xpose.msk.msra.mxu1 %vm161_vm0, %v13398_v35 }
0x1aea   :  { %15085 = vmatprep.subr.msk.mxu1 %vm161_vm0, %v13397_v43 }
0x1aed   :  { %15086 = vmatpush3.xpose.msk.msra.mxu1 %vm161_vm0, %v13397_v43 }
0x1aee   :  { %15087 = vmatprep.subr.msk.mxu1 %vm161_vm0, %v13396_v0 }
0x1af1   :  { %15088 = vmatpush3.xpose.msk.msra.mxu1 %vm161_vm0, %v13396_v0 }
0x1af2   :  { %15089 = vmatprep.subr.msk.mxu1 %vm161_vm0, %v13395_v14 }
0x1af5   :  { %15090 = vmatpush3.xpose.msk.msra.mxu1 %vm161_vm0, %v13395_v14 }
0x1af6   :  { %15091 = vmatprep.subr.msk.mxu1 %vm161_vm0, %v13394_v36 }
0x1af9   :  { %15092 = vmatpush3.xpose.msk.msra.mxu1 %vm161_vm0, %v13394_v36 }
0x1afa   :  { %15093 = vmatprep.subr.msk.mxu1 %vm161_vm0, %v13393_v21 }
0x1afd   :  { %15094 = vmatpush3.xpose.msk.msra.mxu1 %vm161_vm0, %v13393_v21 }
0x1afe   :  { %15095 = vmatprep.subr.msk.mxu1 %vm161_vm0, %v13392_v37 }
0x1b01   :  { %15096 = vmatpush3.xpose.msk.msra.mxu1 %vm161_vm0, %v13392_v37 }
0x1b5d   :  { %v6533_v45 = vpop.xlane.xlu0 %6532 }
0x1b5e   :  { %v6541_v13 = vmul.f32 0.03125, %v6533_v45 }
0x1b5f   :  { %v6530_v38 = vpop.xlane.xlu1 %6529 }
0x1b60   :  { %v6545_v1 = vsub.f32 %v6525_v41, %v6541_v13  ;;  %v6540_v40 = vmul.f32 0.03125, %v6530_v38  ;;  %v19624_v41 = vsub.s32 3, %v17753_v9 }
0x1b61   :  { %v6539_v42 = vpop.xlane.xlu0 %6538 }
0x1b62   :  { %v6544_v11 = vsub.f32 %v6524_v15, %v6540_v40  ;;  %v6543_v34 = vmul.f32 0.03125, %v6539_v42  ;;  %v6549_v48 = vmul.f32 %v6545_v1, %v6545_v1  ;;  %v6591_v46 = vrot.slane %v17756_v17, %v19624_v41 }
0x1b63   :  { %v6536_v27 = vpop.xlane.xlu1 %6535 }
0x1b64   :  { %v6547_v60 = vsub.f32 %v6527_v52, %v6543_v34  ;;  %v6542_v47 = vmul.f32 0.03125, %v6536_v27  ;;  %v6555_v12 = vsel %vm161_vm0, %v6549_v48, 0.0  ;;  %v6548_v20 = vmul.f32 %v6544_v11, %v6544_v11 }
0x1b65   :  { %6556 = vadd.xlane.f32.xlu0 %v6555_v12 }
0x1b66   :  { %v6546_v23 = vsub.f32 %v6526_v49, %v6542_v47  ;;  %v6552_v19 = vsel %vm161_vm0, %v6548_v20, 0.0  ;;  %v6551_v61 = vmul.f32 %v6547_v60, %v6547_v60 }
0x1b67   :  { %6553 = vadd.xlane.f32.xlu1 %v6552_v19 }
0x1b68   :  { %v6561_v16 = vsel %vm161_vm0, %v6551_v61, 0.0  ;;  %v6550_v62 = vmul.f32 %v6546_v23, %v6546_v23 }
0x1b69   :  { %6562 = vadd.xlane.f32.xlu0 %v6561_v16 }
0x1b6a   :  { %v6558_v44 = vsel %vm161_vm0, %v6550_v62, 0.0 }
0x1b6b   :  { %6559 = vadd.xlane.f32.xlu1 %v6558_v44 }
0x1bee   :  { %v6557_v39 = vpop.xlane.xlu0 %6556 }
0x1bef   :  { %v6565_v58 = vmul.f32 0.03125, %v6557_v39 }
0x1bf0   :  { %v6554_v22 = vpop.xlane.xlu1 %6553 }
0x1bf1   :  { %v6569_v7 = vadd.f32 1e-05, %v6565_v58  ;;  %v6564_v63 = vmul.f32 0.03125, %v6554_v22 }
0x1bf2   :  { %v6563_v59 = vpop.xlane.xlu0 %6562 }
0x1bf3   :  { %15961 = vrsqrt.f32 %v6569_v7  ;;  %v6568_v2 = vadd.f32 1e-05, %v6564_v63  ;;  %v6567_v8 = vmul.f32 0.03125, %v6563_v59 }
0x1bf4   :  { %v6560_v25 = vpop.xlane.xlu1 %6559 }
0x1bf5   :  { %15963 = vrsqrt.f32 %v6568_v2  ;;  %v6571_v6 = vadd.f32 1e-05, %v6567_v8  ;;  %v6566_v56 = vmul.f32 0.03125, %v6560_v25 }
0x1bf7   :  { %15965 = vrsqrt.f32 %v6571_v6  ;;  %v6570_v32 = vadd.f32 1e-05, %v6566_v56 }
0x1bf9   :  { %15967 = vrsqrt.f32 %v6570_v32 }
0x1c00   :  { %v15962_v5 = vpop.eup %15961 }
0x1c01   :  { %v6577_v26 = vmul.f32 %v15962_v5, %v6545_v1 }
0x1c02   :  { %v15964_v28 = vpop.eup %15963 }
0x1c03   :  { %v6576_v55 = vmul.f32 %v15964_v28, %v6544_v11  ;;  %v6585_v4 = vmul.f32 %v6583_v50, %v6577_v26 }
0x1c04   :  { %v15966_v15 = vpop.eup %15965 }
0x1c05   :  { %v6584_v30 = vmul.f32 %v6583_v50, %v6576_v55  ;;  %v6579_v52 = vmul.f32 %v15966_v15, %v6547_v60  ;;  %v18095_v3 = vadd.f32 %v6591_v46, %v6585_v4 }
0x1c06   :  { %v15968_v10 = vpop.eup %15967 }
0x1c07   :  { %v18093_v54 = vadd.f32 %v6591_v46, %v6584_v30  ;;  %v6578_v49 = vmul.f32 %v15968_v10, %v6546_v23  ;;  %v6587_v53 = vmul.f32 %v6583_v50, %v6579_v52 }
0x1c09   :  { %15097 = vmatprep.mubr.msk.f32.mxu1 %vm161_vm0, %v18093_v54  ;;  %v6586_v31 = vmul.f32 %v6583_v50, %v6578_v49  ;;  %v18103_v17 = vadd.f32 %v6591_v46, %v6587_v53 }
0x1c0a   :  { %15098 = vmatmul.mubr.msk.f32.vlgmr.msra.gmra.mxu1 %vm161_vm0, %v18095_v3 }
0x1c0b   :  { %v18101_v33 = vadd.f32 %v6591_v46, %v6586_v31  ;;  %19650 = vst [vmem:[#allocation25_spill] sm:$0xff] %v18103_v17 }
0x1c0d   :  { %15100 = vmatprep.mubr.msk.f32.mxu1 %vm161_vm0, %v18101_v33 }
0x1c0e   :  { %15101 = vmatmul.mubr.msk.f32.gmra.mxu1 %vm161_vm0, %v18103_v17 }
0x1cca   :  { %v15099_v51 = vpop.f32.mrf.mxu1 }
0x1ccb   :  { %v18112_v35 = vadd.f32 %v15099_v51, %v13410_v29 }
0x1ccc   :  { %v6738_v45 = vpop.f32.mrf.mxu1 }
0x1ccd   :  { %v18114_v13 = vadd.f32 %v13410_v29, %v6738_v45  ;;  %6765 = vrot.lane.b32.xlu1 %v18112_v35, %s16345_s22  ;;  %v18139_v60 = vmul.f32 0.35355338, %v18112_v35 }
0x1cce   :  { %v15102_v38 = vpop.f32.mrf.mxu1 }
0x1ccf   :  { %v18118_v1 = vadd.f32 %v15102_v38, %v13410_v29  ;;  %6763 = vrot.lane.b32.xlu0 %v18114_v13, %s16345_s22  ;;  %v18123_v40 = vmul.f32 0.35355338, %v18114_v13 }
0x1cd0   :  { %v6748_v42 = vpop.f32.mrf.mxu1 }
0x1cd1   :  { %15107 = vmatprep.mubr.msk.f32.mxu0 %vm305_vm1, %v18123_v40  ;;  %6856 = vrot.lane.b32.xlu1 %v18118_v1, %s16345_s22  ;;  %v18129_v11 = vadd.f32 %v13410_v29, %v6748_v42  ;;  %v18152_v20 = vmul.f32 0.35355338, %v18118_v1 }
0x1cd3   :  { %v18142_v47 = vmul.f32 0.35355338, %v18129_v11 }
0x1cd5   :  { %6854 = vrot.lane.b32.xlu1 %v18129_v11, %s16345_s22 }
0x1d3f   :  { %v6766_v34 = vpop.permute.xlu1 %6765 }
0x1d40   :  { %15103 = vmatprep.subr.msk.mxu0 %vm305_vm1, %v6766_v34 }
0x1d41   :  { %v6764_v48 = vpop.permute.xlu0 %6763  ;;  %15104 = vmatpush3.xpose.msk.msra.mxu0 %vm305_vm1, %v6766_v34 }
0x1d42   :  { %15105 = vmatprep.subr.msk.mxu0 %vm305_vm1, %v6764_v48 }
0x1d43   :  { %v6857_v27 = vpop.permute.xlu1 %6856 }
0x1d45   :  { %15106 = vmatpush3.xpose.msk.msra.mxu0 %vm305_vm1, %v6764_v48 }
0x1d46   :  { %15110 = vmatprep.subr.msk.mxu0 %vm305_vm1, %v6857_v27 }
0x1d47   :  { %v6855_v12 = vpop.permute.xlu1 %6854 }
0x1d48   :  { %15108 = vmatmul.mubr.msk.f32.vlgmr.msra.gmra.mxu0 %vm305_vm1, %v18139_v60 }
0x1d49   :  { %15111 = vmatpush3.xpose.msk.msra.mxu0 %vm305_vm1, %v6857_v27  ;;  %15114 = vmatprep.mubr.msk.f32.mxu0 %vm305_vm1, %v18142_v47 }
0x1d4a   :  { %15112 = vmatprep.subr.msk.mxu0 %vm305_vm1, %v6855_v12 }
0x1d4d   :  { %15113 = vmatpush3.xpose.msk.msra.mxu0 %vm305_vm1, %v6855_v12 }
0x1d50   :  { %15115 = vmatmul.mubr.msk.f32.vlgmr.msra.gmra.mxu0 %vm305_vm1, %v18152_v20 }
0x1e08   :  { %v15109_v23 = vpop.f32.mrf.mxu0 }
0x1e09   :  { %v6946_v19 = vsel %vm482_vm2, %v15109_v23, -inf }
0x1e0a   :  { %6947 = vmax.xlane.f32.xlu1 %v6946_v19  ;;  %v6843_v61 = vpop.f32.mrf.mxu0 }
0x1e0b   :  { %v6943_v16 = vsel %vm482_vm2, %v6843_v61, -inf }
0x1e0c   :  { %6944 = vmax.xlane.f32.xlu0 %v6943_v16 }
0x1e10   :  { %v15116_v62 = vpop.f32.mrf.mxu0 }
0x1e11   :  { %v6952_v0 = vsel %vm482_vm2, %v15116_v62, -inf }
0x1e12   :  { %v6934_v44 = vpop.f32.mrf.mxu0 }
0x1e13   :  { %v6949_v43 = vsel %vm482_vm2, %v6934_v44, -inf }
0x1e14   :  { %6950 = vmax.xlane.f32.xlu0 %v6949_v43 }
0x1e18   :  { %6953 = vmax.xlane.f32.xlu0 %v6952_v0 }
0x1e1b   :  { %6989 = vrot.lane.b32.xlu1 %v18112_v35, %s16337_s23 }
0x1e1f   :  { %7076 = vrot.lane.b32.xlu1 %v18118_v1, %s16337_s23 }
0x1e23   :  { %7074 = vrot.lane.b32.xlu1 %v18129_v11, %s16337_s23 }
0x1e2e   :  { %6987 = vrot.lane.b32.xlu0 %v18114_v13, %s16337_s23 }
0x1e93   :  { %v6948_v14 = vpop.xlane.xlu1 %6947 }
0x1e94   :  { %v6956_v36 = vsub.f32 %v15109_v23, %v6948_v14 }
0x1e95   :  { %v6945_v21 = vpop.xlane.xlu0 %6944 }
0x1e96   :  { %v6961_v37 = vmul.f32 1.442695, %v6956_v36  ;;  %v6955_v39 = vsub.f32 %v6843_v61, %v6945_v21 }
0x1e97   :  { %v6990_v58 = vpop.permute.xlu1 %6989 }
0x1e98   :  { %15969 = vpow2.f32 %v6961_v37  ;;  %v6959_v22 = vmul.f32 1.442695, %v6955_v39  ;;  %15117 = vmatprep.subr.mxu0 %v6990_v58 }
0x1e99   :  { %15118 = vmatpush3.msra.mxu0 %v6990_v58 }
0x1e9a   :  { %15971 = vpow2.f32 %v6959_v22 }
0x1e9b   :  { %v7077_v32 = vpop.permute.xlu1 %7076 }
0x1e9d   :  { %v6951_v7 = vpop.xlane.xlu0 %6950 }
0x1e9e   :  { %v6957_v28 = vsub.f32 %v6934_v44, %v6951_v7 }
0x1e9f   :  { %v7075_v4 = vpop.permute.xlu1 %7074 }
0x1ea0   :  { %v6963_v55 = vmul.f32 1.442695, %v6957_v28 }
0x1ea1   :  { %v6954_v63 = vpop.xlane.xlu0 %6953 }
0x1ea2   :  { %v6958_v59 = vsub.f32 %v15116_v62, %v6954_v63 }
0x1ea4   :  { %v6965_v2 = vmul.f32 1.442695, %v6958_v59 }
0x1ea5   :  { %v15970_v8 = vpop.eup %15969  ;;  %v6988_v25 = vpop.permute.xlu0 %6987 }
0x1ea6   :  { %15973 = vpow2.f32 %v6965_v2  ;;  %15119 = vmatprep.subr.mxu0 %v6988_v25  ;;  %v6970_v6 = vsel %vm482_vm2, %v15970_v8, 0.0 }
0x1ea7   :  { %v15972_v56 = vpop.eup %15971  ;;  %6971 = vadd.xlane.f32.xlu0 %v6970_v6  ;;  %15120 = vmatpush3.msra.mxu0 %v6988_v25  ;;  %15975 = vpow2.f32 %v6963_v55 }
0x1ea8   :  { %15124 = vmatprep.subr.mxu0 %v7077_v32  ;;  %v6967_v5 = vsel %vm482_vm2, %v15972_v56, 0.0 }
0x1ea9   :  { %6968 = vadd.xlane.f32.xlu1 %v6967_v5 }
0x1eb3   :  { %v15974_v50 = vpop.eup %15973 }
0x1eb4   :  { %v6976_v26 = vsel %vm482_vm2, %v15974_v50, 0.0  ;;  %v15976_v15 = vpop.eup %15975 }
0x1eb5   :  { %6977 = vadd.xlane.f32.xlu0 %v6976_v26  ;;  %v6973_v46 = vsel %vm482_vm2, %v15976_v15, 0.0 }
0x1eba   :  { %7165 = vrot.lane.b32.xlu1 %v18114_v13, %s16346_s24 }
0x1ecb   :  { %7167 = vrot.lane.b32.xlu0 %v18112_v35, %s16346_s24 }
0x1ecf   :  { %7161 = vrot.lane.b32.xlu0 %v18123_v40, %s16347_s25 }
0x1ed3   :  { %7163 = vrot.lane.b32.xlu0 %v18139_v60, %s16347_s25 }
0x1ed7   :  { %7252 = vrot.lane.b32.xlu0 %v18142_v47, %s16347_s25 }
0x1ede   :  { %6974 = vadd.xlane.f32.xlu1 %v6973_v46 }
0x1eef   :  { %7258 = vrot.lane.b32.xlu1 %v18118_v1, %s16346_s24 }
0x1ef3   :  { %7256 = vrot.lane.b32.xlu1 %v18129_v11, %s16346_s24 }
0x1ef7   :  { %7254 = vrot.lane.b32.xlu1 %v18152_v20, %s16347_s25 }
0x1f30   :  { %v6972_v30 = vpop.xlane.xlu0 %6971 }
0x1f31   :  { %15977 = vrcp.f32 %v6972_v30 }
0x1f32   :  { %v6969_v52 = vpop.xlane.xlu1 %6968 }
0x1f33   :  { %15979 = vrcp.f32 %v6969_v52 }
0x1f36   :  { %v7166_v45 = vpop.permute.xlu1 %7165 }
0x1f3e   :  { %v15978_v10 = vpop.eup %15977  ;;  %v6978_v53 = vpop.xlane.xlu0 %6977 }
0x1f3f   :  { %v6984_v29 = vmul.f32 %v15978_v10, %v15970_v8  ;;  %15981 = vrcp.f32 %v6978_v53  ;;  %v18235_v53 = vld [vmem:[%s19602_s4 + $0x38] sm:$0xff] }
0x1f40   :  { %v15980_v49 = vpop.eup %15979 }
0x1f41   :  { %v6983_v31 = vmul.f32 %v15980_v49, %v15972_v56 }
0x1f42   :  { %v7168_v51 = vpop.permute.xlu0 %7167 }
0x1f43   :  { %15121 = vmatprep.mubr.msk.f32.mxu0 %vm482_vm2, %v6983_v31  ;;  %v18242_v31 = vld [vmem:[%s19602_s4 + $0x28] sm:$0xff] }
0x1f44   :  { %15122 = vmatmul.mubr.msk.f32.vlgmr.msra.gmra.mxu0 %vm482_vm2, %v6984_v29 }
0x1f45   :  { %15125 = vmatpush3.msra.mxu0 %v7077_v32 }
0x1f46   :  { %15126 = vmatprep.subr.mxu0 %v7075_v4  ;;  %v7162_v48 = vpop.permute.xlu0 %7161 }
0x1f47   :  { %15127 = vmatpush3.msra.mxu0 %v7075_v4 }
0x1f48   :  { %15131 = vmatprep.subr.msk.mxu0 %vm305_vm1, %v7168_v51 }
0x1f4a   :  { %v7164_v23 = vpop.permute.xlu0 %7163 }
0x1f4c   :  { %v15982_v42 = vpop.eup %15981 }
0x1f4d   :  { %v6986_v12 = vmul.f32 %v15982_v42, %v15974_v50 }
0x1f4e   :  { %v7253_v61 = vpop.permute.xlu0 %7252 }
0x1f67   :  { %v6975_v38 = vpop.xlane.xlu1 %6974 }
0x1f68   :  { %15983 = vrcp.f32 %v6975_v38  ;;  %v18267_v38 = vld [vmem:[%s19602_s4 + $0x20] sm:$0xff] }
0x1f6b   :  { %v7259_v19 = vpop.permute.xlu1 %7258 }
0x1f6f   :  { %v7257_v16 = vpop.permute.xlu1 %7256 }
0x1f73   :  { %v7255_v62 = vpop.permute.xlu1 %7254 }
0x1f75   :  { %v15984_v34 = vpop.eup %15983 }
0x1f76   :  { %v6985_v27 = vmul.f32 %v15984_v34, %v15976_v15 }
0x1f78   :  { %15128 = vmatprep.mubr.msk.f32.mxu0 %vm482_vm2, %v6985_v27 }
0x1f79   :  { %15129 = vmatmul.mubr.msk.f32.vlgmr.msra.gmra.mxu0 %vm482_vm2, %v6986_v12 }
0x1f7a   :  { %15132 = vmatpush3.xpose.msk.msra.mxu0 %vm305_vm1, %v7168_v51  ;;  %15135 = vmatprep.mubr.msk.f32.mxu0 %vm305_vm1, %v7162_v48 }
0x1f7b   :  { %15133 = vmatprep.subr.msk.mxu0 %vm305_vm1, %v7166_v45 }
0x1f7e   :  { %15134 = vmatpush3.xpose.msk.msra.mxu0 %vm305_vm1, %v7166_v45  ;;  %v18260_v45 = vld [vmem:[%s19602_s4 + $0x30] sm:$0xff] }
0x1f7f   :  { %15138 = vmatprep.subr.msk.mxu0 %vm305_vm1, %v7259_v19 }
0x1f81   :  { %15136 = vmatmul.mubr.msk.f32.vlgmr.msra.gmra.mxu0 %vm305_vm1, %v7164_v23 }
0x1f82   :  { %15139 = vmatpush3.xpose.msk.msra.mxu0 %vm305_vm1, %v7259_v19  ;;  %15142 = vmatprep.mubr.msk.f32.mxu0 %vm305_vm1, %v7253_v61 }
0x1f83   :  { %15140 = vmatprep.subr.msk.mxu0 %vm305_vm1, %v7257_v16 }
0x1f86   :  { %15141 = vmatpush3.xpose.msk.msra.mxu0 %vm305_vm1, %v7257_v16 }
0x1f89   :  { %15143 = vmatmul.mubr.msk.f32.vlgmr.msra.gmra.mxu0 %vm305_vm1, %v7255_v62 }
0x2004   :  { %v18204_v44 = vpop.f32.mrf.mxu0 }
0x2006   :  { %v18206_v43 = vpop.f32.mrf.mxu0 }
0x2039   :  { %v18208_v0 = vpop.f32.mrf.mxu0 }
0x203b   :  { %v18210_v14 = vpop.f32.mrf.mxu0 }
0x2041   :  { %v15137_v36 = vpop.f32.mrf.mxu0 }
0x2042   :  { %v7346_v21 = vsel %vm482_vm2, %v15137_v36, -inf }
0x2043   :  { %7347 = vmax.xlane.f32.xlu1 %v7346_v21  ;;  %v7243_v37 = vpop.f32.mrf.mxu0 }
0x2044   :  { %v7343_v39 = vsel %vm482_vm2, %v7243_v37, -inf }
0x2045   :  { %7344 = vmax.xlane.f32.xlu0 %v7343_v39 }
0x2049   :  { %v15144_v58 = vpop.f32.mrf.mxu0 }
0x204a   :  { %v7352_v63 = vsel %vm482_vm2, %v15144_v58, -inf }
0x204b   :  { %v7334_v22 = vpop.f32.mrf.mxu0 }
0x204c   :  { %v7349_v7 = vsel %vm482_vm2, %v7334_v22, -inf }
0x204d   :  { %7350 = vmax.xlane.f32.xlu0 %v7349_v7 }
0x2051   :  { %7353 = vmax.xlane.f32.xlu0 %v7352_v63 }
0x2054   :  { %7389 = vrot.lane.b32.xlu1 %v18112_v35, %s16348_s26 }
0x20cc   :  { %v7348_v59 = vpop.xlane.xlu1 %7347 }
0x20cd   :  { %v7356_v2 = vsub.f32 %v15137_v36, %v7348_v59 }
0x20ce   :  { %v7345_v8 = vpop.xlane.xlu0 %7344 }
0x20cf   :  { %v7361_v25 = vmul.f32 1.442695, %v7356_v2  ;;  %v7355_v6 = vsub.f32 %v7243_v37, %v7345_v8 }
0x20d0   :  { %v7390_v56 = vpop.permute.xlu1 %7389 }
0x20d1   :  { %15985 = vpow2.f32 %v7361_v25  ;;  %v7359_v32 = vmul.f32 1.442695, %v7355_v6  ;;  %15145 = vmatprep.subr.mxu0 %v7390_v56 }
0x20d2   :  { %15146 = vmatpush3.msra.mxu0 %v7390_v56 }
0x20d3   :  { %15987 = vpow2.f32 %v7359_v32 }
0x20d6   :  { %v7351_v5 = vpop.xlane.xlu0 %7350 }
0x20d7   :  { %v7357_v10 = vsub.f32 %v7334_v22, %v7351_v5 }
0x20d9   :  { %v7363_v49 = vmul.f32 1.442695, %v7357_v10 }
0x20da   :  { %v7354_v50 = vpop.xlane.xlu0 %7353 }
0x20db   :  { %v7358_v26 = vsub.f32 %v15144_v58, %v7354_v50 }
0x20dd   :  { %v7365_v28 = vmul.f32 1.442695, %v7358_v26 }
0x20de   :  { %v15986_v55 = vpop.eup %15985 }
0x20df   :  { %15989 = vpow2.f32 %v7365_v28  ;;  %v7370_v15 = vsel %vm482_vm2, %v15986_v55, 0.0 }
0x20e0   :  { %v15988_v46 = vpop.eup %15987  ;;  %7371 = vadd.xlane.f32.xlu0 %v7370_v15  ;;  %15991 = vpow2.f32 %v7363_v49 }
0x20e1   :  { %v7367_v4 = vsel %vm482_vm2, %v15988_v46, 0.0 }
0x20e2   :  { %7368 = vadd.xlane.f32.xlu1 %v7367_v4 }
0x20ec   :  { %v18220_v30 = vpop.eup %15989 }
0x20ed   :  { %v7376_v52 = vsel %vm482_vm2, %v18220_v30, 0.0  ;;  %v15992_v29 = vpop.eup %15991 }
0x20ee   :  { %7377 = vadd.xlane.f32.xlu0 %v7376_v52  ;;  %v7373_v51 = vsel %vm482_vm2, %v15992_v29, 0.0 }
0x20f3   :  { %7476 = vrot.lane.b32.xlu1 %v18118_v1, %s16348_s26 }
0x2104   :  { %7387 = vrot.lane.b32.xlu0 %v18114_v13, %s16348_s26 }
0x2108   :  { %7880 = vrot.lane.b32.xlu0 %v18118_v1, %s16349_s0 }
0x210c   :  { %7874 = vrot.lane.b32.xlu0 %v18142_v47, %s16350_s27 }
0x2110   :  { %7571 = vrot.lane.b32.xlu0 %v18235_v53, %s16347_s25 }
0x2114   :  { %7567 = vrot.lane.b32.xlu0 %v18242_v31, %s16347_s25 }
0x2117   :  { %7374 = vadd.xlane.f32.xlu1 %v7373_v51 }
0x2118   :  { %7789 = vrot.lane.b32.xlu0 %v18112_v35, %s16349_s0 }
0x211c   :  { %7783 = vrot.lane.b32.xlu0 %v18123_v40, %s16350_s27 }
0x2128   :  { %7474 = vrot.lane.b32.xlu1 %v18129_v11, %s16348_s26  ;;  %s12348_s26 = sadd.f32 1e-05, %s13689_s29 }
0x2129   :  { %s13686_s29 = sld [smem:[#allocation12 + $0x87]] }
0x212c   :  { %7878 = vrot.lane.b32.xlu1 %v18129_v11, %s16349_s0 }
0x2130   :  { %7876 = vrot.lane.b32.xlu1 %v18152_v20, %s16350_s27 }
0x2134   :  { %7569 = vrot.lane.b32.xlu1 %v18260_v45, %s16347_s25 }
0x2138   :  { %7565 = vrot.lane.b32.xlu1 %v18267_v38, %s16347_s25 }
0x213c   :  { %7787 = vrot.lane.b32.xlu1 %v18114_v13, %s16349_s0  ;;  %s13670_s0 = sld [smem:[#allocation12 + $0x83]] }
0x2140   :  { %7785 = vrot.lane.b32.xlu1 %v18139_v60, %s16350_s27 }
0x2169   :  { %v7372_v42 = vpop.xlane.xlu0 %7371 }
0x216a   :  { %15993 = vrcp.f32 %v7372_v42 }
0x216b   :  { %v7369_v34 = vpop.xlane.xlu1 %7368 }
0x216c   :  { %15995 = vrcp.f32 %v7369_v34 }
0x216f   :  { %v7477_v16 = vpop.permute.xlu1 %7476 }
0x2177   :  { %v7378_v48 = vpop.xlane.xlu0 %7377  ;;  %v15994_v27 = vpop.eup %15993 }
0x2178   :  { %v7384_v61 = vmul.f32 %v15994_v27, %v15986_v55  ;;  %15997 = vrcp.f32 %v7378_v48 }
0x2179   :  { %v15996_v12 = vpop.eup %15995 }
0x217a   :  { %v7383_v23 = vmul.f32 %v15996_v12, %v15988_v46 }
0x217b   :  { %v7388_v19 = vpop.permute.xlu0 %7387 }
0x217c   :  { %15147 = vmatprep.subr.mxu0 %v7388_v19  ;;  %15149 = vmatprep.mubr.msk.f32.mxu0 %vm482_vm2, %v7383_v23 }
0x217d   :  { %15148 = vmatpush3.msra.mxu0 %v7388_v19 }
0x217e   :  { %15150 = vmatmul.mubr.msk.f32.vlgmr.msra.gmra.mxu0 %vm482_vm2, %v7384_v61  ;;  %15152 = vmatprep.subr.mxu0 %v7477_v16 }
0x217f   :  { %v7881_v62 = vpop.permute.xlu0 %7880  ;;  %15153 = vmatpush3.msra.mxu0 %v7477_v16 }
0x2183   :  { %v7875_v36 = vpop.permute.xlu0 %7874 }
0x2185   :  { %v15998_v7 = vpop.eup %15997 }
0x2186   :  { %v7386_v8 = vmul.f32 %v15998_v7, %v18220_v30 }
0x2187   :  { %v7572_v21 = vpop.permute.xlu0 %7571 }
0x2188   :  { %15159 = vmatprep.subr.msk.mxu1 %vm305_vm1, %v7572_v21 }
0x2189   :  { %15160 = vmatpush3.xpose.msk.msra.mxu1 %vm305_vm1, %v7572_v21 }
0x218b   :  { %v7568_v25 = vpop.permute.xlu0 %7567 }
0x218f   :  { %v7790_v56 = vpop.permute.xlu0 %7789 }
0x2193   :  { %v7784_v5 = vpop.permute.xlu0 %7783 }
0x21a0   :  { %v7375_v37 = vpop.xlane.xlu1 %7374 }
0x21a1   :  { %15999 = vrcp.f32 %v7375_v37 }
0x21a4   :  { %v7475_v39 = vpop.permute.xlu1 %7474 }
0x21a5   :  { %15154 = vmatprep.subr.mxu0 %v7475_v39 }
0x21a6   :  { %15155 = vmatpush3.msra.mxu0 %v7475_v39 }
0x21a7   :  { %15173 = vmatprep.subr.msk.mxu0 %vm305_vm1, %v18235_v53 }
0x21a8   :  { %v7879_v58 = vpop.permute.xlu1 %7878 }
0x21ac   :  { %v7877_v22 = vpop.permute.xlu1 %7876 }
0x21ae   :  { %v16000_v63 = vpop.eup %15999 }
0x21af   :  { %v7385_v59 = vmul.f32 %v16000_v63, %v15992_v29 }
0x21b0   :  { %v7570_v2 = vpop.permute.xlu1 %7569 }
0x21b1   :  { %15156 = vmatprep.mubr.msk.f32.mxu0 %vm482_vm2, %v7385_v59  ;;  %15161 = vmatprep.subr.msk.mxu1 %vm305_vm1, %v7570_v2 }
0x21b2   :  { %15157 = vmatmul.mubr.msk.f32.vlgmr.msra.gmra.mxu0 %vm482_vm2, %v7386_v8  ;;  %15162 = vmatpush3.xpose.msk.msra.mxu1 %vm305_vm1, %v7570_v2 }
0x21b3   :  { %15174 = vmatpush3.xpose.msk.msra.mxu0 %vm305_vm1, %v18235_v53  ;;  %15181 = vmatprep.mubr.msk.f32.mxu0 %vm305_vm1, %v18206_v43 }
0x21b4   :  { %15163 = vmatprep.subr.msk.mxu1 %vm305_vm1, %v7568_v25  ;;  %15175 = vmatprep.subr.msk.mxu0 %vm305_vm1, %v18260_v45  ;;  %v7566_v6 = vpop.permute.xlu1 %7565 }
0x21b6   :  { %15164 = vmatpush3.xpose.msk.msra.mxu1 %vm305_vm1, %v7568_v25 }
0x21b7   :  { %15176 = vmatpush3.xpose.msk.msra.mxu0 %vm305_vm1, %v18260_v45  ;;  %15165 = vmatprep.subr.msk.mxu1 %vm305_vm1, %v7566_v6 }
0x21b8   :  { %15177 = vmatprep.subr.msk.mxu0 %vm305_vm1, %v18242_v31 }
0x21ba   :  { %15166 = vmatpush3.xpose.msk.msra.mxu1 %vm305_vm1, %v7566_v6 }
0x21bb   :  { %15178 = vmatpush3.xpose.msk.msra.mxu0 %vm305_vm1, %v18242_v31  ;;  %15187 = vmatprep.subr.msk.mxu1 %vm305_vm1, %v7790_v56 }
0x21bc   :  { %15179 = vmatprep.subr.msk.mxu0 %vm305_vm1, %v18267_v38 }
0x21bf   :  { %15180 = vmatpush3.xpose.msk.msra.mxu0 %vm305_vm1, %v18267_v38 }
0x21c0   :  { %15194 = vmatprep.subr.msk.mxu0 %vm305_vm1, %v7881_v62 }
0x21c2   :  { %15182 = vmatmul.mubr.msk.f32.vlgmr.msra.gmra.mxu0 %vm305_vm1, %v18204_v44  ;;  %v7788_v44 = vpop.permute.xlu1 %7787 }
0x21c3   :  { %15184 = vmatprep.mubr.msk.f32.mxu0 %vm305_vm1, %v18210_v14  ;;  %15195 = vmatpush3.xpose.msk.msra.mxu0 %vm305_vm1, %v7881_v62 }
0x21c4   :  { %15196 = vmatprep.subr.msk.mxu0 %vm305_vm1, %v7879_v58 }
0x21c6   :  { %15185 = vmatmul.mubr.msk.f32.gmra.mxu0 %vm305_vm1, %v18208_v0  ;;  %v7786_v50 = vpop.permute.xlu1 %7785 }
0x21c7   :  { %15197 = vmatpush3.xpose.msk.msra.mxu0 %vm305_vm1, %v7879_v58  ;;  %15198 = vmatprep.mubr.msk.f32.mxu0 %vm305_vm1, %v7875_v36 }
0x21ca   :  { %15199 = vmatmul.mubr.msk.f32.vlgmr.msra.gmra.mxu0 %vm305_vm1, %v7877_v22 }
0x223e   :  { %v15151_v43 = vpop.f32.mrf.mxu0 }
0x2240   :  { %v7465_v32 = vpop.f32.mrf.mxu0 }
0x2241   :  { %15167 = vmatprep.mubr.msk.f32.mxu1 %vm305_vm1, %v7465_v32 }
0x2242   :  { %15168 = vmatmul.mubr.msk.f32.vlgmr.msra.gmra.mxu1 %vm305_vm1, %v15151_v43 }
0x2243   :  { %15188 = vmatpush3.xpose.msk.msra.mxu1 %vm305_vm1, %v7790_v56 }
0x2244   :  { %15189 = vmatprep.subr.msk.mxu1 %vm305_vm1, %v7788_v44 }
0x2247   :  { %15190 = vmatpush3.xpose.msk.msra.mxu1 %vm305_vm1, %v7788_v44 }
0x2272   :  { %v15158_v0 = vpop.f32.mrf.mxu0 }
0x2274   :  { %v7552_v14 = vpop.f32.mrf.mxu0 }
0x2275   :  { %15170 = vmatprep.mubr.msk.f32.mxu1 %vm305_vm1, %v7552_v14 }
0x2276   :  { %15171 = vmatmul.mubr.msk.f32.gmra.mxu1 %vm305_vm1, %v15158_v0 }
0x2277   :  { %15191 = vmatprep.mubr.msk.f32.mxu1 %vm305_vm1, %v7784_v5 }
0x227a   :  { %15192 = vmatmul.mubr.msk.f32.vlgmr.msra.gmra.mxu1 %vm305_vm1, %v7786_v50 }
0x2282   :  { %v18328_v26 = vpop.f32.mrf.mxu0 }
0x2284   :  { %v18330_v28 = vpop.f32.mrf.mxu0 }
0x2286   :  { %v18332_v55 = vpop.f32.mrf.mxu0 }
0x2288   :  { %v18334_v15 = vpop.f32.mrf.mxu0 }
0x228a   :  { %v15200_v46 = vpop.f32.mrf.mxu0 }
0x228b   :  { %v7974_v4 = vsel %vm482_vm2, %v15200_v46, -inf }
0x228c   :  { %7975 = vmax.xlane.f32.xlu1 %v7974_v4  ;;  %v7956_v30 = vpop.f32.mrf.mxu0 }
0x228d   :  { %v7971_v52 = vsel %vm482_vm2, %v7956_v30, -inf }
0x228e   :  { %7972 = vmax.xlane.f32.xlu0 %v7971_v52 }
0x229d   :  { %8098 = vrot.lane.b32.xlu1 %v18118_v1, %s16351_s17 }
0x22a1   :  { %8306 = vrot.lane.b32.xlu1 %v18112_v35, %s16352_s10 }
0x22a5   :  { %8304 = vrot.lane.b32.xlu1 %v18114_v13, %s16352_s10 }
0x22a9   :  { %8397 = vrot.lane.b32.xlu1 %v18118_v1, %s16352_s10 }
0x22ad   :  { %8395 = vrot.lane.b32.xlu1 %v18129_v11, %s16352_s10 }
0x22b1   :  { %8393 = vrot.lane.b32.xlu1 %v18152_v20, %s16353_s16 }
0x2302   :  { %v18352_v20 = vpop.f32.mrf.mxu1 }
0x2304   :  { %v18354_v61 = vpop.f32.mrf.mxu1 }
0x2315   :  { %v7976_v10 = vpop.xlane.xlu1 %7975 }
0x2316   :  { %v7980_v49 = vsub.f32 %v15200_v46, %v7976_v10 }
0x2317   :  { %v7973_v29 = vpop.xlane.xlu0 %7972 }
0x2318   :  { %v7987_v51 = vmul.f32 1.442695, %v7980_v49  ;;  %v7979_v42 = vsub.f32 %v7956_v30, %v7973_v29 }
0x2319   :  { %v8099_v34 = vpop.permute.xlu1 %8098 }
0x231a   :  { %16001 = vpow2.f32 %v7987_v51  ;;  %v7985_v48 = vmul.f32 1.442695, %v7979_v42  ;;  %15208 = vmatprep.subr.mxu0 %v8099_v34 }
0x231b   :  { %15209 = vmatpush3.msra.mxu0 %v8099_v34 }
0x231c   :  { %16003 = vpow2.f32 %v7985_v48 }
0x231d   :  { %v8307_v58 = vpop.permute.xlu1 %8306 }
0x2321   :  { %v8305_v22 = vpop.permute.xlu1 %8304 }
0x2325   :  { %v8398_v63 = vpop.permute.xlu1 %8397 }
0x2327   :  { %v16002_v27 = vpop.eup %16001 }
0x2328   :  { %v7998_v12 = vsel %vm482_vm2, %v16002_v27, 0.0 }
0x2329   :  { %v16004_v23 = vpop.eup %16003  ;;  %7999 = vadd.xlane.f32.xlu0 %v7998_v12  ;;  %v8396_v2 = vpop.permute.xlu1 %8395 }
0x232a   :  { %v7995_v19 = vsel %vm482_vm2, %v16004_v23, 0.0 }
0x232d   :  { %7996 = vadd.xlane.f32.xlu0 %v7995_v19 }
0x2336   :  { %v18356_v16 = vpop.f32.mrf.mxu1 }
0x2338   :  { %v18358_v62 = vpop.f32.mrf.mxu1 }
0x233a   :  { %v15193_v36 = vpop.f32.mrf.mxu1 }
0x233b   :  { %v7968_v21 = vsel %vm482_vm2, %v15193_v36, -inf }
0x233c   :  { %7969 = vmax.xlane.f32.xlu1 %v7968_v21  ;;  %v7865_v37 = vpop.f32.mrf.mxu1 }
0x233d   :  { %v7965_v39 = vsel %vm482_vm2, %v7865_v37, -inf }
0x2343   :  { %8096 = vrot.lane.b32.xlu0 %v18129_v11, %s16351_s17 }
0x2347   :  { %8300 = vrot.lane.b32.xlu0 %v18123_v40, %s16353_s16 }
0x234b   :  { %8302 = vrot.lane.b32.xlu0 %v18139_v60, %s16353_s16  ;;  %v8394_v60 = vpop.permute.xlu1 %8393 }
0x234d   :  { %8011 = vrot.lane.b32.xlu1 %v18112_v35, %s16351_s17 }
0x234f   :  { %8391 = vrot.lane.b32.xlu0 %v18142_v47, %s16353_s16 }
0x236e   :  { %7966 = vmax.xlane.f32.xlu0 %v7965_v39 }
0x23b2   :  { %v8000_v7 = vpop.xlane.xlu0 %7999 }
0x23b3   :  { %16005 = vrcp.f32 %v8000_v7 }
0x23b6   :  { %v7997_v59 = vpop.xlane.xlu0 %7996 }
0x23b7   :  { %16007 = vrcp.f32 %v7997_v59 }
0x23ba   :  { %v8097_v40 = vpop.permute.xlu0 %8096 }
0x23bb   :  { %15210 = vmatprep.subr.mxu0 %v8097_v40 }
0x23bc   :  { %15211 = vmatpush3.msra.mxu0 %v8097_v40 }
0x23bd   :  { %15229 = vmatprep.subr.msk.mxu0 %vm305_vm1, %v8307_v58 }
0x23be   :  { %v8301_v25 = vpop.permute.xlu0 %8300 }
0x23c0   :  { %v16006_v8 = vpop.eup %16005 }
0x23c1   :  { %v8008_v43 = vmul.f32 %v16006_v8, %v16002_v27 }
0x23c2   :  { %v8303_v14 = vpop.permute.xlu0 %8302 }
0x23c4   :  { %v16008_v47 = vpop.eup %16007 }
0x23c5   :  { %v7970_v6 = vpop.xlane.xlu1 %7969  ;;  %v8007_v56 = vmul.f32 %v16008_v47, %v16004_v23 }
0x23c6   :  { %v7978_v32 = vsub.f32 %v15193_v36, %v7970_v6  ;;  %v8392_v5 = vpop.permute.xlu0 %8391 }
0x23c7   :  { %15212 = vmatprep.mubr.msk.f32.mxu0 %vm482_vm2, %v8007_v56 }
0x23c8   :  { %v7983_v44 = vmul.f32 1.442695, %v7978_v32  ;;  %15213 = vmatmul.mubr.msk.f32.vlgmr.msra.gmra.mxu0 %vm482_vm2, %v8008_v43 }
0x23c9   :  { %15230 = vmatpush3.xpose.msk.msra.mxu0 %vm305_vm1, %v8307_v58  ;;  %15233 = vmatprep.mubr.msk.f32.mxu0 %vm305_vm1, %v8301_v25  ;;  %v8012_v0 = vpop.permute.xlu1 %8011 }
0x23ca   :  { %16009 = vpow2.f32 %v7983_v44  ;;  %15231 = vmatprep.subr.msk.mxu0 %vm305_vm1, %v8305_v22  ;;  %15201 = vmatprep.subr.mxu1 %v8012_v0 }
0x23cb   :  { %15202 = vmatpush3.msra.mxu1 %v8012_v0 }
0x23cd   :  { %15232 = vmatpush3.xpose.msk.msra.mxu0 %vm305_vm1, %v8305_v22 }
0x23ce   :  { %15236 = vmatprep.subr.msk.mxu0 %vm305_vm1, %v8398_v63 }
0x23d0   :  { %15234 = vmatmul.mubr.msk.f32.vlgmr.msra.gmra.mxu0 %vm305_vm1, %v8303_v14 }
0x23d1   :  { %15237 = vmatpush3.xpose.msk.msra.mxu0 %vm305_vm1, %v8398_v63  ;;  %15240 = vmatprep.mubr.msk.f32.mxu0 %vm305_vm1, %v8392_v5 }
0x23d2   :  { %15238 = vmatprep.subr.msk.mxu0 %vm305_vm1, %v8396_v2 }
0x23d5   :  { %15239 = vmatpush3.xpose.msk.msra.mxu0 %vm305_vm1, %v8396_v2 }
0x23d7   :  { %v16010_v50 = vpop.eup %16009 }
0x23d8   :  { %15241 = vmatmul.mubr.msk.f32.vlgmr.msra.gmra.mxu0 %vm305_vm1, %v8394_v60  ;;  %v7992_v46 = vsel %vm482_vm2, %v16010_v50, 0.0 }
0x23d9   :  { %7993 = vadd.xlane.f32.xlu0 %v7992_v46 }
0x23f7   :  { %v7967_v4 = vpop.xlane.xlu0 %7966 }
0x23f8   :  { %v7977_v30 = vsub.f32 %v7865_v37, %v7967_v4 }
0x23fa   :  { %v7981_v52 = vmul.f32 1.442695, %v7977_v30  ;;  %v13513_v30 = vld [vmem:[%s19604_s6 + $0x58] sm:$0xff] }
0x23fc   :  { %16011 = vpow2.f32 %v7981_v52 }
0x2409   :  { %v16012_v10 = vpop.eup %16011 }
0x240a   :  { %v7989_v49 = vsel %vm482_vm2, %v16012_v10, 0.0 }
0x240b   :  { %7990 = vadd.xlane.f32.xlu0 %v7989_v49 }
0x2421   :  { %8009 = vrot.lane.b32.xlu0 %v18114_v13, %s16351_s17 }
0x2462   :  { %v7994_v42 = vpop.xlane.xlu0 %7993 }
0x2463   :  { %16013 = vrcp.f32 %v7994_v42 }
0x2470   :  { %v16014_v58 = vpop.eup %16013 }
0x2471   :  { %v8006_v63 = vmul.f32 %v16014_v58, %v16010_v50 }
0x2488   :  { %v18390_v29 = vpop.f32.mrf.mxu0 }
0x248a   :  { %v18392_v51 = vpop.f32.mrf.mxu0 }
0x2490   :  { %v18394_v34 = vpop.f32.mrf.mxu0 }
0x2491   :  { %v8485_v39 = vsel %vm482_vm2, %v18394_v34, -inf }
0x2492   :  { %v18396_v48 = vpop.f32.mrf.mxu0 }
0x2493   :  { %v8482_v27 = vsel %vm482_vm2, %v18396_v48, -inf }
0x2494   :  { %8483 = vmax.xlane.f32.xlu1 %v8482_v27  ;;  %v7991_v12 = vpop.xlane.xlu0 %7990 }
0x2495   :  { %16015 = vrcp.f32 %v7991_v12 }
0x2498   :  { %v15242_v23 = vpop.f32.mrf.mxu0  ;;  %v8010_v19 = vpop.permute.xlu0 %8009 }
0x2499   :  { %v8491_v36 = vsel %vm482_vm2, %v15242_v23, -inf  ;;  %15203 = vmatprep.subr.mxu1 %v8010_v19 }
0x249a   :  { %v8473_v21 = vpop.f32.mrf.mxu0  ;;  %8492 = vmax.xlane.f32.xlu0 %v8491_v36  ;;  %15204 = vmatpush3.msra.mxu1 %v8010_v19 }
0x249b   :  { %v8488_v37 = vsel %vm482_vm2, %v8473_v21, -inf }
0x249c   :  { %8489 = vmax.xlane.f32.xlu1 %v8488_v37 }
0x249e   :  { %8486 = vmax.xlane.f32.xlu0 %v8485_v39 }
0x24a2   :  { %v16016_v22 = vpop.eup %16015 }
0x24a3   :  { %v8005_v7 = vmul.f32 %v16016_v22, %v16012_v10 }
0x24a5   :  { %15205 = vmatprep.mubr.msk.f32.mxu1 %vm482_vm2, %v8005_v7 }
0x24a6   :  { %15206 = vmatmul.mubr.msk.f32.vlgmr.msra.gmra.mxu1 %vm482_vm2, %v8006_v63 }
0x24ad   :  { %8189 = vrot.lane.b32.xlu1 %v18235_v53, %s16350_s27 }
0x24b1   :  { %8185 = vrot.lane.b32.xlu1 %v18242_v31, %s16350_s27 }
0x24b4   :  { %8187 = vrot.lane.b32.xlu0 %v18260_v45, %s16350_s27 }
0x24b5   :  { %8183 = vrot.lane.b32.xlu1 %v18267_v38, %s16350_s27 }
0x24b8   :  { %8615 = vrot.lane.b32.xlu0 %v18118_v1, %s16354_s20 }
0x24b9   :  { %8613 = vrot.lane.b32.xlu1 %v18129_v11, %s16354_s20 }
0x251d   :  { %v8484_v59 = vpop.xlane.xlu1 %8483 }
0x251e   :  { %v8494_v52 = vsub.f32 %v18396_v48, %v8484_v59 }
0x2520   :  { %v8498_v49 = vmul.f32 1.442695, %v8494_v52  ;;  %v13515_v52 = vld [vmem:[%s19605_s7 + $0x1] ss:$0 sm:$0xff] }
0x2523   :  { %v8493_v40 = vpop.xlane.xlu0 %8492 }
0x2524   :  { %v8497_v2 = vsub.f32 %v15242_v23, %v8493_v40 }
0x2525   :  { %v8490_v60 = vpop.xlane.xlu1 %8489 }
0x2526   :  { %v8504_v8 = vmul.f32 1.442695, %v8497_v2  ;;  %v8496_v47 = vsub.f32 %v8473_v21, %v8490_v60  ;;  %v13508_v21 = vld [vmem:[%s19604_s6 + $0x30] sm:$0xff]  ;;  %v7770_v60 = vadd.f32 %v18328_v26, %v18352_v20 }
0x2527   :  { %v8487_v25 = vpop.xlane.xlu0 %8486 }
0x2528   :  { %16017 = vpow2.f32 %v8504_v8  ;;  %v8502_v6 = vmul.f32 1.442695, %v8496_v47  ;;  %v8495_v10 = vsub.f32 %v18394_v34, %v8487_v25  ;;  %v7765_v25 = vadd.f32 %v18330_v28, %v18354_v61 }
0x2529   :  { %v8190_v56 = vpop.permute.xlu1 %8189 }
0x252a   :  { %16019 = vpow2.f32 %v8502_v6  ;;  %15215 = vmatprep.subr.msk.mxu1 %vm305_vm1, %v8190_v56 }
0x252b   :  { %v8188_v43 = vpop.permute.xlu0 %8187  ;;  %15216 = vmatpush3.xpose.msk.msra.mxu1 %vm305_vm1, %v8190_v56  ;;  %16021 = vpow2.f32 %v8498_v49 }
0x252c   :  { %15217 = vmatprep.subr.msk.mxu1 %vm305_vm1, %v8188_v43 }
0x252d   :  { %v8186_v1 = vpop.permute.xlu1 %8185 }
0x252f   :  { %15218 = vmatpush3.xpose.msk.msra.mxu1 %vm305_vm1, %v8188_v43  ;;  %v8616_v14 = vpop.permute.xlu0 %8615 }
0x2530   :  { %15219 = vmatprep.subr.msk.mxu1 %vm305_vm1, %v8186_v1 }
0x2531   :  { %v8184_v11 = vpop.permute.xlu1 %8183 }
0x2533   :  { %15220 = vmatpush3.xpose.msk.msra.mxu1 %vm305_vm1, %v8186_v1  ;;  %v7780_v1 = vadd.f32 %v18332_v55, %v18356_v16 }
0x2534   :  { %15221 = vmatprep.subr.msk.mxu1 %vm305_vm1, %v8184_v11 }
0x2535   :  { %v16018_v32 = vpop.eup %16017  ;;  %v8614_v4 = vpop.permute.xlu1 %8613 }
0x2536   :  { %v8515_v44 = vsel %vm482_vm2, %v16018_v32, 0.0 }
0x2537   :  { %v16020_v0 = vpop.eup %16019  ;;  %8516 = vadd.xlane.f32.xlu0 %v8515_v44  ;;  %15222 = vmatpush3.xpose.msk.msra.mxu1 %vm305_vm1, %v8184_v11 }
0x2538   :  { %15250 = vmatprep.subr.mxu1 %v8616_v14  ;;  %v8512_v5 = vsel %vm482_vm2, %v16020_v0, 0.0  ;;  %v18444_v42 = vpop.eup %16021 }
0x2539   :  { %8513 = vadd.xlane.f32.xlu1 %v8512_v5  ;;  %v8506_v12 = vsel %vm482_vm2, %v18444_v42, 0.0 }
0x2564   :  { %8827 = vxpose.xlu0.b32.start [1/2] (short) (narrow) %v18093_v54, 32 }
0x2566   :  { %v15207_v50 = vpop.f32.mrf.mxu1 }
0x2568   :  { %8828 = vxpose.xlu0.b32.end [2/2] (short) (narrow) %v18095_v3, 32  ;;  %v8087_v46 = vpop.f32.mrf.mxu1 }
0x2569   :  { %15223 = vmatprep.mubr.msk.f32.mxu1 %vm305_vm1, %v8087_v46 }
0x256a   :  { %15224 = vmatmul.mubr.msk.f32.vlgmr.msra.gmra.mxu1 %vm305_vm1, %v15207_v50 }
0x256b   :  { %15251 = vmatpush3.msra.mxu1 %v8616_v14  ;;  %15226 = vmatprep.mubr.msk.f32.mxu1 %vm305_vm1, %v18392_v51  ;;  %v8500_v51 = vmul.f32 1.442695, %v8495_v10 }
0x256c   :  { %8859 = vxpose.xlu1.b32.start [1/2] (short) (narrow) %v18101_v33, 32  ;;  %15252 = vmatprep.subr.mxu1 %v8614_v4 }
0x256d   :  { %15253 = vmatpush3.msra.mxu1 %v8614_v4  ;;  %16023 = vpow2.f32 %v8500_v51 }
0x256e   :  { %15227 = vmatmul.mubr.msk.f32.gmra.mxu1 %vm305_vm1, %v18390_v29  ;;  %15271 = vmatprep.subr.msk.mxu1 %vm482_vm2, %v13513_v30 }
0x2570   :  { %8860 = vxpose.xlu1.b32.end [2/2] (short) (narrow) %v18103_v17, 32 }
0x257a   :  { %v18446_v27 = vpop.eup %16023 }
0x257b   :  { %v8509_v29 = vsel %vm482_vm2, %v18446_v27, 0.0 }
0x259d   :  { %8507 = vadd.xlane.f32.xlu0 %v8506_v12 }
0x259f   :  { %8510 = vadd.xlane.f32.xlu1 %v8509_v29 }
0x25b0   :  { %8526 = vrot.lane.b32.xlu1 %v18114_v13, %s16354_s20 }
0x25b3   :  { %8528 = vrot.lane.b32.xlu0 %v18112_v35, %s16354_s20 }
0x25b4   :  { %8704 = vrot.lane.b32.xlu1 %v18260_v45, %s16353_s16  ;;  %v13510_v45 = vld [vmem:[%s19604_s6 + $0x40] sm:$0xff] }
0x25b7   :  { %8706 = vrot.lane.b32.xlu0 %v18235_v53, %s16353_s16  ;;  %v13512_v53 = vld [vmem:[%s19604_s6 + $0x50] sm:$0xff] }
0x25b8   :  { %8700 = vrot.lane.b32.xlu1 %v18267_v38, %s16353_s16  ;;  %v13509_v38 = vld [vmem:[%s19604_s6 + $0x38] sm:$0xff] }
0x25bb   :  { %8702 = vrot.lane.b32.xlu0 %v18242_v31, %s16353_s16  ;;  %v13511_v31 = vld [vmem:[%s19604_s6 + $0x48] sm:$0xff] }
0x25c0   :  { %v8517_v34 = vpop.xlane.xlu0 %8516 }
0x25c1   :  { %16025 = vrcp.f32 %v8517_v34 }
0x25c2   :  { %v8514_v48 = vpop.xlane.xlu1 %8513 }
0x25c3   :  { %16027 = vrcp.f32 %v8514_v48 }
0x25ce   :  { %v16026_v13 = vpop.eup %16025 }
0x25cf   :  { %v8525_v35 = vmul.f32 %v16026_v13, %v16018_v32 }
0x25d0   :  { %v16028_v23 = vpop.eup %16027 }
0x25d1   :  { %v8524_v19 = vmul.f32 %v16028_v23, %v16020_v0 }
0x25d3   :  { %15254 = vmatprep.mubr.msk.f32.mxu1 %vm482_vm2, %v8524_v19 }
0x25d4   :  { %15255 = vmatmul.mubr.msk.f32.vlgmr.msra.gmra.mxu1 %vm482_vm2, %v8525_v35 }
0x25d5   :  { %15272 = vmatpush3.xpose.msk.msra.mxu1 %vm482_vm2, %v13513_v30 }
0x25d6   :  { %15273 = vmatprep.subr.msk.mxu1 %vm482_vm2, %v13512_v53 }
0x25d9   :  { %15274 = vmatpush3.xpose.msk.msra.mxu1 %vm482_vm2, %v13512_v53 }
0x25da   :  { %15275 = vmatprep.subr.msk.mxu1 %vm482_vm2, %v13511_v31 }
0x25dd   :  { %15276 = vmatpush3.xpose.msk.msra.mxu1 %vm482_vm2, %v13511_v31 }
0x25de   :  { %15277 = vmatprep.subr.msk.mxu1 %vm482_vm2, %v13510_v45 }
0x25e0   :  { %v8843_v36 = vpop.trf.xlu0 }
0x25e1   :  { %15278 = vmatpush3.xpose.msk.msra.mxu1 %vm482_vm2, %v13510_v45  ;;  %15283 = vmatprep.mubr.msk.f32.mxu1 %vm482_vm2, %v8843_v36 }
0x25e2   :  { %15279 = vmatprep.subr.msk.mxu1 %vm482_vm2, %v13509_v38 }
0x25e4   :  { %v8844_v37 = vpop.trf.xlu0 }
0x25e5   :  { %15280 = vmatpush3.xpose.msk.msra.mxu1 %vm482_vm2, %v13509_v38 }
0x25e6   :  { %15281 = vmatprep.subr.msk.mxu1 %vm482_vm2, %v13508_v21 }
0x25e8   :  { %v8845_v39 = vpop.trf.xlu0  ;;  %v8875_v58 = vpop.trf.xlu1 }
0x25e9   :  { %15282 = vmatpush3.xpose.msk.msra.mxu1 %vm482_vm2, %v13508_v21 }
0x25ec   :  { %15284 = vmatmul.mubr.msk.f32.vlgmr.msra.gmra.mxu1 %vm482_vm2, %v8844_v37  ;;  %v8876_v22 = vpop.trf.xlu1  ;;  %v8846_v7 = vpop.trf.xlu0 }
0x25ed   :  { %15286 = vmatprep.mubr.msk.f32.mxu1 %vm482_vm2, %v8845_v39 }
0x25f0   :  { %15287 = vmatmul.mubr.msk.f32.gmra.mxu1 %vm482_vm2, %v8846_v7  ;;  %v8877_v63 = vpop.trf.xlu1 }
0x25f1   :  { %15289 = vmatprep.mubr.msk.f32.mxu1 %vm482_vm2, %v8875_v58 }
0x25f4   :  { %15290 = vmatmul.mubr.msk.f32.gmra.mxu1 %vm482_vm2, %v8876_v22  ;;  %v8878_v59 = vpop.trf.xlu1 }
0x25f5   :  { %15292 = vmatprep.mubr.msk.f32.mxu1 %vm482_vm2, %v8877_v63 }
0x25f8   :  { %15293 = vmatmul.mubr.msk.f32.gmra.mxu1 %vm482_vm2, %v8878_v59 }
0x2626   :  { %v8508_v40 = vpop.xlane.xlu0 %8507 }
0x2627   :  { %16029 = vrcp.f32 %v8508_v40 }
0x2628   :  { %v8511_v2 = vpop.xlane.xlu1 %8510 }
0x2629   :  { %16031 = vrcp.f32 %v8511_v2 }
0x262a   :  { %v8529_v8 = vpop.permute.xlu0 %8528  ;;  %v15225_v47 = vpop.f32.mrf.mxu1 }
0x262b   :  { %v18504_v6 = vadd.f32 %v15225_v47, %v7770_v60  ;;  %15243 = vmatprep.subr.mxu0 %v8529_v8 }
0x262c   :  { %15244 = vmatpush3.msra.mxu0 %v8529_v8  ;;  %v8527_v56 = vpop.permute.xlu1 %8526  ;;  %v8277_v43 = vpop.f32.mrf.mxu1 }
0x262d   :  { %v18508_v11 = vadd.f32 %v8277_v43, %v7765_v25  ;;  %15245 = vmatprep.subr.mxu0 %v8527_v56 }
0x262e   :  { %15246 = vmatpush3.msra.mxu0 %v8527_v56  ;;  %v15228_v26 = vpop.f32.mrf.mxu1  ;;  %v8707_v0 = vpop.permute.xlu0 %8706 }
0x262f   :  { %v18510_v20 = vadd.f32 %v15228_v26, %v7780_v1  ;;  %15257 = vmatprep.subr.msk.mxu0 %vm305_vm1, %v8707_v0 }
0x2630   :  { %v8705_v14 = vpop.permute.xlu1 %8704  ;;  %v18524_v5 = vpop.f32.mrf.mxu1 }
0x2632   :  { %v8703_v55 = vpop.permute.xlu0 %8702 }
0x2634   :  { %v16030_v32 = vpop.eup %16029  ;;  %v8701_v16 = vpop.permute.xlu1 %8700 }
0x2635   :  { %v8522_v44 = vmul.f32 %v16030_v32, %v18444_v42 }
0x2636   :  { %v16032_v28 = vpop.eup %16031 }
0x2637   :  { %v8523_v61 = vmul.f32 %v16032_v28, %v18446_v27  ;;  %15247 = vmatprep.mubr.msk.f32.mxu0 %vm482_vm2, %v8522_v44 }
0x2639   :  { %15248 = vmatmul.mubr.msk.f32.vlgmr.msra.gmra.mxu0 %vm482_vm2, %v8523_v61 }
0x263a   :  { %15258 = vmatpush3.xpose.msk.msra.mxu0 %vm305_vm1, %v8707_v0 }
0x263b   :  { %15259 = vmatprep.subr.msk.mxu0 %vm305_vm1, %v8705_v14 }
0x263e   :  { %15260 = vmatpush3.xpose.msk.msra.mxu0 %vm305_vm1, %v8705_v14 }
0x263f   :  { %15261 = vmatprep.subr.msk.mxu0 %vm305_vm1, %v8703_v55 }
0x2642   :  { %15262 = vmatpush3.xpose.msk.msra.mxu0 %vm305_vm1, %v8703_v55 }
0x2643   :  { %15263 = vmatprep.subr.msk.mxu0 %vm305_vm1, %v8701_v16 }
0x2646   :  { %15264 = vmatpush3.xpose.msk.msra.mxu0 %vm305_vm1, %v8701_v16 }
0x2694   :  { %v15256_v50 = vpop.f32.mrf.mxu1 }
0x2696   :  { %v8691_v46 = vpop.f32.mrf.mxu1 }
0x26ac   :  { %v15285_v4 = vpop.f32.mrf.mxu1 }
0x26ad   :  { %v18535_v12 = vadd.f32 %v15285_v4, %v13515_v52  ;;  %v13507_v4 = vld [vmem:[%s19603_s5 + $0x1] ss:$0 sm:$0xff] }
0x26ae   :  { %v9019_v30 = vpop.f32.mrf.mxu1 }
0x26af   :  { %v18543_v13 = vadd.f32 %v13515_v52, %v9019_v30  ;;  %v18598_v38 = vmul.f32 0.5, %v18535_v12 }
0x26b0   :  { %v15288_v10 = vpop.f32.mrf.mxu1 }
0x26b1   :  { %v18529_v49 = vadd.f32 %v15288_v10, %v13515_v52  ;;  %v18585_v45 = vmul.f32 0.5, %v18543_v13 }
0x26b2   :  { %v9029_v51 = vpop.f32.mrf.mxu1 }
0x26b3   :  { %v18531_v42 = vadd.f32 %v13515_v52, %v9029_v51  ;;  %9076 = vrot.lane.b32.xlu0 %v18529_v49, %s16350_s27  ;;  %v18632_v8 = vmul.f32 0.5, %v18529_v49  ;;  %v7775_v51 = vadd.f32 %v18334_v15, %v18358_v62 }
0x26b4   :  { %v15291_v27 = vpop.f32.mrf.mxu1 }
0x26b5   :  { %9074 = vrot.lane.b32.xlu1 %v18531_v42, %s16350_s27  ;;  %v18558_v31 = vadd.f32 %v15291_v27, %v13515_v52  ;;  %v18624_v2 = vmul.f32 0.5, %v18531_v42 }
0x26b6   :  { %v9039_v29 = vpop.f32.mrf.mxu1 }
0x26b7   :  { %v18539_v34 = vadd.f32 %v13515_v52, %v9039_v29  ;;  %9072 = vrot.lane.b32.xlu0 %v18535_v12, %s16350_s27  ;;  %v18641_v43 = vmul.f32 0.5, %v18558_v31 }
0x26b8   :  { %v15294_v48 = vpop.f32.mrf.mxu1 }
0x26b9   :  { %v18545_v23 = vadd.f32 %v15294_v48, %v13515_v52  ;;  %v18548_v19 = vmul.f32 0.5, %v18539_v34 }
0x26ba   :  { %v9049_v35 = vpop.f32.mrf.mxu1 }
0x26bb   :  { %9070 = vrot.lane.b32.xlu0 %v18543_v13, %s16350_s27  ;;  %15317 = vmatprep.mubr.msk.f32.mxu1 %vm2614_vm3, %v18548_v19  ;;  %v18556_v53 = vadd.f32 %v13515_v52, %v9049_v35  ;;  %v18651_v44 = vmul.f32 0.5, %v18545_v23  ;;  %v8298_v35 = vadd.f32 %v18524_v5, %v7775_v51 }
0x26bc   :  { %9193 = vrot.lane.b32.xlu1 %v18545_v23, %s16350_s27 }
0x26bd   :  { %v18644_v26 = vmul.f32 0.5, %v18556_v53 }
0x26bf   :  { %9189 = vrot.lane.b32.xlu0 %v18558_v31, %s16350_s27 }
0x26c0   :  { %9191 = vrot.lane.b32.xlu1 %v18556_v53, %s16350_s27 }
0x26c3   :  { %9392 = vrot.lane.b32.xlu0 %v18531_v42, %s16345_s22 }
0x26c4   :  { %9187 = vrot.lane.b32.xlu1 %v18539_v34, %s16350_s27  ;;  %s19653_s27 = smov 100  }
0x26c7   :  { %9503 = vrot.lane.b32.xlu0 %v18545_v23, %s16345_s22 }
0x26c8   :  { %9394 = vrot.lane.b32.xlu1 %v18529_v49, %s16345_s22 }
0x26cb   :  { %9618 = vrot.lane.b32.xlu0 %v18531_v42, %s16355_s9 }
0x26cc   :  { %9390 = vrot.lane.b32.xlu1 %v18535_v12, %s16345_s22 }
0x26cf   :  { %9616 = vrot.lane.b32.xlu0 %v18535_v12, %s16355_s9 }
0x26d0   :  { %9388 = vrot.lane.b32.xlu1 %v18543_v13, %s16345_s22 }
0x26d3   :  { %9614 = vrot.lane.b32.xlu0 %v18543_v13, %s16355_s9 }
0x26d4   :  { %9620 = vrot.lane.b32.xlu1 %v18529_v49, %s16355_s9 }
0x26d7   :  { %9606 = vrot.lane.b32.xlu0 %v18585_v45, %s16356_s15 }
0x26d8   :  { %9499 = vrot.lane.b32.xlu1 %v18558_v31, %s16345_s22 }
0x26db   :  { %9501 = vrot.lane.b32.xlu0 %v18556_v53, %s16345_s22 }
0x26dc   :  { %9497 = vrot.lane.b32.xlu1 %v18539_v34, %s16345_s22 }
0x26e0   :  { %9737 = vrot.lane.b32.xlu1 %v18545_v23, %s16355_s9 }
0x26e4   :  { %9608 = vrot.lane.b32.xlu1 %v18598_v38, %s16356_s15 }
0x26e8   :  { %9735 = vrot.lane.b32.xlu1 %v18556_v53, %s16355_s9 }
0x26f9   :  { %v15249_v36 = vpop.f32.mrf.mxu0 }
0x26fb   :  { %v8604_v21 = vpop.f32.mrf.mxu0 }
0x26fc   :  { %15265 = vmatprep.mubr.msk.f32.mxu0 %vm305_vm1, %v8604_v21 }
0x26fd   :  { %15266 = vmatmul.mubr.msk.f32.vlgmr.msra.gmra.mxu0 %vm305_vm1, %v15249_v36 }
0x26fe   :  { %15268 = vmatprep.mubr.msk.f32.mxu0 %vm305_vm1, %v8691_v46 }
0x2701   :  { %15269 = vmatmul.mubr.msk.f32.gmra.mxu0 %vm305_vm1, %v15256_v50 }
0x2702   :  { %15303 = vmatprep.mubr.msk.f32.mxu0 %vm2614_vm3, %v18585_v45 }
0x2725   :  { %v9077_v37 = vpop.permute.xlu0 %9076 }
0x2726   :  { %15295 = vmatprep.subr.msk.mxu0 %vm2614_vm3, %v9077_v37 }
0x2727   :  { %15296 = vmatpush3.xpose.msk.msra.mxu0 %vm2614_vm3, %v9077_v37  ;;  %v9075_v39 = vpop.permute.xlu1 %9074 }
0x2728   :  { %15297 = vmatprep.subr.msk.mxu0 %vm2614_vm3, %v9075_v39 }
0x2729   :  { %v9073_v58 = vpop.permute.xlu0 %9072 }
0x272b   :  { %15298 = vmatpush3.xpose.msk.msra.mxu0 %vm2614_vm3, %v9075_v39 }
0x272c   :  { %15299 = vmatprep.subr.msk.mxu0 %vm2614_vm3, %v9073_v58 }
0x272d   :  { %v9071_v22 = vpop.permute.xlu0 %9070 }
0x272e   :  { %v9194_v7 = vpop.permute.xlu1 %9193 }
0x272f   :  { %15309 = vmatprep.subr.msk.mxu1 %vm2614_vm3, %v9194_v7  ;;  %15300 = vmatpush3.xpose.msk.msra.mxu0 %vm2614_vm3, %v9073_v58 }
0x2730   :  { %15310 = vmatpush3.xpose.msk.msra.mxu1 %vm2614_vm3, %v9194_v7  ;;  %15301 = vmatprep.subr.msk.mxu0 %vm2614_vm3, %v9071_v22 }
0x2731   :  { %v9190_v63 = vpop.permute.xlu0 %9189 }
0x2732   :  { %v9192_v59 = vpop.permute.xlu1 %9191 }
0x2733   :  { %15311 = vmatprep.subr.msk.mxu1 %vm2614_vm3, %v9192_v59  ;;  %15302 = vmatpush3.xpose.msk.msra.mxu0 %vm2614_vm3, %v9071_v22 }
0x2734   :  { %15312 = vmatpush3.xpose.msk.msra.mxu1 %vm2614_vm3, %v9192_v59 }
0x2735   :  { %15313 = vmatprep.subr.msk.mxu1 %vm2614_vm3, %v9190_v63  ;;  %v9393_v40 = vpop.permute.xlu0 %9392 }
0x2736   :  { %v9188_v60 = vpop.permute.xlu1 %9187  ;;  %15304 = vmatmul.mubr.msk.f32.vlgmr.msra.gmra.mxu0 %vm2614_vm3, %v18598_v38 }
0x2737   :  { %15306 = vmatprep.mubr.msk.f32.mxu0 %vm2614_vm3, %v18624_v2 }
0x2738   :  { %15314 = vmatpush3.xpose.msk.msra.mxu1 %vm2614_vm3, %v9190_v63 }
0x2739   :  { %15315 = vmatprep.subr.msk.mxu1 %vm2614_vm3, %v9188_v60  ;;  %v18635_v47 = vpop.permute.xlu0 %9503 }
0x273a   :  { %v9395_v25 = vpop.permute.xlu1 %9394  ;;  %15307 = vmatmul.mubr.msk.f32.gmra.mxu0 %vm2614_vm3, %v18632_v8 }
0x273b   :  { %15323 = vmatprep.subr.mxu0 %v9395_v25 }
0x273c   :  { %15316 = vmatpush3.xpose.msk.msra.mxu1 %vm2614_vm3, %v9188_v60  ;;  %15324 = vmatpush3.msra.mxu0 %v9395_v25 }
0x273d   :  { %15325 = vmatprep.subr.mxu0 %v9393_v40  ;;  %v9619_v56 = vpop.permute.xlu0 %9618 }
0x273e   :  { %15326 = vmatpush3.msra.mxu0 %v9393_v40  ;;  %v9391_v1 = vpop.permute.xlu1 %9390 }
0x273f   :  { %15318 = vmatmul.mubr.msk.f32.vlgmr.msra.gmra.mxu1 %vm2614_vm3, %v18641_v43  ;;  %15327 = vmatprep.subr.mxu0 %v9391_v1 }
0x2740   :  { %15320 = vmatprep.mubr.msk.f32.mxu1 %vm2614_vm3, %v18644_v26  ;;  %15328 = vmatpush3.msra.mxu0 %v9391_v1 }
0x2741   :  { %v9617_v32 = vpop.permute.xlu0 %9616 }
0x2742   :  { %v9389_v28 = vpop.permute.xlu1 %9388 }
0x2743   :  { %15321 = vmatmul.mubr.msk.f32.gmra.mxu1 %vm2614_vm3, %v18651_v44  ;;  %15329 = vmatprep.subr.mxu0 %v9389_v28 }
0x2744   :  { %15330 = vmatpush3.msra.mxu0 %v9389_v28 }
0x2745   :  { %15337 = vmatprep.subr.mxu0 %v18635_v47  ;;  %v9615_v61 = vpop.permute.xlu0 %9614 }
0x2746   :  { %v9621_v0 = vpop.permute.xlu1 %9620 }
0x2747   :  { %15351 = vmatprep.subr.msk.mxu1 %vm2614_vm3, %v9621_v0 }
0x2748   :  { %15352 = vmatpush3.xpose.msk.msra.mxu1 %vm2614_vm3, %v9621_v0 }
0x2749   :  { %15353 = vmatprep.subr.msk.mxu1 %vm2614_vm3, %v9619_v56  ;;  %v9607_v14 = vpop.permute.xlu0 %9606 }
0x274a   :  { %v18659_v55 = vpop.permute.xlu1 %9499  ;;  %15359 = vmatprep.mubr.msk.f32.mxu1 %vm2614_vm3, %v9607_v14 }
0x274c   :  { %15354 = vmatpush3.xpose.msk.msra.mxu1 %vm2614_vm3, %v9619_v56 }
0x274d   :  { %15355 = vmatprep.subr.msk.mxu1 %vm2614_vm3, %v9617_v32 }
0x274e   :  { %v18664_v16 = vpop.permute.xlu1 %9497 }
0x2750   :  { %15356 = vmatpush3.xpose.msk.msra.mxu1 %vm2614_vm3, %v9617_v32 }
0x2751   :  { %15357 = vmatprep.subr.msk.mxu1 %vm2614_vm3, %v9615_v61 }
0x2752   :  { %v18668_v50 = vpop.permute.xlu1 %9737 }
0x2754   :  { %15358 = vmatpush3.xpose.msk.msra.mxu1 %vm2614_vm3, %v9615_v61  ;;  %v18706_v61 = vpop.permute.xlu0 %9501 }
0x2756   :  { %v9609_v46 = vpop.permute.xlu1 %9608 }
0x2757   :  { %15360 = vmatmul.mubr.msk.f32.vlgmr.msra.gmra.mxu1 %vm2614_vm3, %v9609_v46 }
0x275a   :  { %v18704_v28 = vpop.permute.xlu1 %9735 }
0x27bd   :  { %v15267_v30 = vpop.f32.mrf.mxu0 }
0x27be   :  { %v8814_v52 = vadd.f32 %v15267_v30, %v18504_v6 }
0x27bf   :  { %v8794_v10 = vpop.f32.mrf.mxu0 }
0x27c0   :  { %v18678_v27 = vadd.f32 %v13507_v4, %v8814_v52  ;;  %v18681_v29 = vadd.f32 %v8794_v10, %v18508_v11 }
0x27c1   :  { %v15270_v48 = vpop.f32.mrf.mxu0 }
0x27c2   :  { %v8816_v36 = vadd.f32 %v15270_v48, %v18510_v20 }
0x27c3   :  { %v8804_v21 = vpop.f32.mrf.mxu0 }
0x27c4   :  { %v18685_v37 = vadd.f32 %v13507_v4, %v8816_v36  ;;  %v8815_v39 = vadd.f32 %v8804_v21, %v8298_v35 }
0x27c6   :  { %19651 = vst [vmem:[#allocation23_spill] sm:$0xff] %v18685_v37  ;;  %v18687_v58 = vadd.f32 %v13507_v4, %v8815_v39 }
0x27c8   :  { %19652 = vst [vmem:[#allocation22_spill] sm:$0xff] %v18687_v58 }
0x27f6   :  { %v15305_v6 = vpop.f32.mrf.mxu0 }
0x27f7   :  { %v9303_v22 = vsel %vm161_vm0, %v15305_v6, -inf }
0x27f8   :  { %9304 = vmax.xlane.f32.xlu1 %v9303_v22  ;;  %v9164_v15 = vpop.f32.mrf.mxu0 }
0x27f9   :  { %v9300_v62 = vsel %vm161_vm0, %v9164_v15, -inf }
0x27fa   :  { %9301 = vmax.xlane.f32.xlu0 %v9300_v62  ;;  %v15308_v11 = vpop.f32.mrf.mxu0 }
0x27fb   :  { %v9309_v7 = vsel %vm161_vm0, %v15308_v11, -inf }
0x27fc   :  { %v9174_v5 = vpop.f32.mrf.mxu0 }
0x27fd   :  { %v9306_v59 = vsel %vm161_vm0, %v9174_v5, -inf }
0x27fe   :  { %9310 = vmax.xlane.f32.xlu0 %v9309_v7 }
0x27ff   :  { %v15319_v20 = vpop.f32.mrf.mxu1 }
0x2800   :  { %v9315_v56 = vsel %vm161_vm0, %v15319_v20, -inf }
0x2801   :  { %v9281_v63 = vpop.f32.mrf.mxu1 }
0x2802   :  { %9307 = vmax.xlane.f32.xlu0 %v9306_v59  ;;  %v9312_v40 = vsel %vm161_vm0, %v9281_v63, -inf }
0x2803   :  { %9313 = vmax.xlane.f32.xlu1 %v9312_v40  ;;  %v18694_v60 = vpop.f32.mrf.mxu1 }
0x2804   :  { %v9321_v32 = vsel %vm161_vm0, %v18694_v60, -inf }
0x2805   :  { %v9291_v25 = vpop.f32.mrf.mxu1 }
0x2806   :  { %9316 = vmax.xlane.f32.xlu0 %v9315_v56  ;;  %v9318_v1 = vsel %vm161_vm0, %v9291_v25, -inf }
0x2807   :  { %9319 = vmax.xlane.f32.xlu1 %v9318_v1 }
0x280a   :  { %9322 = vmax.xlane.f32.xlu0 %v9321_v32 }
0x2818   :  { %9610 = vrot.lane.b32.xlu1 %v18624_v2, %s16356_s15 }
0x2820   :  { %9733 = vrot.lane.b32.xlu0 %v18558_v31, %s16355_s9 }
0x2881   :  { %v9305_v0 = vpop.xlane.xlu1 %9304 }
0x2882   :  { %v9325_v14 = vsub.f32 %v15305_v6, %v9305_v0 }
0x2883   :  { %v9302_v46 = vpop.xlane.xlu0 %9301 }
0x2884   :  { %v9334_v4 = vmul.f32 1.442695, %v9325_v14  ;;  %v9324_v30 = vsub.f32 %v9164_v15, %v9302_v46 }
0x2886   :  { %16033 = vpow2.f32 %v9334_v4  ;;  %v9332_v52 = vmul.f32 1.442695, %v9324_v30 }
0x2887   :  { %v9311_v10 = vpop.xlane.xlu0 %9310 }
0x2888   :  { %16035 = vpow2.f32 %v9332_v52  ;;  %v9327_v51 = vsub.f32 %v15308_v11, %v9311_v10 }
0x288a   :  { %v9338_v48 = vmul.f32 1.442695, %v9327_v51 }
0x288b   :  { %v9308_v35 = vpop.xlane.xlu0 %9307 }
0x288c   :  { %16037 = vpow2.f32 %v9338_v48  ;;  %v9326_v36 = vsub.f32 %v9174_v5, %v9308_v35  ;;  %v9314_v21 = vpop.xlane.xlu1 %9313 }
0x288d   :  { %v9328_v39 = vsub.f32 %v9281_v63, %v9314_v21 }
0x288e   :  { %v9336_v22 = vmul.f32 1.442695, %v9326_v36 }
0x288f   :  { %v9340_v62 = vmul.f32 1.442695, %v9328_v39  ;;  %v9317_v7 = vpop.xlane.xlu0 %9316 }
0x2890   :  { %16039 = vpow2.f32 %v9336_v22  ;;  %v9329_v59 = vsub.f32 %v15319_v20, %v9317_v7  ;;  %v9320_v6 = vpop.xlane.xlu1 %9319 }
0x2891   :  { %16041 = vpow2.f32 %v9340_v62  ;;  %v9330_v10 = vsub.f32 %v9291_v25, %v9320_v6 }
0x2892   :  { %v9342_v40 = vmul.f32 1.442695, %v9329_v59 }
0x2893   :  { %v16034_v15 = vpop.eup %16033  ;;  %v9323_v52 = vpop.xlane.xlu0 %9322  ;;  %v9344_v48 = vmul.f32 1.442695, %v9330_v10 }
0x2894   :  { %16043 = vpow2.f32 %v9342_v40  ;;  %v9611_v56 = vpop.permute.xlu1 %9610  ;;  %v9351_v1 = vsel %vm161_vm0, %v16034_v15, 0.0  ;;  %v9331_v51 = vsub.f32 %v18694_v60, %v9323_v52  ;;  %v18745_v60 = vpop.f32.mrf.mxu1 }
0x2895   :  { %v16036_v11 = vpop.eup %16035  ;;  %15362 = vmatprep.mubr.msk.f32.mxu1 %vm2614_vm3, %v9611_v56  ;;  %9352 = vadd.xlane.f32.xlu0 %v9351_v1  ;;  %16045 = vpow2.f32 %v9344_v48  ;;  %v9843_v7 = vsel %vm161_vm0, %v18745_v60, -inf }
0x2896   :  { %v9348_v5 = vsel %vm161_vm0, %v16036_v11, 0.0  ;;  %v9346_v35 = vmul.f32 1.442695, %v9331_v51  ;;  %v18747_v25 = vpop.f32.mrf.mxu1 }
0x2897   :  { %9349 = vadd.xlane.f32.xlu1 %v9348_v5  ;;  %v9840_v62 = vsel %vm161_vm0, %v18747_v25, -inf  ;;  %v9734_v59 = vpop.permute.xlu0 %9733 }
0x2898   :  { %16047 = vpow2.f32 %v9346_v35 }
0x2899   :  { %v18711_v63 = vpop.eup %16037 }
0x289a   :  { %v9357_v20 = vsel %vm161_vm0, %v18711_v63, 0.0 }
0x289b   :  { %9358 = vadd.xlane.f32.xlu0 %v9357_v20 }
0x289d   :  { %v16040_v32 = vpop.eup %16039 }
0x289e   :  { %v9354_v0 = vsel %vm161_vm0, %v16040_v32, 0.0  ;;  %v18716_v14 = vpop.eup %16041 }
0x289f   :  { %9355 = vadd.xlane.f32.xlu1 %v9354_v0  ;;  %v9360_v30 = vsel %vm161_vm0, %v18716_v14, 0.0 }
0x28a1   :  { %v18718_v46 = vpop.eup %16043 }
0x28a2   :  { %v9363_v4 = vsel %vm161_vm0, %v18718_v46, 0.0  ;;  %v18729_v36 = vpop.eup %16045 }
0x28a3   :  { %9364 = vadd.xlane.f32.xlu0 %v9363_v4  ;;  %9361 = vadd.xlane.f32.xlu1 %v9360_v30  ;;  %v9366_v22 = vsel %vm161_vm0, %v18729_v36, 0.0 }
0x28a5   :  { %v18731_v21 = vpop.eup %16047 }
0x28a6   :  { %v9369_v39 = vsel %vm161_vm0, %v18731_v21, 0.0 }
0x28b4   :  { %9731 = vrot.lane.b32.xlu1 %v18539_v34, %s16355_s9 }
0x28b9   :  { %9612 = vrot.lane.b32.xlu0 %v18632_v8, %s16356_s15 }
0x28d8   :  { %9370 = vadd.xlane.f32.xlu0 %v9369_v39  ;;  %9367 = vadd.xlane.f32.xlu1 %v9366_v22 }
0x28e9   :  { %9725 = vrot.lane.b32.xlu1 %v18641_v43, %s16356_s15 }
0x28ed   :  { %9729 = vrot.lane.b32.xlu1 %v18651_v44, %s16356_s15 }
0x28ee   :  { %9723 = vrot.lane.b32.xlu0 %v18548_v19, %s16356_s15 }
0x28f2   :  { %9727 = vrot.lane.b32.xlu0 %v18644_v26, %s16356_s15 }
0x2911   :  { %9841 = vmax.xlane.f32.xlu0 %v9840_v62  ;;  %9844 = vmax.xlane.f32.xlu1 %v9843_v7 }
0x291e   :  { %v9353_v6 = vpop.xlane.xlu0 %9352 }
0x291f   :  { %16049 = vrcp.f32 %v9353_v6 }
0x2920   :  { %v9350_v40 = vpop.xlane.xlu1 %9349 }
0x2921   :  { %16051 = vrcp.f32 %v9350_v40 }
0x2924   :  { %v9359_v56 = vpop.xlane.xlu0 %9358 }
0x2925   :  { %16053 = vrcp.f32 %v9359_v56 }
0x2928   :  { %v9356_v1 = vpop.xlane.xlu1 %9355 }
0x2929   :  { %16055 = vrcp.f32 %v9356_v1 }
0x292c   :  { %v9365_v5 = vpop.xlane.xlu0 %9364  ;;  %v9362_v20 = vpop.xlane.xlu1 %9361 }
0x292d   :  { %v16050_v0 = vpop.eup %16049  ;;  %16057 = vrcp.f32 %v9365_v5 }
0x292e   :  { %v16052_v4 = vpop.eup %16051  ;;  %16059 = vrcp.f32 %v9362_v20  ;;  %v9381_v52 = vmul.f32 %v16050_v0, %v16034_v15 }
0x292f   :  { %v9380_v30 = vmul.f32 %v16052_v4, %v16036_v11 }
0x2930   :  { %v9613_v10 = vpop.permute.xlu0 %9612 }
0x2931   :  { %15331 = vmatprep.mubr.msk.f32.mxu0 %vm161_vm0, %v9380_v30  ;;  %15363 = vmatmul.mubr.msk.f32.gmra.mxu1 %vm2614_vm3, %v9613_v10 }
0x2932   :  { %15332 = vmatmul.mubr.msk.f32.vlgmr.msra.gmra.mxu0 %vm161_vm0, %v9381_v52  ;;  %v16054_v51 = vpop.eup %16053 }
0x2933   :  { %15338 = vmatpush3.msra.mxu0 %v18635_v47  ;;  %v9383_v11 = vmul.f32 %v16054_v51, %v18711_v63 }
0x2934   :  { %15339 = vmatprep.subr.mxu0 %v18706_v61 }
0x2935   :  { %15340 = vmatpush3.msra.mxu0 %v18706_v61 }
0x2936   :  { %v16056_v48 = vpop.eup %16055  ;;  %15341 = vmatprep.subr.mxu0 %v18659_v55 }
0x2937   :  { %15342 = vmatpush3.msra.mxu0 %v18659_v55  ;;  %v9382_v15 = vmul.f32 %v16056_v48, %v16040_v32 }
0x2938   :  { %15343 = vmatprep.subr.mxu0 %v18664_v16 }
0x2939   :  { %15344 = vmatpush3.msra.mxu0 %v18664_v16  ;;  %15334 = vmatprep.mubr.msk.f32.mxu0 %vm161_vm0, %v9382_v15  ;;  %v9732_v16 = vpop.permute.xlu1 %9731 }
0x293a   :  { %v16058_v47 = vpop.eup %16057  ;;  %15365 = vmatprep.subr.msk.mxu0 %vm2614_vm3, %v18668_v50  ;;  %15335 = vmatmul.mubr.msk.f32.gmra.mxu0 %vm161_vm0, %v9383_v11 }
0x293b   :  { %v16060_v61 = vpop.eup %16059  ;;  %v9385_v35 = vmul.f32 %v16058_v47, %v18718_v46 }
0x293c   :  { %v9384_v55 = vmul.f32 %v16060_v61, %v18716_v14 }
0x293e   :  { %15345 = vmatprep.mubr.msk.f32.mxu0 %vm161_vm0, %v9384_v55 }
0x293f   :  { %15346 = vmatmul.mubr.msk.f32.vlgmr.msra.gmra.mxu0 %vm161_vm0, %v9385_v35 }
0x2940   :  { %15366 = vmatpush3.xpose.msk.msra.mxu0 %vm2614_vm3, %v18668_v50 }
0x2941   :  { %15367 = vmatprep.subr.msk.mxu0 %vm2614_vm3, %v18704_v28 }
0x2944   :  { %15368 = vmatpush3.xpose.msk.msra.mxu0 %vm2614_vm3, %v18704_v28 }
0x2945   :  { %15369 = vmatprep.subr.msk.mxu0 %vm2614_vm3, %v9734_v59 }
0x2948   :  { %15370 = vmatpush3.xpose.msk.msra.mxu0 %vm2614_vm3, %v9734_v59 }
0x2949   :  { %15371 = vmatprep.subr.msk.mxu0 %vm2614_vm3, %v9732_v16 }
0x294c   :  { %15372 = vmatpush3.xpose.msk.msra.mxu0 %vm2614_vm3, %v9732_v16 }
0x2961   :  { %v9371_v63 = vpop.xlane.xlu0 %9370  ;;  %v9368_v32 = vpop.xlane.xlu1 %9367 }
0x2962   :  { %16061 = vrcp.f32 %v9371_v63 }
0x2963   :  { %16063 = vrcp.f32 %v9368_v32 }
0x2965   :  { %v9724_v28 = vpop.permute.xlu0 %9723  ;;  %v9726_v22 = vpop.permute.xlu1 %9725 }
0x2969   :  { %v9728_v62 = vpop.permute.xlu0 %9727  ;;  %v9730_v7 = vpop.permute.xlu1 %9729 }
0x296f   :  { %v16062_v50 = vpop.eup %16061 }
0x2970   :  { %v16064_v14 = vpop.eup %16063  ;;  %v9387_v46 = vmul.f32 %v16062_v50, %v18731_v21 }
0x2971   :  { %v9386_v39 = vmul.f32 %v16064_v14, %v18729_v36 }
0x2973   :  { %15348 = vmatprep.mubr.msk.f32.mxu0 %vm161_vm0, %v9386_v39 }
0x2974   :  { %15349 = vmatmul.mubr.msk.f32.gmra.mxu0 %vm161_vm0, %v9387_v46 }
0x2975   :  { %15373 = vmatprep.mubr.msk.f32.mxu0 %vm2614_vm3, %v9724_v28 }
0x2978   :  { %15374 = vmatmul.mubr.msk.f32.vlgmr.msra.gmra.mxu0 %vm2614_vm3, %v9726_v22 }
0x2979   :  { %15376 = vmatprep.mubr.msk.f32.mxu0 %vm2614_vm3, %v9728_v62 }
0x297c   :  { %15377 = vmatmul.mubr.msk.f32.gmra.mxu0 %vm2614_vm3, %v9730_v7 }
0x299a   :  { %v9845_v1 = vpop.xlane.xlu1 %9844  ;;  %v9842_v20 = vpop.xlane.xlu0 %9841 }
0x299b   :  { %v9865_v0 = vsub.f32 %v18745_v60, %v9845_v1  ;;  %v9864_v30 = vsub.f32 %v18747_v25, %v9842_v20 }
0x299d   :  { %v9874_v52 = vmul.f32 1.442695, %v9865_v0  ;;  %v9872_v51 = vmul.f32 1.442695, %v9864_v30 }
0x299f   :  { %16065 = vpow2.f32 %v9874_v52 }
0x29a0   :  { %16067 = vpow2.f32 %v9872_v51 }
0x29ac   :  { %v18813_v16 = vpop.eup %16065 }
0x29ad   :  { %v16068_v50 = vpop.eup %16067  ;;  %v9891_v14 = vsel %vm161_vm0, %v18813_v16, 0.0 }
0x29ae   :  { %v9888_v46 = vsel %vm161_vm0, %v16068_v50, 0.0 }
0x29f1   :  { %v15364_v59 = vpop.f32.mrf.mxu1 }
0x29f2   :  { %v9849_v6 = vsel %vm161_vm0, %v15364_v59, -inf  ;;  %v18792_v40 = vpop.f32.mrf.mxu0 }
0x29f3   :  { %v9714_v21 = vpop.f32.mrf.mxu1 }
0x29f4   :  { %v9846_v36 = vsel %vm161_vm0, %v9714_v21, -inf  ;;  %v18794_v56 = vpop.f32.mrf.mxu0 }
0x29f5   :  { %9847 = vmax.xlane.f32.xlu0 %v9846_v36 }
0x29f9   :  { %9850 = vmax.xlane.f32.xlu0 %v9849_v6 }
0x29fa   :  { %v18796_v5 = vpop.f32.mrf.mxu0 }
0x29fc   :  { %v18799_v4 = vpop.f32.mrf.mxu0 }
0x29ff   :  { %v18802_v10 = vpop.f32.mrf.mxu0 }
0x2a01   :  { %v18804_v48 = vpop.f32.mrf.mxu0 }
0x2a34   :  { %v18806_v15 = vpop.f32.mrf.mxu0 }
0x2a36   :  { %v18808_v11 = vpop.f32.mrf.mxu0 }
0x2a38   :  { %v15375_v47 = vpop.f32.mrf.mxu0 }
0x2a39   :  { %v9855_v61 = vsel %vm161_vm0, %v15375_v47, -inf }
0x2a3a   :  { %9856 = vmax.xlane.f32.xlu0 %v9855_v61  ;;  %v9821_v60 = vpop.f32.mrf.mxu0 }
0x2a3b   :  { %v9852_v35 = vsel %vm161_vm0, %v9821_v60, -inf }
0x2a3c   :  { %9853 = vmax.xlane.f32.xlu1 %v9852_v35  ;;  %v15378_v25 = vpop.f32.mrf.mxu0 }
0x2a3d   :  { %v9861_v55 = vsel %vm161_vm0, %v15378_v25, -inf }
0x2a3e   :  { %9862 = vmax.xlane.f32.xlu0 %v9861_v55  ;;  %v9831_v63 = vpop.f32.mrf.mxu0 }
0x2a3f   :  { %v9858_v32 = vsel %vm161_vm0, %v9831_v63, -inf }
0x2a40   :  { %9859 = vmax.xlane.f32.xlu1 %v9858_v32 }
0x2a42   :  { %9892 = vadd.xlane.f32.xlu0 %v9891_v14 }
0x2a44   :  { %9889 = vadd.xlane.f32.xlu1 %v9888_v46 }
0x2a7e   :  { %v9848_v39 = vpop.xlane.xlu0 %9847 }
0x2a7f   :  { %v9866_v28 = vsub.f32 %v9714_v21, %v9848_v39 }
0x2a81   :  { %v9876_v22 = vmul.f32 1.442695, %v9866_v28 }
0x2a82   :  { %v9851_v62 = vpop.xlane.xlu0 %9850 }
0x2a83   :  { %16069 = vpow2.f32 %v9876_v22  ;;  %v9867_v7 = vsub.f32 %v15364_v59, %v9851_v62 }
0x2a85   :  { %v9878_v36 = vmul.f32 1.442695, %v9867_v7 }
0x2a87   :  { %16071 = vpow2.f32 %v9878_v36 }
0x2a90   :  { %v18819_v6 = vpop.eup %16069 }
0x2a91   :  { %v9894_v1 = vsel %vm161_vm0, %v18819_v6, 0.0 }
0x2a92   :  { %9895 = vadd.xlane.f32.xlu1 %v9894_v1 }
0x2a94   :  { %v18823_v20 = vpop.eup %16071 }
0x2a95   :  { %v9897_v0 = vsel %vm161_vm0, %v18823_v20, 0.0 }
0x2a96   :  { %9898 = vadd.xlane.f32.xlu0 %v9897_v0 }
0x2aa3   :  { %9934 = vrot.lane.b32.xlu1 %v18529_v49, %s16357_s30 }
0x2aa7   :  { %9930 = vrot.lane.b32.xlu1 %v18535_v12, %s16357_s30 }
0x2aab   :  { %9928 = vrot.lane.b32.xlu1 %v18543_v13, %s16357_s30 }
0x2aac   :  { %9932 = vrot.lane.b32.xlu0 %v18531_v42, %s16357_s30 }
0x2aaf   :  { %10041 = vrot.lane.b32.xlu1 %v18556_v53, %s16357_s30 }
0x2ab0   :  { %10043 = vrot.lane.b32.xlu0 %v18545_v23, %s16357_s30 }
0x2ac3   :  { %v9857_v59 = vpop.xlane.xlu0 %9856 }
0x2ac4   :  { %v9869_v21 = vsub.f32 %v15375_v47, %v9857_v59  ;;  %v18858_v59 = vld [vmem:[#allocation6 + $0x10] sm:$0xff] }
0x2ac5   :  { %v9854_v30 = vpop.xlane.xlu1 %9853 }
0x2ac6   :  { %v9882_v52 = vmul.f32 1.442695, %v9869_v21  ;;  %v9868_v51 = vsub.f32 %v9821_v60, %v9854_v30  ;;  %v18864_v21 = vld [vmem:[#allocation6 + $0x18] sm:$0xff] }
0x2ac7   :  { %v9863_v61 = vpop.xlane.xlu0 %9862 }
0x2ac8   :  { %16073 = vpow2.f32 %v9882_v52  ;;  %v9880_v35 = vmul.f32 1.442695, %v9868_v51  ;;  %v9871_v55 = vsub.f32 %v15378_v25, %v9863_v61 }
0x2ac9   :  { %v9860_v32 = vpop.xlane.xlu1 %9859 }
0x2aca   :  { %16075 = vpow2.f32 %v9880_v35  ;;  %v9886_v14 = vmul.f32 1.442695, %v9871_v55  ;;  %v9870_v46 = vsub.f32 %v9831_v63, %v9860_v32 }
0x2acc   :  { %16077 = vpow2.f32 %v9886_v14  ;;  %v9884_v39 = vmul.f32 1.442695, %v9870_v46 }
0x2acd   :  { %v9890_v28 = vpop.xlane.xlu1 %9889 }
0x2ace   :  { %16079 = vpow2.f32 %v9884_v39 }
0x2acf   :  { %16081 = vrcp.f32 %v9890_v28 }
0x2ad5   :  { %v18839_v22 = vpop.eup %16073 }
0x2ad6   :  { %v9903_v47 = vsel %vm161_vm0, %v18839_v22, 0.0 }
0x2ad7   :  { %v18843_v62 = vpop.eup %16075  ;;  %9904 = vadd.xlane.f32.xlu0 %v9903_v47 }
0x2ad8   :  { %v9900_v60 = vsel %vm161_vm0, %v18843_v62, 0.0 }
0x2ad9   :  { %v18847_v25 = vpop.eup %16077  ;;  %9901 = vadd.xlane.f32.xlu1 %v9900_v60 }
0x2ada   :  { %v9909_v63 = vsel %vm161_vm0, %v18847_v25, 0.0 }
0x2adb   :  { %v18851_v7 = vpop.eup %16079  ;;  %9910 = vadd.xlane.f32.xlu0 %v9909_v63 }
0x2adc   :  { %v16082_v36 = vpop.eup %16081  ;;  %v9906_v1 = vsel %vm161_vm0, %v18851_v7, 0.0 }
0x2add   :  { %9907 = vadd.xlane.f32.xlu1 %v9906_v1  ;;  %v9920_v0 = vmul.f32 %v16082_v36, %v16068_v50  ;;  %v9893_v50 = vpop.xlane.xlu0 %9892 }
0x2ade   :  { %16083 = vrcp.f32 %v9893_v50 }
0x2adf   :  { %15387 = vmatprep.mubr.msk.f32.mxu1 %vm161_vm0, %v9920_v0 }
0x2aeb   :  { %v16084_v55 = vpop.eup %16083 }
0x2aec   :  { %v9921_v46 = vmul.f32 %v16084_v55, %v18813_v16 }
0x2aee   :  { %10037 = vrot.lane.b32.xlu1 %v18539_v34, %s16357_s30 }
0x2af1   :  { %10039 = vrot.lane.b32.xlu0 %v18558_v31, %s16357_s30 }
0x2af2   :  { %10148 = vrot.lane.b32.xlu1 %v18858_v59, %s16356_s15 }
0x2af5   :  { %10150 = vrot.lane.b32.xlu0 %v18864_v21, %s16356_s15 }
0x2af6   :  { %10430 = vrot.lane.b32.xlu1 %v18531_v42, %s16353_s16 }
0x2af9   :  { %10432 = vrot.lane.b32.xlu0 %v18529_v49, %s16353_s16 }
0x2afa   :  { %10549 = vrot.lane.b32.xlu1 %v18545_v23, %s16353_s16 }
0x2afd   :  { %10428 = vrot.lane.b32.xlu0 %v18535_v12, %s16353_s16 }
0x2afe   :  { %10547 = vrot.lane.b32.xlu1 %v18556_v53, %s16353_s16 }
0x2b01   :  { %10426 = vrot.lane.b32.xlu0 %v18543_v13, %s16353_s16 }
0x2b02   :  { %10420 = vrot.lane.b32.xlu1 %v18598_v38, %s16347_s25 }
0x2b05   :  { %10418 = vrot.lane.b32.xlu0 %v18585_v45, %s16347_s25 }
0x2b06   :  { %10422 = vrot.lane.b32.xlu1 %v18624_v2, %s16347_s25 }
0x2b09   :  { %10545 = vrot.lane.b32.xlu0 %v18558_v31, %s16353_s16 }
0x2b0a   :  { %10543 = vrot.lane.b32.xlu1 %v18539_v34, %s16353_s16  ;;  %s19654_s16 = smov 116  }
0x2b0d   :  { %10424 = vrot.lane.b32.xlu0 %v18632_v8, %s16347_s25 }
0x2b0e   :  { %10537 = vrot.lane.b32.xlu1 %v18641_v43, %s16347_s25 }
0x2b11   :  { %10535 = vrot.lane.b32.xlu0 %v18548_v19, %s16347_s25 }
0x2b12   :  { %10541 = vrot.lane.b32.xlu1 %v18651_v44, %s16347_s25 }
0x2b15   :  { %10539 = vrot.lane.b32.xlu0 %v18644_v26, %s16347_s25 }
0x2b1b   :  { %v9896_v30 = vpop.xlane.xlu1 %9895 }
0x2b1c   :  { %16085 = vrcp.f32 %v9896_v30 }
0x2b1f   :  { %v9899_v52 = vpop.xlane.xlu0 %9898  ;;  %v9935_v51 = vpop.permute.xlu1 %9934 }
0x2b20   :  { %16087 = vrcp.f32 %v9899_v52  ;;  %15379 = vmatprep.subr.mxu1 %v9935_v51 }
0x2b21   :  { %15380 = vmatpush3.msra.mxu1 %v9935_v51 }
0x2b23   :  { %v9933_v61 = vpop.permute.xlu0 %9932  ;;  %v9931_v35 = vpop.permute.xlu1 %9930 }
0x2b24   :  { %15381 = vmatprep.subr.mxu1 %v9933_v61 }
0x2b25   :  { %15382 = vmatpush3.msra.mxu1 %v9933_v61 }
0x2b26   :  { %15383 = vmatprep.subr.mxu1 %v9931_v35 }
0x2b27   :  { %v10044_v32 = vpop.permute.xlu0 %10043  ;;  %15384 = vmatpush3.msra.mxu1 %v9931_v35  ;;  %v9929_v14 = vpop.permute.xlu1 %9928 }
0x2b28   :  { %15385 = vmatprep.subr.mxu1 %v9929_v14  ;;  %15393 = vmatprep.subr.mxu0 %v10044_v32 }
0x2b29   :  { %v16086_v39 = vpop.eup %16085  ;;  %15386 = vmatpush3.msra.mxu1 %v9929_v14  ;;  %15394 = vmatpush3.msra.mxu0 %v10044_v32 }
0x2b2a   :  { %15388 = vmatmul.mubr.msk.f32.vlgmr.msra.gmra.mxu1 %vm161_vm0, %v9921_v46  ;;  %v9922_v28 = vmul.f32 %v16086_v39, %v18819_v6 }
0x2b2b   :  { %v10042_v47 = vpop.permute.xlu1 %10041 }
0x2b2c   :  { %15390 = vmatprep.mubr.msk.f32.mxu1 %vm161_vm0, %v9922_v28  ;;  %15395 = vmatprep.subr.mxu0 %v10042_v47 }
0x2b2d   :  { %v16088_v60 = vpop.eup %16087  ;;  %15396 = vmatpush3.msra.mxu0 %v10042_v47 }
0x2b2e   :  { %v9923_v63 = vmul.f32 %v16088_v60, %v18823_v20 }
0x2b30   :  { %15391 = vmatmul.mubr.msk.f32.gmra.mxu1 %vm161_vm0, %v9923_v63 }
0x2b60   :  { %v9905_v16 = vpop.xlane.xlu0 %9904 }
0x2b61   :  { %16089 = vrcp.f32 %v9905_v16 }
0x2b62   :  { %v9902_v36 = vpop.xlane.xlu1 %9901 }
0x2b63   :  { %16091 = vrcp.f32 %v9902_v36 }
0x2b64   :  { %v9911_v1 = vpop.xlane.xlu0 %9910 }
0x2b65   :  { %16093 = vrcp.f32 %v9911_v1 }
0x2b66   :  { %v9908_v0 = vpop.xlane.xlu1 %9907 }
0x2b67   :  { %16095 = vrcp.f32 %v9908_v0 }
0x2b68   :  { %v10040_v50 = vpop.permute.xlu0 %10039 }
0x2b69   :  { %15397 = vmatprep.subr.mxu0 %v10040_v50 }
0x2b6a   :  { %15398 = vmatpush3.msra.mxu0 %v10040_v50  ;;  %v10038_v6 = vpop.permute.xlu1 %10037 }
0x2b6b   :  { %15399 = vmatprep.subr.mxu0 %v10038_v6 }
0x2b6c   :  { %v10151_v30 = vpop.permute.xlu0 %10150  ;;  %15400 = vmatpush3.msra.mxu0 %v10038_v6 }
0x2b6d   :  { %15407 = vmatprep.subr.msk.mxu1 %vm2614_vm3, %v10151_v30  ;;  %15423 = vmatprep.subr.msk.mxu0 %vm2614_vm3, %v18864_v21 }
0x2b6e   :  { %15408 = vmatpush3.xpose.msk.msra.mxu1 %vm2614_vm3, %v10151_v30  ;;  %v10149_v20 = vpop.permute.xlu1 %10148  ;;  %v16090_v52 = vpop.eup %16089 }
0x2b6f   :  { %15409 = vmatprep.subr.msk.mxu1 %vm2614_vm3, %v10149_v20  ;;  %v9925_v55 = vmul.f32 %v16090_v52, %v18839_v22 }
0x2b70   :  { %v16092_v51 = vpop.eup %16091  ;;  %v10433_v61 = vpop.permute.xlu0 %10432 }
0x2b71   :  { %v9924_v35 = vmul.f32 %v16092_v51, %v18843_v62 }
0x2b72   :  { %15410 = vmatpush3.xpose.msk.msra.mxu1 %vm2614_vm3, %v10149_v20  ;;  %v10431_v32 = vpop.permute.xlu1 %10430  ;;  %v16094_v14 = vpop.eup %16093 }
0x2b73   :  { %15401 = vmatprep.mubr.msk.f32.mxu0 %vm161_vm0, %v9924_v35  ;;  %15439 = vmatprep.subr.msk.mxu1 %vm2614_vm3, %v10433_v61  ;;  %v9927_v22 = vmul.f32 %v16094_v14, %v18847_v25 }
0x2b74   :  { %v16096_v46 = vpop.eup %16095  ;;  %v10429_v39 = vpop.permute.xlu0 %10428  ;;  %15402 = vmatmul.mubr.msk.f32.vlgmr.msra.gmra.mxu0 %vm161_vm0, %v9925_v55 }
0x2b75   :  { %15424 = vmatpush3.xpose.msk.msra.mxu0 %vm2614_vm3, %v18864_v21  ;;  %v9926_v28 = vmul.f32 %v16096_v46, %v18851_v7 }
0x2b76   :  { %v10550_v62 = vpop.permute.xlu1 %10549  ;;  %15425 = vmatprep.subr.msk.mxu0 %vm2614_vm3, %v18858_v59 }
0x2b77   :  { %15404 = vmatprep.mubr.msk.f32.mxu0 %vm161_vm0, %v9926_v28 }
0x2b78   :  { %v10427_v47 = vpop.permute.xlu0 %10426  ;;  %15405 = vmatmul.mubr.msk.f32.gmra.mxu0 %vm161_vm0, %v9927_v22 }
0x2b79   :  { %15426 = vmatpush3.xpose.msk.msra.mxu0 %vm2614_vm3, %v18858_v59  ;;  %15427 = vmatprep.mubr.msk.f32.mxu0 %vm2614_vm3, %v18794_v56 }
0x2b7a   :  { %15453 = vmatprep.subr.msk.mxu0 %vm2614_vm3, %v10550_v62  ;;  %v10548_v7 = vpop.permute.xlu1 %10547 }
0x2b7c   :  { %v10419_v60 = vpop.permute.xlu0 %10418  ;;  %15428 = vmatmul.mubr.msk.f32.vlgmr.msra.gmra.mxu0 %vm2614_vm3, %v18792_v40 }
0x2b7d   :  { %15454 = vmatpush3.xpose.msk.msra.mxu0 %vm2614_vm3, %v10550_v62  ;;  %15430 = vmatprep.mubr.msk.f32.mxu0 %vm2614_vm3, %v18799_v4 }
0x2b7e   :  { %15455 = vmatprep.subr.msk.mxu0 %vm2614_vm3, %v10548_v7  ;;  %v10421_v25 = vpop.permute.xlu1 %10420 }
0x2b80   :  { %v10546_v63 = vpop.permute.xlu0 %10545  ;;  %15431 = vmatmul.mubr.msk.f32.gmra.mxu0 %vm2614_vm3, %v18796_v5 }
0x2b81   :  { %15456 = vmatpush3.xpose.msk.msra.mxu0 %vm2614_vm3, %v10548_v7  ;;  %15433 = vmatprep.mubr.msk.f32.mxu0 %vm2614_vm3, %v18804_v48 }
0x2b82   :  { %15457 = vmatprep.subr.msk.mxu0 %vm2614_vm3, %v10546_v63  ;;  %v10423_v40 = vpop.permute.xlu1 %10422 }
0x2b84   :  { %v10425_v56 = vpop.permute.xlu0 %10424  ;;  %15434 = vmatmul.mubr.msk.f32.gmra.mxu0 %vm2614_vm3, %v18802_v10 }
0x2b85   :  { %15458 = vmatpush3.xpose.msk.msra.mxu0 %vm2614_vm3, %v10546_v63  ;;  %15436 = vmatprep.mubr.msk.f32.mxu0 %vm2614_vm3, %v18808_v11 }
0x2b86   :  { %v10544_v4 = vpop.permute.xlu1 %10543 }
0x2b87   :  { %15459 = vmatprep.subr.msk.mxu0 %vm2614_vm3, %v10544_v4 }
0x2b88   :  { %v10536_v5 = vpop.permute.xlu0 %10535  ;;  %15437 = vmatmul.mubr.msk.f32.gmra.mxu0 %vm2614_vm3, %v18806_v15 }
0x2b89   :  { %15460 = vmatpush3.xpose.msk.msra.mxu0 %vm2614_vm3, %v10544_v4  ;;  %15461 = vmatprep.mubr.msk.f32.mxu0 %vm2614_vm3, %v10536_v5 }
0x2b8a   :  { %v10538_v48 = vpop.permute.xlu1 %10537 }
0x2b8c   :  { %v10540_v16 = vpop.permute.xlu0 %10539  ;;  %15462 = vmatmul.mubr.msk.f32.vlgmr.msra.gmra.mxu0 %vm2614_vm3, %v10538_v48 }
0x2b8d   :  { %15464 = vmatprep.mubr.msk.f32.mxu0 %vm2614_vm3, %v10540_v16 }
0x2b8e   :  { %v10542_v10 = vpop.permute.xlu1 %10541 }
0x2b90   :  { %15465 = vmatmul.mubr.msk.f32.gmra.mxu0 %vm2614_vm3, %v10542_v10 }
0x2bea   :  { %v15389_v11 = vpop.f32.mrf.mxu1 }
0x2bec   :  { %v10018_v36 = vpop.f32.mrf.mxu1 }
0x2bed   :  { %15411 = vmatprep.mubr.msk.f32.mxu1 %vm2614_vm3, %v10018_v36 }
0x2bee   :  { %15412 = vmatmul.mubr.msk.f32.vlgmr.msra.gmra.mxu1 %vm2614_vm3, %v15389_v11 }
0x2bef   :  { %15440 = vmatpush3.xpose.msk.msra.mxu1 %vm2614_vm3, %v10433_v61 }
0x2bf0   :  { %15441 = vmatprep.subr.msk.mxu1 %vm2614_vm3, %v10431_v32  ;;  %v15392_v15 = vpop.f32.mrf.mxu1 }
0x2bf2   :  { %v10028_v1 = vpop.f32.mrf.mxu1 }
0x2bf3   :  { %15442 = vmatpush3.xpose.msk.msra.mxu1 %vm2614_vm3, %v10431_v32  ;;  %15414 = vmatprep.mubr.msk.f32.mxu1 %vm2614_vm3, %v10028_v1 }
0x2bf4   :  { %15443 = vmatprep.subr.msk.mxu1 %vm2614_vm3, %v10429_v39  ;;  %15415 = vmatmul.mubr.msk.f32.gmra.mxu1 %vm2614_vm3, %v15392_v15 }
0x2bf7   :  { %15444 = vmatpush3.xpose.msk.msra.mxu1 %vm2614_vm3, %v10429_v39 }
0x2bf8   :  { %15445 = vmatprep.subr.msk.mxu1 %vm2614_vm3, %v10427_v47 }
0x2bfb   :  { %15446 = vmatpush3.xpose.msk.msra.mxu1 %vm2614_vm3, %v10427_v47 }
0x2c34   :  { %v15403_v0 = vpop.f32.mrf.mxu0 }
0x2c36   :  { %v10127_v50 = vpop.f32.mrf.mxu0 }
0x2c37   :  { %15417 = vmatprep.mubr.msk.f32.mxu1 %vm2614_vm3, %v10127_v50 }
0x2c38   :  { %v15406_v6 = vpop.f32.mrf.mxu0  ;;  %15418 = vmatmul.mubr.msk.f32.gmra.mxu1 %vm2614_vm3, %v15403_v0 }
0x2c3a   :  { %v10137_v30 = vpop.f32.mrf.mxu0 }
0x2c3b   :  { %15420 = vmatprep.mubr.msk.f32.mxu1 %vm2614_vm3, %v10137_v30 }
0x2c3c   :  { %15421 = vmatmul.mubr.msk.f32.gmra.mxu1 %vm2614_vm3, %v15406_v6  ;;  %v18974_v20 = vpop.f32.mrf.mxu0 }
0x2c3d   :  { %15447 = vmatprep.mubr.msk.f32.mxu1 %vm2614_vm3, %v10419_v60 }
0x2c3e   :  { %v18976_v52 = vpop.f32.mrf.mxu0 }
0x2c40   :  { %15448 = vmatmul.mubr.msk.f32.vlgmr.msra.gmra.mxu1 %vm2614_vm3, %v10421_v25  ;;  %v18978_v51 = vpop.f32.mrf.mxu0 }
0x2c41   :  { %15450 = vmatprep.mubr.msk.f32.mxu1 %vm2614_vm3, %v10423_v40 }
0x2c42   :  { %v18980_v61 = vpop.f32.mrf.mxu0 }
0x2c44   :  { %15451 = vmatmul.mubr.msk.f32.gmra.mxu1 %vm2614_vm3, %v10425_v56  ;;  %v18982_v35 = vpop.f32.mrf.mxu0 }
0x2c46   :  { %v18986_v32 = vpop.f32.mrf.mxu0 }
0x2c48   :  { %v18990_v46 = vpop.f32.mrf.mxu0 }
0x2c4a   :  { %v18994_v28 = vpop.f32.mrf.mxu0 }
0x2c4c   :  { %v15463_v47 = vpop.f32.mrf.mxu0 }
0x2c4d   :  { %v10667_v50 = vsel %vm161_vm0, %v15463_v47, -inf }
0x2c4e   :  { %v10633_v25 = vpop.f32.mrf.mxu0 }
0x2c4f   :  { %v10664_v10 = vsel %vm161_vm0, %v10633_v25, -inf }
0x2c50   :  { %v15466_v4 = vpop.f32.mrf.mxu0 }
0x2c51   :  { %v10673_v6 = vsel %vm161_vm0, %v15466_v4, -inf }
0x2c52   :  { %v10643_v11 = vpop.f32.mrf.mxu0 }
0x2c53   :  { %v10670_v1 = vsel %vm161_vm0, %v10643_v11, -inf }
0x2cae   :  { %v18984_v55 = vpop.f32.mrf.mxu1 }
0x2cb0   :  { %v18988_v14 = vpop.f32.mrf.mxu1 }
0x2cb4   :  { %v18992_v39 = vpop.f32.mrf.mxu1 }
0x2cb6   :  { %v18996_v62 = vpop.f32.mrf.mxu1 }
0x2cf8   :  { %v18998_v22 = vpop.f32.mrf.mxu1 }
0x2cfa   :  { %v19000_v7 = vpop.f32.mrf.mxu1 }
0x2cfc   :  { %v19002_v60 = vpop.f32.mrf.mxu1 }
0x2cfe   :  { %v19004_v63 = vpop.f32.mrf.mxu1 }
0x2d00   :  { %v19006_v40 = vpop.f32.mrf.mxu1 }
0x2d01   :  { %v10655_v56 = vsel %vm161_vm0, %v19006_v40, -inf }
0x2d02   :  { %10656 = vmax.xlane.f32.xlu1 %v10655_v56  ;;  %v10516_v5 = vpop.f32.mrf.mxu1 }
0x2d03   :  { %v10652_v48 = vsel %vm161_vm0, %v10516_v5, -inf }
0x2d04   :  { %10653 = vmax.xlane.f32.xlu0 %v10652_v48  ;;  %v15452_v16 = vpop.f32.mrf.mxu1 }
0x2d05   :  { %v10661_v0 = vsel %vm161_vm0, %v15452_v16, -inf }
0x2d06   :  { %v10526_v36 = vpop.f32.mrf.mxu1  ;;  %10665 = vmax.xlane.f32.xlu1 %v10664_v10 }
0x2d07   :  { %v10658_v15 = vsel %vm161_vm0, %v10526_v36, -inf }
0x2d08   :  { %10659 = vmax.xlane.f32.xlu0 %v10658_v15 }
0x2d0a   :  { %10671 = vmax.xlane.f32.xlu1 %v10670_v1 }
0x2d0c   :  { %10662 = vmax.xlane.f32.xlu0 %v10661_v0 }
0x2d10   :  { %10668 = vmax.xlane.f32.xlu0 %v10667_v50 }
0x2d14   :  { %10674 = vmax.xlane.f32.xlu0 %v10673_v6 }
0x2d8b   :  { %v10657_v30 = vpop.xlane.xlu1 %10656 }
0x2d8d   :  { %v10654_v56 = vpop.xlane.xlu0 %10653 }
0x2d8f   :  { %v10666_v48 = vpop.xlane.xlu1 %10665 }
0x2d90   :  { %v10680_v41 = vsub.f32 %v10633_v25, %v10666_v48 }
0x2d91   :  { %v10660_v10 = vpop.xlane.xlu0 %10659 }
0x2d92   :  { %v10692_v24 = vmul.f32 1.442695, %v10680_v41 }
0x2d93   :  { %v10672_v57 = vpop.xlane.xlu1 %10671 }
0x2d94   :  { %16097 = vpow2.f32 %v10692_v24  ;;  %v10682_v15 = vsub.f32 %v10643_v11, %v10672_v57  ;;  %v10678_v11 = vsub.f32 %v10526_v36, %v10660_v10 }
0x2d95   :  { %v10663_v18 = vpop.xlane.xlu0 %10662 }
0x2d96   :  { %v10696_v1 = vmul.f32 1.442695, %v10682_v15  ;;  %v10679_v15 = vsub.f32 %v15452_v16, %v10663_v18 }
0x2d98   :  { %16099 = vpow2.f32 %v10696_v1  ;;  %v10688_v1 = vmul.f32 1.442695, %v10678_v11 }
0x2d99   :  { %v10669_v9 = vpop.xlane.xlu0 %10668 }
0x2d9a   :  { %v10681_v0 = vsub.f32 %v15463_v47, %v10669_v9  ;;  %v10677_v47 = vsub.f32 %v19006_v40, %v10657_v30 }
0x2d9c   :  { %v10694_v37 = vmul.f32 1.442695, %v10681_v0  ;;  %v10686_v48 = vmul.f32 1.442695, %v10677_v47  ;;  %v10690_v0 = vmul.f32 1.442695, %v10679_v15 }
0x2d9d   :  { %v10675_v17 = vpop.xlane.xlu0 %10674 }
0x2d9e   :  { %16101 = vpow2.f32 %v10694_v37  ;;  %v10683_v50 = vsub.f32 %v15466_v4, %v10675_v17 }
0x2da0   :  { %v10698_v58 = vmul.f32 1.442695, %v10683_v50 }
0x2da1   :  { %v19017_v6 = vpop.eup %16097 }
0x2da2   :  { %16103 = vpow2.f32 %v10698_v58  ;;  %v10712_v25 = vsel %vm161_vm0, %v19017_v6, 0.0  ;;  %v10676_v58 = vsub.f32 %v10516_v5, %v10654_v56 }
0x2da3   :  { %10713 = vadd.xlane.f32.xlu1 %v10712_v25 }
0x2da4   :  { %v10684_v4 = vmul.f32 1.442695, %v10676_v58 }
0x2da5   :  { %v19021_v41 = vpop.eup %16099 }
0x2da6   :  { %v10718_v57 = vsel %vm161_vm0, %v19021_v41, 0.0  ;;  %16105 = vpow2.f32 %v10684_v4 }
0x2da7   :  { %10719 = vadd.xlane.f32.xlu1 %v10718_v57  ;;  %16107 = vpow2.f32 %v10686_v48 }
0x2da8   :  { %16109 = vpow2.f32 %v10688_v1 }
0x2da9   :  { %16111 = vpow2.f32 %v10690_v0 }
0x2dab   :  { %v19025_v24 = vpop.eup %16101 }
0x2dac   :  { %v10715_v9 = vsel %vm161_vm0, %v19025_v24, 0.0 }
0x2dad   :  { %10716 = vadd.xlane.f32.xlu0 %v10715_v9 }
0x2daf   :  { %v19029_v17 = vpop.eup %16103 }
0x2db0   :  { %v10721_v37 = vsel %vm161_vm0, %v19029_v17, 0.0 }
0x2db1   :  { %10722 = vadd.xlane.f32.xlu0 %v10721_v37 }
0x2db3   :  { %v19046_v50 = vpop.eup %16105 }
0x2db4   :  { %v19048_v25 = vpop.eup %16107  ;;  %v10700_v57 = vsel %vm161_vm0, %v19046_v50, 0.0 }
0x2db5   :  { %v19052_v5 = vpop.eup %16109  ;;  %v10703_v40 = vsel %vm161_vm0, %v19048_v25, 0.0 }
0x2db6   :  { %v19056_v18 = vpop.eup %16111  ;;  %v10706_v16 = vsel %vm161_vm0, %v19052_v5, 0.0 }
0x2db7   :  { %v10709_v36 = vsel %vm161_vm0, %v19056_v18, 0.0 }
0x2db8   :  { %10746 = vrot.lane.b32.xlu1 %v18529_v49, %s16346_s24 }
0x2dbc   :  { %10742 = vrot.lane.b32.xlu1 %v18535_v12, %s16346_s24 }
0x2dc0   :  { %10740 = vrot.lane.b32.xlu1 %v18543_v13, %s16346_s24 }
0x2dc4   :  { %10853 = vrot.lane.b32.xlu1 %v18556_v53, %s16346_s24 }
0x2dc7   :  { %10744 = vrot.lane.b32.xlu0 %v18531_v42, %s16346_s24 }
0x2dcb   :  { %10855 = vrot.lane.b32.xlu0 %v18545_v23, %s16346_s24 }
0x2de8   :  { %10701 = vadd.xlane.f32.xlu1 %v10700_v57 }
0x2dea   :  { %10704 = vadd.xlane.f32.xlu0 %v10703_v40 }
0x2dec   :  { %10707 = vadd.xlane.f32.xlu1 %v10706_v16 }
0x2dee   :  { %10710 = vadd.xlane.f32.xlu0 %v10709_v36 }
0x2dfd   :  { %10849 = vrot.lane.b32.xlu1 %v18539_v34, %s16346_s24 }
0x2e01   :  { %11117 = vrot.lane.b32.xlu1 %v18529_v49, %s19653_s27 }
0x2e04   :  { %10851 = vrot.lane.b32.xlu0 %v18558_v31, %s16346_s24  ;;  %s19655_s24 = smov 84  }
0x2e05   :  { %11115 = vrot.lane.b32.xlu1 %v18531_v42, %s19653_s27 }
0x2e08   :  { %10960 = vrot.lane.b32.xlu0 %v18864_v21, %s16347_s25 }
0x2e09   :  { %11234 = vrot.lane.b32.xlu1 %v18545_v23, %s19653_s27 }
0x2e0c   :  { %10958 = vrot.lane.b32.xlu0 %v18858_v59, %s16347_s25 }
0x2e0d   :  { %11232 = vrot.lane.b32.xlu1 %v18556_v53, %s19653_s27 }
0x2e10   :  { %11113 = vrot.lane.b32.xlu0 %v18535_v12, %s19653_s27 }
0x2e11   :  { %11105 = vrot.lane.b32.xlu1 %v18598_v38, %s19654_s16 }
0x2e14   :  { %11111 = vrot.lane.b32.xlu0 %v18543_v13, %s19653_s27 }
0x2e15   :  { %11107 = vrot.lane.b32.xlu1 %v18624_v2, %s19654_s16 }
0x2e18   :  { %11103 = vrot.lane.b32.xlu0 %v18585_v45, %s19654_s16 }
0x2e19   :  { %11228 = vrot.lane.b32.xlu1 %v18539_v34, %s19653_s27 }
0x2e1c   :  { %11230 = vrot.lane.b32.xlu0 %v18558_v31, %s19653_s27 }
0x2e1d   :  { %11222 = vrot.lane.b32.xlu1 %v18641_v43, %s19654_s16 }
0x2e20   :  { %11109 = vrot.lane.b32.xlu0 %v18632_v8, %s19654_s16 }
0x2e21   :  { %11226 = vrot.lane.b32.xlu1 %v18651_v44, %s19654_s16 }
0x2e24   :  { %11220 = vrot.lane.b32.xlu0 %v18548_v19, %s19654_s16 }
0x2e28   :  { %11224 = vrot.lane.b32.xlu0 %v18644_v26, %s19654_s16 }
0x2e2c   :  { %v10714_v45 = vpop.xlane.xlu1 %10713 }
0x2e2d   :  { %16113 = vrcp.f32 %v10714_v45 }
0x2e30   :  { %v10720_v38 = vpop.xlane.xlu1 %10719 }
0x2e34   :  { %v10747_v2 = vpop.permute.xlu1 %10746 }
0x2e35   :  { %15467 = vmatprep.subr.mxu1 %v10747_v2 }
0x2e36   :  { %v10717_v59 = vpop.xlane.xlu0 %10716  ;;  %15468 = vmatpush3.msra.mxu1 %v10747_v2 }
0x2e37   :  { %16115 = vrcp.f32 %v10717_v59 }
0x2e38   :  { %v10743_v43 = vpop.permute.xlu1 %10742  ;;  %16117 = vrcp.f32 %v10720_v38 }
0x2e3a   :  { %v16114_v21 = vpop.eup %16113  ;;  %v10723_v30 = vpop.xlane.xlu0 %10722 }
0x2e3b   :  { %v10736_v8 = vmul.f32 %v16114_v21, %v19017_v6  ;;  %16119 = vrcp.f32 %v10723_v30 }
0x2e3c   :  { %v10741_v44 = vpop.permute.xlu1 %10740 }
0x2e3d   :  { %15489 = vmatprep.mubr.msk.f32.mxu0 %vm161_vm0, %v10736_v8 }
0x2e3e   :  { %v10745_v56 = vpop.permute.xlu0 %10744 }
0x2e3f   :  { %15469 = vmatprep.subr.mxu1 %v10745_v56 }
0x2e40   :  { %15470 = vmatpush3.msra.mxu1 %v10745_v56  ;;  %v10854_v26 = vpop.permute.xlu1 %10853 }
0x2e41   :  { %15471 = vmatprep.subr.mxu1 %v10743_v43 }
0x2e42   :  { %v10856_v19 = vpop.permute.xlu0 %10855  ;;  %15472 = vmatpush3.msra.mxu1 %v10743_v43 }
0x2e43   :  { %15473 = vmatprep.subr.mxu1 %v10741_v44  ;;  %15481 = vmatprep.subr.mxu0 %v10856_v19 }
0x2e44   :  { %15474 = vmatpush3.msra.mxu1 %v10741_v44  ;;  %15482 = vmatpush3.msra.mxu0 %v10856_v19  ;;  %v16116_v47 = vpop.eup %16115 }
0x2e45   :  { %15483 = vmatprep.subr.mxu0 %v10854_v26  ;;  %v16118_v11 = vpop.eup %16117  ;;  %v10737_v1 = vmul.f32 %v16116_v47, %v19025_v24 }
0x2e46   :  { %15484 = vmatpush3.msra.mxu0 %v10854_v26  ;;  %v10738_v40 = vmul.f32 %v16118_v11, %v19021_v41 }
0x2e48   :  { %v16120_v15 = vpop.eup %16119 }
0x2e49   :  { %v10739_v41 = vmul.f32 %v16120_v15, %v19029_v17 }
0x2e71   :  { %v10702_v10 = vpop.xlane.xlu1 %10701 }
0x2e72   :  { %16121 = vrcp.f32 %v10702_v10 }
0x2e73   :  { %v10705_v6 = vpop.xlane.xlu0 %10704 }
0x2e74   :  { %16123 = vrcp.f32 %v10705_v6 }
0x2e75   :  { %v10708_v9 = vpop.xlane.xlu1 %10707 }
0x2e76   :  { %16125 = vrcp.f32 %v10708_v9 }
0x2e77   :  { %v10711_v37 = vpop.xlane.xlu0 %10710 }
0x2e78   :  { %16127 = vrcp.f32 %v10711_v37 }
0x2e79   :  { %v10850_v58 = vpop.permute.xlu1 %10849 }
0x2e7b   :  { %v10852_v4 = vpop.permute.xlu0 %10851 }
0x2e7c   :  { %15485 = vmatprep.subr.mxu0 %v10852_v4 }
0x2e7d   :  { %15486 = vmatpush3.msra.mxu0 %v10852_v4  ;;  %v11118_v48 = vpop.permute.xlu1 %11117 }
0x2e7e   :  { %15487 = vmatprep.subr.mxu0 %v10850_v58 }
0x2e7f   :  { %v16122_v0 = vpop.eup %16121  ;;  %v10961_v57 = vpop.permute.xlu0 %10960  ;;  %15488 = vmatpush3.msra.mxu0 %v10850_v58 }
0x2e80   :  { %15490 = vmatmul.mubr.msk.f32.vlgmr.msra.gmra.mxu0 %vm161_vm0, %v10737_v1  ;;  %15511 = vmatprep.subr.msk.mxu0 %vm2614_vm3, %v11118_v48  ;;  %v10732_v16 = vmul.f32 %v16122_v0, %v19046_v50 }
0x2e81   :  { %v16124_v36 = vpop.eup %16123  ;;  %15492 = vmatprep.mubr.msk.f32.mxu0 %vm161_vm0, %v10738_v40  ;;  %15512 = vmatpush3.xpose.msk.msra.mxu0 %vm2614_vm3, %v11118_v48  ;;  %v11116_v45 = vpop.permute.xlu1 %11115 }
0x2e82   :  { %v10733_v24 = vmul.f32 %v16124_v36, %v19048_v25  ;;  %15475 = vmatprep.mubr.msk.f32.mxu1 %vm161_vm0, %v10732_v16  ;;  %15513 = vmatprep.subr.msk.mxu0 %vm2614_vm3, %v11116_v45 }
0x2e83   :  { %v16126_v38 = vpop.eup %16125  ;;  %v10959_v2 = vpop.permute.xlu0 %10958  ;;  %15495 = vmatprep.subr.msk.mxu1 %vm2614_vm3, %v10961_v57 }
0x2e84   :  { %15476 = vmatmul.mubr.msk.f32.vlgmr.msra.gmra.mxu1 %vm161_vm0, %v10733_v24  ;;  %15493 = vmatmul.mubr.msk.f32.gmra.mxu0 %vm161_vm0, %v10739_v41  ;;  %v10734_v50 = vmul.f32 %v16126_v38, %v19052_v5 }
0x2e85   :  { %v16128_v59 = vpop.eup %16127  ;;  %15496 = vmatpush3.xpose.msk.msra.mxu1 %vm2614_vm3, %v10961_v57  ;;  %15514 = vmatpush3.xpose.msk.msra.mxu0 %vm2614_vm3, %v11116_v45  ;;  %v11235_v25 = vpop.permute.xlu1 %11234 }
0x2e86   :  { %15478 = vmatprep.mubr.msk.f32.mxu1 %vm161_vm0, %v10734_v50  ;;  %15497 = vmatprep.subr.msk.mxu1 %vm2614_vm3, %v10959_v2  ;;  %v10735_v17 = vmul.f32 %v16128_v59, %v19056_v18  ;;  %v10385_v59 = vadd.f32 %v18974_v20, %v18984_v55 }
0x2e87   :  { %v11114_v43 = vpop.permute.xlu0 %11113 }
0x2e88   :  { %15479 = vmatmul.mubr.msk.f32.gmra.mxu1 %vm161_vm0, %v10735_v17  ;;  %15515 = vmatprep.subr.msk.mxu0 %vm2614_vm3, %v11114_v43  ;;  %v10380_v17 = vadd.f32 %v18976_v52, %v18988_v14  ;;  %v10405_v52 = vadd.f32 %v18982_v35, %v18998_v22  ;;  %v10410_v35 = vadd.f32 %v18994_v28, %v19004_v63 }
0x2e89   :  { %15498 = vmatpush3.xpose.msk.msra.mxu1 %vm2614_vm3, %v10959_v2  ;;  %15516 = vmatpush3.xpose.msk.msra.mxu0 %vm2614_vm3, %v11114_v43  ;;  %v11233_v5 = vpop.permute.xlu1 %11232 }
0x2e8a   :  { %15525 = vmatprep.subr.msk.mxu1 %vm2614_vm3, %v11235_v25 }
0x2e8b   :  { %v11112_v21 = vpop.permute.xlu0 %11111 }
0x2e8c   :  { %15517 = vmatprep.subr.msk.mxu0 %vm2614_vm3, %v11112_v21 }
0x2e8d   :  { %15518 = vmatpush3.xpose.msk.msra.mxu0 %vm2614_vm3, %v11112_v21  ;;  %v11106_v30 = vpop.permute.xlu1 %11105 }
0x2e8f   :  { %v11104_v8 = vpop.permute.xlu0 %11103 }
0x2e90   :  { %15519 = vmatprep.mubr.msk.f32.mxu0 %vm2614_vm3, %v11104_v8  ;;  %v10395_v8 = vadd.f32 %v18978_v51, %v18992_v39 }
0x2e91   :  { %15520 = vmatmul.mubr.msk.f32.vlgmr.msra.gmra.mxu0 %vm2614_vm3, %v11106_v30  ;;  %v11108_v18 = vpop.permute.xlu1 %11107 }
0x2e92   :  { %15522 = vmatprep.mubr.msk.f32.mxu0 %vm2614_vm3, %v11108_v18 }
0x2e93   :  { %v11231_v44 = vpop.permute.xlu0 %11230 }
0x2e95   :  { %v11229_v47 = vpop.permute.xlu1 %11228 }
0x2e97   :  { %v11110_v56 = vpop.permute.xlu0 %11109 }
0x2e98   :  { %15523 = vmatmul.mubr.msk.f32.gmra.mxu0 %vm2614_vm3, %v11110_v56 }
0x2e99   :  { %v11223_v57 = vpop.permute.xlu1 %11222 }
0x2e9b   :  { %v11221_v48 = vpop.permute.xlu0 %11220 }
0x2e9d   :  { %v11227_v45 = vpop.permute.xlu1 %11226 }
0x2e9f   :  { %v11225_v40 = vpop.permute.xlu0 %11224 }
0x2f40   :  { %v15491_v19 = vpop.f32.mrf.mxu0 }
0x2f42   :  { %v10939_v6 = vpop.f32.mrf.mxu0 }
0x2f44   :  { %v15477_v26 = vpop.f32.mrf.mxu1  ;;  %v15494_v58 = vpop.f32.mrf.mxu0 }
0x2f46   :  { %v10830_v10 = vpop.f32.mrf.mxu1  ;;  %v10949_v4 = vpop.f32.mrf.mxu0 }
0x2f47   :  { %15499 = vmatprep.mubr.msk.f32.mxu1 %vm2614_vm3, %v10830_v10 }
0x2f48   :  { %v15480_v9 = vpop.f32.mrf.mxu1  ;;  %15500 = vmatmul.mubr.msk.f32.vlgmr.msra.gmra.mxu1 %vm2614_vm3, %v15477_v26 }
0x2f49   :  { %15526 = vmatpush3.xpose.msk.msra.mxu1 %vm2614_vm3, %v11235_v25 }
0x2f4a   :  { %15527 = vmatprep.subr.msk.mxu1 %vm2614_vm3, %v11233_v5  ;;  %v10840_v37 = vpop.f32.mrf.mxu1 }
0x2f4b   :  { %15502 = vmatprep.mubr.msk.f32.mxu1 %vm2614_vm3, %v10840_v37 }
0x2f4c   :  { %15503 = vmatmul.mubr.msk.f32.gmra.mxu1 %vm2614_vm3, %v15480_v9  ;;  %v10400_v9 = vadd.f32 %v18986_v32, %v19000_v7 }
0x2f4d   :  { %15528 = vmatpush3.xpose.msk.msra.mxu1 %vm2614_vm3, %v11233_v5  ;;  %15505 = vmatprep.mubr.msk.f32.mxu1 %vm2614_vm3, %v10939_v6 }
0x2f4e   :  { %15529 = vmatprep.subr.msk.mxu1 %vm2614_vm3, %v11231_v44 }
0x2f50   :  { %15506 = vmatmul.mubr.msk.f32.gmra.mxu1 %vm2614_vm3, %v15491_v19 }
0x2f51   :  { %15530 = vmatpush3.xpose.msk.msra.mxu1 %vm2614_vm3, %v11231_v44  ;;  %15508 = vmatprep.mubr.msk.f32.mxu1 %vm2614_vm3, %v10949_v4  ;;  %v15521_v11 = vpop.f32.mrf.mxu0 }
0x2f52   :  { %15531 = vmatprep.subr.msk.mxu1 %vm2614_vm3, %v11229_v47  ;;  %v11340_v15 = vsel %vm161_vm0, %v15521_v11, -inf }
0x2f53   :  { %11341 = vmax.xlane.f32.xlu1 %v11340_v15  ;;  %v11201_v1 = vpop.f32.mrf.mxu0 }
0x2f54   :  { %15509 = vmatmul.mubr.msk.f32.gmra.mxu1 %vm2614_vm3, %v15494_v58  ;;  %v11337_v0 = vsel %vm161_vm0, %v11201_v1, -inf  ;;  %v10415_v58 = vadd.f32 %v18990_v46, %v19002_v60 }
0x2f55   :  { %15532 = vmatpush3.xpose.msk.msra.mxu1 %vm2614_vm3, %v11229_v47  ;;  %15533 = vmatprep.mubr.msk.f32.mxu1 %vm2614_vm3, %v11221_v48 }
0x2f56   :  { %11338 = vmax.xlane.f32.xlu0 %v11337_v0 }
0x2f58   :  { %v15524_v16 = vpop.f32.mrf.mxu0  ;;  %15534 = vmatmul.mubr.msk.f32.vlgmr.msra.gmra.mxu1 %vm2614_vm3, %v11223_v57 }
0x2f59   :  { %15536 = vmatprep.mubr.msk.f32.mxu1 %vm2614_vm3, %v11225_v40  ;;  %v11346_v41 = vsel %vm161_vm0, %v15524_v16, -inf }
0x2f5a   :  { %v11211_v36 = vpop.f32.mrf.mxu0 }
0x2f5b   :  { %v11343_v24 = vsel %vm161_vm0, %v11211_v36, -inf }
0x2f5c   :  { %11344 = vmax.xlane.f32.xlu0 %v11343_v24  ;;  %15537 = vmatmul.mubr.msk.f32.gmra.mxu1 %vm2614_vm3, %v11227_v45 }
0x2f60   :  { %11347 = vmax.xlane.f32.xlu0 %v11346_v41 }
0x2fdc   :  { %v11342_v50 = vpop.xlane.xlu1 %11341 }
0x2fdd   :  { %v11362_v43 = vsub.f32 %v15521_v11, %v11342_v50 }
0x2fdf   :  { %v11339_v38 = vpop.xlane.xlu0 %11338  ;;  %v11371_v19 = vmul.f32 1.442695, %v11362_v43 }
0x2fe0   :  { %v11361_v18 = vsub.f32 %v11201_v1, %v11339_v38 }
0x2fe1   :  { %16129 = vpow2.f32 %v11371_v19 }
0x2fe2   :  { %v11369_v55 = vmul.f32 1.442695, %v11361_v18 }
0x2fe4   :  { %16131 = vpow2.f32 %v11369_v55 }
0x2fe5   :  { %v11345_v2 = vpop.xlane.xlu0 %11344 }
0x2fe6   :  { %v11363_v14 = vsub.f32 %v11211_v36, %v11345_v2 }
0x2fe8   :  { %v11373_v47 = vmul.f32 1.442695, %v11363_v14 }
0x2fe9   :  { %v11348_v21 = vpop.xlane.xlu0 %11347 }
0x2fea   :  { %v11364_v26 = vsub.f32 %v15524_v16, %v11348_v21 }
0x2fec   :  { %v11375_v51 = vmul.f32 1.442695, %v11364_v26 }
0x2fee   :  { %16133 = vpow2.f32 %v11375_v51  ;;  %v19191_v57 = vpop.eup %16129 }
0x2fef   :  { %16135 = vpow2.f32 %v11373_v47  ;;  %v11388_v16 = vsel %vm161_vm0, %v19191_v57, 0.0 }
0x2ff1   :  { %v19194_v40 = vpop.eup %16131 }
0x2ff2   :  { %v11385_v45 = vsel %vm161_vm0, %v19194_v40, 0.0 }
0x2ffb   :  { %v19198_v36 = vpop.eup %16133 }
0x2ffc   :  { %v19202_v24 = vpop.eup %16135  ;;  %v11394_v41 = vsel %vm161_vm0, %v19198_v36, 0.0 }
0x2ffd   :  { %v11391_v38 = vsel %vm161_vm0, %v19202_v24, 0.0 }
0x3008   :  { %v15501_v25 = vpop.f32.mrf.mxu1 }
0x3009   :  { %v19162_v5 = vadd.f32 %v15501_v25, %v10385_v59 }
0x300a   :  { %v11056_v30 = vpop.f32.mrf.mxu1 }
0x300b   :  { %v19166_v44 = vadd.f32 %v11056_v30, %v10380_v17 }
0x300c   :  { %v15504_v56 = vpop.f32.mrf.mxu1 }
0x300d   :  { %v19168_v10 = vadd.f32 %v15504_v56, %v10395_v8 }
0x300e   :  { %v19170_v20 = vpop.f32.mrf.mxu1 }
0x3010   :  { %v15507_v6 = vpop.f32.mrf.mxu1 }
0x3011   :  { %v19176_v39 = vadd.f32 %v15507_v6, %v10405_v52 }
0x3012   :  { %v11076_v37 = vpop.f32.mrf.mxu1 }
0x3013   :  { %v19180_v4 = vadd.f32 %v11076_v37, %v10400_v9 }
0x3014   :  { %v15510_v11 = vpop.f32.mrf.mxu1 }
0x3015   :  { %v19184_v22 = vadd.f32 %v15510_v11, %v10415_v58 }
0x3016   :  { %v11086_v32 = vpop.f32.mrf.mxu1 }
0x3017   :  { %v19186_v7 = vadd.f32 %v11086_v32, %v10410_v35 }
0x3018   :  { %v15535_v48 = vpop.f32.mrf.mxu1 }
0x3019   :  { %v11352_v15 = vsel %vm161_vm0, %v15535_v48, -inf }
0x301a   :  { %11353 = vmax.xlane.f32.xlu0 %v11352_v15  ;;  %v11318_v46 = vpop.f32.mrf.mxu1 }
0x301b   :  { %v11349_v60 = vsel %vm161_vm0, %v11318_v46, -inf }
0x301c   :  { %11350 = vmax.xlane.f32.xlu1 %v11349_v60  ;;  %v15538_v1 = vpop.f32.mrf.mxu1 }
0x301d   :  { %v11358_v0 = vsel %vm161_vm0, %v15538_v1, -inf }
0x301e   :  { %11359 = vmax.xlane.f32.xlu0 %v11358_v0  ;;  %v11328_v28 = vpop.f32.mrf.mxu1 }
0x301f   :  { %v11355_v63 = vsel %vm161_vm0, %v11328_v28, -inf }
0x3020   :  { %11356 = vmax.xlane.f32.xlu1 %v11355_v63  ;;  %v16193_v63 = vld [vmem:[#allocation6 + $0x18] sm:$0xff] }
0x3022   :  { %11389 = vadd.xlane.f32.xlu0 %v11388_v16 }
0x3024   :  { %11386 = vadd.xlane.f32.xlu1 %v11385_v45 }
0x3026   :  { %11395 = vadd.xlane.f32.xlu0 %v11394_v41 }
0x3028   :  { %11392 = vadd.xlane.f32.xlu1 %v11391_v38 }
0x3039   :  { %11431 = vrot.lane.b32.xlu1 %v18529_v49, %s19655_s24 }
0x303c   :  { %11429 = vrot.lane.b32.xlu0 %v18531_v42, %s19655_s24 }
0x303d   :  { %11427 = vrot.lane.b32.xlu1 %v18535_v12, %s19655_s24 }
0x3040   :  { %11540 = vrot.lane.b32.xlu0 %v18545_v23, %s19655_s24 }
0x3041   :  { %11425 = vrot.lane.b32.xlu1 %v18543_v13, %s19655_s24 }
0x3045   :  { %11538 = vrot.lane.b32.xlu1 %v18556_v53, %s19655_s24 }
0x30a3   :  { %v11354_v2 = vpop.xlane.xlu0 %11353 }
0x30a4   :  { %v11366_v50 = vsub.f32 %v15535_v48, %v11354_v2 }
0x30a5   :  { %v11351_v59 = vpop.xlane.xlu1 %11350 }
0x30a6   :  { %v11379_v25 = vmul.f32 1.442695, %v11366_v50  ;;  %v11365_v49 = vsub.f32 %v11318_v46, %v11351_v59 }
0x30a7   :  { %v11360_v17 = vpop.xlane.xlu0 %11359 }
0x30a8   :  { %16137 = vpow2.f32 %v11379_v25  ;;  %v11377_v42 = vmul.f32 1.442695, %v11365_v49  ;;  %v11368_v43 = vsub.f32 %v15538_v1, %v11360_v17 }
0x30a9   :  { %v11357_v21 = vpop.xlane.xlu1 %11356 }
0x30aa   :  { %16139 = vpow2.f32 %v11377_v42  ;;  %v11383_v12 = vmul.f32 1.442695, %v11368_v43  ;;  %v11367_v30 = vsub.f32 %v11328_v28, %v11357_v21 }
0x30ab   :  { %v11390_v23 = vpop.xlane.xlu0 %11389 }
0x30ac   :  { %16141 = vpow2.f32 %v11383_v12  ;;  %v11381_v8 = vmul.f32 1.442695, %v11367_v30 }
0x30ad   :  { %16143 = vrcp.f32 %v11390_v23  ;;  %v11387_v13 = vpop.xlane.xlu1 %11386 }
0x30ae   :  { %16145 = vpow2.f32 %v11381_v8 }
0x30af   :  { %16147 = vrcp.f32 %v11387_v13  ;;  %v11396_v53 = vpop.xlane.xlu0 %11395 }
0x30b0   :  { %16149 = vrcp.f32 %v11396_v53 }
0x30b1   :  { %v11393_v18 = vpop.xlane.xlu1 %11392 }
0x30b2   :  { %16151 = vrcp.f32 %v11393_v18 }
0x30b3   :  { %v11430_v56 = vpop.permute.xlu0 %11429 }
0x30b5   :  { %v19220_v19 = vpop.eup %16137  ;;  %v11432_v26 = vpop.permute.xlu1 %11431 }
0x30b6   :  { %15539 = vmatprep.subr.mxu0 %v11432_v26  ;;  %v11400_v52 = vsel %vm161_vm0, %v19220_v19, 0.0 }
0x30b7   :  { %v19224_v55 = vpop.eup %16139  ;;  %11401 = vadd.xlane.f32.xlu0 %v11400_v52  ;;  %v11541_v14 = vpop.permute.xlu0 %11540  ;;  %15540 = vmatpush3.msra.mxu0 %v11432_v26  ;;  %v13666_v26 = vld [vmem:[#allocation8 + $0x1] ss:$0 sm:$0xff] }
0x30b8   :  { %15541 = vmatprep.subr.mxu0 %v11430_v56  ;;  %15553 = vmatprep.subr.mxu1 %v11541_v14  ;;  %v11397_v6 = vsel %vm161_vm0, %v19224_v55, 0.0 }
0x30b9   :  { %v19228_v9 = vpop.eup %16141  ;;  %15554 = vmatpush3.msra.mxu1 %v11541_v14  ;;  %11398 = vadd.xlane.f32.xlu1 %v11397_v6  ;;  %v11428_v51 = vpop.permute.xlu1 %11427 }
0x30ba   :  { %v16144_v37 = vpop.eup %16143  ;;  %15542 = vmatpush3.msra.mxu0 %v11430_v56  ;;  %v11406_v58 = vsel %vm161_vm0, %v19228_v9, 0.0 }
0x30bb   :  { %v16146_v47 = vpop.eup %16145  ;;  %15543 = vmatprep.subr.mxu0 %v11428_v51  ;;  %11407 = vadd.xlane.f32.xlu0 %v11406_v58  ;;  %v11418_v46 = vmul.f32 %v16144_v37, %v19191_v57  ;;  %v16192_v57 = vld [vmem:[#allocation6 + $0x10] sm:$0xff] }
0x30bc   :  { %v16148_v11 = vpop.eup %16147  ;;  %15544 = vmatpush3.msra.mxu0 %v11428_v51  ;;  %v11403_v35 = vsel %vm161_vm0, %v16146_v47, 0.0 }
0x30bd   :  { %11404 = vadd.xlane.f32.xlu1 %v11403_v35  ;;  %v11426_v32 = vpop.permute.xlu1 %11425  ;;  %v11417_v48 = vmul.f32 %v16148_v11, %v19194_v40  ;;  %v16150_v15 = vpop.eup %16149 }
0x30be   :  { %15545 = vmatprep.subr.mxu0 %v11426_v32  ;;  %v11420_v28 = vmul.f32 %v16150_v15, %v19198_v36 }
0x30bf   :  { %v16152_v60 = vpop.eup %16151  ;;  %15547 = vmatprep.mubr.msk.f32.mxu0 %vm161_vm0, %v11417_v48  ;;  %15546 = vmatpush3.msra.mxu0 %v11426_v32 }
0x30c0   :  { %15548 = vmatmul.mubr.msk.f32.vlgmr.msra.gmra.mxu0 %vm161_vm0, %v11418_v46  ;;  %v11419_v1 = vmul.f32 %v16152_v60, %v19202_v24 }
0x30c1   :  { %v11539_v0 = vpop.permute.xlu1 %11538 }
0x30c2   :  { %15550 = vmatprep.mubr.msk.f32.mxu0 %vm161_vm0, %v11419_v1  ;;  %15555 = vmatprep.subr.mxu1 %v11539_v0 }
0x30c3   :  { %15556 = vmatpush3.msra.mxu1 %v11539_v0 }
0x30c4   :  { %15551 = vmatmul.mubr.msk.f32.gmra.mxu0 %vm161_vm0, %v11420_v28 }
0x30ce   :  { %11534 = vrot.lane.b32.xlu1 %v18539_v34, %s19655_s24 }
0x30d1   :  { %11536 = vrot.lane.b32.xlu0 %v18558_v31, %s19655_s24 }
0x30d2   :  { %11643 = vrot.lane.b32.xlu1 %v16192_v57, %s19654_s16 }
0x30d5   :  { %11645 = vrot.lane.b32.xlu0 %v16193_v63, %s19654_s16 }
0x3140   :  { %v11402_v40 = vpop.xlane.xlu0 %11401 }
0x3141   :  { %16153 = vrcp.f32 %v11402_v40 }
0x3142   :  { %v11399_v16 = vpop.xlane.xlu1 %11398 }
0x3143   :  { %16155 = vrcp.f32 %v11399_v16 }
0x3144   :  { %v11408_v36 = vpop.xlane.xlu0 %11407 }
0x3145   :  { %16157 = vrcp.f32 %v11408_v36 }
0x3146   :  { %v11405_v45 = vpop.xlane.xlu1 %11404 }
0x3147   :  { %16159 = vrcp.f32 %v11405_v45 }
0x3148   :  { %v11537_v24 = vpop.permute.xlu0 %11536 }
0x3149   :  { %15557 = vmatprep.subr.mxu1 %v11537_v24 }
0x314a   :  { %15558 = vmatpush3.msra.mxu1 %v11537_v24  ;;  %v11535_v34 = vpop.permute.xlu1 %11534  ;;  %v11869_v24 = vadd.f32 %v18678_v27, %v18095_v3 }
0x314b   :  { %15559 = vmatprep.subr.mxu1 %v11535_v34 }
0x314c   :  { %15560 = vmatpush3.msra.mxu1 %v11535_v34  ;;  %v11646_v31 = vpop.permute.xlu0 %11645 }
0x314d   :  { %15567 = vmatprep.subr.msk.mxu0 %vm2614_vm3, %v11646_v31 }
0x314e   :  { %15568 = vmatpush3.xpose.msk.msra.mxu0 %vm2614_vm3, %v11646_v31  ;;  %v11644_v41 = vpop.permute.xlu1 %11643  ;;  %v16154_v38 = vpop.eup %16153 }
0x314f   :  { %15569 = vmatprep.subr.msk.mxu0 %vm2614_vm3, %v11644_v41  ;;  %v11422_v59 = vmul.f32 %v16154_v38, %v19220_v19 }
0x3150   :  { %v16156_v2 = vpop.eup %16155 }
0x3151   :  { %v11421_v50 = vmul.f32 %v16156_v2, %v19224_v55  ;;  %v10390_v55 = vadd.f32 %v18980_v61, %v18996_v62  ;;  %v16194_v61 = vld [vmem:[%s19603_s5 + $0x1] ss:$0 sm:$0xff]  ;;  %s13672_s5 = sld [smem:[#allocation12 + $0x85]] }
0x3152   :  { %15570 = vmatpush3.xpose.msk.msra.mxu0 %vm2614_vm3, %v11644_v41  ;;  %v16158_v25 = vpop.eup %16157  ;;  %v8823_v62 = vadd.f32 %v16194_v61, %v18681_v29 }
0x3153   :  { %15561 = vmatprep.mubr.msk.f32.mxu1 %vm161_vm0, %v11421_v50  ;;  %v11424_v42 = vmul.f32 %v16158_v25, %v19228_v9  ;;  %v11097_v51 = vadd.f32 %v19170_v20, %v10390_v55  ;;  %v19656_v25 = vld [vmem:[#allocation22_spill] sm:$0xff]  ;;  %v12235_v55 = vld [vmem:[#allocation11 + $0xb0] sm:$0xff] }
0x3154   :  { %v16160_v49 = vpop.eup %16159  ;;  %15562 = vmatmul.mubr.msk.f32.vlgmr.msra.gmra.mxu1 %vm161_vm0, %v11422_v59 }
0x3155   :  { %v11423_v17 = vmul.f32 %v16160_v49, %v16146_v47  ;;  %v11870_v49 = vadd.f32 %v19656_v25, %v18101_v33 }
0x3157   :  { %15564 = vmatprep.mubr.msk.f32.mxu1 %vm161_vm0, %v11423_v17  ;;  %s11965_s15 = sadd.f32 1e-05, %s13672_s5 }
0x3158   :  { %15565 = vmatmul.mubr.msk.f32.gmra.mxu1 %vm161_vm0, %v11424_v42 }
0x3159   :  { %v11966_v40 = vstv %s11965_s15 }
0x315a   :  { %16161 = vrsqrt.f32 %v11966_v40  ;;  %vm11969_vm1 = vcmp.eq.f32.partialorder %v11966_v40, inf  ;;  %vm11971_vm2 = vcmp.eq.f32.partialorder %v11966_v40, 0.0 }
0x3180   :  { %v15549_v43 = vpop.f32.mrf.mxu0 }
0x3182   :  { %v11515_v21 = vpop.f32.mrf.mxu0 }
0x3183   :  { %15571 = vmatprep.mubr.msk.f32.mxu0 %vm2614_vm3, %v11515_v21  ;;  %v19658_v21 = vld [vmem:[#allocation23_spill] sm:$0xff] }
0x3184   :  { %v15552_v12 = vpop.f32.mrf.mxu0  ;;  %15572 = vmatmul.mubr.msk.f32.vlgmr.msra.gmra.mxu0 %vm2614_vm3, %v15549_v43  ;;  %v19657_v43 = vld [vmem:[#allocation25_spill] sm:$0xff] }
0x3186   :  { %v11525_v30 = vpop.f32.mrf.mxu0 }
0x3187   :  { %15574 = vmatprep.mubr.msk.f32.mxu0 %vm2614_vm3, %v11525_v30 }
0x3188   :  { %15575 = vmatmul.mubr.msk.f32.gmra.mxu0 %vm2614_vm3, %v15552_v12  ;;  %v11871_v12 = vadd.f32 %v19658_v21, %v19657_v43 }
0x3214   :  { %v15563_v23 = vpop.f32.mrf.mxu1 }
0x3216   :  { %v11624_v8 = vpop.f32.mrf.mxu1 }
0x3217   :  { %15577 = vmatprep.mubr.msk.f32.mxu0 %vm2614_vm3, %v11624_v8 }
0x3218   :  { %v15566_v13 = vpop.f32.mrf.mxu1  ;;  %15578 = vmatmul.mubr.msk.f32.gmra.mxu0 %vm2614_vm3, %v15563_v23 }
0x321a   :  { %v11634_v53 = vpop.f32.mrf.mxu1 }
0x321b   :  { %15580 = vmatprep.mubr.msk.f32.mxu0 %vm2614_vm3, %v11634_v53 }
0x321c   :  { %15581 = vmatmul.mubr.msk.f32.gmra.mxu0 %vm2614_vm3, %v15566_v13 }
0x3244   :  { %v15573_v18 = vpop.f32.mrf.mxu0 }
0x3245   :  { %v11781_v14 = vadd.f32 %v15573_v18, %v19162_v5  ;;  %v11868_v5 = vadd.f32 %v8823_v62, %v18093_v54 }
0x3246   :  { %v11741_v56 = vpop.f32.mrf.mxu0 }
0x3247   :  { %v11780_v19 = vadd.f32 %v11741_v56, %v19166_v44  ;;  %v11795_v37 = vadd.f32 %v13666_v26, %v11781_v14  ;;  %v12033_v14 = vld [vmem:[#allocation11 + $0x88] sm:$0xff] }
0x3248   :  { %v15576_v52 = vpop.f32.mrf.mxu0 }
0x3249   :  { %v11794_v6 = vadd.f32 %v13666_v26, %v11780_v19  ;;  %v11783_v47 = vadd.f32 %v15576_v52, %v19168_v10  ;;  %v12035_v19 = vld [vmem:[#allocation11 + $0x98] sm:$0xff]  ;;  %v12034_v52 = vld [vmem:[#allocation11 + $0x90] sm:$0xff] }
0x324a   :  { %v11751_v9 = vpop.f32.mrf.mxu0  ;;  %15583 = vmatprep.subr.mxu1 %v12035_v19 }
0x324b   :  { %11802 = vxpose.xlu0.b32.start [1/4] (short) (narrow) %v11794_v6, 16  ;;  %v11782_v58 = vadd.f32 %v11751_v9, %v11097_v51  ;;  %v11797_v44 = vadd.f32 %v13666_v26, %v11783_v47  ;;  %15584 = vmatpush3.msra.mxu1 %v12035_v19  ;;  %v12234_v6 = vld [vmem:[#allocation11 + $0xa8] sm:$0xff]  ;;  %v12032_v9 = vld [vmem:[#allocation11 + $0x80] sm:$0xff] }
0x324c   :  { %15585 = vmatprep.subr.mxu1 %v12034_v52  ;;  %v12233_v51 = vld [vmem:[#allocation11 + $0xa0] sm:$0xff] }
0x324d   :  { %v11796_v11 = vadd.f32 %v13666_v26, %v11782_v58  ;;  %15586 = vmatpush3.msra.mxu1 %v12034_v52 }
0x324e   :  { %15587 = vmatprep.subr.mxu1 %v12033_v14 }
0x324f   :  { %11803 = vxpose.xlu0.b32.cont [2/4] (short) (narrow) %v11795_v37, 16  ;;  %15588 = vmatpush3.msra.mxu1 %v12033_v14 }
0x3250   :  { %15589 = vmatprep.subr.mxu1 %v12032_v9 }
0x3251   :  { %15590 = vmatpush3.msra.mxu1 %v12032_v9 }
0x3253   :  { %11804 = vxpose.xlu0.b32.cont [3/4] (short) (narrow) %v11796_v11, 16 }
0x3257   :  { %11805 = vxpose.xlu0.b32.end [4/4] (short) (narrow) %v11797_v44, 16 }
0x32c7   :  { %v11818_v35 = vpop.trf.xlu0 }
0x32c8   :  { %v11872_v20 = vadd.f32 %v11868_v5, %v11818_v35 }
0x32ca   :  { %v11876_v32 = vsel %vm161_vm0, %v11872_v20, 0.0 }
0x32cb   :  { %11877 = vadd.xlane.f32.xlu0 %v11876_v32 }
0x32d8   :  { %v15579_v48 = vpop.f32.mrf.mxu0 }
0x32d9   :  { %v11785_v60 = vadd.f32 %v15579_v48, %v19176_v39  ;;  %v11972_v39 = vand.u32 2147483648, %v11966_v40 }
0x32da   :  { %v11761_v15 = vpop.f32.mrf.mxu0 }
0x32db   :  { %v11784_v10 = vadd.f32 %v11761_v15, %v19180_v4  ;;  %v11799_v28 = vadd.f32 %v13666_v26, %v11785_v60  ;;  %v16162_v4 = vpop.eup %16161  ;;  %v19314_v60 = vld [vmem:[#allocation9 + $0x4] sm:$0xf] }
0x32dc   :  { %v15582_v46 = vpop.f32.mrf.mxu0  ;;  %v11968_v16 = vmul.f32 %v16162_v4, %v11966_v40 }
0x32dd   :  { %v11798_v1 = vadd.f32 %v13666_v26, %v11784_v10  ;;  %v11787_v54 = vadd.f32 %v15582_v46, %v19184_v22  ;;  %v19311_v10 = vld [vmem:[#allocation11 + $0x78] sm:$0xff] }
0x32de   :  { %v11771_v0 = vpop.f32.mrf.mxu0  ;;  %v11970_v36 = vsel %vm11969_vm1, %v11966_v40, %v11968_v16  ;;  %15597 = vmatprep.subr.mxu1 %v19311_v10 }
0x32df   :  { %11834 = vxpose.xlu1.b32.start [1/4] (short) (narrow) %v11798_v1, 16  ;;  %v11786_v29 = vadd.f32 %v11771_v0, %v19186_v7  ;;  %v11801_v63 = vadd.f32 %v13666_v26, %v11787_v54  ;;  %v11973_v45 = vsel %vm11971_vm2, %v11972_v39, %v11970_v36  ;;  %v11819_v7 = vpop.trf.xlu0  ;;  %v19659_v0 = vld [vmem:[#allocation19_spill] sm:$0xff]  ;;  %v19331_v36 = vstv %s13667_s19 }
0x32e0   :  { %15707 = vpush %v11973_v45  ;;  %v11873_v22 = vadd.f32 %v11869_v24, %v11819_v7  ;;  %v19335_v7 = vstv %s13668_s13  ;;  %s13734_s13 = sld [smem:[#allocation12 + $0x8f]] }
0x32e1   :  { %v11800_v57 = vadd.f32 %v13666_v26, %v11786_v29  ;;  %v12236_v26 = vld [vmem:[#allocation11 + $0xb8] sm:$0xff] }
0x32e2   :  { %v11879_v34 = vsel %vm161_vm0, %v11873_v22, 0.0  ;;  %15611 = vmatprep.subr.mxu0 %v12236_v26 }
0x32e3   :  { %11835 = vxpose.xlu1.b32.cont [2/4] (short) (narrow) %v11799_v28, 16  ;;  %15612 = vmatpush3.msra.mxu0 %v12236_v26  ;;  %v19660_v28 = vsub.s32 0, %v19659_v0 }
0x32e4   :  { %15613 = vmatprep.subr.mxu0 %v12235_v55 }
0x32e5   :  { %15614 = vmatpush3.msra.mxu0 %v12235_v55  ;;  %v19320_v29 = vrot.slane %v19314_v60, %v19660_v28 }
0x32e6   :  { %15615 = vmatprep.subr.mxu0 %v12234_v6 }
0x32e7   :  { %11836 = vxpose.xlu1.b32.cont [3/4] (short) (narrow) %v11800_v57, 16  ;;  %15616 = vmatpush3.msra.mxu0 %v12234_v6  ;;  %v19661_v57 = vsub.s32 1, %v19659_v0 }
0x32e8   :  { %15617 = vmatprep.subr.mxu0 %v12233_v51 }
0x32e9   :  { %15618 = vmatpush3.msra.mxu0 %v12233_v51 }
0x32eb   :  { %11837 = vxpose.xlu1.b32.end [4/4] (short) (narrow) %v11801_v63, 16  ;;  %v19326_v63 = vrot.slane %v19314_v60, %v19661_v57 }
0x3311   :  { %s15708_s30 = spop %15707 }
0x3312   :  { %11880 = vadd.xlane.f32.xlu1 %v11879_v34  ;;  %v11975_v31 = vstv %s15708_s30  ;;  %v12349_v34 = vstv %s12348_s26  ;;  %s13688_s26 = sld [smem:[#allocation12 + $0x89]] }
0x3313   :  { %16163 = vrcp.f32 %v11975_v31  ;;  %vm12352_vm3 = vcmp.eq.f32.partialorder %v12349_v34, inf  ;;  %v12355_v43 = vand.u32 2147483648, %v12349_v34  ;;  %vm12354_vm4 = vcmp.eq.f32.partialorder %v12349_v34, 0.0 }
0x3320   :  { %v16164_v41 = vpop.eup %16163 }
0x3321   :  { %15709 = vpush %v16164_v41 }
0x3352   :  { %s15710_s4 = spop %15709 }
0x3353   :  { %s11978_s17 = smul.f32 %s15710_s4, %s13669_s1  ;;  %s12955_s1 = sadd.f32 1e-05, %s13734_s13 }
0x3354   :  { %v11878_v38 = vpop.xlane.xlu0 %11877  ;;  %s19567_s13 = sld [smem:[#allocation12 + $0x8c]] }
0x3355   :  { %v11888_v2 = vmul.f32 0.03125, %v11878_v38  ;;  %v19341_v41 = vstv %s11978_s17  ;;  %s13687_s17 = sld [smem:[#allocation12 + $0x88]] }
0x3357   :  { %v19285_v50 = vsub.f32 %v11872_v20, %v11888_v2 }
0x3359   :  { %v11896_v59 = vmul.f32 %v19285_v50, %v19285_v50 }
0x335b   :  { %v11850_v3 = vpop.trf.xlu1  ;;  %v11900_v27 = vsel %vm161_vm0, %v11896_v59, 0.0  ;;  %v19345_v59 = vstv %s13670_s0 }
0x335c   :  { %v11874_v17 = vadd.f32 %v11870_v49, %v11850_v3  ;;  %11901 = vadd.xlane.f32.xlu1 %v11900_v27 }
0x335e   :  { %v11882_v42 = vsel %vm161_vm0, %v11874_v17, 0.0 }
0x335f   :  { %11883 = vadd.xlane.f32.xlu0 %v11882_v42  ;;  %v11851_v30 = vpop.trf.xlu1 }
0x3360   :  { %v11875_v23 = vadd.f32 %v11871_v12, %v11851_v30 }
0x3362   :  { %v11885_v8 = vsel %vm161_vm0, %v11875_v23, 0.0 }
0x3363   :  { %11886 = vadd.xlane.f32.xlu0 %v11885_v8 }
0x339b   :  { %v11881_v13 = vpop.xlane.xlu1 %11880 }
0x339c   :  { %v11889_v53 = vmul.f32 0.03125, %v11881_v13 }
0x339e   :  { %v19296_v18 = vsub.f32 %v11873_v22, %v11889_v53  ;;  %v19338_v22 = vstv %s13671_s21  ;;  %s13673_s21 = sld [smem:[#allocation12 + $0x86]] }
0x33a0   :  { %v11897_v33 = vmul.f32 %v19296_v18, %v19296_v18 }
0x33a2   :  { %v11903_v56 = vsel %vm161_vm0, %v11897_v33, 0.0 }
0x33a3   :  { %11904 = vadd.xlane.f32.xlu0 %v11903_v56 }
0x33e5   :  { %v11902_v32 = vpop.xlane.xlu1 %11901 }
0x33e6   :  { %v11912_v48 = vmul.f32 0.03125, %v11902_v32 }
0x33e8   :  { %v11884_v37 = vpop.xlane.xlu0 %11883  ;;  %v11916_v15 = vadd.f32 1e-05, %v11912_v48 }
0x33e9   :  { %v11890_v58 = vmul.f32 0.03125, %v11884_v37 }
0x33ea   :  { %16165 = vrsqrt.f32 %v11916_v15 }
0x33eb   :  { %v19301_v47 = vsub.f32 %v11874_v17, %v11890_v58 }
0x33ec   :  { %v11887_v11 = vpop.xlane.xlu0 %11886 }
0x33ed   :  { %v11891_v44 = vmul.f32 0.03125, %v11887_v11  ;;  %v11898_v61 = vmul.f32 %v19301_v47, %v19301_v47 }
0x33ef   :  { %v19305_v62 = vsub.f32 %v11875_v23, %v11891_v44  ;;  %v11906_v5 = vsel %vm161_vm0, %v11898_v61, 0.0 }
0x33f0   :  { %11907 = vadd.xlane.f32.xlu1 %v11906_v5  ;;  %v12015_v5 = vld [vmem:[#allocation11 + $0x70] sm:$0xff] }
0x33f1   :  { %v11899_v35 = vmul.f32 %v19305_v62, %v19305_v62 }
0x33f3   :  { %v11909_v20 = vsel %vm161_vm0, %v11899_v35, 0.0  ;;  %v12014_v35 = vld [vmem:[#allocation11 + $0x68] sm:$0xff] }
0x33f4   :  { %11910 = vadd.xlane.f32.xlu0 %v11909_v20  ;;  %v12013_v20 = vld [vmem:[#allocation11 + $0x60] sm:$0xff] }
0x33f7   :  { %v16166_v46 = vpop.eup %16165 }
0x33f8   :  { %v11924_v1 = vmul.f32 %v16166_v46, %v19285_v50 }
0x33fa   :  { %v11932_v54 = vmul.f32 %v19320_v29, %v11924_v1 }
0x33fc   :  { %v19329_v16 = vadd.f32 %v19326_v63, %v11932_v54 }
0x33fe   :  { %v11946_v45 = vmul.f32 %v19331_v36, %v19329_v16 }
0x3400   :  { %v11952_v24 = vadd.f32 %v19335_v7, %v11946_v45 }
0x3402   :  { %v11961_v31 = vsub.f32 %v11952_v24, %v19338_v22 }
0x3404   :  { %v11980_v50 = vmul.f32 %v19341_v41, %v11961_v31 }
0x3406   :  { %v11985_v3 = vadd.f32 %v19345_v59, %v11980_v50 }
0x3408   :  { %v11989_v21 = vmax.f32 %v11985_v3, 0.0 }
0x340a   :  { %v11998_v53 = vrot.slane %v11989_v21, 7 }
0x340c   :  { %v19359_v56 = vsel %vm5535_vm8, 0.0, %v11998_v53 }
0x340d   :  { %v12021_v55 = vrot.slane %v19359_v56, 1  ;;  %v12222_v14 = vrot.slane %v19359_v56, 2 }
0x342c   :  { %v11905_v40 = vpop.xlane.xlu0 %11904 }
0x342d   :  { %v11913_v4 = vmul.f32 0.03125, %v11905_v40 }
0x342f   :  { %v11917_v39 = vadd.f32 1e-05, %v11913_v4 }
0x3431   :  { %16167 = vrsqrt.f32 %v11917_v39 }
0x3432   :  { %16169 = vrsqrt.f32 %v12349_v34 }
0x343e   :  { %v16168_v38 = vpop.eup %16167 }
0x343f   :  { %v11925_v2 = vmul.f32 %v16168_v38, %v19296_v18  ;;  %v16170_v17 = vpop.eup %16169 }
0x3440   :  { %v12351_v12 = vmul.f32 %v16170_v17, %v12349_v34 }
0x3441   :  { %v11933_v25 = vmul.f32 %v19320_v29, %v11925_v2 }
0x3442   :  { %v12353_v23 = vsel %vm12352_vm3, %v12349_v34, %v12351_v12 }
0x3443   :  { %v19349_v49 = vadd.f32 %v19326_v63, %v11933_v25  ;;  %v12356_v13 = vsel %vm12354_vm4, %v12355_v43, %v12353_v23 }
0x3444   :  { %15711 = vpush %v12356_v13 }
0x3445   :  { %v11947_v27 = vmul.f32 %v19331_v36, %v19349_v49 }
0x3447   :  { %v11953_v42 = vadd.f32 %v19335_v7, %v11947_v27 }
0x3449   :  { %v11962_v30 = vsub.f32 %v11953_v42, %v19338_v22 }
0x344b   :  { %v11981_v8 = vmul.f32 %v19341_v41, %v11962_v30 }
0x344d   :  { %v11986_v18 = vadd.f32 %v19345_v59, %v11981_v8 }
0x344f   :  { %v11990_v33 = vmax.f32 %v11986_v18, 0.0 }
0x3451   :  { %v11999_v19 = vrot.slane %v11990_v33, 7 }
0x3453   :  { %v19362_v26 = vsel %vm5535_vm8, %v11998_v53, %v11999_v19  ;;  %v12010_v52 = vsel %vm5535_vm8, %v11999_v19, 0.0  ;;  %v13694_v19 = vld [vmem:[%s19610_s12 + $0xb8] sm:$0xff] }
0x3454   :  { %v12022_v6 = vrot.slane %v19362_v26, 1  ;;  %v12223_v9 = vrot.slane %v19362_v26, 2  ;;  %v12024_v51 = vrot.slane %v12010_v52, 1  ;;  %v12225_v37 = vrot.slane %v12010_v52, 2  ;;  %15639 = vmatprep.subr.mxu0 %v13694_v19  ;;  %v13693_v52 = vld [vmem:[%s19610_s12 + $0xb0] sm:$0xff] }
0x3456   :  { %v12023_v58 = vsel %vm5558_vm9, %v12021_v55, %v12022_v6  ;;  %v12224_v11 = vsel %vm5760_vm10, %v12222_v14, %v12223_v9  ;;  %v12025_v44 = vsel %vm5558_vm9, %v12022_v6, %v12024_v51  ;;  %v12226_v61 = vsel %vm5760_vm10, %v12223_v9, %v12225_v37  ;;  %v13697_v55 = vld [vmem:[%s19610_s12 + $0xd0] sm:$0xff]  ;;  %v13691_v14 = vld [vmem:[%s19610_s12 + $0xa0] sm:$0xff]  ;;  %v13696_v6 = vld [vmem:[%s19610_s12 + $0xc8] sm:$0xff] }
0x3457   :  { %15591 = vmatprep.mubr.msk.f32.mxu1 %vm161_vm0, %v12023_v58  ;;  %15619 = vmatprep.mubr.msk.f32.mxu0 %vm161_vm0, %v12224_v11  ;;  %v19441_v9 = vld [vmem:[%s19610_s12 + $0x118] sm:$0xff]  ;;  %v13695_v51 = vld [vmem:[%s19610_s12 + $0xc0] sm:$0xff]  ;;  %v12956_v58 = vstv %s12955_s1  ;;  %s13733_s1 = sld [smem:[#allocation12 + $0x8e]] }
0x3458   :  { %15592 = vmatmul.mubr.msk.f32.vlgmr.msra.gmra.mxu1 %vm161_vm0, %v12025_v44  ;;  %15620 = vmatmul.mubr.msk.f32.vlgmr.msra.gmra.mxu0 %vm161_vm0, %v12226_v61  ;;  %v19450_v37 = vld [vmem:[%s19610_s12 + $0xf8] sm:$0xff]  ;;  %vm12959_vm5 = vcmp.eq.f32.partialorder %v12956_v58, inf  ;;  %v12962_v44 = vand.u32 2147483648, %v12956_v58  ;;  %vm12961_vm6 = vcmp.eq.f32.partialorder %v12956_v58, 0.0 }
0x3459   :  { %15598 = vmatpush3.msra.mxu1 %v19311_v10  ;;  %15640 = vmatpush3.msra.mxu0 %v13694_v19 }
0x345a   :  { %15599 = vmatprep.subr.mxu1 %v12015_v5  ;;  %15641 = vmatprep.subr.mxu0 %v13693_v52 }
0x345b   :  { %15600 = vmatpush3.msra.mxu1 %v12015_v5  ;;  %15642 = vmatpush3.msra.mxu0 %v13693_v52 }
0x345c   :  { %15601 = vmatprep.subr.mxu1 %v12014_v35 }
0x345d   :  { %15602 = vmatpush3.msra.mxu1 %v12014_v35 }
0x345e   :  { %15603 = vmatprep.subr.mxu1 %v12013_v20 }
0x345f   :  { %15604 = vmatpush3.msra.mxu1 %v12013_v20 }
0x3475   :  { %s15712_s10 = spop %15711 }
0x3476   :  { %v12358_v25 = vstv %s15712_s10 }
0x3479   :  { %v11908_v32 = vpop.xlane.xlu1 %11907 }
0x347a   :  { %v11914_v48 = vmul.f32 0.03125, %v11908_v32 }
0x347c   :  { %v11918_v15 = vadd.f32 1e-05, %v11914_v48 }
0x347d   :  { %v11911_v46 = vpop.xlane.xlu0 %11910 }
0x347e   :  { %16171 = vrsqrt.f32 %v11918_v15  ;;  %v11915_v1 = vmul.f32 0.03125, %v11911_v46 }
0x3480   :  { %v11919_v28 = vadd.f32 1e-05, %v11915_v1 }
0x3482   :  { %16173 = vrsqrt.f32 %v11919_v28 }
0x3483   :  { %16175 = vrcp.f32 %v12358_v25 }
0x3484   :  { %16177 = vrsqrt.f32 %v12956_v58 }
0x348b   :  { %v16172_v54 = vpop.eup %16171 }
0x348c   :  { %v11926_v57 = vmul.f32 %v16172_v54, %v19301_v47 }
0x348e   :  { %v11934_v10 = vmul.f32 %v19320_v29, %v11926_v57 }
0x348f   :  { %v16174_v40 = vpop.eup %16173 }
0x3490   :  { %v19381_v4 = vadd.f32 %v19326_v63, %v11934_v10  ;;  %v11927_v39 = vmul.f32 %v16174_v40, %v19305_v62  ;;  %v16176_v33 = vpop.eup %16175  ;;  %v12334_v10 = vstv %s13673_s21 }
0x3491   :  { %15713 = vpush %v16176_v33  ;;  %v16178_v11 = vpop.eup %16177 }
0x3492   :  { %v11935_v45 = vmul.f32 %v19320_v29, %v11927_v39  ;;  %v11948_v24 = vmul.f32 %v19331_v36, %v19381_v4  ;;  %v12958_v61 = vmul.f32 %v16178_v11, %v12956_v58 }
0x3494   :  { %v19388_v34 = vadd.f32 %v19326_v63, %v11935_v45  ;;  %v11954_v31 = vadd.f32 %v19335_v7, %v11948_v24  ;;  %v12960_v5 = vsel %vm12959_vm5, %v12956_v58, %v12958_v61 }
0x3495   :  { %v12963_v35 = vsel %vm12961_vm6, %v12962_v44, %v12960_v5 }
0x3496   :  { %v11949_v47 = vmul.f32 %v19331_v36, %v19388_v34  ;;  %v11963_v38 = vsub.f32 %v11954_v31, %v19338_v22  ;;  %15715 = vpush %v12963_v35  ;;  %v12343_v31 = vstv %s13688_s26  ;;  %v13717_v35 = vld [vmem:[%s19610_s12 + $0x110] sm:$0xff]  ;;  %s16361_s26 = smov [#allocation13]  }
0x3498   :  { %v11955_v2 = vadd.f32 %v19335_v7, %v11949_v47  ;;  %v11982_v50 = vmul.f32 %v19341_v41, %v11963_v38 }
0x349a   :  { %v11964_v62 = vsub.f32 %v11955_v2, %v19338_v22  ;;  %v11987_v29 = vadd.f32 %v19345_v59, %v11982_v50 }
0x349c   :  { %v11983_v63 = vmul.f32 %v19341_v41, %v11964_v62  ;;  %v11991_v3 = vmax.f32 %v11987_v29, 0.0 }
0x349e   :  { %v11988_v27 = vadd.f32 %v19345_v59, %v11983_v63  ;;  %v12001_v17 = vrot.slane %v11991_v3, 7 }
0x34a0   :  { %v11992_v36 = vmax.f32 %v11988_v27, 0.0  ;;  %v12009_v42 = vsel %vm5535_vm8, 0.0, %v12001_v17 }
0x34a1   :  { %v12026_v21 = vrot.slane %v12009_v42, 1  ;;  %v12227_v12 = vrot.slane %v12009_v42, 2 }
0x34a2   :  { %v12002_v43 = vrot.slane %v11992_v36, 7  ;;  %v12367_v36 = vstv %s13687_s17 }
0x34a4   :  { %v12003_v7 = vsel %vm5535_vm8, %v12001_v17, %v12002_v43  ;;  %v12011_v22 = vsel %vm5535_vm8, %v12002_v43, 0.0 }
0x34a5   :  { %v12027_v30 = vrot.slane %v12003_v7, 1  ;;  %v12228_v23 = vrot.slane %v12003_v7, 2  ;;  %v12029_v8 = vrot.slane %v12011_v22, 1  ;;  %v12230_v13 = vrot.slane %v12011_v22, 2 }
0x34a7   :  { %v12028_v41 = vsel %vm5558_vm9, %v12026_v21, %v12027_v30  ;;  %v12229_v53 = vsel %vm5760_vm10, %v12227_v12, %v12228_v23  ;;  %v12030_v59 = vsel %vm5558_vm9, %v12027_v30, %v12029_v8  ;;  %v12231_v18 = vsel %vm5760_vm10, %v12228_v23, %v12230_v13 }
0x34a8   :  { %15594 = vmatprep.mubr.msk.f32.mxu1 %vm161_vm0, %v12028_v41  ;;  %15622 = vmatprep.mubr.msk.f32.mxu0 %vm161_vm0, %v12229_v53 }
0x34a9   :  { %15595 = vmatmul.mubr.msk.f32.gmra.mxu1 %vm161_vm0, %v12030_v59  ;;  %15623 = vmatmul.mubr.msk.f32.gmra.mxu0 %vm161_vm0, %v12231_v18 }
0x34aa   :  { %15605 = vmatprep.mubr.msk.f32.mxu1 %vm161_vm0, %v19359_v56  ;;  %v13698_v56 = vld [vmem:[%s19610_s12 + $0xd8] sm:$0xff] }
0x34ab   :  { %15625 = vmatprep.subr.mxu1 %v13698_v56 }
0x34ad   :  { %15606 = vmatmul.mubr.msk.f32.vlgmr.msra.gmra.mxu1 %vm161_vm0, %v19362_v26  ;;  %v13692_v26 = vld [vmem:[%s19610_s12 + $0xa8] sm:$0xff] }
0x34ae   :  { %15608 = vmatprep.mubr.msk.f32.mxu1 %vm161_vm0, %v12009_v42  ;;  %15626 = vmatpush3.msra.mxu1 %v13698_v56 }
0x34af   :  { %15643 = vmatprep.subr.mxu0 %v13692_v26  ;;  %15627 = vmatprep.subr.mxu1 %v13697_v55 }
0x34b0   :  { %15644 = vmatpush3.msra.mxu0 %v13692_v26  ;;  %15628 = vmatpush3.msra.mxu1 %v13697_v55 }
0x34b1   :  { %15609 = vmatmul.mubr.msk.f32.gmra.mxu1 %vm161_vm0, %v12003_v7  ;;  %15645 = vmatprep.subr.mxu0 %v13691_v14 }
0x34b2   :  { %15629 = vmatprep.subr.mxu1 %v13696_v6  ;;  %15646 = vmatpush3.msra.mxu0 %v13691_v14 }
0x34b3   :  { %15630 = vmatpush3.msra.mxu1 %v13696_v6  ;;  %15667 = vmatprep.subr.mxu0 %v19441_v9 }
0x34b4   :  { %15631 = vmatprep.subr.mxu1 %v13695_v51 }
0x34b5   :  { %15632 = vmatpush3.msra.mxu1 %v13695_v51 }
0x34b6   :  { %15653 = vmatprep.subr.mxu1 %v19450_v37 }
0x34c2   :  { %s15714_s4 = spop %15713 }
0x34c3   :  { %s12361_s10 = smul.f32 %s15714_s4, %s13686_s29  ;;  %s13732_s29 = sld [smem:[#allocation12 + $0x8d]] }
0x34c5   :  { %v12362_v62 = vstv %s12361_s10 }
0x34c7   :  { %s15716_s0 = spop %15715 }
0x34c8   :  { %v12965_v15 = vstv %s15716_s0  ;;  %s13064_s0 = sshll.u32 %s16361_s26, 4  ;;  %s13065_s0 = int_to_ptr.vmem [resolvable:$true] %s13064_s0 }
0x34c9   :  { %16179 = vrcp.f32 %v12965_v15  ;;  %s16303_s17 = scalar_lea.vmem %s13065_s0, 512  ;;  %p16308_p12 = scmp.lt.s32.totalorder %s13065_s0, %s13065_s0 }
0x34ca   :  { %p16304_p11 = scmp.ne.s32.totalorder %s13065_s0, %s16303_s17  ;;  %p16309_p13 = scmp.lt.s32.totalorder %s16303_s17, %s16303_s17 }
0x34cc   :  { %p16310_p0 = por %p16309_p13, %p16308_p12 }
0x34ce   :  { %p16311_p1 = pnand %p16310_p0, %p16304_p11 }
0x34d6   :  { %v16180_v12 = vpop.eup %16179 }
0x34d7   :  { %15717 = vpush %v16180_v12 }
0x3508   :  { %s15718_s21 = spop %15717 }
0x3509   :  { %s12968_s4 = smul.f32 %s15718_s21, %s19567_s13 }
0x3518   :  { %v15593_v20 = vpop.f32.mrf.mxu1  ;;  %v15621_v46 = vpop.f32.mrf.mxu0 }
0x351a   :  { %v12110_v32 = vpop.f32.mrf.mxu1  ;;  %v12311_v57 = vpop.f32.mrf.mxu0 }
0x3569   :  { %v15596_v48 = vpop.f32.mrf.mxu1  ;;  %v15624_v24 = vpop.f32.mrf.mxu0 }
0x356b   :  { %v12120_v1 = vpop.f32.mrf.mxu1  ;;  %v12321_v17 = vpop.f32.mrf.mxu0 }
0x356d   :  { %v15607_v28 = vpop.f32.mrf.mxu1 }
0x356e   :  { %v12209_v54 = vadd.f32 %v15607_v28, %v15593_v20  ;;  %v13716_v28 = vld [vmem:[%s19610_s12 + $0x108] sm:$0xff] }
0x356f   :  { %v12203_v40 = vpop.f32.mrf.mxu1 }
0x3570   :  { %v12331_v39 = vadd.f32 %v15621_v46, %v12209_v54  ;;  %v12204_v45 = vadd.f32 %v12203_v40, %v12110_v32 }
0x3571   :  { %v15610_v47 = vpop.f32.mrf.mxu1 }
0x3572   :  { %v12336_v38 = vadd.f32 %v12334_v10, %v12331_v39  ;;  %v12330_v2 = vadd.f32 %v12311_v57, %v12204_v45  ;;  %v12219_v50 = vadd.f32 %v15610_v47, %v15596_v48  ;;  %v13709_v57 = vld [vmem:[%s19610_s12 + $0xf0] sm:$0xff] }
0x3573   :  { %v12213_v29 = vpop.f32.mrf.mxu1 }
0x3574   :  { %v12345_v25 = vsub.f32 %v12336_v38, %v12343_v31  ;;  %v12335_v63 = vadd.f32 %v12334_v10, %v12330_v2  ;;  %v12333_v3 = vadd.f32 %v15624_v24, %v12219_v50  ;;  %v12214_v27 = vadd.f32 %v12213_v29, %v12120_v1  ;;  %v13715_v24 = vld [vmem:[%s19610_s12 + $0x100] sm:$0xff] }
0x3576   :  { %v12344_v42 = vsub.f32 %v12335_v63, %v12343_v31  ;;  %v12338_v43 = vadd.f32 %v12334_v10, %v12333_v3  ;;  %v12364_v7 = vmul.f32 %v12362_v62, %v12345_v25  ;;  %v12332_v21 = vadd.f32 %v12321_v17, %v12214_v27  ;;  %v13707_v25 = vld [vmem:[%s19610_s12 + $0xe0] sm:$0xff] }
0x3578   :  { %v12347_v22 = vsub.f32 %v12338_v43, %v12343_v31  ;;  %v12363_v30 = vmul.f32 %v12362_v62, %v12344_v42  ;;  %v12369_v23 = vadd.f32 %v12367_v36, %v12364_v7  ;;  %v12337_v8 = vadd.f32 %v12334_v10, %v12332_v21  ;;  %v13726_v43 = vld [vmem:[%s19610_s12 + $0x138] sm:$0xff] }
0x357a   :  { %v12366_v13 = vmul.f32 %v12362_v62, %v12347_v22  ;;  %v12368_v41 = vadd.f32 %v12367_v36, %v12363_v30  ;;  %v12373_v53 = vmax.f32 %v12369_v23, 0.0  ;;  %v12346_v59 = vsub.f32 %v12337_v8, %v12343_v31  ;;  %v13725_v30 = vld [vmem:[%s19610_s12 + $0x130] sm:$0xff] }
0x357c   :  { %v12371_v18 = vadd.f32 %v12367_v36, %v12366_v13  ;;  %v12372_v33 = vmax.f32 %v12368_v41, 0.0  ;;  %v12382_v19 = vrot.slane %v12373_v53, 6  ;;  %v12365_v52 = vmul.f32 %v12362_v62, %v12346_v59  ;;  %v13724_v41 = vld [vmem:[%s19610_s12 + $0x128] sm:$0xff]  ;;  %v13723_v59 = vld [vmem:[%s19610_s12 + $0x120] sm:$0xff] }
0x357e   :  { %v12375_v56 = vmax.f32 %v12371_v18, 0.0  ;;  %v19454_v26 = vsel %vm5920_vm13, %v12382_v19, 0.0  ;;  %v12381_v55 = vrot.slane %v12372_v33, 6  ;;  %v12370_v14 = vadd.f32 %v12367_v36, %v12365_v52 }
0x357f   :  { %v12407_v44 = vrot.slane %v19454_v26, 1  ;;  %v12720_v29 = vrot.slane %v19454_v26, 3  ;;  %v12608_v36 = vrot.slane %v19454_v26, 2  ;;  %v12832_v52 = vrot.slane %v19454_v26, 4 }
0x3580   :  { %v12385_v6 = vrot.slane %v12375_v56, 6  ;;  %v19457_v51 = vsel %vm5920_vm13, 0.0, %v12381_v55  ;;  %v19460_v58 = vsel %vm5920_vm13, %v12381_v55, %v12382_v19  ;;  %v12374_v11 = vmax.f32 %v12370_v14, 0.0 }
0x3581   :  { %15647 = vmatprep.mubr.msk.f32.mxu0 %vm161_vm0, %v19457_v51  ;;  %v12404_v61 = vrot.slane %v19457_v51, 1  ;;  %v12405_v5 = vrot.slane %v19460_v58, 1  ;;  %v12717_v54 = vrot.slane %v19457_v51, 3  ;;  %v12605_v38 = vrot.slane %v19457_v51, 2 }
0x3582   :  { %15648 = vmatmul.mubr.msk.f32.vlgmr.msra.gmra.mxu0 %vm161_vm0, %v19460_v58  ;;  %v12384_v20 = vrot.slane %v12374_v11, 6  ;;  %v19473_v32 = vsel %vm5920_vm13, %v12385_v6, 0.0  ;;  %v12606_v2 = vrot.slane %v19460_v58, 2  ;;  %v12829_v23 = vrot.slane %v19457_v51, 4 }
0x3583   :  { %15668 = vmatpush3.msra.mxu0 %v19441_v9  ;;  %v12406_v48 = vsel %vm5558_vm9, %v12404_v61, %v12405_v5  ;;  %v12408_v15 = vsel %vm5558_vm9, %v12405_v5, %v12407_v44  ;;  %v12718_v9 = vrot.slane %v19460_v58, 3  ;;  %v12412_v39 = vrot.slane %v19473_v32, 1 }
0x3584   :  { %15633 = vmatprep.mubr.msk.f32.mxu1 %vm161_vm0, %v12406_v48  ;;  %15669 = vmatprep.subr.mxu0 %v13717_v35  ;;  %v19480_v46 = vsel %vm5920_vm13, 0.0, %v12384_v20  ;;  %v19483_v1 = vsel %vm5920_vm13, %v12384_v20, %v12385_v6  ;;  %v12607_v63 = vsel %vm5760_vm10, %v12605_v38, %v12606_v2  ;;  %v12725_v7 = vrot.slane %v19473_v32, 3 }
0x3585   :  { %15634 = vmatmul.mubr.msk.f32.vlgmr.msra.gmra.mxu1 %vm161_vm0, %v12408_v15  ;;  %15650 = vmatprep.mubr.msk.f32.mxu0 %vm161_vm0, %v19480_v46  ;;  %v12409_v10 = vrot.slane %v19480_v46, 1  ;;  %v12410_v40 = vrot.slane %v19483_v1, 1  ;;  %v12719_v31 = vsel %vm6256_vm14, %v12717_v54, %v12718_v9  ;;  %v12722_v50 = vrot.slane %v19480_v46, 3 }
0x3586   :  { %15670 = vmatpush3.msra.mxu0 %v13717_v35  ;;  %15654 = vmatpush3.msra.mxu1 %v19450_v37  ;;  %v13708_v37 = vld [vmem:[%s19610_s12 + $0xe8] sm:$0xff]  ;;  %v12723_v62 = vrot.slane %v19483_v1, 3  ;;  %v12721_v3 = vsel %vm6256_vm14, %v12718_v9, %v12720_v29  ;;  %v12610_v27 = vrot.slane %v19480_v46, 2  ;;  %v12611_v17 = vrot.slane %v19483_v1, 2  ;;  %s13690_s12 = sld [smem:[#allocation12 + $0x8b]] }
0x3587   :  { %15651 = vmatmul.mubr.msk.f32.gmra.mxu0 %vm161_vm0, %v19483_v1  ;;  %15671 = vmatprep.subr.mxu0 %v13716_v28  ;;  %v12411_v45 = vsel %vm5558_vm9, %v12409_v10, %v12410_v40  ;;  %v12413_v47 = vsel %vm5558_vm9, %v12410_v40, %v12412_v39  ;;  %v12609_v21 = vsel %vm5760_vm10, %v12606_v2, %v12608_v36  ;;  %v12830_v8 = vrot.slane %v19460_v58, 4 }
0x3588   :  { %15655 = vmatprep.subr.mxu1 %v13709_v57  ;;  %15672 = vmatpush3.msra.mxu0 %v13716_v28  ;;  %v12724_v42 = vsel %vm6256_vm14, %v12722_v50, %v12723_v62  ;;  %v12612_v12 = vsel %vm5760_vm10, %v12610_v27, %v12611_v17  ;;  %v12726_v22 = vsel %vm6256_vm14, %v12723_v62, %v12725_v7  ;;  %v12613_v13 = vrot.slane %v19473_v32, 2 }
0x3589   :  { %15675 = vmatprep.mubr.msk.f32.mxu0 %vm161_vm0, %v12719_v31  ;;  %15636 = vmatprep.mubr.msk.f32.mxu1 %vm161_vm0, %v12411_v45  ;;  %v12831_v18 = vsel %vm6369_vm15, %v12829_v23, %v12830_v8  ;;  %v12834_v33 = vrot.slane %v19480_v46, 4  ;;  %v12835_v19 = vrot.slane %v19483_v1, 4  ;;  %v12833_v56 = vsel %vm6369_vm15, %v12830_v8, %v12832_v52 }
0x358a   :  { %15656 = vmatpush3.msra.mxu1 %v13709_v57  ;;  %15673 = vmatprep.subr.mxu0 %v13715_v24  ;;  %v12614_v53 = vsel %vm5760_vm10, %v12611_v17, %v12613_v13  ;;  %v12837_v14 = vrot.slane %v19473_v32, 4  ;;  %v12950_v50 = vstv %s13733_s1  ;;  %v12969_v27 = vstv %s12968_s4 }
0x358b   :  { %15637 = vmatmul.mubr.msk.f32.gmra.mxu1 %vm161_vm0, %v12413_v47  ;;  %15657 = vmatprep.subr.mxu1 %v13708_v37  ;;  %v12836_v55 = vsel %vm6369_vm15, %v12834_v33, %v12835_v19 }
0x358c   :  { %15674 = vmatpush3.msra.mxu0 %v13715_v24  ;;  %15658 = vmatpush3.msra.mxu1 %v13708_v37  ;;  %v12838_v6 = vsel %vm6369_vm15, %v12835_v19, %v12837_v14  ;;  %v12941_v47 = vstv %s13690_s12 }
0x358d   :  { %15661 = vmatprep.mubr.msk.f32.mxu1 %vm161_vm0, %v12607_v63  ;;  %15676 = vmatmul.mubr.msk.f32.vlgmr.msra.gmra.mxu0 %vm161_vm0, %v12721_v3 }
0x358e   :  { %15659 = vmatprep.subr.mxu1 %v13707_v25  ;;  %15678 = vmatprep.mubr.msk.f32.mxu0 %vm161_vm0, %v12724_v42 }
0x358f   :  { %15660 = vmatpush3.msra.mxu1 %v13707_v25 }
0x3590   :  { %15662 = vmatmul.mubr.msk.f32.vlgmr.msra.gmra.mxu1 %vm161_vm0, %v12609_v21  ;;  %15681 = vmatprep.subr.mxu1 %v13726_v43 }
0x3591   :  { %15664 = vmatprep.mubr.msk.f32.mxu1 %vm161_vm0, %v12612_v12  ;;  %15679 = vmatmul.mubr.msk.f32.gmra.mxu0 %vm161_vm0, %v12726_v22  ;;  %v12974_v12 = vstv %s13732_s29 }
0x3592   :  { %15682 = vmatpush3.msra.mxu1 %v13726_v43 }
0x3593   :  { %15683 = vmatprep.subr.mxu1 %v13725_v30 }
0x3594   :  { %15684 = vmatpush3.msra.mxu1 %v13725_v30 }
0x3595   :  { %15665 = vmatmul.mubr.msk.f32.gmra.mxu1 %vm161_vm0, %v12614_v53  ;;  %15685 = vmatprep.subr.mxu1 %v13724_v41 }
0x3596   :  { %15686 = vmatpush3.msra.mxu1 %v13724_v41  ;;  %15689 = vmatprep.mubr.msk.f32.mxu1 %vm161_vm0, %v12831_v18 }
0x3597   :  { %15687 = vmatprep.subr.mxu1 %v13723_v59 }
0x3598   :  { %15688 = vmatpush3.msra.mxu1 %v13723_v59 }
0x3599   :  { %15690 = vmatmul.mubr.msk.f32.vlgmr.msra.gmra.mxu1 %vm161_vm0, %v12833_v56 }
0x359a   :  { %15692 = vmatprep.mubr.msk.f32.mxu1 %vm161_vm0, %v12836_v55 }
0x359d   :  { %15693 = vmatmul.mubr.msk.f32.gmra.mxu1 %vm161_vm0, %v12838_v6 }
0x3642   :  { %v15649_v26 = vpop.f32.mrf.mxu0 }
0x3644   :  { %v12586_v51 = vpop.f32.mrf.mxu0 }
0x3645   :  { %v15635_v58 = vpop.f32.mrf.mxu1 }
0x3646   :  { %v12592_v15 = vadd.f32 %v15649_v26, %v15635_v58 }
0x3647   :  { %v12493_v11 = vpop.f32.mrf.mxu1  ;;  %v15652_v44 = vpop.f32.mrf.mxu0 }
0x3648   :  { %v12587_v32 = vadd.f32 %v12586_v51, %v12493_v11 }
0x3649   :  { %v12596_v5 = vpop.f32.mrf.mxu0 }
0x364b   :  { %v15638_v61 = vpop.f32.mrf.mxu1 }
0x364c   :  { %v12602_v9 = vadd.f32 %v15652_v44, %v15638_v61 }
0x364d   :  { %v12503_v35 = vpop.f32.mrf.mxu1  ;;  %v15677_v48 = vpop.f32.mrf.mxu0 }
0x364e   :  { %v12597_v40 = vadd.f32 %v12596_v5, %v12503_v35 }
0x364f   :  { %v12806_v28 = vpop.f32.mrf.mxu0 }
0x3650   :  { %v15663_v20 = vpop.f32.mrf.mxu1 }
0x3651   :  { %v12714_v1 = vadd.f32 %v15663_v20, %v12592_v15  ;;  %v15680_v24 = vpop.f32.mrf.mxu0 }
0x3652   :  { %v12694_v46 = vpop.f32.mrf.mxu1 }
0x3653   :  { %v12713_v57 = vadd.f32 %v12694_v46, %v12587_v32  ;;  %v12826_v45 = vadd.f32 %v15677_v48, %v12714_v1  ;;  %v12816_v3 = vpop.f32.mrf.mxu0 }
0x3655   :  { %v15666_v54 = vpop.f32.mrf.mxu1  ;;  %v12825_v2 = vadd.f32 %v12806_v28, %v12713_v57 }
0x3656   :  { %v12716_v39 = vadd.f32 %v15666_v54, %v12602_v9 }
0x3657   :  { %v12704_v10 = vpop.f32.mrf.mxu1 }
0x3658   :  { %v12715_v37 = vadd.f32 %v12704_v10, %v12597_v40  ;;  %v12828_v63 = vadd.f32 %v15680_v24, %v12716_v39 }
0x3659   :  { %v15691_v31 = vpop.f32.mrf.mxu1 }
0x365a   :  { %v12938_v38 = vadd.f32 %v15691_v31, %v12826_v45  ;;  %v12827_v7 = vadd.f32 %v12816_v3, %v12715_v37 }
0x365b   :  { %v12918_v62 = vpop.f32.mrf.mxu1 }
0x365c   :  { %v12943_v29 = vadd.f32 %v12941_v47, %v12938_v38  ;;  %v12937_v25 = vadd.f32 %v12918_v62, %v12825_v2 }
0x365d   :  { %v15694_v17 = vpop.f32.mrf.mxu1 }
0x365e   :  { %v12952_v36 = vsub.f32 %v12943_v29, %v12950_v50  ;;  %v12942_v42 = vadd.f32 %v12941_v47, %v12937_v25  ;;  %v12940_v43 = vadd.f32 %v15694_v17, %v12828_v63 }
0x365f   :  { %v12928_v21 = vpop.f32.mrf.mxu1 }
0x3660   :  { %v12951_v22 = vsub.f32 %v12942_v42, %v12950_v50  ;;  %v12971_v30 = vmul.f32 %v12969_v27, %v12952_v36  ;;  %v12945_v23 = vadd.f32 %v12941_v47, %v12940_v43  ;;  %v12939_v8 = vadd.f32 %v12928_v21, %v12827_v7 }
0x3661   :  { %v19662_v43 = vsub.s32 2, %v19659_v0 }
0x3662   :  { %v12970_v13 = vmul.f32 %v12969_v27, %v12951_v22  ;;  %v12954_v41 = vsub.f32 %v12945_v23, %v12950_v50  ;;  %v12944_v53 = vadd.f32 %v12941_v47, %v12939_v8  ;;  %v12976_v59 = vadd.f32 %v12974_v12, %v12971_v30 }
0x3663   :  { %v13042_v7 = vrot.slane %v19314_v60, %v19662_v43  ;;  %v19663_v22 = vsub.s32 3, %v19659_v0 }
0x3664   :  { %v12973_v18 = vmul.f32 %v12969_v27, %v12954_v41  ;;  %v12953_v33 = vsub.f32 %v12944_v53, %v12950_v50  ;;  %v12980_v19 = vmax.f32 %v12976_v59, 0.0  ;;  %v12975_v52 = vadd.f32 %v12974_v12, %v12970_v13 }
0x3665   :  { %v13050_v30 = vrot.slane %v19314_v60, %v19663_v22 }
0x3666   :  { %v12972_v56 = vmul.f32 %v12969_v27, %v12953_v33  ;;  %v12984_v55 = vadd.f32 %v12980_v19, %v19349_v49  ;;  %v12979_v14 = vmax.f32 %v12975_v52, 0.0  ;;  %v12978_v6 = vadd.f32 %v12974_v12, %v12973_v18 }
0x3668   :  { %v12990_v26 = vsel %vm161_vm0, %v12984_v55, 0.0  ;;  %v12983_v51 = vadd.f32 %v12979_v14, %v19329_v16  ;;  %v12982_v58 = vmax.f32 %v12978_v6, 0.0  ;;  %v12977_v11 = vadd.f32 %v12974_v12, %v12972_v56 }
0x3669   :  { %12991 = vadd.xlane.f32.xlu0 %v12990_v26 }
0x366a   :  { %v12987_v44 = vsel %vm161_vm0, %v12983_v51, 0.0  ;;  %v12986_v61 = vadd.f32 %v12982_v58, %v19388_v34  ;;  %v12981_v5 = vmax.f32 %v12977_v11, 0.0 }
0x366b   :  { %12988 = vadd.xlane.f32.xlu1 %v12987_v44 }
0x366c   :  { %v12996_v35 = vsel %vm161_vm0, %v12986_v61, 0.0  ;;  %v12985_v20 = vadd.f32 %v12981_v5, %v19381_v4 }
0x366d   :  { %12997 = vadd.xlane.f32.xlu0 %v12996_v35 }
0x366e   :  { %v12993_v49 = vsel %vm161_vm0, %v12985_v20, 0.0 }
0x366f   :  { %12994 = vadd.xlane.f32.xlu1 %v12993_v49 }
0x36f2   :  { %v12992_v48 = vpop.xlane.xlu0 %12991 }
0x36f3   :  { %v13000_v15 = vmul.f32 0.03125, %v12992_v48 }
0x36f4   :  { %v12989_v16 = vpop.xlane.xlu1 %12988 }
0x36f5   :  { %v13004_v46 = vsub.f32 %v12984_v55, %v13000_v15  ;;  %v12999_v32 = vmul.f32 0.03125, %v12989_v16 }
0x36f6   :  { %v12998_v1 = vpop.xlane.xlu0 %12997 }
0x36f7   :  { %v13003_v28 = vsub.f32 %v12983_v51, %v12999_v32  ;;  %v13002_v54 = vmul.f32 0.03125, %v12998_v1  ;;  %v13008_v9 = vmul.f32 %v13004_v46, %v13004_v46 }
0x36f8   :  { %v12995_v34 = vpop.xlane.xlu1 %12994 }
0x36f9   :  { %v13006_v57 = vsub.f32 %v12986_v61, %v13002_v54  ;;  %v13001_v10 = vmul.f32 0.03125, %v12995_v34  ;;  %v13014_v40 = vsel %vm161_vm0, %v13008_v9, 0.0  ;;  %v13007_v39 = vmul.f32 %v13003_v28, %v13003_v28 }
0x36fa   :  { %13015 = vadd.xlane.f32.xlu0 %v13014_v40 }
0x36fb   :  { %v13005_v4 = vsub.f32 %v12985_v20, %v13001_v10  ;;  %v13011_v45 = vsel %vm161_vm0, %v13007_v39, 0.0  ;;  %v13010_v24 = vmul.f32 %v13006_v57, %v13006_v57 }
0x36fc   :  { %13012 = vadd.xlane.f32.xlu1 %v13011_v45 }
0x36fd   :  { %v13020_v31 = vsel %vm161_vm0, %v13010_v24, 0.0  ;;  %v13009_v47 = vmul.f32 %v13005_v4, %v13005_v4 }
0x36fe   :  { %13021 = vadd.xlane.f32.xlu0 %v13020_v31 }
0x36ff   :  { %v13017_v37 = vsel %vm161_vm0, %v13009_v47, 0.0 }
0x3700   :  { %13018 = vadd.xlane.f32.xlu1 %v13017_v37 }
0x3783   :  { %v13016_v38 = vpop.xlane.xlu0 %13015 }
0x3784   :  { %v13024_v2 = vmul.f32 0.03125, %v13016_v38 }
0x3785   :  { %v13013_v50 = vpop.xlane.xlu1 %13012 }
0x3786   :  { %v13028_v62 = vadd.f32 1e-05, %v13024_v2  ;;  %v13023_v29 = vmul.f32 0.03125, %v13013_v50 }
0x3787   :  { %v13022_v25 = vpop.xlane.xlu0 %13021 }
0x3788   :  { %16181 = vrsqrt.f32 %v13028_v62  ;;  %v13027_v63 = vadd.f32 1e-05, %v13023_v29  ;;  %v13026_v3 = vmul.f32 0.03125, %v13022_v25 }
0x3789   :  { %v13019_v27 = vpop.xlane.xlu1 %13018 }
0x378a   :  { %16183 = vrsqrt.f32 %v13027_v63  ;;  %v13030_v17 = vadd.f32 1e-05, %v13026_v3  ;;  %v13025_v36 = vmul.f32 0.03125, %v13019_v27 }
0x378c   :  { %16185 = vrsqrt.f32 %v13030_v17  ;;  %v13029_v42 = vadd.f32 1e-05, %v13025_v36 }
0x378e   :  { %16187 = vrsqrt.f32 %v13029_v42 }
0x3795   :  { %v16182_v21 = vpop.eup %16181 }
0x3796   :  { %v13036_v12 = vmul.f32 %v16182_v21, %v13004_v46 }
0x3797   :  { %v16184_v23 = vpop.eup %16183 }
0x3798   :  { %v13035_v8 = vmul.f32 %v16184_v23, %v13003_v28  ;;  %v13044_v13 = vmul.f32 %v13042_v7, %v13036_v12 }
0x3799   :  { %v16186_v41 = vpop.eup %16185 }
0x379a   :  { %v13038_v53 = vmul.f32 %v16186_v41, %v13006_v57  ;;  %v13043_v59 = vmul.f32 %v13042_v7, %v13035_v8  ;;  %v13052_v18 = vadd.f32 %v13050_v30, %v13044_v13 }
0x379b   :  { %v16188_v33 = vpop.eup %16187 }
0x379c   :  { %v13037_v19 = vmul.f32 %v16188_v33, %v13005_v4  ;;  %v13046_v52 = vmul.f32 %v13042_v7, %v13038_v53  ;;  %v13051_v56 = vadd.f32 %v13050_v30, %v13043_v59  ;;  %13056 = vst.msk [vmem:[#allocation13 + $0x8] sm:$0xff] %vm161_vm0, %v13052_v18 }
0x379e   :  { %v13045_v55 = vmul.f32 %v13042_v7, %v13037_v19  ;;  %v13054_v14 = vadd.f32 %v13050_v30, %v13046_v52  ;;  %13055 = vst.msk [vmem:[#allocation13] sm:$0xff] %vm161_vm0, %v13051_v56 }
0x37a0   :  { %v13053_v60 = vadd.f32 %v13050_v30, %v13045_v55  ;;  %13058 = vst.msk [vmem:[#allocation13 + $0x18] sm:$0xff] %vm161_vm0, %v13054_v14 }
0x37a2   :  { %13057 = vst.msk [vmem:[#allocation13 + $0x10] sm:$0xff] %vm161_vm0, %v13053_v60 }
0x37a3   :  { %16314 = shalt.err (!%p16311_p1)
}
0x37a4   :  { %s19664_s10 = smov 8   ;;  %s19665_s20 = smov 128  }
0x37a5   :  { %13070 = dma.vmem_to_hbm [thread:$0]  %s13065_s0, 512, %s19612_s14, [#allocation4], %s19665_s20, %s19665_s20, %s19664_s10  }
0x37a6   :  { %16331 = dma.done.wait [#allocation4], 512  }
0x37a7   :  { %16332 = vsyncadd [#allocation4], 4294966784 }
0x37a8   :  { %13074 = vsyncpa [#allocation3], 1 }
0x37a9   :  { %13075 = vsyncpa [#allocation7], 1 }
0x37aa   :  { %13076 = vsyncpa [#allocation10], 1 }
0x37ab   :  { %13077 = vsyncpa [#allocation4], 1 }
0x37ac   :  { %13078 = vsyncpa [#allocation5], 1 }

</bundles_post_ra>
